<compile_context>
chip_gen: v6e
topology: v6e:2x2x1
jax: 0.10.0
libtpu: 0.0.40
codegen_flags: <defaults>
</compile_context>

<pallas_src>
import math
import functools

import jax
import jax.numpy as jnp
from jax import lax
from jax.experimental import pallas as pl
from jax.experimental.pallas import tpu as pltpu

_LN_EPS = 1e-5
_NEG = -1e9


# ----------------------------------------------------------------------------
# Generation-aware sizing helpers
# ----------------------------------------------------------------------------

def _vmem_budget_bytes():
    """~75% of physical VMEM (v5e/v6e: 128 MiB, v7x: 64 MiB), with fallback."""
    cap = 64 << 20
    try:
        info = pltpu.get_tpu_info()
        cap = int(getattr(info, "vmem_capacity_bytes", cap))
    except Exception:
        pass
    return max(16 << 20, min(int(cap * 3 // 4), 96 << 20))


_VMEM_BUDGET = _vmem_budget_bytes()


def _compiler_params(dims):
    return pltpu.CompilerParams(dimension_semantics=dims,
                                vmem_limit_bytes=_VMEM_BUDGET)


def _probe_single_buffering():
    """Check pipeline_mode=pl.Buffered(1) is supported by this jax/libtpu."""
    try:
        def _k(a_ref, w_ref, o_ref):
            o_ref[...] = a_ref[...] + w_ref[...]
        f = pl.pallas_call(
            _k,
            out_shape=jax.ShapeDtypeStruct((16, 128), jnp.float32),
            grid=(2,),
            in_specs=[
                pl.BlockSpec((8, 128), lambda i: (i, 0)),
                pl.BlockSpec((8, 128), lambda i: (0, 0),
                             pipeline_mode=pl.Buffered(1)),
            ],
            out_specs=pl.BlockSpec((8, 128), lambda i: (i, 0)),
        )
        jax.block_until_ready(jax.jit(f)(jnp.zeros((16, 128), jnp.float32),
                                         jnp.zeros((8, 128), jnp.float32)))
        return True
    except Exception:
        return False


_SINGLE_BUFFER_WEIGHTS = _probe_single_buffering()


def _const_spec(shape):
    """BlockSpec for a grid-invariant operand; single-buffered when supported
    (constant index_map, so double-buffering would only double VMEM)."""
    nd = len(shape)
    idx = lambda *_: (0,) * nd
    if _SINGLE_BUFFER_WEIGHTS:
        return pl.BlockSpec(shape, idx, pipeline_mode=pl.Buffered(1))
    return pl.BlockSpec(shape, idx)


def _divisor_tile(total, unit, target):
    """Largest multiple-of-`unit` tile <= target that divides `total` (else total)."""
    if total <= target:
        return total
    if total % unit:
        return total
    t = max(unit, (min(target, total) // unit) * unit)
    while total % t:
        t -= unit
    return t


def _row_tile(m, row_bytes):
    """Row tile: multiple of 8, divides m, working set within ~1/4 of the VMEM
    budget, and >= 2 tiles when possible so the parallel grid axis has real
    work (v7x: 2 TensorCores)."""
    if m % 8:
        return m
    budget_rows = max(8, int((_VMEM_BUDGET // 4) // max(row_bytes, 1)))
    tm = _divisor_tile(m, 8, min(256, budget_rows))
    if tm == m and m >= 16:
        tm = _divisor_tile(m, 8, m // 2)
    return tm


def _q_tile(sq, sk):
    """Query-row tile for attention (bounds the resident (tq, Sk) scores)."""
    cap = max(8, int((_VMEM_BUDGET // 8) // max(4 * sk, 1)))
    return _divisor_tile(sq, 8, min(256, cap))


def _dff_tile(d, dff):
    """FFN hidden-dim tile (keeps the w1/w2 slices within ~1/4 of the budget)."""
    cap = max(128, int((_VMEM_BUDGET // 4) // max(8 * d, 1)))
    return _divisor_tile(dff, 128, min(2048, cap))


def _class_tile(c, d):
    """Class-dim tile for the tied-embedding head (bf16 (tc, D) tile, dbl-buf)."""
    cap = max(128, int((_VMEM_BUDGET // 4) // max(4 * d, 1)))
    return _divisor_tile(c, 128, min(2048, cap))


# ----------------------------------------------------------------------------
# Fused multi-head attention + residual + LayerNorm
# ----------------------------------------------------------------------------

def _attn_ln_core(xq, xkv, bias,
                  wq_ref, wk_ref, wv_ref, wo_ref,
                  bq_ref, bk_ref, bv_ref, bo_ref,
                  g_ref, beta_ref, num_heads, scale):
    """MHA + output projection + residual + post-LN for one query tile.

    Heads are pre-split in the weight layout (H, D, dk) / (H, dk, D), so every
    matmul contracts only over its own head's dk columns -- no redundant
    full-width MXU work and no in-kernel reshape / transpose / lane masking.
    """
    xq_b = xq.astype(jnp.bfloat16)
    xkv_b = xkv.astype(jnp.bfloat16)
    out = None
    for h in range(num_heads):
        q = jnp.dot(xq_b, wq_ref[h], preferred_element_type=jnp.float32) + bq_ref[h]
        k = jnp.dot(xkv_b, wk_ref[h], preferred_element_type=jnp.float32) + bk_ref[h]
        v = jnp.dot(xkv_b, wv_ref[h], preferred_element_type=jnp.float32) + bv_ref[h]
        s = lax.dot_general((q * scale).astype(jnp.bfloat16), k.astype(jnp.bfloat16),
                            (((1,), (1,)), ((), ())),
                            preferred_element_type=jnp.float32)      # (tq, Sk)
        s = s + bias
        s = s - jnp.max(s, axis=-1, keepdims=True)
        p = jnp.exp(s)
        p = p * pl.reciprocal(jnp.sum(p, axis=-1, keepdims=True), approx=True)
        ah = jnp.dot(p.astype(jnp.bfloat16), v.astype(jnp.bfloat16),
                     preferred_element_type=jnp.float32)             # (tq, dk)
        oh = jnp.dot(ah.astype(jnp.bfloat16), wo_ref[h],
                     preferred_element_type=jnp.float32)             # (tq, D)
        out = oh if out is None else out + oh
    out = out + bo_ref[...]

    # residual + post-LN (f32 VPU math).
    y = xq + out
    mu = jnp.mean(y, axis=-1, keepdims=True)
    var = jnp.mean((y - mu) * (y - mu), axis=-1, keepdims=True)
    return ((y - mu) * lax.rsqrt(var + _LN_EPS)) * g_ref[...] + beta_ref[...]


def _mha_self_ln_kernel(lens_ref, x_ref,
                        wq_ref, wk_ref, wv_ref, wo_ref,
                        bq_ref, bk_ref, bv_ref, bo_ref,
                        g_ref, beta_ref, o_ref,
                        *, num_heads, scale, tq, nq, causal):
    b = pl.program_id(0)
    x = x_ref[0]                                   # (S, D) f32 -- K/V source
    if nq == 1:
        q_start = 0
        xq = x
    else:
        q_start = pl.multiple_of(pl.program_id(1) * tq, tq)
        xq = x_ref[0, pl.ds(q_start, tq), :]       # (tq, D) query tile
    sk = x.shape[0]

    # Mask built in-kernel (never DMA'd): key padding from SMEM lengths,
    # optionally AND'ed with the causal constraint.
    col = lax.broadcasted_iota(jnp.int32, (tq, sk), 1)
    keep = col < lens_ref[b]
    if causal:
        row = q_start + lax.broadcasted_iota(jnp.int32, (tq, sk), 0)
        keep = jnp.logical_and(keep, col <= row)
    bias = jnp.where(keep, 0.0, _NEG)

    o_ref[0] = _attn_ln_core(xq, x, bias, wq_ref, wk_ref, wv_ref, wo_ref,
                             bq_ref, bk_ref, bv_ref, bo_ref, g_ref, beta_ref,
                             num_heads, scale)


def _mha_cross_ln_kernel(lens_ref, xq_ref, xkv_ref,
                         wq_ref, wk_ref, wv_ref, wo_ref,
                         bq_ref, bk_ref, bv_ref, bo_ref,
                         g_ref, beta_ref, o_ref, *, num_heads, scale):
    b = pl.program_id(0)
    xq = xq_ref[0]                                 # (tq, D)
    xkv = xkv_ref[0]                               # (Sk, D)
    tq, sk = xq.shape[0], xkv.shape[0]
    col = lax.broadcasted_iota(jnp.int32, (tq, sk), 1)
    bias = jnp.where(col < lens_ref[b], 0.0, _NEG)
    o_ref[0] = _attn_ln_core(xq, xkv, bias, wq_ref, wk_ref, wv_ref, wo_ref,
                             bq_ref, bk_ref, bv_ref, bo_ref, g_ref, beta_ref,
                             num_heads, scale)


def _attn_weight_specs(num_heads, d, dk):
    return [
        _const_spec((num_heads, d, dk)),   # wq
        _const_spec((num_heads, d, dk)),   # wk
        _const_spec((num_heads, d, dk)),   # wv
        _const_spec((num_heads, dk, d)),   # wo
        _const_spec((num_heads, 1, dk)),   # bq
        _const_spec((num_heads, 1, dk)),   # bk
        _const_spec((num_heads, 1, dk)),   # bv
        _const_spec((1, d)),               # bo
        _const_spec((1, d)),               # ln gamma
        _const_spec((1, d)),               # ln beta
    ]


def mha_self_ln_block(x, lens, attn_p, ln_p, num_heads, *, causal):
    """Fused self-attention + residual + LN.  Single activation input serves
    both the query tile (sliced in-kernel) and the full-sequence K/V."""
    B, S, D = x.shape
    assert D % num_heads == 0
    dk = D // num_heads
    scale = 1.0 / math.sqrt(dk)
    tq = _q_tile(S, S)
    nq = S // tq
    kern = functools.partial(_mha_self_ln_kernel, num_heads=num_heads,
                             scale=scale, tq=tq, nq=nq, causal=causal)
    grid_spec = pltpu.PrefetchScalarGridSpec(
        num_scalar_prefetch=1,
        grid=(B, nq),
        in_specs=[pl.BlockSpec((1, S, D), lambda b, q, *_: (b, 0, 0))]
                 + _attn_weight_specs(num_heads, D, dk),
        out_specs=pl.BlockSpec((1, tq, D), lambda b, q, *_: (b, q, 0)),
    )
    return pl.pallas_call(
        kern,
        out_shape=jax.ShapeDtypeStruct((B, S, D), jnp.float32),
        grid_spec=grid_spec,
        compiler_params=_compiler_params(("parallel", "parallel")),
    )(lens, x,
      attn_p["wq"], attn_p["wk"], attn_p["wv"], attn_p["wo"],
      attn_p["bq"], attn_p["bk"], attn_p["bv"], attn_p["bo"],
      ln_p["g"], ln_p["b"])


def mha_cross_ln_block(x_q, x_kv, lens, attn_p, ln_p, num_heads):
    """Fused cross-attention + residual + LN (query tiled, K/V per batch)."""
    B, Sq, D = x_q.shape
    Sk = x_kv.shape[1]
    assert D % num_heads == 0
    dk = D // num_heads
    scale = 1.0 / math.sqrt(dk)
    tq = _q_tile(Sq, Sk)
    nq = Sq // tq
    kern = functools.partial(_mha_cross_ln_kernel, num_heads=num_heads, scale=scale)
    grid_spec = pltpu.PrefetchScalarGridSpec(
        num_scalar_prefetch=1,
        grid=(B, nq),
        in_specs=[pl.BlockSpec((1, tq, D), lambda b, q, *_: (b, q, 0)),
                  pl.BlockSpec((1, Sk, D), lambda b, q, *_: (b, 0, 0))]
                 + _attn_weight_specs(num_heads, D, dk),
        out_specs=pl.BlockSpec((1, tq, D), lambda b, q, *_: (b, q, 0)),
    )
    return pl.pallas_call(
        kern,
        out_shape=jax.ShapeDtypeStruct((B, Sq, D), jnp.float32),
        grid_spec=grid_spec,
        compiler_params=_compiler_params(("parallel", "parallel")),
    )(lens, x_q, x_kv,
      attn_p["wq"], attn_p["wk"], attn_p["wv"], attn_p["wo"],
      attn_p["bq"], attn_p["bk"], attn_p["bv"], attn_p["bo"],
      ln_p["g"], ln_p["b"])


# ----------------------------------------------------------------------------
# Fused FFN + residual + LayerNorm (row-parallel, Dff-tiled accumulation)
# ----------------------------------------------------------------------------

def _ffn_ln_kernel(x_ref, w1_ref, b1_ref, w2_ref, b2_ref, g_ref, beta_ref,
                   o_ref, acc_ref):
    k = pl.program_id(1)

    @pl.when(k == 0)
    def _():
        acc_ref[...] = jnp.zeros_like(acc_ref)

    x = x_ref[...]                                              # (TM, D) f32
    h = jnp.dot(x.astype(jnp.bfloat16), w1_ref[...],
                preferred_element_type=jnp.float32) + b1_ref[...]
    h = jnp.maximum(h, 0.0)                                     # ReLU (exact per Dff chunk)
    acc_ref[...] += jnp.dot(h.astype(jnp.bfloat16), w2_ref[...],
                            preferred_element_type=jnp.float32)

    @pl.when(k == pl.num_programs(1) - 1)
    def _():
        y = x + acc_ref[...] + b2_ref[...]
        mu = jnp.mean(y, axis=-1, keepdims=True)
        var = jnp.mean((y - mu) * (y - mu), axis=-1, keepdims=True)
        o_ref[...] = ((y - mu) * lax.rsqrt(var + _LN_EPS)) * g_ref[...] + beta_ref[...]


def ffn_ln_block(x, ffn_p, ln_p):
    B, S, D = x.shape
    Dff = ffn_p["w1"].shape[1]
    M = B * S
    tdff = _dff_tile(D, Dff)
    nk = Dff // tdff
    tm = _row_tile(M, 4 * (3 * D + tdff))
    x2d = x.reshape(M, D)
    out = pl.pallas_call(
        _ffn_ln_kernel,
        out_shape=jax.ShapeDtypeStruct((M, D), jnp.float32),
        grid=(M // tm, nk),
        in_specs=[
            pl.BlockSpec((tm, D), lambda i, k: (i, 0)),
            pl.BlockSpec((D, tdff), lambda i, k: (0, k)),
            pl.BlockSpec((1, tdff), lambda i, k: (0, k)),
            pl.BlockSpec((tdff, D), lambda i, k: (k, 0)),
            _const_spec((1, D)),
            _const_spec((1, D)),
            _const_spec((1, D)),
        ],
        out_specs=pl.BlockSpec((tm, D), lambda i, k: (i, 0)),
        scratch_shapes=[pltpu.VMEM((tm, D), jnp.float32)],
        compiler_params=_compiler_params(("parallel", "arbitrary")),
    )(x2d, ffn_p["w1"], ffn_p["b1"], ffn_p["w2"], ffn_p["b2"],
      ln_p["g"], ln_p["b"])
    return out.reshape(B, S, D)


# ----------------------------------------------------------------------------
# Tied-embedding output head + log-softmax (class-dim tiled, streaming LSE)
# ----------------------------------------------------------------------------

def _output_head_kernel(x_ref, e_ref, o_ref, *, tc, nc):
    x = x_ref[...].astype(jnp.bfloat16)                         # (TM, D)
    # Contract on the feature dim of both operands: no in-kernel transpose.
    logits = lax.dot_general(x, e_ref[...], (((1,), (1,)), ((), ())),
                             preferred_element_type=jnp.float32)  # (TM, tc)
    if nc == 1:
        z = logits - jnp.max(logits, axis=-1, keepdims=True)
        lse = jnp.log(jnp.sum(jnp.exp(z), axis=-1, keepdims=True))
        o_ref[...] = z - lse
    else:
        c = pl.program_id(1)
        start = pl.multiple_of(c * tc, tc)
        o_ref[:, pl.ds(start, tc)] = logits                     # stash raw logits

        @pl.when(c == nc - 1)
        def _():
            full = o_ref[...]                                   # (TM, C) f32
            z = full - jnp.max(full, axis=-1, keepdims=True)
            lse = jnp.log(jnp.sum(jnp.exp(z), axis=-1, keepdims=True))
            o_ref[...] = z - lse


def output_head(x, emb_bf16):
    B, S, D = x.shape
    C = emb_bf16.shape[0]
    M = B * S
    tc = _class_tile(C, D)
    nc = C // tc
    tm = _row_tile(M, 4 * (D + C))
    x2d = x.reshape(M, D)
    kern = functools.partial(_output_head_kernel, tc=tc, nc=nc)
    out = pl.pallas_call(
        kern,
        out_shape=jax.ShapeDtypeStruct((M, C), jnp.float32),
        grid=(M // tm, nc),
        in_specs=[
            pl.BlockSpec((tm, D), lambda i, c: (i, 0)),
            pl.BlockSpec((tc, D), lambda i, c: (c, 0)),
        ],
        out_specs=pl.BlockSpec((tm, C), lambda i, c: (i, 0)),
        compiler_params=_compiler_params(("parallel", "arbitrary")),
    )(x2d, emb_bf16)
    return out.reshape(B, S, C)


# ----------------------------------------------------------------------------
# Model glue
# ----------------------------------------------------------------------------

def encoder_layer(p, x, src_lens, heads):
    x = mha_self_ln_block(x, src_lens, p["attn"], p["ln1"], heads, causal=False)
    x = ffn_ln_block(x, p["ffn"], p["ln2"])
    return x


def decoder_layer(p, y, enc_out, src_lens, dec_lens, heads):
    y = mha_self_ln_block(y, dec_lens, p["self_attn"], p["ln1"], heads, causal=True)
    y = mha_cross_ln_block(y, enc_out, src_lens, p["cross_attn"], p["ln2"], heads)
    y = ffn_ln_block(y, p["ffn"], p["ln3"])
    return y


def positional_encoding(seq_len, d_model):
    pos = jnp.arange(seq_len, dtype=jnp.float32)[:, None]
    i = jnp.arange(d_model, dtype=jnp.float32)[None, :]
    angle = pos / jnp.power(10000.0, (2.0 * jnp.floor(i / 2.0)) / d_model)
    pe = jnp.where((jnp.arange(d_model) % 2) == 0, jnp.sin(angle), jnp.cos(angle))
    return pe.astype(jnp.float32)


def supertagger_forward(params, encoder_input, decoder_input,
                        encoder_mask, decoder_mask, pe_enc, pe_dec,
                        *, enc_heads, dec_heads):
    B, S_enc, D = encoder_input.shape
    S_dec = decoder_input.shape[1]

    # Masks are never DMA'd into the kernels.  The (B, S_dec, S_enc) cross mask
    # only encodes source padding, so reduce it to per-batch source lengths
    # that travel via scalar prefetch (SMEM); the decoder mask (lower
    # triangular in the reference) is rebuilt in-kernel from iota.
    # TODO(synk): arbitrary (non-causal / per-target-row) masks unsupported.
    src_lens = jnp.sum((encoder_mask[:, 0, :] > 0).astype(jnp.int32), axis=-1)
    dec_lens = jnp.full((B,), S_dec, jnp.int32)
    del decoder_mask

    x = encoder_input + pe_enc[None]
    for lp in params["encoder"]:
        x = encoder_layer(lp, x, src_lens, enc_heads)
    enc_out = x

    y = decoder_input + pe_dec[None]
    for lp in params["decoder"]:
        y = decoder_layer(lp, y, enc_out, src_lens, dec_lens, dec_heads)

    return output_head(y, params["embedding_bf16"])   # (B, S_dec, C) log-probs


# ----------------------------------------------------------------------------
# Deterministic parameter initialization
#   Matmul weights are stored in bf16 (MXU inputs) with heads pre-split;
#   biases / LN params / the gather-side embedding stay f32.
# ----------------------------------------------------------------------------

def _init_lin(key, din, dout):
    return 0.05 * jax.random.normal(key, (din, dout), jnp.float32)


def _init_ln(d):
    return {"g": jnp.ones((1, d), jnp.float32), "b": jnp.zeros((1, d), jnp.float32)}


def _split_out_cols(w, heads):
    # (D_in, D_out) -> (H, D_in, dk): head h owns output columns h*dk:(h+1)*dk
    d_in, d_out = w.shape
    dk = d_out // heads
    return jnp.transpose(w.reshape(d_in, heads, dk), (1, 0, 2))


def _init_attn(key, d, heads):
    ks = jax.random.split(key, 4)
    dk = d // heads
    wq = _split_out_cols(_init_lin(ks[0], d, d), heads).astype(jnp.bfloat16)
    wk = _split_out_cols(_init_lin(ks[1], d, d), heads).astype(jnp.bfloat16)
    wv = _split_out_cols(_init_lin(ks[2], d, d), heads).astype(jnp.bfloat16)
    # (D, D) -> (H, dk, D): head h owns input rows h*dk:(h+1)*dk of W_o
    wo = _init_lin(ks[3], d, d).reshape(heads, dk, d).astype(jnp.bfloat16)
    zb = jnp.zeros((heads, 1, dk), jnp.float32)
    return {"wq": wq, "wk": wk, "wv": wv, "wo": wo,
            "bq": zb, "bk": zb, "bv": zb,
            "bo": jnp.zeros((1, d), jnp.float32)}


def _init_ffn(key, d, dff):
    k1, k2 = jax.random.split(key)
    return {"w1": _init_lin(k1, d, dff).astype(jnp.bfloat16),
            "b1": jnp.zeros((1, dff), jnp.float32),
            "w2": _init_lin(k2, dff, d).astype(jnp.bfloat16),
            "b2": jnp.zeros((1, d), jnp.float32)}


def init_params(key, *, num_classes, d_model, d_intermediate,
                encoder_layers, decoder_layers, encoder_heads, decoder_heads):
    keys = jax.random.split(key, 1 + encoder_layers + decoder_layers)
    emb = 0.1 * jax.random.normal(keys[0], (num_classes, d_model), jnp.float32)
    enc = []
    for l in range(encoder_layers):
        k1, k2 = jax.random.split(keys[1 + l])
        enc.append({"attn": _init_attn(k1, d_model, encoder_heads),
                    "ln1": _init_ln(d_model),
                    "ffn": _init_ffn(k2, d_model, d_intermediate),
                    "ln2": _init_ln(d_model)})
    dec = []
    for l in range(decoder_layers):
        k1, k2, k3 = jax.random.split(keys[1 + encoder_layers + l], 3)
        dec.append({"self_attn": _init_attn(k1, d_model, decoder_heads),
                    "ln1": _init_ln(d_model),
                    "cross_attn": _init_attn(k2, d_model, decoder_heads),
                    "ln2": _init_ln(d_model),
                    "ffn": _init_ffn(k3, d_model, d_intermediate),
                    "ln3": _init_ln(d_model)})
    # f32 copy kept only for the decoder-input gather (F.embedding); the output
    # head consumes the pre-cast bf16 copy (halves HBM->VMEM traffic).
    return {"embedding_matrix": emb,
            "embedding_bf16": emb.astype(jnp.bfloat16),
            "encoder": enc, "decoder": dec}


# ----------------------------------------------------------------------------
# Driver
# ----------------------------------------------------------------------------

if __name__ == "__main__":
    # Small but lane/sublane-friendly shapes (D, C multiples of 128; S mult of 8).
    B, S_enc, S_dec = 2, 16, 16
    d_model, d_intermediate = 128, 256
    encoder_heads = decoder_heads = 4
    encoder_layers = decoder_layers = 2
    num_classes = 128

    key = jax.random.PRNGKey(0)
    k_par, k_enc, k_tok = jax.random.split(key, 3)

    params = init_params(k_par, num_classes=num_classes, d_model=d_model,
                         d_intermediate=d_intermediate,
                         encoder_layers=encoder_layers,
                         decoder_layers=decoder_layers,
                         encoder_heads=encoder_heads,
                         decoder_heads=decoder_heads)

    # encoder_input: already-embedded word vectors
    encoder_input = jax.random.normal(k_enc, (B, S_enc, d_model), jnp.float32)

    # decoder_input: F.embedding(batch_y, embedding_matrix) (f32 gather)
    decoder_tokens = jax.random.randint(k_tok, (B, S_dec), 0, num_classes)
    decoder_input = params["embedding_matrix"][decoder_tokens]

    # encoder_mask: (B, S_dec, S_enc), zero out padded source positions
    lens = jnp.array([S_enc, S_enc - 3], dtype=jnp.int32)
    col = jnp.arange(S_enc)[None, None, :]
    encoder_mask = (col < lens[:, None, None]).astype(jnp.float32)
    encoder_mask = jnp.broadcast_to(encoder_mask, (B, S_dec, S_enc))

    # decoder_mask: causal lower-triangular (B, S_dec, S_dec)
    decoder_mask = jnp.broadcast_to(
        jnp.tril(jnp.ones((S_dec, S_dec), jnp.float32))[None], (B, S_dec, S_dec))

    # positional encodings precomputed once (hoisted out of the forward pass)
    pe_enc = positional_encoding(S_enc, d_model)
    pe_dec = positional_encoding(S_dec, d_model)

    fwd = jax.jit(functools.partial(supertagger_forward,
                                    enc_heads=encoder_heads,
                                    dec_heads=decoder_heads))
    out = fwd(params, encoder_input, decoder_input,
              encoder_mask, decoder_mask, pe_enc, pe_dec)
    jax.block_until_ready(out)

    assert out.shape == (B, S_dec, num_classes)
    assert bool(jnp.all(jnp.isfinite(out)))
    # log-softmax rows sum to 1 in prob space
    assert bool(jnp.allclose(jnp.sum(jnp.exp(out), axis=-1), 1.0, atol=1e-3))
    print("KERNEL_OK")
</pallas_src>

<mosaic_0001>
module attributes {stable_mosaic.version = 11 : i64} {
  func.func @_k(%arg0: i32, %arg1: memref<8x128xf32, #tpu.memory_space<vmem>>, %arg2: memref<8x128xf32, #tpu.memory_space<vmem>>, %arg3: memref<8x128xf32, #tpu.memory_space<vmem>>) attributes {dimension_semantics = [#tpu.dimension_semantics<arbitrary>], iteration_bounds = array<i64: 2>, scalar_prefetch = 0 : i64, scratch_operands = 0 : i64, tpu.core_type = #tpu.core_type<tc>, window_params = [{transform_indices = @transform_0, window_bounds = array<i64: 8, 128>}, {pipeline_mode = #tpu.pipeline_mode<synchronous>, transform_indices = @transform_1, window_bounds = array<i64: 8, 128>}, {transform_indices = @transform_2, window_bounds = array<i64: 8, 128>}]} {
    %c0 = arith.constant 0 : index
    %c0_0 = arith.constant 0 : index
    %0 = vector.load %arg1[%c0, %c0_0] : memref<8x128xf32, #tpu.memory_space<vmem>>, vector<8x128xf32>
    %c0_1 = arith.constant 0 : index
    %c0_2 = arith.constant 0 : index
    %1 = vector.load %arg2[%c0_1, %c0_2] : memref<8x128xf32, #tpu.memory_space<vmem>>, vector<8x128xf32>
    %2 = arith.addf %0, %1 : vector<8x128xf32>
    %c0_3 = arith.constant 0 : index
    %c0_4 = arith.constant 0 : index
    %3 = vector.load %arg3[%c0_3, %c0_4] : memref<8x128xf32, #tpu.memory_space<vmem>>, vector<8x128xf32>
    tpu.vector_store %arg3[%c0_3, %c0_4], %2 {strides = array<i32>} : memref<8x128xf32, #tpu.memory_space<vmem>>, vector<8x128xf32>,
    return
  }
  func.func @transform_0(%arg0: i32) -> (i32, i32) {
    %c0_i32 = arith.constant 0 : i32
    %c0_i32_0 = arith.constant 0 : i32
    return %arg0, %c0_i32 : i32, i32
  }
  func.func @transform_1(%arg0: i32) -> (i32, i32) {
    %c0_i32 = arith.constant 0 : i32
    %c0_i32_0 = arith.constant 0 : i32
    %c0_i32_1 = arith.constant 0 : i32
    return %c0_i32, %c0_i32_0 : i32, i32
  }
  func.func @transform_2(%arg0: i32) -> (i32, i32) {
    %c0_i32 = arith.constant 0 : i32
    %c0_i32_0 = arith.constant 0 : i32
    return %arg0, %c0_i32 : i32, i32
  }
}

module attributes {stable_mosaic.version = 11 : i64} {
  func.func @_mha_self_ln_kernel(%arg0: i32, %arg1: i32, %arg2: memref<2xi32, #tpu.memory_space<smem>>, %arg3: memref<1x16x128xf32, #tpu.memory_space<vmem>>, %arg4: memref<4x128x32xbf16, #tpu.memory_space<vmem>>, %arg5: memref<4x128x32xbf16, #tpu.memory_space<vmem>>, %arg6: memref<4x128x32xbf16, #tpu.memory_space<vmem>>, %arg7: memref<4x32x128xbf16, #tpu.memory_space<vmem>>, %arg8: memref<4x1x32xf32, #tpu.memory_space<vmem>>, %arg9: memref<4x1x32xf32, #tpu.memory_space<vmem>>, %arg10: memref<4x1x32xf32, #tpu.memory_space<vmem>>, %arg11: memref<1x128xf32, #tpu.memory_space<vmem>>, %arg12: memref<1x128xf32, #tpu.memory_space<vmem>>, %arg13: memref<1x128xf32, #tpu.memory_space<vmem>>, %arg14: memref<1x16x128xf32, #tpu.memory_space<vmem>>) attributes {dimension_semantics = [#tpu.dimension_semantics<parallel>, #tpu.dimension_semantics<parallel>], iteration_bounds = array<i64: 2, 1>, scalar_prefetch = 1 : i64, scratch_operands = 0 : i64, tpu.core_type = #tpu.core_type<tc>, window_params = [{transform_indices = @transform_0, window_bounds = array<i64: 1, 16, 128>}, {pipeline_mode = #tpu.pipeline_mode<synchronous>, transform_indices = @transform_1, window_bounds = array<i64: 4, 128, 32>}, {pipeline_mode = #tpu.pipeline_mode<synchronous>, transform_indices = @transform_2, window_bounds = array<i64: 4, 128, 32>}, {pipeline_mode = #tpu.pipeline_mode<synchronous>, transform_indices = @transform_3, window_bounds = array<i64: 4, 128, 32>}, {pipeline_mode = #tpu.pipeline_mode<synchronous>, transform_indices = @transform_4, window_bounds = array<i64: 4, 32, 128>}, {pipeline_mode = #tpu.pipeline_mode<synchronous>, transform_indices = @transform_5, window_bounds = array<i64: 4, 1, 32>}, {pipeline_mode = #tpu.pipeline_mode<synchronous>, transform_indices = @transform_6, window_bounds = array<i64: 4, 1, 32>}, {pipeline_mode = #tpu.pipeline_mode<synchronous>, transform_indices = @transform_7, window_bounds = array<i64: 4, 1, 32>}, {pipeline_mode = #tpu.pipeline_mode<synchronous>, transform_indices = @transform_8, window_bounds = array<i64: 1, 128>}, {pipeline_mode = #tpu.pipeline_mode<synchronous>, transform_indices = @transform_9, window_bounds = array<i64: 1, 128>}, {pipeline_mode = #tpu.pipeline_mode<synchronous>, transform_indices = @transform_10, window_bounds = array<i64: 1, 128>}, {transform_indices = @transform_11, window_bounds = array<i64: 1, 16, 128>}]} {
    %c0 = arith.constant 0 : index
    %c0_0 = arith.constant 0 : index
    %c0_1 = arith.constant 0 : index
    %0 = vector.load %arg3[%c0, %c0_0, %c0_1] : memref<1x16x128xf32, #tpu.memory_space<vmem>>, vector<1x16x128xf32>
    %1 = vector.shape_cast %0 : vector<1x16x128xf32> to vector<16x128xf32>
    %2 = tpu.iota {dimensions = array<i32: 1>} : vector<16x16xi32>
    %3 = arith.index_cast %arg0 : i32 to index
    %4 = memref.load %arg2[%3] : memref<2xi32, #tpu.memory_space<smem>>
    %5 = vector.broadcast %4 : i32 to vector<16x16xi32>
    %6 = arith.cmpi slt, %2, %5 : vector<16x16xi32>
    %cst = arith.constant 0.000000e+00 : f32
    %cst_2 = arith.constant -1.000000e+09 : f32
    %7 = vector.broadcast %cst : f32 to vector<16x16xf32>
    %8 = vector.broadcast %cst_2 : f32 to vector<16x16xf32>
    %9 = arith.select %6, %7, %8 : vector<16x16xi1>, vector<16x16xf32>
    %10 = arith.truncf %1 : vector<16x128xf32> to vector<16x128xbf16>
    %11 = arith.truncf %1 : vector<16x128xf32> to vector<16x128xbf16>
    %c0_3 = arith.constant 0 : index
    %c0_4 = arith.constant 0 : index
    %c0_5 = arith.constant 0 : index
    %12 = vector.load %arg4[%c0_3, %c0_4, %c0_5] : memref<4x128x32xbf16, #tpu.memory_space<vmem>>, vector<1x128x32xbf16>
    %13 = vector.shape_cast %12 : vector<1x128x32xbf16> to vector<128x32xbf16>
    %cst_6 = arith.constant dense<0.000000e+00> : vector<16x32xf32>
    %14 = tpu.matmul %10, %13, %cst_6 {dimension_numbers = #tpu.dot_dimension_numbers<[1], [0], [0], [1], [0, 0, 1, 1], [], []>} : vector<16x128xbf16>, vector<128x32xbf16>, vector<16x32xf32> -> vector<16x32xf32>
    %c0_7 = arith.constant 0 : index
    %c0_8 = arith.constant 0 : index
    %c0_9 = arith.constant 0 : index
    %15 = vector.load %arg8[%c0_7, %c0_8, %c0_9] : memref<4x1x32xf32, #tpu.memory_space<vmem>>, vector<1x1x32xf32>
    %16 = vector.shape_cast %15 : vector<1x1x32xf32> to vector<1x32xf32>
    %17 = vector.broadcast %16 : vector<1x32xf32> to vector<16x32xf32>
    %18 = arith.addf %14, %17 : vector<16x32xf32>
    %c0_10 = arith.constant 0 : index
    %c0_11 = arith.constant 0 : index
    %c0_12 = arith.constant 0 : index
    %19 = vector.load %arg5[%c0_10, %c0_11, %c0_12] : memref<4x128x32xbf16, #tpu.memory_space<vmem>>, vector<1x128x32xbf16>
    %20 = vector.shape_cast %19 : vector<1x128x32xbf16> to vector<128x32xbf16>
    %cst_13 = arith.constant dense<0.000000e+00> : vector<16x32xf32>
    %21 = tpu.matmul %11, %20, %cst_13 {dimension_numbers = #tpu.dot_dimension_numbers<[1], [0], [0], [1], [0, 0, 1, 1], [], []>} : vector<16x128xbf16>, vector<128x32xbf16>, vector<16x32xf32> -> vector<16x32xf32>
    %c0_14 = arith.constant 0 : index
    %c0_15 = arith.constant 0 : index
    %c0_16 = arith.constant 0 : index
    %22 = vector.load %arg9[%c0_14, %c0_15, %c0_16] : memref<4x1x32xf32, #tpu.memory_space<vmem>>, vector<1x1x32xf32>
    %23 = vector.shape_cast %22 : vector<1x1x32xf32> to vector<1x32xf32>
    %24 = vector.broadcast %23 : vector<1x32xf32> to vector<16x32xf32>
    %25 = arith.addf %21, %24 : vector<16x32xf32>
    %c0_17 = arith.constant 0 : index
    %c0_18 = arith.constant 0 : index
    %c0_19 = arith.constant 0 : index
    %26 = vector.load %arg6[%c0_17, %c0_18, %c0_19] : memref<4x128x32xbf16, #tpu.memory_space<vmem>>, vector<1x128x32xbf16>
    %27 = vector.shape_cast %26 : vector<1x128x32xbf16> to vector<128x32xbf16>
    %cst_20 = arith.constant dense<0.000000e+00> : vector<16x32xf32>
    %28 = tpu.matmul %11, %27, %cst_20 {dimension_numbers = #tpu.dot_dimension_numbers<[1], [0], [0], [1], [0, 0, 1, 1], [], []>} : vector<16x128xbf16>, vector<128x32xbf16>, vector<16x32xf32> -> vector<16x32xf32>
    %c0_21 = arith.constant 0 : index
    %c0_22 = arith.constant 0 : index
    %c0_23 = arith.constant 0 : index
    %29 = vector.load %arg10[%c0_21, %c0_22, %c0_23] : memref<4x1x32xf32, #tpu.memory_space<vmem>>, vector<1x1x32xf32>
    %30 = vector.shape_cast %29 : vector<1x1x32xf32> to vector<1x32xf32>
    %31 = vector.broadcast %30 : vector<1x32xf32> to vector<16x32xf32>
    %32 = arith.addf %28, %31 : vector<16x32xf32>
    %cst_24 = arith.constant 0.176776692 : f32
    %33 = vector.broadcast %cst_24 : f32 to vector<16x32xf32>
    %34 = arith.mulf %18, %33 : vector<16x32xf32>
    %35 = arith.truncf %34 : vector<16x32xf32> to vector<16x32xbf16>
    %36 = arith.truncf %25 : vector<16x32xf32> to vector<16x32xbf16>
    %cst_25 = arith.constant dense<0.000000e+00> : vector<16x16xf32>
    %37 = tpu.matmul %35, %36, %cst_25 {dimension_numbers = #tpu.dot_dimension_numbers<[1], [1], [0], [0], [0, 0, 1, 0], [], []>} : vector<16x32xbf16>, vector<16x32xbf16>, vector<16x16xf32> -> vector<16x16xf32>
    %38 = arith.addf %37, %9 : vector<16x16xf32>
    %cst_26 = arith.constant dense<0xFF800000> : vector<16xf32>
    %39 = vector.multi_reduction <maximumf>, %38, %cst_26 [1] : vector<16x16xf32> to vector<16xf32>
    %40 = vector.shape_cast %39 : vector<16xf32> to vector<16x1xf32>
    %41 = vector.broadcast %40 : vector<16x1xf32> to vector<16x16xf32>
    %42 = arith.subf %38, %41 : vector<16x16xf32>
    %43 = math.exp %42 : vector<16x16xf32>
    %cst_27 = arith.constant dense<0.000000e+00> : vector<16xf32>
    %44 = vector.multi_reduction <add>, %43, %cst_27 [1] : vector<16x16xf32> to vector<16xf32>
    %45 = vector.shape_cast %44 : vector<16xf32> to vector<16x1xf32>
    %46 = tpu.reciprocal %45 {approx = true} : vector<16x1xf32> -> vector<16x1xf32>
    %47 = vector.broadcast %46 : vector<16x1xf32> to vector<16x16xf32>
    %48 = arith.mulf %43, %47 : vector<16x16xf32>
    %49 = arith.truncf %48 : vector<16x16xf32> to vector<16x16xbf16>
    %50 = arith.truncf %32 : vector<16x32xf32> to vector<16x32xbf16>
    %cst_28 = arith.constant dense<0.000000e+00> : vector<16x32xf32>
    %51 = tpu.matmul %49, %50, %cst_28 {dimension_numbers = #tpu.dot_dimension_numbers<[1], [0], [0], [1], [0, 0, 1, 1], [], []>} : vector<16x16xbf16>, vector<16x32xbf16>, vector<16x32xf32> -> vector<16x32xf32>
    %52 = arith.truncf %51 : vector<16x32xf32> to vector<16x32xbf16>
    %c0_29 = arith.constant 0 : index
    %c0_30 = arith.constant 0 : index
    %c0_31 = arith.constant 0 : index
    %53 = vector.load %arg7[%c0_29, %c0_30, %c0_31] : memref<4x32x128xbf16, #tpu.memory_space<vmem>>, vector<1x32x128xbf16>
    %54 = vector.shape_cast %53 : vector<1x32x128xbf16> to vector<32x128xbf16>
    %cst_32 = arith.constant dense<0.000000e+00> : vector<16x128xf32>
    %55 = tpu.matmul %52, %54, %cst_32 {dimension_numbers = #tpu.dot_dimension_numbers<[1], [0], [0], [1], [0, 0, 1, 1], [], []>} : vector<16x32xbf16>, vector<32x128xbf16>, vector<16x128xf32> -> vector<16x128xf32>
    %c1 = arith.constant 1 : index
    %c0_33 = arith.constant 0 : index
    %c0_34 = arith.constant 0 : index
    %56 = vector.load %arg4[%c1, %c0_33, %c0_34] : memref<4x128x32xbf16, #tpu.memory_space<vmem>>, vector<1x128x32xbf16>
    %57 = vector.shape_cast %56 : vector<1x128x32xbf16> to vector<128x32xbf16>
    %cst_35 = arith.constant dense<0.000000e+00> : vector<16x32xf32>
    %58 = tpu.matmul %10, %57, %cst_35 {dimension_numbers = #tpu.dot_dimension_numbers<[1], [0], [0], [1], [0, 0, 1, 1], [], []>} : vector<16x128xbf16>, vector<128x32xbf16>, vector<16x32xf32> -> vector<16x32xf32>
    %c1_36 = arith.constant 1 : index
    %c0_37 = arith.constant 0 : index
    %c0_38 = arith.constant 0 : index
    %59 = vector.load %arg8[%c1_36, %c0_37, %c0_38] : memref<4x1x32xf32, #tpu.memory_space<vmem>>, vector<1x1x32xf32>
    %60 = vector.shape_cast %59 : vector<1x1x32xf32> to vector<1x32xf32>
    %61 = vector.broadcast %60 : vector<1x32xf32> to vector<16x32xf32>
    %62 = arith.addf %58, %61 : vector<16x32xf32>
    %c1_39 = arith.constant 1 : index
    %c0_40 = arith.constant 0 : index
    %c0_41 = arith.constant 0 : index
    %63 = vector.load %arg5[%c1_39, %c0_40, %c0_41] : memref<4x128x32xbf16, #tpu.memory_space<vmem>>, vector<1x128x32xbf16>
    %64 = vector.shape_cast %63 : vector<1x128x32xbf16> to vector<128x32xbf16>
    %cst_42 = arith.constant dense<0.000000e+00> : vector<16x32xf32>
    %65 = tpu.matmul %11, %64, %cst_42 {dimension_numbers = #tpu.dot_dimension_numbers<[1], [0], [0], [1], [0, 0, 1, 1], [], []>} : vector<16x128xbf16>, vector<128x32xbf16>, vector<16x32xf32> -> vector<16x32xf32>
    %c1_43 = arith.constant 1 : index
    %c0_44 = arith.constant 0 : index
    %c0_45 = arith.constant 0 : index
    %66 = vector.load %arg9[%c1_43, %c0_44, %c0_45] : memref<4x1x32xf32, #tpu.memory_space<vmem>>, vector<1x1x32xf32>
    %67 = vector.shape_cast %66 : vector<1x1x32xf32> to vector<1x32xf32>
    %68 = vector.broadcast %67 : vector<1x32xf32> to vector<16x32xf32>
    %69 = arith.addf %65, %68 : vector<16x32xf32>
    %c1_46 = arith.constant 1 : index
    %c0_47 = arith.constant 0 : index
    %c0_48 = arith.constant 0 : index
    %70 = vector.load %arg6[%c1_46, %c0_47, %c0_48] : memref<4x128x32xbf16, #tpu.memory_space<vmem>>, vector<1x128x32xbf16>
    %71 = vector.shape_cast %70 : vector<1x128x32xbf16> to vector<128x32xbf16>
    %cst_49 = arith.constant dense<0.000000e+00> : vector<16x32xf32>
    %72 = tpu.matmul %11, %71, %cst_49 {dimension_numbers = #tpu.dot_dimension_numbers<[1], [0], [0], [1], [0, 0, 1, 1], [], []>} : vector<16x128xbf16>, vector<128x32xbf16>, vector<16x32xf32> -> vector<16x32xf32>
    %c1_50 = arith.constant 1 : index
    %c0_51 = arith.constant 0 : index
    %c0_52 = arith.constant 0 : index
    %73 = vector.load %arg10[%c1_50, %c0_51, %c0_52] : memref<4x1x32xf32, #tpu.memory_space<vmem>>, vector<1x1x32xf32>
    %74 = vector.shape_cast %73 : vector<1x1x32xf32> to vector<1x32xf32>
    %75 = vector.broadcast %74 : vector<1x32xf32> to vector<16x32xf32>
    %76 = arith.addf %72, %75 : vector<16x32xf32>
    %cst_53 = arith.constant 0.176776692 : f32
    %77 = vector.broadcast %cst_53 : f32 to vector<16x32xf32>
    %78 = arith.mulf %62, %77 : vector<16x32xf32>
    %79 = arith.truncf %78 : vector<16x32xf32> to vector<16x32xbf16>
    %80 = arith.truncf %69 : vector<16x32xf32> to vector<16x32xbf16>
    %cst_54 = arith.constant dense<0.000000e+00> : vector<16x16xf32>
    %81 = tpu.matmul %79, %80, %cst_54 {dimension_numbers = #tpu.dot_dimension_numbers<[1], [1], [0], [0], [0, 0, 1, 0], [], []>} : vector<16x32xbf16>, vector<16x32xbf16>, vector<16x16xf32> -> vector<16x16xf32>
    %82 = arith.addf %81, %9 : vector<16x16xf32>
    %cst_55 = arith.constant dense<0xFF800000> : vector<16xf32>
    %83 = vector.multi_reduction <maximumf>, %82, %cst_55 [1] : vector<16x16xf32> to vector<16xf32>
    %84 = vector.shape_cast %83 : vector<16xf32> to vector<16x1xf32>
    %85 = vector.broadcast %84 : vector<16x1xf32> to vector<16x16xf32>
    %86 = arith.subf %82, %85 : vector<16x16xf32>
    %87 = math.exp %86 : vector<16x16xf32>
    %cst_56 = arith.constant dense<0.000000e+00> : vector<16xf32>
    %88 = vector.multi_reduction <add>, %87, %cst_56 [1] : vector<16x16xf32> to vector<16xf32>
    %89 = vector.shape_cast %88 : vector<16xf32> to vector<16x1xf32>
    %90 = tpu.reciprocal %89 {approx = true} : vector<16x1xf32> -> vector<16x1xf32>
    %91 = vector.broadcast %90 : vector<16x1xf32> to vector<16x16xf32>
    %92 = arith.mulf %87, %91 : vector<16x16xf32>
    %93 = arith.truncf %92 : vector<16x16xf32> to vector<16x16xbf16>
    %94 = arith.truncf %76 : vector<16x32xf32> to vector<16x32xbf16>
    %cst_57 = arith.constant dense<0.000000e+00> : vector<16x32xf32>
    %95 = tpu.matmul %93, %94, %cst_57 {dimension_numbers = #tpu.dot_dimension_numbers<[1], [0], [0], [1], [0, 0, 1, 1], [], []>} : vector<16x16xbf16>, vector<16x32xbf16>, vector<16x32xf32> -> vector<16x32xf32>
    %96 = arith.truncf %95 : vector<16x32xf32> to vector<16x32xbf16>
    %c1_58 = arith.constant 1 : index
    %c0_59 = arith.constant 0 : index
    %c0_60 = arith.constant 0 : index
    %97 = vector.load %arg7[%c1_58, %c0_59, %c0_60] : memref<4x32x128xbf16, #tpu.memory_space<vmem>>, vector<1x32x128xbf16>
    %98 = vector.shape_cast %97 : vector<1x32x128xbf16> to vector<32x128xbf16>
    %cst_61 = arith.constant dense<0.000000e+00> : vector<16x128xf32>
    %99 = tpu.matmul %96, %98, %cst_61 {dimension_numbers = #tpu.dot_dimension_numbers<[1], [0], [0], [1], [0, 0, 1, 1], [], []>} : vector<16x32xbf16>, vector<32x128xbf16>, vector<16x128xf32> -> vector<16x128xf32>
    %100 = arith.addf %55, %99 : vector<16x128xf32>
    %c2 = arith.constant 2 : index
    %c0_62 = arith.constant 0 : index
    %c0_63 = arith.constant 0 : index
    %101 = vector.load %arg4[%c2, %c0_62, %c0_63] : memref<4x128x32xbf16, #tpu.memory_space<vmem>>, vector<1x128x32xbf16>
    %102 = vector.shape_cast %101 : vector<1x128x32xbf16> to vector<128x32xbf16>
    %cst_64 = arith.constant dense<0.000000e+00> : vector<16x32xf32>
    %103 = tpu.matmul %10, %102, %cst_64 {dimension_numbers = #tpu.dot_dimension_numbers<[1], [0], [0], [1], [0, 0, 1, 1], [], []>} : vector<16x128xbf16>, vector<128x32xbf16>, vector<16x32xf32> -> vector<16x32xf32>
    %c2_65 = arith.constant 2 : index
    %c0_66 = arith.constant 0 : index
    %c0_67 = arith.constant 0 : index
    %104 = vector.load %arg8[%c2_65, %c0_66, %c0_67] : memref<4x1x32xf32, #tpu.memory_space<vmem>>, vector<1x1x32xf32>
    %105 = vector.shape_cast %104 : vector<1x1x32xf32> to vector<1x32xf32>
    %106 = vector.broadcast %105 : vector<1x32xf32> to vector<16x32xf32>
    %107 = arith.addf %103, %106 : vector<16x32xf32>
    %c2_68 = arith.constant 2 : index
    %c0_69 = arith.constant 0 : index
    %c0_70 = arith.constant 0 : index
    %108 = vector.load %arg5[%c2_68, %c0_69, %c0_70] : memref<4x128x32xbf16, #tpu.memory_space<vmem>>, vector<1x128x32xbf16>
    %109 = vector.shape_cast %108 : vector<1x128x32xbf16> to vector<128x32xbf16>
    %cst_71 = arith.constant dense<0.000000e+00> : vector<16x32xf32>
    %110 = tpu.matmul %11, %109, %cst_71 {dimension_numbers = #tpu.dot_dimension_numbers<[1], [0], [0], [1], [0, 0, 1, 1], [], []>} : vector<16x128xbf16>, vector<128x32xbf16>, vector<16x32xf32> -> vector<16x32xf32>
    %c2_72 = arith.constant 2 : index
    %c0_73 = arith.constant 0 : index
    %c0_74 = arith.constant 0 : index
    %111 = vector.load %arg9[%c2_72, %c0_73, %c0_74] : memref<4x1x32xf32, #tpu.memory_space<vmem>>, vector<1x1x32xf32>
    %112 = vector.shape_cast %111 : vector<1x1x32xf32> to vector<1x32xf32>
    %113 = vector.broadcast %112 : vector<1x32xf32> to vector<16x32xf32>
    %114 = arith.addf %110, %113 : vector<16x32xf32>
    %c2_75 = arith.constant 2 : index
    %c0_76 = arith.constant 0 : index
    %c0_77 = arith.constant 0 : index
    %115 = vector.load %arg6[%c2_75, %c0_76, %c0_77] : memref<4x128x32xbf16, #tpu.memory_space<vmem>>, vector<1x128x32xbf16>
    %116 = vector.shape_cast %115 : vector<1x128x32xbf16> to vector<128x32xbf16>
    %cst_78 = arith.constant dense<0.000000e+00> : vector<16x32xf32>
    %117 = tpu.matmul %11, %116, %cst_78 {dimension_numbers = #tpu.dot_dimension_numbers<[1], [0], [0], [1], [0, 0, 1, 1], [], []>} : vector<16x128xbf16>, vector<128x32xbf16>, vector<16x32xf32> -> vector<16x32xf32>
    %c2_79 = arith.constant 2 : index
    %c0_80 = arith.constant 0 : index
    %c0_81 = arith.constant 0 : index
    %118 = vector.load %arg10[%c2_79, %c0_80, %c0_81] : memref<4x1x32xf32, #tpu.memory_space<vmem>>, vector<1x1x32xf32>
    %119 = vector.shape_cast %118 : vector<1x1x32xf32> to vector<1x32xf32>
    %120 = vector.broadcast %119 : vector<1x32xf32> to vector<16x32xf32>
    %121 = arith.addf %117, %120 : vector<16x32xf32>
    %cst_82 = arith.constant 0.176776692 : f32
    %122 = vector.broadcast %cst_82 : f32 to vector<16x32xf32>
    %123 = arith.mulf %107, %122 : vector<16x32xf32>
    %124 = arith.truncf %123 : vector<16x32xf32> to vector<16x32xbf16>
    %125 = arith.truncf %114 : vector<16x32xf32> to vector<16x32xbf16>
    %cst_83 = arith.constant dense<0.000000e+00> : vector<16x16xf32>
    %126 = tpu.matmul %124, %125, %cst_83 {dimension_numbers = #tpu.dot_dimension_numbers<[1], [1], [0], [0], [0, 0, 1, 0], [], []>} : vector<16x32xbf16>, vector<16x32xbf16>, vector<16x16xf32> -> vector<16x16xf32>
    %127 = arith.addf %126, %9 : vector<16x16xf32>
    %cst_84 = arith.constant dense<0xFF800000> : vector<16xf32>
    %128 = vector.multi_reduction <maximumf>, %127, %cst_84 [1] : vector<16x16xf32> to vector<16xf32>
    %129 = vector.shape_cast %128 : vector<16xf32> to vector<16x1xf32>
    %130 = vector.broadcast %129 : vector<16x1xf32> to vector<16x16xf32>
    %131 = arith.subf %127, %130 : vector<16x16xf32>
    %132 = math.exp %131 : vector<16x16xf32>
    %cst_85 = arith.constant dense<0.000000e+00> : vector<16xf32>
    %133 = vector.multi_reduction <add>, %132, %cst_85 [1] : vector<16x16xf32> to vector<16xf32>
    %134 = vector.shape_cast %133 : vector<16xf32> to vector<16x1xf32>
    %135 = tpu.reciprocal %134 {approx = true} : vector<16x1xf32> -> vector<16x1xf32>
    %136 = vector.broadcast %135 : vector<16x1xf32> to vector<16x16xf32>
    %137 = arith.mulf %132, %136 : vector<16x16xf32>
    %138 = arith.truncf %137 : vector<16x16xf32> to vector<16x16xbf16>
    %139 = arith.truncf %121 : vector<16x32xf32> to vector<16x32xbf16>
    %cst_86 = arith.constant dense<0.000000e+00> : vector<16x32xf32>
    %140 = tpu.matmul %138, %139, %cst_86 {dimension_numbers = #tpu.dot_dimension_numbers<[1], [0], [0], [1], [0, 0, 1, 1], [], []>} : vector<16x16xbf16>, vector<16x32xbf16>, vector<16x32xf32> -> vector<16x32xf32>
    %141 = arith.truncf %140 : vector<16x32xf32> to vector<16x32xbf16>
    %c2_87 = arith.constant 2 : index
    %c0_88 = arith.constant 0 : index
    %c0_89 = arith.constant 0 : index
    %142 = vector.load %arg7[%c2_87, %c0_88, %c0_89] : memref<4x32x128xbf16, #tpu.memory_space<vmem>>, vector<1x32x128xbf16>
    %143 = vector.shape_cast %142 : vector<1x32x128xbf16> to vector<32x128xbf16>
    %cst_90 = arith.constant dense<0.000000e+00> : vector<16x128xf32>
    %144 = tpu.matmul %141, %143, %cst_90 {dimension_numbers = #tpu.dot_dimension_numbers<[1], [0], [0], [1], [0, 0, 1, 1], [], []>} : vector<16x32xbf16>, vector<32x128xbf16>, vector<16x128xf32> -> vector<16x128xf32>
    %145 = arith.addf %100, %144 : vector<16x128xf32>
    %c3 = arith.constant 3 : index
    %c0_91 = arith.constant 0 : index
    %c0_92 = arith.constant 0 : index
    %146 = vector.load %arg4[%c3, %c0_91, %c0_92] : memref<4x128x32xbf16, #tpu.memory_space<vmem>>, vector<1x128x32xbf16>
    %147 = vector.shape_cast %146 : vector<1x128x32xbf16> to vector<128x32xbf16>
    %cst_93 = arith.constant dense<0.000000e+00> : vector<16x32xf32>
    %148 = tpu.matmul %10, %147, %cst_93 {dimension_numbers = #tpu.dot_dimension_numbers<[1], [0], [0], [1], [0, 0, 1, 1], [], []>} : vector<16x128xbf16>, vector<128x32xbf16>, vector<16x32xf32> -> vector<16x32xf32>
    %c3_94 = arith.constant 3 : index
    %c0_95 = arith.constant 0 : index
    %c0_96 = arith.constant 0 : index
    %149 = vector.load %arg8[%c3_94, %c0_95, %c0_96] : memref<4x1x32xf32, #tpu.memory_space<vmem>>, vector<1x1x32xf32>
    %150 = vector.shape_cast %149 : vector<1x1x32xf32> to vector<1x32xf32>
    %151 = vector.broadcast %150 : vector<1x32xf32> to vector<16x32xf32>
    %152 = arith.addf %148, %151 : vector<16x32xf32>
    %c3_97 = arith.constant 3 : index
    %c0_98 = arith.constant 0 : index
    %c0_99 = arith.constant 0 : index
    %153 = vector.load %arg5[%c3_97, %c0_98, %c0_99] : memref<4x128x32xbf16, #tpu.memory_space<vmem>>, vector<1x128x32xbf16>
    %154 = vector.shape_cast %153 : vector<1x128x32xbf16> to vector<128x32xbf16>
    %cst_100 = arith.constant dense<0.000000e+00> : vector<16x32xf32>
    %155 = tpu.matmul %11, %154, %cst_100 {dimension_numbers = #tpu.dot_dimension_numbers<[1], [0], [0], [1], [0, 0, 1, 1], [], []>} : vector<16x128xbf16>, vector<128x32xbf16>, vector<16x32xf32> -> vector<16x32xf32>
    %c3_101 = arith.constant 3 : index
    %c0_102 = arith.constant 0 : index
    %c0_103 = arith.constant 0 : index
    %156 = vector.load %arg9[%c3_101, %c0_102, %c0_103] : memref<4x1x32xf32, #tpu.memory_space<vmem>>, vector<1x1x32xf32>
    %157 = vector.shape_cast %156 : vector<1x1x32xf32> to vector<1x32xf32>
    %158 = vector.broadcast %157 : vector<1x32xf32> to vector<16x32xf32>
    %159 = arith.addf %155, %158 : vector<16x32xf32>
    %c3_104 = arith.constant 3 : index
    %c0_105 = arith.constant 0 : index
    %c0_106 = arith.constant 0 : index
    %160 = vector.load %arg6[%c3_104, %c0_105, %c0_106] : memref<4x128x32xbf16, #tpu.memory_space<vmem>>, vector<1x128x32xbf16>
    %161 = vector.shape_cast %160 : vector<1x128x32xbf16> to vector<128x32xbf16>
    %cst_107 = arith.constant dense<0.000000e+00> : vector<16x32xf32>
    %162 = tpu.matmul %11, %161, %cst_107 {dimension_numbers = #tpu.dot_dimension_numbers<[1], [0], [0], [1], [0, 0, 1, 1], [], []>} : vector<16x128xbf16>, vector<128x32xbf16>, vector<16x32xf32> -> vector<16x32xf32>
    %c3_108 = arith.constant 3 : index
    %c0_109 = arith.constant 0 : index
    %c0_110 = arith.constant 0 : index
    %163 = vector.load %arg10[%c3_108, %c0_109, %c0_110] : memref<4x1x32xf32, #tpu.memory_space<vmem>>, vector<1x1x32xf32>
    %164 = vector.shape_cast %163 : vector<1x1x32xf32> to vector<1x32xf32>
    %165 = vector.broadcast %164 : vector<1x32xf32> to vector<16x32xf32>
    %166 = arith.addf %162, %165 : vector<16x32xf32>
    %cst_111 = arith.constant 0.176776692 : f32
    %167 = vector.broadcast %cst_111 : f32 to vector<16x32xf32>
    %168 = arith.mulf %152, %167 : vector<16x32xf32>
    %169 = arith.truncf %168 : vector<16x32xf32> to vector<16x32xbf16>
    %170 = arith.truncf %159 : vector<16x32xf32> to vector<16x32xbf16>
    %cst_112 = arith.constant dense<0.000000e+00> : vector<16x16xf32>
    %171 = tpu.matmul %169, %170, %cst_112 {dimension_numbers = #tpu.dot_dimension_numbers<[1], [1], [0], [0], [0, 0, 1, 0], [], []>} : vector<16x32xbf16>, vector<16x32xbf16>, vector<16x16xf32> -> vector<16x16xf32>
    %172 = arith.addf %171, %9 : vector<16x16xf32>
    %cst_113 = arith.constant dense<0xFF800000> : vector<16xf32>
    %173 = vector.multi_reduction <maximumf>, %172, %cst_113 [1] : vector<16x16xf32> to vector<16xf32>
    %174 = vector.shape_cast %173 : vector<16xf32> to vector<16x1xf32>
    %175 = vector.broadcast %174 : vector<16x1xf32> to vector<16x16xf32>
    %176 = arith.subf %172, %175 : vector<16x16xf32>
    %177 = math.exp %176 : vector<16x16xf32>
    %cst_114 = arith.constant dense<0.000000e+00> : vector<16xf32>
    %178 = vector.multi_reduction <add>, %177, %cst_114 [1] : vector<16x16xf32> to vector<16xf32>
    %179 = vector.shape_cast %178 : vector<16xf32> to vector<16x1xf32>
    %180 = tpu.reciprocal %179 {approx = true} : vector<16x1xf32> -> vector<16x1xf32>
    %181 = vector.broadcast %180 : vector<16x1xf32> to vector<16x16xf32>
    %182 = arith.mulf %177, %181 : vector<16x16xf32>
    %183 = arith.truncf %182 : vector<16x16xf32> to vector<16x16xbf16>
    %184 = arith.truncf %166 : vector<16x32xf32> to vector<16x32xbf16>
    %cst_115 = arith.constant dense<0.000000e+00> : vector<16x32xf32>
    %185 = tpu.matmul %183, %184, %cst_115 {dimension_numbers = #tpu.dot_dimension_numbers<[1], [0], [0], [1], [0, 0, 1, 1], [], []>} : vector<16x16xbf16>, vector<16x32xbf16>, vector<16x32xf32> -> vector<16x32xf32>
    %186 = arith.truncf %185 : vector<16x32xf32> to vector<16x32xbf16>
    %c3_116 = arith.constant 3 : index
    %c0_117 = arith.constant 0 : index
    %c0_118 = arith.constant 0 : index
    %187 = vector.load %arg7[%c3_116, %c0_117, %c0_118] : memref<4x32x128xbf16, #tpu.memory_space<vmem>>, vector<1x32x128xbf16>
    %188 = vector.shape_cast %187 : vector<1x32x128xbf16> to vector<32x128xbf16>
    %cst_119 = arith.constant dense<0.000000e+00> : vector<16x128xf32>
    %189 = tpu.matmul %186, %188, %cst_119 {dimension_numbers = #tpu.dot_dimension_numbers<[1], [0], [0], [1], [0, 0, 1, 1], [], []>} : vector<16x32xbf16>, vector<32x128xbf16>, vector<16x128xf32> -> vector<16x128xf32>
    %190 = arith.addf %145, %189 : vector<16x128xf32>
    %c0_120 = arith.constant 0 : index
    %c0_121 = arith.constant 0 : index
    %191 = vector.load %arg11[%c0_120, %c0_121] : memref<1x128xf32, #tpu.memory_space<vmem>>, vector<1x128xf32>
    %192 = vector.broadcast %191 : vector<1x128xf32> to vector<16x128xf32>
    %193 = arith.addf %190, %192 : vector<16x128xf32>
    %194 = arith.addf %1, %193 : vector<16x128xf32>
    %cst_122 = arith.constant dense<0.000000e+00> : vector<16xf32>
    %195 = vector.multi_reduction <add>, %194, %cst_122 [1] : vector<16x128xf32> to vector<16xf32>
    %196 = vector.shape_cast %195 : vector<16xf32> to vector<16x1xf32>
    %cst_123 = arith.constant 1.280000e+02 : f32
    %197 = vector.broadcast %cst_123 : f32 to vector<16x1xf32>
    %198 = arith.divf %196, %197 : vector<16x1xf32>
    %199 = vector.broadcast %198 : vector<16x1xf32> to vector<16x128xf32>
    %200 = arith.subf %194, %199 : vector<16x128xf32>
    %201 = vector.broadcast %198 : vector<16x1xf32> to vector<16x128xf32>
    %202 = arith.subf %194, %201 : vector<16x128xf32>
    %203 = arith.mulf %200, %202 : vector<16x128xf32>
    %cst_124 = arith.constant dense<0.000000e+00> : vector<16xf32>
    %204 = vector.multi_reduction <add>, %203, %cst_124 [1] : vector<16x128xf32> to vector<16xf32>
    %205 = vector.shape_cast %204 : vector<16xf32> to vector<16x1xf32>
    %cst_125 = arith.constant 1.280000e+02 : f32
    %206 = vector.broadcast %cst_125 : f32 to vector<16x1xf32>
    %207 = arith.divf %205, %206 : vector<16x1xf32>
    %208 = vector.broadcast %198 : vector<16x1xf32> to vector<16x128xf32>
    %209 = arith.subf %194, %208 : vector<16x128xf32>
    %cst_126 = arith.constant 9.99999974E-6 : f32
    %210 = vector.broadcast %cst_126 : f32 to vector<16x1xf32>
    %211 = arith.addf %207, %210 : vector<16x1xf32>
    %212 = math.rsqrt %211 : vector<16x1xf32>
    %213 = vector.broadcast %212 : vector<16x1xf32> to vector<16x128xf32>
    %214 = arith.mulf %209, %213 : vector<16x128xf32>
    %c0_127 = arith.constant 0 : index
    %c0_128 = arith.constant 0 : index
    %215 = vector.load %arg12[%c0_127, %c0_128] : memref<1x128xf32, #tpu.memory_space<vmem>>, vector<1x128xf32>
    %216 = vector.broadcast %215 : vector<1x128xf32> to vector<16x128xf32>
    %217 = arith.mulf %214, %216 : vector<16x128xf32>
    %c0_129 = arith.constant 0 : index
    %c0_130 = arith.constant 0 : index
    %218 = vector.load %arg13[%c0_129, %c0_130] : memref<1x128xf32, #tpu.memory_space<vmem>>, vector<1x128xf32>
    %219 = vector.broadcast %218 : vector<1x128xf32> to vector<16x128xf32>
    %220 = arith.addf %217, %219 : vector<16x128xf32>
    %c0_131 = arith.constant 0 : index
    %c0_132 = arith.constant 0 : index
    %c0_133 = arith.constant 0 : index
    %221 = vector.load %arg14[%c0_131, %c0_132, %c0_133] : memref<1x16x128xf32, #tpu.memory_space<vmem>>, vector<1x16x128xf32>
    %222 = vector.shape_cast %221 : vector<1x16x128xf32> to vector<16x128xf32>
    %223 = vector.shape_cast %220 : vector<16x128xf32> to vector<1x16x128xf32>
    tpu.vector_store %arg14[%c0_131, %c0_132, %c0_133], %223 {strides = array<i32>} : memref<1x16x128xf32, #tpu.memory_space<vmem>>, vector<1x16x128xf32>,
    return
  }
  func.func @transform_0(%arg0: i32, %arg1: i32, %arg2: memref<2xi32, #tpu.memory_space<smem>>) -> (i32, i32, i32) {
    %c0_i32 = arith.constant 0 : i32
    %c0_i32_0 = arith.constant 0 : i32
    %c0_i32_1 = arith.constant 0 : i32
    return %arg0, %c0_i32, %c0_i32_0 : i32, i32, i32
  }
  func.func @transform_1(%arg0: i32, %arg1: i32, %arg2: memref<2xi32, #tpu.memory_space<smem>>) -> (i32, i32, i32) {
    %c0_i32 = arith.constant 0 : i32
    %c0_i32_0 = arith.constant 0 : i32
    %c0_i32_1 = arith.constant 0 : i32
    %c0_i32_2 = arith.constant 0 : i32
    return %c0_i32, %c0_i32_0, %c0_i32_1 : i32, i32, i32
  }
  func.func @transform_2(%arg0: i32, %arg1: i32, %arg2: memref<2xi32, #tpu.memory_space<smem>>) -> (i32, i32, i32) {
    %c0_i32 = arith.constant 0 : i32
    %c0_i32_0 = arith.constant 0 : i32
    %c0_i32_1 = arith.constant 0 : i32
    %c0_i32_2 = arith.constant 0 : i32
    return %c0_i32, %c0_i32_0, %c0_i32_1 : i32, i32, i32
  }
  func.func @transform_3(%arg0: i32, %arg1: i32, %arg2: memref<2xi32, #tpu.memory_space<smem>>) -> (i32, i32, i32) {
    %c0_i32 = arith.constant 0 : i32
    %c0_i32_0 = arith.constant 0 : i32
    %c0_i32_1 = arith.constant 0 : i32
    %c0_i32_2 = arith.constant 0 : i32
    return %c0_i32, %c0_i32_0, %c0_i32_1 : i32, i32, i32
  }
  func.func @transform_4(%arg0: i32, %arg1: i32, %arg2: memref<2xi32, #tpu.memory_space<smem>>) -> (i32, i32, i32) {
    %c0_i32 = arith.constant 0 : i32
    %c0_i32_0 = arith.constant 0 : i32
    %c0_i32_1 = arith.constant 0 : i32
    %c0_i32_2 = arith.constant 0 : i32
    return %c0_i32, %c0_i32_0, %c0_i32_1 : i32, i32, i32
  }
  func.func @transform_5(%arg0: i32, %arg1: i32, %arg2: memref<2xi32, #tpu.memory_space<smem>>) -> (i32, i32, i32) {
    %c0_i32 = arith.constant 0 : i32
    %c0_i32_0 = arith.constant 0 : i32
    %c0_i32_1 = arith.constant 0 : i32
    %c0_i32_2 = arith.constant 0 : i32
    return %c0_i32, %c0_i32_0, %c0_i32_1 : i32, i32, i32
  }
  func.func @transform_6(%arg0: i32, %arg1: i32, %arg2: memref<2xi32, #tpu.memory_space<smem>>) -> (i32, i32, i32) {
    %c0_i32 = arith.constant 0 : i32
    %c0_i32_0 = arith.constant 0 : i32
    %c0_i32_1 = arith.constant 0 : i32
    %c0_i32_2 = arith.constant 0 : i32
    return %c0_i32, %c0_i32_0, %c0_i32_1 : i32, i32, i32
  }
  func.func @transform_7(%arg0: i32, %arg1: i32, %arg2: memref<2xi32, #tpu.memory_space<smem>>) -> (i32, i32, i32) {
    %c0_i32 = arith.constant 0 : i32
    %c0_i32_0 = arith.constant 0 : i32
    %c0_i32_1 = arith.constant 0 : i32
    %c0_i32_2 = arith.constant 0 : i32
    return %c0_i32, %c0_i32_0, %c0_i32_1 : i32, i32, i32
  }
  func.func @transform_8(%arg0: i32, %arg1: i32, %arg2: memref<2xi32, #tpu.memory_space<smem>>) -> (i32, i32) {
    %c0_i32 = arith.constant 0 : i32
    %c0_i32_0 = arith.constant 0 : i32
    %c0_i32_1 = arith.constant 0 : i32
    return %c0_i32, %c0_i32_0 : i32, i32
  }
  func.func @transform_9(%arg0: i32, %arg1: i32, %arg2: memref<2xi32, #tpu.memory_space<smem>>) -> (i32, i32) {
    %c0_i32 = arith.constant 0 : i32
    %c0_i32_0 = arith.constant 0 : i32
    %c0_i32_1 = arith.constant 0 : i32
    return %c0_i32, %c0_i32_0 : i32, i32
  }
  func.func @transform_10(%arg0: i32, %arg1: i32, %arg2: memref<2xi32, #tpu.memory_space<smem>>) -> (i32, i32) {
    %c0_i32 = arith.constant 0 : i32
    %c0_i32_0 = arith.constant 0 : i32
    %c0_i32_1 = arith.constant 0 : i32
    return %c0_i32, %c0_i32_0 : i32, i32
  }
  func.func @transform_11(%arg0: i32, %arg1: i32, %arg2: memref<2xi32, #tpu.memory_space<smem>>) -> (i32, i32, i32) {
    %c0_i32 = arith.constant 0 : i32
    %c0_i32_0 = arith.constant 0 : i32
    return %arg0, %arg1, %c0_i32 : i32, i32, i32
  }
}

module attributes {stable_mosaic.version = 11 : i64} {
  func.func @_ffn_ln_kernel(%arg0: i32, %arg1: i32, %arg2: memref<16x128xf32, #tpu.memory_space<vmem>>, %arg3: memref<128x256xbf16, #tpu.memory_space<vmem>>, %arg4: memref<1x256xf32, #tpu.memory_space<vmem>>, %arg5: memref<256x128xbf16, #tpu.memory_space<vmem>>, %arg6: memref<1x128xf32, #tpu.memory_space<vmem>>, %arg7: memref<1x128xf32, #tpu.memory_space<vmem>>, %arg8: memref<1x128xf32, #tpu.memory_space<vmem>>, %arg9: memref<16x128xf32, #tpu.memory_space<vmem>>, %arg10: memref<16x128xf32, #tpu.memory_space<vmem>>) attributes {dimension_semantics = [#tpu.dimension_semantics<parallel>, #tpu.dimension_semantics<arbitrary>], iteration_bounds = array<i64: 2, 1>, scalar_prefetch = 0 : i64, scratch_operands = 1 : i64, tpu.core_type = #tpu.core_type<tc>, window_params = [{transform_indices = @transform_0, window_bounds = array<i64: 16, 128>}, {transform_indices = @transform_1, window_bounds = array<i64: 128, 256>}, {transform_indices = @transform_2, window_bounds = array<i64: 1, 256>}, {transform_indices = @transform_3, window_bounds = array<i64: 256, 128>}, {pipeline_mode = #tpu.pipeline_mode<synchronous>, transform_indices = @transform_4, window_bounds = array<i64: 1, 128>}, {pipeline_mode = #tpu.pipeline_mode<synchronous>, transform_indices = @transform_5, window_bounds = array<i64: 1, 128>}, {pipeline_mode = #tpu.pipeline_mode<synchronous>, transform_indices = @transform_6, window_bounds = array<i64: 1, 128>}, {transform_indices = @transform_7, window_bounds = array<i64: 16, 128>}]} {
    %c0_i32 = arith.constant 0 : i32
    %0 = arith.cmpi eq, %arg1, %c0_i32 : i32
    %1 = arith.extui %0 : i1 to i32
    %c0_i32_0 = arith.constant 0 : i32
    %2 = arith.cmpi ne, %1, %c0_i32_0 : i32
    scf.if %2 {
      %cst_16 = arith.constant 0.000000e+00 : f32
      %21 = vector.broadcast %cst_16 : f32 to vector<16x128xf32>
      %c0_17 = arith.constant 0 : index
      %c0_18 = arith.constant 0 : index
      %22 = vector.load %arg10[%c0_17, %c0_18] : memref<16x128xf32, #tpu.memory_space<vmem>>, vector<16x128xf32>
      tpu.vector_store %arg10[%c0_17, %c0_18], %21 {strides = array<i32>} : memref<16x128xf32, #tpu.memory_space<vmem>>, vector<16x128xf32>,
    } else {
    }
    %c0 = arith.constant 0 : index
    %c0_1 = arith.constant 0 : index
    %3 = vector.load %arg2[%c0, %c0_1] : memref<16x128xf32, #tpu.memory_space<vmem>>, vector<16x128xf32>
    %4 = arith.truncf %3 : vector<16x128xf32> to vector<16x128xbf16>
    %c0_2 = arith.constant 0 : index
    %c0_3 = arith.constant 0 : index
    %5 = vector.load %arg3[%c0_2, %c0_3] : memref<128x256xbf16, #tpu.memory_space<vmem>>, vector<128x256xbf16>
    %cst = arith.constant dense<0.000000e+00> : vector<16x256xf32>
    %6 = tpu.matmul %4, %5, %cst {dimension_numbers = #tpu.dot_dimension_numbers<[1], [0], [0], [1], [0, 0, 1, 1], [], []>} : vector<16x128xbf16>, vector<128x256xbf16>, vector<16x256xf32> -> vector<16x256xf32>
    %c0_4 = arith.constant 0 : index
    %c0_5 = arith.constant 0 : index
    %7 = vector.load %arg4[%c0_4, %c0_5] : memref<1x256xf32, #tpu.memory_space<vmem>>, vector<1x256xf32>
    %8 = vector.broadcast %7 : vector<1x256xf32> to vector<16x256xf32>
    %9 = arith.addf %6, %8 : vector<16x256xf32>
    %cst_6 = arith.constant 0.000000e+00 : f32
    %10 = vector.broadcast %cst_6 : f32 to vector<16x256xf32>
    %11 = arith.maximumf %9, %10 : vector<16x256xf32>
    %c0_7 = arith.constant 0 : index
    %c0_8 = arith.constant 0 : index
    %12 = vector.load %arg10[%c0_7, %c0_8] : memref<16x128xf32, #tpu.memory_space<vmem>>, vector<16x128xf32>
    %13 = arith.truncf %11 : vector<16x256xf32> to vector<16x256xbf16>
    %c0_9 = arith.constant 0 : index
    %c0_10 = arith.constant 0 : index
    %14 = vector.load %arg5[%c0_9, %c0_10] : memref<256x128xbf16, #tpu.memory_space<vmem>>, vector<256x128xbf16>
    %cst_11 = arith.constant dense<0.000000e+00> : vector<16x128xf32>
    %15 = tpu.matmul %13, %14, %cst_11 {dimension_numbers = #tpu.dot_dimension_numbers<[1], [0], [0], [1], [0, 0, 1, 1], [], []>} : vector<16x256xbf16>, vector<256x128xbf16>, vector<16x128xf32> -> vector<16x128xf32>
    %16 = arith.addf %12, %15 : vector<16x128xf32>
    %c0_12 = arith.constant 0 : index
    %c0_13 = arith.constant 0 : index
    %17 = vector.load %arg10[%c0_12, %c0_13] : memref<16x128xf32, #tpu.memory_space<vmem>>, vector<16x128xf32>
    tpu.vector_store %arg10[%c0_12, %c0_13], %16 {strides = array<i32>} : memref<16x128xf32, #tpu.memory_space<vmem>>, vector<16x128xf32>,
    %c0_i32_14 = arith.constant 0 : i32
    %18 = arith.cmpi eq, %arg1, %c0_i32_14 : i32
    %19 = arith.extui %18 : i1 to i32
    %c0_i32_15 = arith.constant 0 : i32
    %20 = arith.cmpi ne, %19, %c0_i32_15 : i32
    scf.if %20 {
      %c0_16 = arith.constant 0 : index
      %c0_17 = arith.constant 0 : index
      %21 = vector.load %arg10[%c0_16, %c0_17] : memref<16x128xf32, #tpu.memory_space<vmem>>, vector<16x128xf32>
      %22 = arith.addf %3, %21 : vector<16x128xf32>
      %c0_18 = arith.constant 0 : index
      %c0_19 = arith.constant 0 : index
      %23 = vector.load %arg6[%c0_18, %c0_19] : memref<1x128xf32, #tpu.memory_space<vmem>>, vector<1x128xf32>
      %24 = vector.broadcast %23 : vector<1x128xf32> to vector<16x128xf32>
      %25 = arith.addf %22, %24 : vector<16x128xf32>
      %cst_20 = arith.constant dense<0.000000e+00> : vector<16xf32>
      %26 = vector.multi_reduction <add>, %25, %cst_20 [1] : vector<16x128xf32> to vector<16xf32>
      %27 = vector.shape_cast %26 : vector<16xf32> to vector<16x1xf32>
      %cst_21 = arith.constant 1.280000e+02 : f32
      %28 = vector.broadcast %cst_21 : f32 to vector<16x1xf32>
      %29 = arith.divf %27, %28 : vector<16x1xf32>
      %30 = vector.broadcast %29 : vector<16x1xf32> to vector<16x128xf32>
      %31 = arith.subf %25, %30 : vector<16x128xf32>
      %32 = vector.broadcast %29 : vector<16x1xf32> to vector<16x128xf32>
      %33 = arith.subf %25, %32 : vector<16x128xf32>
      %34 = arith.mulf %31, %33 : vector<16x128xf32>
      %cst_22 = arith.constant dense<0.000000e+00> : vector<16xf32>
      %35 = vector.multi_reduction <add>, %34, %cst_22 [1] : vector<16x128xf32> to vector<16xf32>
      %36 = vector.shape_cast %35 : vector<16xf32> to vector<16x1xf32>
      %cst_23 = arith.constant 1.280000e+02 : f32
      %37 = vector.broadcast %cst_23 : f32 to vector<16x1xf32>
      %38 = arith.divf %36, %37 : vector<16x1xf32>
      %39 = vector.broadcast %29 : vector<16x1xf32> to vector<16x128xf32>
      %40 = arith.subf %25, %39 : vector<16x128xf32>
      %cst_24 = arith.constant 9.99999974E-6 : f32
      %41 = vector.broadcast %cst_24 : f32 to vector<16x1xf32>
      %42 = arith.addf %38, %41 : vector<16x1xf32>
      %43 = math.rsqrt %42 : vector<16x1xf32>
      %44 = vector.broadcast %43 : vector<16x1xf32> to vector<16x128xf32>
      %45 = arith.mulf %40, %44 : vector<16x128xf32>
      %c0_25 = arith.constant 0 : index
      %c0_26 = arith.constant 0 : index
      %46 = vector.load %arg7[%c0_25, %c0_26] : memref<1x128xf32, #tpu.memory_space<vmem>>, vector<1x128xf32>
      %47 = vector.broadcast %46 : vector<1x128xf32> to vector<16x128xf32>
      %48 = arith.mulf %45, %47 : vector<16x128xf32>
      %c0_27 = arith.constant 0 : index
      %c0_28 = arith.constant 0 : index
      %49 = vector.load %arg8[%c0_27, %c0_28] : memref<1x128xf32, #tpu.memory_space<vmem>>, vector<1x128xf32>
      %50 = vector.broadcast %49 : vector<1x128xf32> to vector<16x128xf32>
      %51 = arith.addf %48, %50 : vector<16x128xf32>
      %c0_29 = arith.constant 0 : index
      %c0_30 = arith.constant 0 : index
      %52 = vector.load %arg9[%c0_29, %c0_30] : memref<16x128xf32, #tpu.memory_space<vmem>>, vector<16x128xf32>
      tpu.vector_store %arg9[%c0_29, %c0_30], %51 {strides = array<i32>} : memref<16x128xf32, #tpu.memory_space<vmem>>, vector<16x128xf32>,
    } else {
    }
    return
  }
  func.func @transform_0(%arg0: i32, %arg1: i32) -> (i32, i32) {
    %c0_i32 = arith.constant 0 : i32
    %c0_i32_0 = arith.constant 0 : i32
    return %arg0, %c0_i32 : i32, i32
  }
  func.func @transform_1(%arg0: i32, %arg1: i32) -> (i32, i32) {
    %c0_i32 = arith.constant 0 : i32
    %c0_i32_0 = arith.constant 0 : i32
    return %c0_i32, %arg1 : i32, i32
  }
  func.func @transform_2(%arg0: i32, %arg1: i32) -> (i32, i32) {
    %c0_i32 = arith.constant 0 : i32
    %c0_i32_0 = arith.constant 0 : i32
    return %c0_i32, %arg1 : i32, i32
  }
  func.func @transform_3(%arg0: i32, %arg1: i32) -> (i32, i32) {
    %c0_i32 = arith.constant 0 : i32
    %c0_i32_0 = arith.constant 0 : i32
    return %arg1, %c0_i32 : i32, i32
  }
  func.func @transform_4(%arg0: i32, %arg1: i32) -> (i32, i32) {
    %c0_i32 = arith.constant 0 : i32
    %c0_i32_0 = arith.constant 0 : i32
    %c0_i32_1 = arith.constant 0 : i32
    return %c0_i32, %c0_i32_0 : i32, i32
  }
  func.func @transform_5(%arg0: i32, %arg1: i32) -> (i32, i32) {
    %c0_i32 = arith.constant 0 : i32
    %c0_i32_0 = arith.constant 0 : i32
    %c0_i32_1 = arith.constant 0 : i32
    return %c0_i32, %c0_i32_0 : i32, i32
  }
  func.func @transform_6(%arg0: i32, %arg1: i32) -> (i32, i32) {
    %c0_i32 = arith.constant 0 : i32
    %c0_i32_0 = arith.constant 0 : i32
    %c0_i32_1 = arith.constant 0 : i32
    return %c0_i32, %c0_i32_0 : i32, i32
  }
  func.func @transform_7(%arg0: i32, %arg1: i32) -> (i32, i32) {
    %c0_i32 = arith.constant 0 : i32
    %c0_i32_0 = arith.constant 0 : i32
    return %arg0, %c0_i32 : i32, i32
  }
}

module attributes {stable_mosaic.version = 11 : i64} {
  func.func @_mha_self_ln_kernel(%arg0: i32, %arg1: i32, %arg2: memref<2xi32, #tpu.memory_space<smem>>, %arg3: memref<1x16x128xf32, #tpu.memory_space<vmem>>, %arg4: memref<4x128x32xbf16, #tpu.memory_space<vmem>>, %arg5: memref<4x128x32xbf16, #tpu.memory_space<vmem>>, %arg6: memref<4x128x32xbf16, #tpu.memory_space<vmem>>, %arg7: memref<4x32x128xbf16, #tpu.memory_space<vmem>>, %arg8: memref<4x1x32xf32, #tpu.memory_space<vmem>>, %arg9: memref<4x1x32xf32, #tpu.memory_space<vmem>>, %arg10: memref<4x1x32xf32, #tpu.memory_space<vmem>>, %arg11: memref<1x128xf32, #tpu.memory_space<vmem>>, %arg12: memref<1x128xf32, #tpu.memory_space<vmem>>, %arg13: memref<1x128xf32, #tpu.memory_space<vmem>>, %arg14: memref<1x16x128xf32, #tpu.memory_space<vmem>>) attributes {dimension_semantics = [#tpu.dimension_semantics<parallel>, #tpu.dimension_semantics<parallel>], iteration_bounds = array<i64: 2, 1>, scalar_prefetch = 1 : i64, scratch_operands = 0 : i64, tpu.core_type = #tpu.core_type<tc>, window_params = [{transform_indices = @transform_0, window_bounds = array<i64: 1, 16, 128>}, {pipeline_mode = #tpu.pipeline_mode<synchronous>, transform_indices = @transform_1, window_bounds = array<i64: 4, 128, 32>}, {pipeline_mode = #tpu.pipeline_mode<synchronous>, transform_indices = @transform_2, window_bounds = array<i64: 4, 128, 32>}, {pipeline_mode = #tpu.pipeline_mode<synchronous>, transform_indices = @transform_3, window_bounds = array<i64: 4, 128, 32>}, {pipeline_mode = #tpu.pipeline_mode<synchronous>, transform_indices = @transform_4, window_bounds = array<i64: 4, 32, 128>}, {pipeline_mode = #tpu.pipeline_mode<synchronous>, transform_indices = @transform_5, window_bounds = array<i64: 4, 1, 32>}, {pipeline_mode = #tpu.pipeline_mode<synchronous>, transform_indices = @transform_6, window_bounds = array<i64: 4, 1, 32>}, {pipeline_mode = #tpu.pipeline_mode<synchronous>, transform_indices = @transform_7, window_bounds = array<i64: 4, 1, 32>}, {pipeline_mode = #tpu.pipeline_mode<synchronous>, transform_indices = @transform_8, window_bounds = array<i64: 1, 128>}, {pipeline_mode = #tpu.pipeline_mode<synchronous>, transform_indices = @transform_9, window_bounds = array<i64: 1, 128>}, {pipeline_mode = #tpu.pipeline_mode<synchronous>, transform_indices = @transform_10, window_bounds = array<i64: 1, 128>}, {transform_indices = @transform_11, window_bounds = array<i64: 1, 16, 128>}]} {
    %c0 = arith.constant 0 : index
    %c0_0 = arith.constant 0 : index
    %c0_1 = arith.constant 0 : index
    %0 = vector.load %arg3[%c0, %c0_0, %c0_1] : memref<1x16x128xf32, #tpu.memory_space<vmem>>, vector<1x16x128xf32>
    %1 = vector.shape_cast %0 : vector<1x16x128xf32> to vector<16x128xf32>
    %2 = tpu.iota {dimensions = array<i32: 1>} : vector<16x16xi32>
    %3 = arith.index_cast %arg0 : i32 to index
    %4 = memref.load %arg2[%3] : memref<2xi32, #tpu.memory_space<smem>>
    %5 = vector.broadcast %4 : i32 to vector<16x16xi32>
    %6 = arith.cmpi slt, %2, %5 : vector<16x16xi32>
    %7 = tpu.iota {dimensions = array<i32: 0>} : vector<16x16xi32>
    %c0_i32 = arith.constant 0 : i32
    %8 = vector.broadcast %c0_i32 : i32 to vector<16x16xi32>
    %9 = arith.addi %8, %7 : vector<16x16xi32>
    %10 = arith.cmpi sle, %2, %9 : vector<16x16xi32>
    %11 = arith.andi %6, %10 : vector<16x16xi1>
    %cst = arith.constant 0.000000e+00 : f32
    %cst_2 = arith.constant -1.000000e+09 : f32
    %12 = vector.broadcast %cst : f32 to vector<16x16xf32>
    %13 = vector.broadcast %cst_2 : f32 to vector<16x16xf32>
    %14 = arith.select %11, %12, %13 : vector<16x16xi1>, vector<16x16xf32>
    %15 = arith.truncf %1 : vector<16x128xf32> to vector<16x128xbf16>
    %16 = arith.truncf %1 : vector<16x128xf32> to vector<16x128xbf16>
    %c0_3 = arith.constant 0 : index
    %c0_4 = arith.constant 0 : index
    %c0_5 = arith.constant 0 : index
    %17 = vector.load %arg4[%c0_3, %c0_4, %c0_5] : memref<4x128x32xbf16, #tpu.memory_space<vmem>>, vector<1x128x32xbf16>
    %18 = vector.shape_cast %17 : vector<1x128x32xbf16> to vector<128x32xbf16>
    %cst_6 = arith.constant dense<0.000000e+00> : vector<16x32xf32>
    %19 = tpu.matmul %15, %18, %cst_6 {dimension_numbers = #tpu.dot_dimension_numbers<[1], [0], [0], [1], [0, 0, 1, 1], [], []>} : vector<16x128xbf16>, vector<128x32xbf16>, vector<16x32xf32> -> vector<16x32xf32>
    %c0_7 = arith.constant 0 : index
    %c0_8 = arith.constant 0 : index
    %c0_9 = arith.constant 0 : index
    %20 = vector.load %arg8[%c0_7, %c0_8, %c0_9] : memref<4x1x32xf32, #tpu.memory_space<vmem>>, vector<1x1x32xf32>
    %21 = vector.shape_cast %20 : vector<1x1x32xf32> to vector<1x32xf32>
    %22 = vector.broadcast %21 : vector<1x32xf32> to vector<16x32xf32>
    %23 = arith.addf %19, %22 : vector<16x32xf32>
    %c0_10 = arith.constant 0 : index
    %c0_11 = arith.constant 0 : index
    %c0_12 = arith.constant 0 : index
    %24 = vector.load %arg5[%c0_10, %c0_11, %c0_12] : memref<4x128x32xbf16, #tpu.memory_space<vmem>>, vector<1x128x32xbf16>
    %25 = vector.shape_cast %24 : vector<1x128x32xbf16> to vector<128x32xbf16>
    %cst_13 = arith.constant dense<0.000000e+00> : vector<16x32xf32>
    %26 = tpu.matmul %16, %25, %cst_13 {dimension_numbers = #tpu.dot_dimension_numbers<[1], [0], [0], [1], [0, 0, 1, 1], [], []>} : vector<16x128xbf16>, vector<128x32xbf16>, vector<16x32xf32> -> vector<16x32xf32>
    %c0_14 = arith.constant 0 : index
    %c0_15 = arith.constant 0 : index
    %c0_16 = arith.constant 0 : index
    %27 = vector.load %arg9[%c0_14, %c0_15, %c0_16] : memref<4x1x32xf32, #tpu.memory_space<vmem>>, vector<1x1x32xf32>
    %28 = vector.shape_cast %27 : vector<1x1x32xf32> to vector<1x32xf32>
    %29 = vector.broadcast %28 : vector<1x32xf32> to vector<16x32xf32>
    %30 = arith.addf %26, %29 : vector<16x32xf32>
    %c0_17 = arith.constant 0 : index
    %c0_18 = arith.constant 0 : index
    %c0_19 = arith.constant 0 : index
    %31 = vector.load %arg6[%c0_17, %c0_18, %c0_19] : memref<4x128x32xbf16, #tpu.memory_space<vmem>>, vector<1x128x32xbf16>
    %32 = vector.shape_cast %31 : vector<1x128x32xbf16> to vector<128x32xbf16>
    %cst_20 = arith.constant dense<0.000000e+00> : vector<16x32xf32>
    %33 = tpu.matmul %16, %32, %cst_20 {dimension_numbers = #tpu.dot_dimension_numbers<[1], [0], [0], [1], [0, 0, 1, 1], [], []>} : vector<16x128xbf16>, vector<128x32xbf16>, vector<16x32xf32> -> vector<16x32xf32>
    %c0_21 = arith.constant 0 : index
    %c0_22 = arith.constant 0 : index
    %c0_23 = arith.constant 0 : index
    %34 = vector.load %arg10[%c0_21, %c0_22, %c0_23] : memref<4x1x32xf32, #tpu.memory_space<vmem>>, vector<1x1x32xf32>
    %35 = vector.shape_cast %34 : vector<1x1x32xf32> to vector<1x32xf32>
    %36 = vector.broadcast %35 : vector<1x32xf32> to vector<16x32xf32>
    %37 = arith.addf %33, %36 : vector<16x32xf32>
    %cst_24 = arith.constant 0.176776692 : f32
    %38 = vector.broadcast %cst_24 : f32 to vector<16x32xf32>
    %39 = arith.mulf %23, %38 : vector<16x32xf32>
    %40 = arith.truncf %39 : vector<16x32xf32> to vector<16x32xbf16>
    %41 = arith.truncf %30 : vector<16x32xf32> to vector<16x32xbf16>
    %cst_25 = arith.constant dense<0.000000e+00> : vector<16x16xf32>
    %42 = tpu.matmul %40, %41, %cst_25 {dimension_numbers = #tpu.dot_dimension_numbers<[1], [1], [0], [0], [0, 0, 1, 0], [], []>} : vector<16x32xbf16>, vector<16x32xbf16>, vector<16x16xf32> -> vector<16x16xf32>
    %43 = arith.addf %42, %14 : vector<16x16xf32>
    %cst_26 = arith.constant dense<0xFF800000> : vector<16xf32>
    %44 = vector.multi_reduction <maximumf>, %43, %cst_26 [1] : vector<16x16xf32> to vector<16xf32>
    %45 = vector.shape_cast %44 : vector<16xf32> to vector<16x1xf32>
    %46 = vector.broadcast %45 : vector<16x1xf32> to vector<16x16xf32>
    %47 = arith.subf %43, %46 : vector<16x16xf32>
    %48 = math.exp %47 : vector<16x16xf32>
    %cst_27 = arith.constant dense<0.000000e+00> : vector<16xf32>
    %49 = vector.multi_reduction <add>, %48, %cst_27 [1] : vector<16x16xf32> to vector<16xf32>
    %50 = vector.shape_cast %49 : vector<16xf32> to vector<16x1xf32>
    %51 = tpu.reciprocal %50 {approx = true} : vector<16x1xf32> -> vector<16x1xf32>
    %52 = vector.broadcast %51 : vector<16x1xf32> to vector<16x16xf32>
    %53 = arith.mulf %48, %52 : vector<16x16xf32>
    %54 = arith.truncf %53 : vector<16x16xf32> to vector<16x16xbf16>
    %55 = arith.truncf %37 : vector<16x32xf32> to vector<16x32xbf16>
    %cst_28 = arith.constant dense<0.000000e+00> : vector<16x32xf32>
    %56 = tpu.matmul %54, %55, %cst_28 {dimension_numbers = #tpu.dot_dimension_numbers<[1], [0], [0], [1], [0, 0, 1, 1], [], []>} : vector<16x16xbf16>, vector<16x32xbf16>, vector<16x32xf32> -> vector<16x32xf32>
    %57 = arith.truncf %56 : vector<16x32xf32> to vector<16x32xbf16>
    %c0_29 = arith.constant 0 : index
    %c0_30 = arith.constant 0 : index
    %c0_31 = arith.constant 0 : index
    %58 = vector.load %arg7[%c0_29, %c0_30, %c0_31] : memref<4x32x128xbf16, #tpu.memory_space<vmem>>, vector<1x32x128xbf16>
    %59 = vector.shape_cast %58 : vector<1x32x128xbf16> to vector<32x128xbf16>
    %cst_32 = arith.constant dense<0.000000e+00> : vector<16x128xf32>
    %60 = tpu.matmul %57, %59, %cst_32 {dimension_numbers = #tpu.dot_dimension_numbers<[1], [0], [0], [1], [0, 0, 1, 1], [], []>} : vector<16x32xbf16>, vector<32x128xbf16>, vector<16x128xf32> -> vector<16x128xf32>
    %c1 = arith.constant 1 : index
    %c0_33 = arith.constant 0 : index
    %c0_34 = arith.constant 0 : index
    %61 = vector.load %arg4[%c1, %c0_33, %c0_34] : memref<4x128x32xbf16, #tpu.memory_space<vmem>>, vector<1x128x32xbf16>
    %62 = vector.shape_cast %61 : vector<1x128x32xbf16> to vector<128x32xbf16>
    %cst_35 = arith.constant dense<0.000000e+00> : vector<16x32xf32>
    %63 = tpu.matmul %15, %62, %cst_35 {dimension_numbers = #tpu.dot_dimension_numbers<[1], [0], [0], [1], [0, 0, 1, 1], [], []>} : vector<16x128xbf16>, vector<128x32xbf16>, vector<16x32xf32> -> vector<16x32xf32>
    %c1_36 = arith.constant 1 : index
    %c0_37 = arith.constant 0 : index
    %c0_38 = arith.constant 0 : index
    %64 = vector.load %arg8[%c1_36, %c0_37, %c0_38] : memref<4x1x32xf32, #tpu.memory_space<vmem>>, vector<1x1x32xf32>
    %65 = vector.shape_cast %64 : vector<1x1x32xf32> to vector<1x32xf32>
    %66 = vector.broadcast %65 : vector<1x32xf32> to vector<16x32xf32>
    %67 = arith.addf %63, %66 : vector<16x32xf32>
    %c1_39 = arith.constant 1 : index
    %c0_40 = arith.constant 0 : index
    %c0_41 = arith.constant 0 : index
    %68 = vector.load %arg5[%c1_39, %c0_40, %c0_41] : memref<4x128x32xbf16, #tpu.memory_space<vmem>>, vector<1x128x32xbf16>
    %69 = vector.shape_cast %68 : vector<1x128x32xbf16> to vector<128x32xbf16>
    %cst_42 = arith.constant dense<0.000000e+00> : vector<16x32xf32>
    %70 = tpu.matmul %16, %69, %cst_42 {dimension_numbers = #tpu.dot_dimension_numbers<[1], [0], [0], [1], [0, 0, 1, 1], [], []>} : vector<16x128xbf16>, vector<128x32xbf16>, vector<16x32xf32> -> vector<16x32xf32>
    %c1_43 = arith.constant 1 : index
    %c0_44 = arith.constant 0 : index
    %c0_45 = arith.constant 0 : index
    %71 = vector.load %arg9[%c1_43, %c0_44, %c0_45] : memref<4x1x32xf32, #tpu.memory_space<vmem>>, vector<1x1x32xf32>
    %72 = vector.shape_cast %71 : vector<1x1x32xf32> to vector<1x32xf32>
    %73 = vector.broadcast %72 : vector<1x32xf32> to vector<16x32xf32>
    %74 = arith.addf %70, %73 : vector<16x32xf32>
    %c1_46 = arith.constant 1 : index
    %c0_47 = arith.constant 0 : index
    %c0_48 = arith.constant 0 : index
    %75 = vector.load %arg6[%c1_46, %c0_47, %c0_48] : memref<4x128x32xbf16, #tpu.memory_space<vmem>>, vector<1x128x32xbf16>
    %76 = vector.shape_cast %75 : vector<1x128x32xbf16> to vector<128x32xbf16>
    %cst_49 = arith.constant dense<0.000000e+00> : vector<16x32xf32>
    %77 = tpu.matmul %16, %76, %cst_49 {dimension_numbers = #tpu.dot_dimension_numbers<[1], [0], [0], [1], [0, 0, 1, 1], [], []>} : vector<16x128xbf16>, vector<128x32xbf16>, vector<16x32xf32> -> vector<16x32xf32>
    %c1_50 = arith.constant 1 : index
    %c0_51 = arith.constant 0 : index
    %c0_52 = arith.constant 0 : index
    %78 = vector.load %arg10[%c1_50, %c0_51, %c0_52] : memref<4x1x32xf32, #tpu.memory_space<vmem>>, vector<1x1x32xf32>
    %79 = vector.shape_cast %78 : vector<1x1x32xf32> to vector<1x32xf32>
    %80 = vector.broadcast %79 : vector<1x32xf32> to vector<16x32xf32>
    %81 = arith.addf %77, %80 : vector<16x32xf32>
    %cst_53 = arith.constant 0.176776692 : f32
    %82 = vector.broadcast %cst_53 : f32 to vector<16x32xf32>
    %83 = arith.mulf %67, %82 : vector<16x32xf32>
    %84 = arith.truncf %83 : vector<16x32xf32> to vector<16x32xbf16>
    %85 = arith.truncf %74 : vector<16x32xf32> to vector<16x32xbf16>
    %cst_54 = arith.constant dense<0.000000e+00> : vector<16x16xf32>
    %86 = tpu.matmul %84, %85, %cst_54 {dimension_numbers = #tpu.dot_dimension_numbers<[1], [1], [0], [0], [0, 0, 1, 0], [], []>} : vector<16x32xbf16>, vector<16x32xbf16>, vector<16x16xf32> -> vector<16x16xf32>
    %87 = arith.addf %86, %14 : vector<16x16xf32>
    %cst_55 = arith.constant dense<0xFF800000> : vector<16xf32>
    %88 = vector.multi_reduction <maximumf>, %87, %cst_55 [1] : vector<16x16xf32> to vector<16xf32>
    %89 = vector.shape_cast %88 : vector<16xf32> to vector<16x1xf32>
    %90 = vector.broadcast %89 : vector<16x1xf32> to vector<16x16xf32>
    %91 = arith.subf %87, %90 : vector<16x16xf32>
    %92 = math.exp %91 : vector<16x16xf32>
    %cst_56 = arith.constant dense<0.000000e+00> : vector<16xf32>
    %93 = vector.multi_reduction <add>, %92, %cst_56 [1] : vector<16x16xf32> to vector<16xf32>
    %94 = vector.shape_cast %93 : vector<16xf32> to vector<16x1xf32>
    %95 = tpu.reciprocal %94 {approx = true} : vector<16x1xf32> -> vector<16x1xf32>
    %96 = vector.broadcast %95 : vector<16x1xf32> to vector<16x16xf32>
    %97 = arith.mulf %92, %96 : vector<16x16xf32>
    %98 = arith.truncf %97 : vector<16x16xf32> to vector<16x16xbf16>
    %99 = arith.truncf %81 : vector<16x32xf32> to vector<16x32xbf16>
    %cst_57 = arith.constant dense<0.000000e+00> : vector<16x32xf32>
    %100 = tpu.matmul %98, %99, %cst_57 {dimension_numbers = #tpu.dot_dimension_numbers<[1], [0], [0], [1], [0, 0, 1, 1], [], []>} : vector<16x16xbf16>, vector<16x32xbf16>, vector<16x32xf32> -> vector<16x32xf32>
    %101 = arith.truncf %100 : vector<16x32xf32> to vector<16x32xbf16>
    %c1_58 = arith.constant 1 : index
    %c0_59 = arith.constant 0 : index
    %c0_60 = arith.constant 0 : index
    %102 = vector.load %arg7[%c1_58, %c0_59, %c0_60] : memref<4x32x128xbf16, #tpu.memory_space<vmem>>, vector<1x32x128xbf16>
    %103 = vector.shape_cast %102 : vector<1x32x128xbf16> to vector<32x128xbf16>
    %cst_61 = arith.constant dense<0.000000e+00> : vector<16x128xf32>
    %104 = tpu.matmul %101, %103, %cst_61 {dimension_numbers = #tpu.dot_dimension_numbers<[1], [0], [0], [1], [0, 0, 1, 1], [], []>} : vector<16x32xbf16>, vector<32x128xbf16>, vector<16x128xf32> -> vector<16x128xf32>
    %105 = arith.addf %60, %104 : vector<16x128xf32>
    %c2 = arith.constant 2 : index
    %c0_62 = arith.constant 0 : index
    %c0_63 = arith.constant 0 : index
    %106 = vector.load %arg4[%c2, %c0_62, %c0_63] : memref<4x128x32xbf16, #tpu.memory_space<vmem>>, vector<1x128x32xbf16>
    %107 = vector.shape_cast %106 : vector<1x128x32xbf16> to vector<128x32xbf16>
    %cst_64 = arith.constant dense<0.000000e+00> : vector<16x32xf32>
    %108 = tpu.matmul %15, %107, %cst_64 {dimension_numbers = #tpu.dot_dimension_numbers<[1], [0], [0], [1], [0, 0, 1, 1], [], []>} : vector<16x128xbf16>, vector<128x32xbf16>, vector<16x32xf32> -> vector<16x32xf32>
    %c2_65 = arith.constant 2 : index
    %c0_66 = arith.constant 0 : index
    %c0_67 = arith.constant 0 : index
    %109 = vector.load %arg8[%c2_65, %c0_66, %c0_67] : memref<4x1x32xf32, #tpu.memory_space<vmem>>, vector<1x1x32xf32>
    %110 = vector.shape_cast %109 : vector<1x1x32xf32> to vector<1x32xf32>
    %111 = vector.broadcast %110 : vector<1x32xf32> to vector<16x32xf32>
    %112 = arith.addf %108, %111 : vector<16x32xf32>
    %c2_68 = arith.constant 2 : index
    %c0_69 = arith.constant 0 : index
    %c0_70 = arith.constant 0 : index
    %113 = vector.load %arg5[%c2_68, %c0_69, %c0_70] : memref<4x128x32xbf16, #tpu.memory_space<vmem>>, vector<1x128x32xbf16>
    %114 = vector.shape_cast %113 : vector<1x128x32xbf16> to vector<128x32xbf16>
    %cst_71 = arith.constant dense<0.000000e+00> : vector<16x32xf32>
    %115 = tpu.matmul %16, %114, %cst_71 {dimension_numbers = #tpu.dot_dimension_numbers<[1], [0], [0], [1], [0, 0, 1, 1], [], []>} : vector<16x128xbf16>, vector<128x32xbf16>, vector<16x32xf32> -> vector<16x32xf32>
    %c2_72 = arith.constant 2 : index
    %c0_73 = arith.constant 0 : index
    %c0_74 = arith.constant 0 : index
    %116 = vector.load %arg9[%c2_72, %c0_73, %c0_74] : memref<4x1x32xf32, #tpu.memory_space<vmem>>, vector<1x1x32xf32>
    %117 = vector.shape_cast %116 : vector<1x1x32xf32> to vector<1x32xf32>
    %118 = vector.broadcast %117 : vector<1x32xf32> to vector<16x32xf32>
    %119 = arith.addf %115, %118 : vector<16x32xf32>
    %c2_75 = arith.constant 2 : index
    %c0_76 = arith.constant 0 : index
    %c0_77 = arith.constant 0 : index
    %120 = vector.load %arg6[%c2_75, %c0_76, %c0_77] : memref<4x128x32xbf16, #tpu.memory_space<vmem>>, vector<1x128x32xbf16>
    %121 = vector.shape_cast %120 : vector<1x128x32xbf16> to vector<128x32xbf16>
    %cst_78 = arith.constant dense<0.000000e+00> : vector<16x32xf32>
    %122 = tpu.matmul %16, %121, %cst_78 {dimension_numbers = #tpu.dot_dimension_numbers<[1], [0], [0], [1], [0, 0, 1, 1], [], []>} : vector<16x128xbf16>, vector<128x32xbf16>, vector<16x32xf32> -> vector<16x32xf32>
    %c2_79 = arith.constant 2 : index
    %c0_80 = arith.constant 0 : index
    %c0_81 = arith.constant 0 : index
    %123 = vector.load %arg10[%c2_79, %c0_80, %c0_81] : memref<4x1x32xf32, #tpu.memory_space<vmem>>, vector<1x1x32xf32>
    %124 = vector.shape_cast %123 : vector<1x1x32xf32> to vector<1x32xf32>
    %125 = vector.broadcast %124 : vector<1x32xf32> to vector<16x32xf32>
    %126 = arith.addf %122, %125 : vector<16x32xf32>
    %cst_82 = arith.constant 0.176776692 : f32
    %127 = vector.broadcast %cst_82 : f32 to vector<16x32xf32>
    %128 = arith.mulf %112, %127 : vector<16x32xf32>
    %129 = arith.truncf %128 : vector<16x32xf32> to vector<16x32xbf16>
    %130 = arith.truncf %119 : vector<16x32xf32> to vector<16x32xbf16>
    %cst_83 = arith.constant dense<0.000000e+00> : vector<16x16xf32>
    %131 = tpu.matmul %129, %130, %cst_83 {dimension_numbers = #tpu.dot_dimension_numbers<[1], [1], [0], [0], [0, 0, 1, 0], [], []>} : vector<16x32xbf16>, vector<16x32xbf16>, vector<16x16xf32> -> vector<16x16xf32>
    %132 = arith.addf %131, %14 : vector<16x16xf32>
    %cst_84 = arith.constant dense<0xFF800000> : vector<16xf32>
    %133 = vector.multi_reduction <maximumf>, %132, %cst_84 [1] : vector<16x16xf32> to vector<16xf32>
    %134 = vector.shape_cast %133 : vector<16xf32> to vector<16x1xf32>
    %135 = vector.broadcast %134 : vector<16x1xf32> to vector<16x16xf32>
    %136 = arith.subf %132, %135 : vector<16x16xf32>
    %137 = math.exp %136 : vector<16x16xf32>
    %cst_85 = arith.constant dense<0.000000e+00> : vector<16xf32>
    %138 = vector.multi_reduction <add>, %137, %cst_85 [1] : vector<16x16xf32> to vector<16xf32>
    %139 = vector.shape_cast %138 : vector<16xf32> to vector<16x1xf32>
    %140 = tpu.reciprocal %139 {approx = true} : vector<16x1xf32> -> vector<16x1xf32>
    %141 = vector.broadcast %140 : vector<16x1xf32> to vector<16x16xf32>
    %142 = arith.mulf %137, %141 : vector<16x16xf32>
    %143 = arith.truncf %142 : vector<16x16xf32> to vector<16x16xbf16>
    %144 = arith.truncf %126 : vector<16x32xf32> to vector<16x32xbf16>
    %cst_86 = arith.constant dense<0.000000e+00> : vector<16x32xf32>
    %145 = tpu.matmul %143, %144, %cst_86 {dimension_numbers = #tpu.dot_dimension_numbers<[1], [0], [0], [1], [0, 0, 1, 1], [], []>} : vector<16x16xbf16>, vector<16x32xbf16>, vector<16x32xf32> -> vector<16x32xf32>
    %146 = arith.truncf %145 : vector<16x32xf32> to vector<16x32xbf16>
    %c2_87 = arith.constant 2 : index
    %c0_88 = arith.constant 0 : index
    %c0_89 = arith.constant 0 : index
    %147 = vector.load %arg7[%c2_87, %c0_88, %c0_89] : memref<4x32x128xbf16, #tpu.memory_space<vmem>>, vector<1x32x128xbf16>
    %148 = vector.shape_cast %147 : vector<1x32x128xbf16> to vector<32x128xbf16>
    %cst_90 = arith.constant dense<0.000000e+00> : vector<16x128xf32>
    %149 = tpu.matmul %146, %148, %cst_90 {dimension_numbers = #tpu.dot_dimension_numbers<[1], [0], [0], [1], [0, 0, 1, 1], [], []>} : vector<16x32xbf16>, vector<32x128xbf16>, vector<16x128xf32> -> vector<16x128xf32>
    %150 = arith.addf %105, %149 : vector<16x128xf32>
    %c3 = arith.constant 3 : index
    %c0_91 = arith.constant 0 : index
    %c0_92 = arith.constant 0 : index
    %151 = vector.load %arg4[%c3, %c0_91, %c0_92] : memref<4x128x32xbf16, #tpu.memory_space<vmem>>, vector<1x128x32xbf16>
    %152 = vector.shape_cast %151 : vector<1x128x32xbf16> to vector<128x32xbf16>
    %cst_93 = arith.constant dense<0.000000e+00> : vector<16x32xf32>
    %153 = tpu.matmul %15, %152, %cst_93 {dimension_numbers = #tpu.dot_dimension_numbers<[1], [0], [0], [1], [0, 0, 1, 1], [], []>} : vector<16x128xbf16>, vector<128x32xbf16>, vector<16x32xf32> -> vector<16x32xf32>
    %c3_94 = arith.constant 3 : index
    %c0_95 = arith.constant 0 : index
    %c0_96 = arith.constant 0 : index
    %154 = vector.load %arg8[%c3_94, %c0_95, %c0_96] : memref<4x1x32xf32, #tpu.memory_space<vmem>>, vector<1x1x32xf32>
    %155 = vector.shape_cast %154 : vector<1x1x32xf32> to vector<1x32xf32>
    %156 = vector.broadcast %155 : vector<1x32xf32> to vector<16x32xf32>
    %157 = arith.addf %153, %156 : vector<16x32xf32>
    %c3_97 = arith.constant 3 : index
    %c0_98 = arith.constant 0 : index
    %c0_99 = arith.constant 0 : index
    %158 = vector.load %arg5[%c3_97, %c0_98, %c0_99] : memref<4x128x32xbf16, #tpu.memory_space<vmem>>, vector<1x128x32xbf16>
    %159 = vector.shape_cast %158 : vector<1x128x32xbf16> to vector<128x32xbf16>
    %cst_100 = arith.constant dense<0.000000e+00> : vector<16x32xf32>
    %160 = tpu.matmul %16, %159, %cst_100 {dimension_numbers = #tpu.dot_dimension_numbers<[1], [0], [0], [1], [0, 0, 1, 1], [], []>} : vector<16x128xbf16>, vector<128x32xbf16>, vector<16x32xf32> -> vector<16x32xf32>
    %c3_101 = arith.constant 3 : index
    %c0_102 = arith.constant 0 : index
    %c0_103 = arith.constant 0 : index
    %161 = vector.load %arg9[%c3_101, %c0_102, %c0_103] : memref<4x1x32xf32, #tpu.memory_space<vmem>>, vector<1x1x32xf32>
    %162 = vector.shape_cast %161 : vector<1x1x32xf32> to vector<1x32xf32>
    %163 = vector.broadcast %162 : vector<1x32xf32> to vector<16x32xf32>
    %164 = arith.addf %160, %163 : vector<16x32xf32>
    %c3_104 = arith.constant 3 : index
    %c0_105 = arith.constant 0 : index
    %c0_106 = arith.constant 0 : index
    %165 = vector.load %arg6[%c3_104, %c0_105, %c0_106] : memref<4x128x32xbf16, #tpu.memory_space<vmem>>, vector<1x128x32xbf16>
    %166 = vector.shape_cast %165 : vector<1x128x32xbf16> to vector<128x32xbf16>
    %cst_107 = arith.constant dense<0.000000e+00> : vector<16x32xf32>
    %167 = tpu.matmul %16, %166, %cst_107 {dimension_numbers = #tpu.dot_dimension_numbers<[1], [0], [0], [1], [0, 0, 1, 1], [], []>} : vector<16x128xbf16>, vector<128x32xbf16>, vector<16x32xf32> -> vector<16x32xf32>
    %c3_108 = arith.constant 3 : index
    %c0_109 = arith.constant 0 : index
    %c0_110 = arith.constant 0 : index
    %168 = vector.load %arg10[%c3_108, %c0_109, %c0_110] : memref<4x1x32xf32, #tpu.memory_space<vmem>>, vector<1x1x32xf32>
    %169 = vector.shape_cast %168 : vector<1x1x32xf32> to vector<1x32xf32>
    %170 = vector.broadcast %169 : vector<1x32xf32> to vector<16x32xf32>
    %171 = arith.addf %167, %170 : vector<16x32xf32>
    %cst_111 = arith.constant 0.176776692 : f32
    %172 = vector.broadcast %cst_111 : f32 to vector<16x32xf32>
    %173 = arith.mulf %157, %172 : vector<16x32xf32>
    %174 = arith.truncf %173 : vector<16x32xf32> to vector<16x32xbf16>
    %175 = arith.truncf %164 : vector<16x32xf32> to vector<16x32xbf16>
    %cst_112 = arith.constant dense<0.000000e+00> : vector<16x16xf32>
    %176 = tpu.matmul %174, %175, %cst_112 {dimension_numbers = #tpu.dot_dimension_numbers<[1], [1], [0], [0], [0, 0, 1, 0], [], []>} : vector<16x32xbf16>, vector<16x32xbf16>, vector<16x16xf32> -> vector<16x16xf32>
    %177 = arith.addf %176, %14 : vector<16x16xf32>
    %cst_113 = arith.constant dense<0xFF800000> : vector<16xf32>
    %178 = vector.multi_reduction <maximumf>, %177, %cst_113 [1] : vector<16x16xf32> to vector<16xf32>
    %179 = vector.shape_cast %178 : vector<16xf32> to vector<16x1xf32>
    %180 = vector.broadcast %179 : vector<16x1xf32> to vector<16x16xf32>
    %181 = arith.subf %177, %180 : vector<16x16xf32>
    %182 = math.exp %181 : vector<16x16xf32>
    %cst_114 = arith.constant dense<0.000000e+00> : vector<16xf32>
    %183 = vector.multi_reduction <add>, %182, %cst_114 [1] : vector<16x16xf32> to vector<16xf32>
    %184 = vector.shape_cast %183 : vector<16xf32> to vector<16x1xf32>
    %185 = tpu.reciprocal %184 {approx = true} : vector<16x1xf32> -> vector<16x1xf32>
    %186 = vector.broadcast %185 : vector<16x1xf32> to vector<16x16xf32>
    %187 = arith.mulf %182, %186 : vector<16x16xf32>
    %188 = arith.truncf %187 : vector<16x16xf32> to vector<16x16xbf16>
    %189 = arith.truncf %171 : vector<16x32xf32> to vector<16x32xbf16>
    %cst_115 = arith.constant dense<0.000000e+00> : vector<16x32xf32>
    %190 = tpu.matmul %188, %189, %cst_115 {dimension_numbers = #tpu.dot_dimension_numbers<[1], [0], [0], [1], [0, 0, 1, 1], [], []>} : vector<16x16xbf16>, vector<16x32xbf16>, vector<16x32xf32> -> vector<16x32xf32>
    %191 = arith.truncf %190 : vector<16x32xf32> to vector<16x32xbf16>
    %c3_116 = arith.constant 3 : index
    %c0_117 = arith.constant 0 : index
    %c0_118 = arith.constant 0 : index
    %192 = vector.load %arg7[%c3_116, %c0_117, %c0_118] : memref<4x32x128xbf16, #tpu.memory_space<vmem>>, vector<1x32x128xbf16>
    %193 = vector.shape_cast %192 : vector<1x32x128xbf16> to vector<32x128xbf16>
    %cst_119 = arith.constant dense<0.000000e+00> : vector<16x128xf32>
    %194 = tpu.matmul %191, %193, %cst_119 {dimension_numbers = #tpu.dot_dimension_numbers<[1], [0], [0], [1], [0, 0, 1, 1], [], []>} : vector<16x32xbf16>, vector<32x128xbf16>, vector<16x128xf32> -> vector<16x128xf32>
    %195 = arith.addf %150, %194 : vector<16x128xf32>
    %c0_120 = arith.constant 0 : index
    %c0_121 = arith.constant 0 : index
    %196 = vector.load %arg11[%c0_120, %c0_121] : memref<1x128xf32, #tpu.memory_space<vmem>>, vector<1x128xf32>
    %197 = vector.broadcast %196 : vector<1x128xf32> to vector<16x128xf32>
    %198 = arith.addf %195, %197 : vector<16x128xf32>
    %199 = arith.addf %1, %198 : vector<16x128xf32>
    %cst_122 = arith.constant dense<0.000000e+00> : vector<16xf32>
    %200 = vector.multi_reduction <add>, %199, %cst_122 [1] : vector<16x128xf32> to vector<16xf32>
    %201 = vector.shape_cast %200 : vector<16xf32> to vector<16x1xf32>
    %cst_123 = arith.constant 1.280000e+02 : f32
    %202 = vector.broadcast %cst_123 : f32 to vector<16x1xf32>
    %203 = arith.divf %201, %202 : vector<16x1xf32>
    %204 = vector.broadcast %203 : vector<16x1xf32> to vector<16x128xf32>
    %205 = arith.subf %199, %204 : vector<16x128xf32>
    %206 = vector.broadcast %203 : vector<16x1xf32> to vector<16x128xf32>
    %207 = arith.subf %199, %206 : vector<16x128xf32>
    %208 = arith.mulf %205, %207 : vector<16x128xf32>
    %cst_124 = arith.constant dense<0.000000e+00> : vector<16xf32>
    %209 = vector.multi_reduction <add>, %208, %cst_124 [1] : vector<16x128xf32> to vector<16xf32>
    %210 = vector.shape_cast %209 : vector<16xf32> to vector<16x1xf32>
    %cst_125 = arith.constant 1.280000e+02 : f32
    %211 = vector.broadcast %cst_125 : f32 to vector<16x1xf32>
    %212 = arith.divf %210, %211 : vector<16x1xf32>
    %213 = vector.broadcast %203 : vector<16x1xf32> to vector<16x128xf32>
    %214 = arith.subf %199, %213 : vector<16x128xf32>
    %cst_126 = arith.constant 9.99999974E-6 : f32
    %215 = vector.broadcast %cst_126 : f32 to vector<16x1xf32>
    %216 = arith.addf %212, %215 : vector<16x1xf32>
    %217 = math.rsqrt %216 : vector<16x1xf32>
    %218 = vector.broadcast %217 : vector<16x1xf32> to vector<16x128xf32>
    %219 = arith.mulf %214, %218 : vector<16x128xf32>
    %c0_127 = arith.constant 0 : index
    %c0_128 = arith.constant 0 : index
    %220 = vector.load %arg12[%c0_127, %c0_128] : memref<1x128xf32, #tpu.memory_space<vmem>>, vector<1x128xf32>
    %221 = vector.broadcast %220 : vector<1x128xf32> to vector<16x128xf32>
    %222 = arith.mulf %219, %221 : vector<16x128xf32>
    %c0_129 = arith.constant 0 : index
    %c0_130 = arith.constant 0 : index
    %223 = vector.load %arg13[%c0_129, %c0_130] : memref<1x128xf32, #tpu.memory_space<vmem>>, vector<1x128xf32>
    %224 = vector.broadcast %223 : vector<1x128xf32> to vector<16x128xf32>
    %225 = arith.addf %222, %224 : vector<16x128xf32>
    %c0_131 = arith.constant 0 : index
    %c0_132 = arith.constant 0 : index
    %c0_133 = arith.constant 0 : index
    %226 = vector.load %arg14[%c0_131, %c0_132, %c0_133] : memref<1x16x128xf32, #tpu.memory_space<vmem>>, vector<1x16x128xf32>
    %227 = vector.shape_cast %226 : vector<1x16x128xf32> to vector<16x128xf32>
    %228 = vector.shape_cast %225 : vector<16x128xf32> to vector<1x16x128xf32>
    tpu.vector_store %arg14[%c0_131, %c0_132, %c0_133], %228 {strides = array<i32>} : memref<1x16x128xf32, #tpu.memory_space<vmem>>, vector<1x16x128xf32>,
    return
  }
  func.func @transform_0(%arg0: i32, %arg1: i32, %arg2: memref<2xi32, #tpu.memory_space<smem>>) -> (i32, i32, i32) {
    %c0_i32 = arith.constant 0 : i32
    %c0_i32_0 = arith.constant 0 : i32
    %c0_i32_1 = arith.constant 0 : i32
    return %arg0, %c0_i32, %c0_i32_0 : i32, i32, i32
  }
  func.func @transform_1(%arg0: i32, %arg1: i32, %arg2: memref<2xi32, #tpu.memory_space<smem>>) -> (i32, i32, i32) {
    %c0_i32 = arith.constant 0 : i32
    %c0_i32_0 = arith.constant 0 : i32
    %c0_i32_1 = arith.constant 0 : i32
    %c0_i32_2 = arith.constant 0 : i32
    return %c0_i32, %c0_i32_0, %c0_i32_1 : i32, i32, i32
  }
  func.func @transform_2(%arg0: i32, %arg1: i32, %arg2: memref<2xi32, #tpu.memory_space<smem>>) -> (i32, i32, i32) {
    %c0_i32 = arith.constant 0 : i32
    %c0_i32_0 = arith.constant 0 : i32
    %c0_i32_1 = arith.constant 0 : i32
    %c0_i32_2 = arith.constant 0 : i32
    return %c0_i32, %c0_i32_0, %c0_i32_1 : i32, i32, i32
  }
  func.func @transform_3(%arg0: i32, %arg1: i32, %arg2: memref<2xi32, #tpu.memory_space<smem>>) -> (i32, i32, i32) {
    %c0_i32 = arith.constant 0 : i32
    %c0_i32_0 = arith.constant 0 : i32
    %c0_i32_1 = arith.constant 0 : i32
    %c0_i32_2 = arith.constant 0 : i32
    return %c0_i32, %c0_i32_0, %c0_i32_1 : i32, i32, i32
  }
  func.func @transform_4(%arg0: i32, %arg1: i32, %arg2: memref<2xi32, #tpu.memory_space<smem>>) -> (i32, i32, i32) {
    %c0_i32 = arith.constant 0 : i32
    %c0_i32_0 = arith.constant 0 : i32
    %c0_i32_1 = arith.constant 0 : i32
    %c0_i32_2 = arith.constant 0 : i32
    return %c0_i32, %c0_i32_0, %c0_i32_1 : i32, i32, i32
  }
  func.func @transform_5(%arg0: i32, %arg1: i32, %arg2: memref<2xi32, #tpu.memory_space<smem>>) -> (i32, i32, i32) {
    %c0_i32 = arith.constant 0 : i32
    %c0_i32_0 = arith.constant 0 : i32
    %c0_i32_1 = arith.constant 0 : i32
    %c0_i32_2 = arith.constant 0 : i32
    return %c0_i32, %c0_i32_0, %c0_i32_1 : i32, i32, i32
  }
  func.func @transform_6(%arg0: i32, %arg1: i32, %arg2: memref<2xi32, #tpu.memory_space<smem>>) -> (i32, i32, i32) {
    %c0_i32 = arith.constant 0 : i32
    %c0_i32_0 = arith.constant 0 : i32
    %c0_i32_1 = arith.constant 0 : i32
    %c0_i32_2 = arith.constant 0 : i32
    return %c0_i32, %c0_i32_0, %c0_i32_1 : i32, i32, i32
  }
  func.func @transform_7(%arg0: i32, %arg1: i32, %arg2: memref<2xi32, #tpu.memory_space<smem>>) -> (i32, i32, i32) {
    %c0_i32 = arith.constant 0 : i32
    %c0_i32_0 = arith.constant 0 : i32
    %c0_i32_1 = arith.constant 0 : i32
    %c0_i32_2 = arith.constant 0 : i32
    return %c0_i32, %c0_i32_0, %c0_i32_1 : i32, i32, i32
  }
  func.func @transform_8(%arg0: i32, %arg1: i32, %arg2: memref<2xi32, #tpu.memory_space<smem>>) -> (i32, i32) {
    %c0_i32 = arith.constant 0 : i32
    %c0_i32_0 = arith.constant 0 : i32
    %c0_i32_1 = arith.constant 0 : i32
    return %c0_i32, %c0_i32_0 : i32, i32
  }
  func.func @transform_9(%arg0: i32, %arg1: i32, %arg2: memref<2xi32, #tpu.memory_space<smem>>) -> (i32, i32) {
    %c0_i32 = arith.constant 0 : i32
    %c0_i32_0 = arith.constant 0 : i32
    %c0_i32_1 = arith.constant 0 : i32
    return %c0_i32, %c0_i32_0 : i32, i32
  }
  func.func @transform_10(%arg0: i32, %arg1: i32, %arg2: memref<2xi32, #tpu.memory_space<smem>>) -> (i32, i32) {
    %c0_i32 = arith.constant 0 : i32
    %c0_i32_0 = arith.constant 0 : i32
    %c0_i32_1 = arith.constant 0 : i32
    return %c0_i32, %c0_i32_0 : i32, i32
  }
  func.func @transform_11(%arg0: i32, %arg1: i32, %arg2: memref<2xi32, #tpu.memory_space<smem>>) -> (i32, i32, i32) {
    %c0_i32 = arith.constant 0 : i32
    %c0_i32_0 = arith.constant 0 : i32
    return %arg0, %arg1, %c0_i32 : i32, i32, i32
  }
}

module attributes {stable_mosaic.version = 11 : i64} {
  func.func @_mha_cross_ln_kernel(%arg0: i32, %arg1: i32, %arg2: memref<2xi32, #tpu.memory_space<smem>>, %arg3: memref<1x16x128xf32, #tpu.memory_space<vmem>>, %arg4: memref<1x16x128xf32, #tpu.memory_space<vmem>>, %arg5: memref<4x128x32xbf16, #tpu.memory_space<vmem>>, %arg6: memref<4x128x32xbf16, #tpu.memory_space<vmem>>, %arg7: memref<4x128x32xbf16, #tpu.memory_space<vmem>>, %arg8: memref<4x32x128xbf16, #tpu.memory_space<vmem>>, %arg9: memref<4x1x32xf32, #tpu.memory_space<vmem>>, %arg10: memref<4x1x32xf32, #tpu.memory_space<vmem>>, %arg11: memref<4x1x32xf32, #tpu.memory_space<vmem>>, %arg12: memref<1x128xf32, #tpu.memory_space<vmem>>, %arg13: memref<1x128xf32, #tpu.memory_space<vmem>>, %arg14: memref<1x128xf32, #tpu.memory_space<vmem>>, %arg15: memref<1x16x128xf32, #tpu.memory_space<vmem>>) attributes {dimension_semantics = [#tpu.dimension_semantics<parallel>, #tpu.dimension_semantics<parallel>], iteration_bounds = array<i64: 2, 1>, scalar_prefetch = 1 : i64, scratch_operands = 0 : i64, tpu.core_type = #tpu.core_type<tc>, window_params = [{transform_indices = @transform_0, window_bounds = array<i64: 1, 16, 128>}, {transform_indices = @transform_1, window_bounds = array<i64: 1, 16, 128>}, {pipeline_mode = #tpu.pipeline_mode<synchronous>, transform_indices = @transform_2, window_bounds = array<i64: 4, 128, 32>}, {pipeline_mode = #tpu.pipeline_mode<synchronous>, transform_indices = @transform_3, window_bounds = array<i64: 4, 128, 32>}, {pipeline_mode = #tpu.pipeline_mode<synchronous>, transform_indices = @transform_4, window_bounds = array<i64: 4, 128, 32>}, {pipeline_mode = #tpu.pipeline_mode<synchronous>, transform_indices = @transform_5, window_bounds = array<i64: 4, 32, 128>}, {pipeline_mode = #tpu.pipeline_mode<synchronous>, transform_indices = @transform_6, window_bounds = array<i64: 4, 1, 32>}, {pipeline_mode = #tpu.pipeline_mode<synchronous>, transform_indices = @transform_7, window_bounds = array<i64: 4, 1, 32>}, {pipeline_mode = #tpu.pipeline_mode<synchronous>, transform_indices = @transform_8, window_bounds = array<i64: 4, 1, 32>}, {pipeline_mode = #tpu.pipeline_mode<synchronous>, transform_indices = @transform_9, window_bounds = array<i64: 1, 128>}, {pipeline_mode = #tpu.pipeline_mode<synchronous>, transform_indices = @transform_10, window_bounds = array<i64: 1, 128>}, {pipeline_mode = #tpu.pipeline_mode<synchronous>, transform_indices = @transform_11, window_bounds = array<i64: 1, 128>}, {transform_indices = @transform_12, window_bounds = array<i64: 1, 16, 128>}]} {
    %c0 = arith.constant 0 : index
    %c0_0 = arith.constant 0 : index
    %c0_1 = arith.constant 0 : index
    %0 = vector.load %arg3[%c0, %c0_0, %c0_1] : memref<1x16x128xf32, #tpu.memory_space<vmem>>, vector<1x16x128xf32>
    %1 = vector.shape_cast %0 : vector<1x16x128xf32> to vector<16x128xf32>
    %c0_2 = arith.constant 0 : index
    %c0_3 = arith.constant 0 : index
    %c0_4 = arith.constant 0 : index
    %2 = vector.load %arg4[%c0_2, %c0_3, %c0_4] : memref<1x16x128xf32, #tpu.memory_space<vmem>>, vector<1x16x128xf32>
    %3 = vector.shape_cast %2 : vector<1x16x128xf32> to vector<16x128xf32>
    %4 = tpu.iota {dimensions = array<i32: 1>} : vector<16x16xi32>
    %5 = arith.index_cast %arg0 : i32 to index
    %6 = memref.load %arg2[%5] : memref<2xi32, #tpu.memory_space<smem>>
    %7 = vector.broadcast %6 : i32 to vector<16x16xi32>
    %8 = arith.cmpi slt, %4, %7 : vector<16x16xi32>
    %cst = arith.constant 0.000000e+00 : f32
    %cst_5 = arith.constant -1.000000e+09 : f32
    %9 = vector.broadcast %cst : f32 to vector<16x16xf32>
    %10 = vector.broadcast %cst_5 : f32 to vector<16x16xf32>
    %11 = arith.select %8, %9, %10 : vector<16x16xi1>, vector<16x16xf32>
    %12 = arith.truncf %1 : vector<16x128xf32> to vector<16x128xbf16>
    %13 = arith.truncf %3 : vector<16x128xf32> to vector<16x128xbf16>
    %c0_6 = arith.constant 0 : index
    %c0_7 = arith.constant 0 : index
    %c0_8 = arith.constant 0 : index
    %14 = vector.load %arg5[%c0_6, %c0_7, %c0_8] : memref<4x128x32xbf16, #tpu.memory_space<vmem>>, vector<1x128x32xbf16>
    %15 = vector.shape_cast %14 : vector<1x128x32xbf16> to vector<128x32xbf16>
    %cst_9 = arith.constant dense<0.000000e+00> : vector<16x32xf32>
    %16 = tpu.matmul %12, %15, %cst_9 {dimension_numbers = #tpu.dot_dimension_numbers<[1], [0], [0], [1], [0, 0, 1, 1], [], []>} : vector<16x128xbf16>, vector<128x32xbf16>, vector<16x32xf32> -> vector<16x32xf32>
    %c0_10 = arith.constant 0 : index
    %c0_11 = arith.constant 0 : index
    %c0_12 = arith.constant 0 : index
    %17 = vector.load %arg9[%c0_10, %c0_11, %c0_12] : memref<4x1x32xf32, #tpu.memory_space<vmem>>, vector<1x1x32xf32>
    %18 = vector.shape_cast %17 : vector<1x1x32xf32> to vector<1x32xf32>
    %19 = vector.broadcast %18 : vector<1x32xf32> to vector<16x32xf32>
    %20 = arith.addf %16, %19 : vector<16x32xf32>
    %c0_13 = arith.constant 0 : index
    %c0_14 = arith.constant 0 : index
    %c0_15 = arith.constant 0 : index
    %21 = vector.load %arg6[%c0_13, %c0_14, %c0_15] : memref<4x128x32xbf16, #tpu.memory_space<vmem>>, vector<1x128x32xbf16>
    %22 = vector.shape_cast %21 : vector<1x128x32xbf16> to vector<128x32xbf16>
    %cst_16 = arith.constant dense<0.000000e+00> : vector<16x32xf32>
    %23 = tpu.matmul %13, %22, %cst_16 {dimension_numbers = #tpu.dot_dimension_numbers<[1], [0], [0], [1], [0, 0, 1, 1], [], []>} : vector<16x128xbf16>, vector<128x32xbf16>, vector<16x32xf32> -> vector<16x32xf32>
    %c0_17 = arith.constant 0 : index
    %c0_18 = arith.constant 0 : index
    %c0_19 = arith.constant 0 : index
    %24 = vector.load %arg10[%c0_17, %c0_18, %c0_19] : memref<4x1x32xf32, #tpu.memory_space<vmem>>, vector<1x1x32xf32>
    %25 = vector.shape_cast %24 : vector<1x1x32xf32> to vector<1x32xf32>
    %26 = vector.broadcast %25 : vector<1x32xf32> to vector<16x32xf32>
    %27 = arith.addf %23, %26 : vector<16x32xf32>
    %c0_20 = arith.constant 0 : index
    %c0_21 = arith.constant 0 : index
    %c0_22 = arith.constant 0 : index
    %28 = vector.load %arg7[%c0_20, %c0_21, %c0_22] : memref<4x128x32xbf16, #tpu.memory_space<vmem>>, vector<1x128x32xbf16>
    %29 = vector.shape_cast %28 : vector<1x128x32xbf16> to vector<128x32xbf16>
    %cst_23 = arith.constant dense<0.000000e+00> : vector<16x32xf32>
    %30 = tpu.matmul %13, %29, %cst_23 {dimension_numbers = #tpu.dot_dimension_numbers<[1], [0], [0], [1], [0, 0, 1, 1], [], []>} : vector<16x128xbf16>, vector<128x32xbf16>, vector<16x32xf32> -> vector<16x32xf32>
    %c0_24 = arith.constant 0 : index
    %c0_25 = arith.constant 0 : index
    %c0_26 = arith.constant 0 : index
    %31 = vector.load %arg11[%c0_24, %c0_25, %c0_26] : memref<4x1x32xf32, #tpu.memory_space<vmem>>, vector<1x1x32xf32>
    %32 = vector.shape_cast %31 : vector<1x1x32xf32> to vector<1x32xf32>
    %33 = vector.broadcast %32 : vector<1x32xf32> to vector<16x32xf32>
    %34 = arith.addf %30, %33 : vector<16x32xf32>
    %cst_27 = arith.constant 0.176776692 : f32
    %35 = vector.broadcast %cst_27 : f32 to vector<16x32xf32>
    %36 = arith.mulf %20, %35 : vector<16x32xf32>
    %37 = arith.truncf %36 : vector<16x32xf32> to vector<16x32xbf16>
    %38 = arith.truncf %27 : vector<16x32xf32> to vector<16x32xbf16>
    %cst_28 = arith.constant dense<0.000000e+00> : vector<16x16xf32>
    %39 = tpu.matmul %37, %38, %cst_28 {dimension_numbers = #tpu.dot_dimension_numbers<[1], [1], [0], [0], [0, 0, 1, 0], [], []>} : vector<16x32xbf16>, vector<16x32xbf16>, vector<16x16xf32> -> vector<16x16xf32>
    %40 = arith.addf %39, %11 : vector<16x16xf32>
    %cst_29 = arith.constant dense<0xFF800000> : vector<16xf32>
    %41 = vector.multi_reduction <maximumf>, %40, %cst_29 [1] : vector<16x16xf32> to vector<16xf32>
    %42 = vector.shape_cast %41 : vector<16xf32> to vector<16x1xf32>
    %43 = vector.broadcast %42 : vector<16x1xf32> to vector<16x16xf32>
    %44 = arith.subf %40, %43 : vector<16x16xf32>
    %45 = math.exp %44 : vector<16x16xf32>
    %cst_30 = arith.constant dense<0.000000e+00> : vector<16xf32>
    %46 = vector.multi_reduction <add>, %45, %cst_30 [1] : vector<16x16xf32> to vector<16xf32>
    %47 = vector.shape_cast %46 : vector<16xf32> to vector<16x1xf32>
    %48 = tpu.reciprocal %47 {approx = true} : vector<16x1xf32> -> vector<16x1xf32>
    %49 = vector.broadcast %48 : vector<16x1xf32> to vector<16x16xf32>
    %50 = arith.mulf %45, %49 : vector<16x16xf32>
    %51 = arith.truncf %50 : vector<16x16xf32> to vector<16x16xbf16>
    %52 = arith.truncf %34 : vector<16x32xf32> to vector<16x32xbf16>
    %cst_31 = arith.constant dense<0.000000e+00> : vector<16x32xf32>
    %53 = tpu.matmul %51, %52, %cst_31 {dimension_numbers = #tpu.dot_dimension_numbers<[1], [0], [0], [1], [0, 0, 1, 1], [], []>} : vector<16x16xbf16>, vector<16x32xbf16>, vector<16x32xf32> -> vector<16x32xf32>
    %54 = arith.truncf %53 : vector<16x32xf32> to vector<16x32xbf16>
    %c0_32 = arith.constant 0 : index
    %c0_33 = arith.constant 0 : index
    %c0_34 = arith.constant 0 : index
    %55 = vector.load %arg8[%c0_32, %c0_33, %c0_34] : memref<4x32x128xbf16, #tpu.memory_space<vmem>>, vector<1x32x128xbf16>
    %56 = vector.shape_cast %55 : vector<1x32x128xbf16> to vector<32x128xbf16>
    %cst_35 = arith.constant dense<0.000000e+00> : vector<16x128xf32>
    %57 = tpu.matmul %54, %56, %cst_35 {dimension_numbers = #tpu.dot_dimension_numbers<[1], [0], [0], [1], [0, 0, 1, 1], [], []>} : vector<16x32xbf16>, vector<32x128xbf16>, vector<16x128xf32> -> vector<16x128xf32>
    %c1 = arith.constant 1 : index
    %c0_36 = arith.constant 0 : index
    %c0_37 = arith.constant 0 : index
    %58 = vector.load %arg5[%c1, %c0_36, %c0_37] : memref<4x128x32xbf16, #tpu.memory_space<vmem>>, vector<1x128x32xbf16>
    %59 = vector.shape_cast %58 : vector<1x128x32xbf16> to vector<128x32xbf16>
    %cst_38 = arith.constant dense<0.000000e+00> : vector<16x32xf32>
    %60 = tpu.matmul %12, %59, %cst_38 {dimension_numbers = #tpu.dot_dimension_numbers<[1], [0], [0], [1], [0, 0, 1, 1], [], []>} : vector<16x128xbf16>, vector<128x32xbf16>, vector<16x32xf32> -> vector<16x32xf32>
    %c1_39 = arith.constant 1 : index
    %c0_40 = arith.constant 0 : index
    %c0_41 = arith.constant 0 : index
    %61 = vector.load %arg9[%c1_39, %c0_40, %c0_41] : memref<4x1x32xf32, #tpu.memory_space<vmem>>, vector<1x1x32xf32>
    %62 = vector.shape_cast %61 : vector<1x1x32xf32> to vector<1x32xf32>
    %63 = vector.broadcast %62 : vector<1x32xf32> to vector<16x32xf32>
    %64 = arith.addf %60, %63 : vector<16x32xf32>
    %c1_42 = arith.constant 1 : index
    %c0_43 = arith.constant 0 : index
    %c0_44 = arith.constant 0 : index
    %65 = vector.load %arg6[%c1_42, %c0_43, %c0_44] : memref<4x128x32xbf16, #tpu.memory_space<vmem>>, vector<1x128x32xbf16>
    %66 = vector.shape_cast %65 : vector<1x128x32xbf16> to vector<128x32xbf16>
    %cst_45 = arith.constant dense<0.000000e+00> : vector<16x32xf32>
    %67 = tpu.matmul %13, %66, %cst_45 {dimension_numbers = #tpu.dot_dimension_numbers<[1], [0], [0], [1], [0, 0, 1, 1], [], []>} : vector<16x128xbf16>, vector<128x32xbf16>, vector<16x32xf32> -> vector<16x32xf32>
    %c1_46 = arith.constant 1 : index
    %c0_47 = arith.constant 0 : index
    %c0_48 = arith.constant 0 : index
    %68 = vector.load %arg10[%c1_46, %c0_47, %c0_48] : memref<4x1x32xf32, #tpu.memory_space<vmem>>, vector<1x1x32xf32>
    %69 = vector.shape_cast %68 : vector<1x1x32xf32> to vector<1x32xf32>
    %70 = vector.broadcast %69 : vector<1x32xf32> to vector<16x32xf32>
    %71 = arith.addf %67, %70 : vector<16x32xf32>
    %c1_49 = arith.constant 1 : index
    %c0_50 = arith.constant 0 : index
    %c0_51 = arith.constant 0 : index
    %72 = vector.load %arg7[%c1_49, %c0_50, %c0_51] : memref<4x128x32xbf16, #tpu.memory_space<vmem>>, vector<1x128x32xbf16>
    %73 = vector.shape_cast %72 : vector<1x128x32xbf16> to vector<128x32xbf16>
    %cst_52 = arith.constant dense<0.000000e+00> : vector<16x32xf32>
    %74 = tpu.matmul %13, %73, %cst_52 {dimension_numbers = #tpu.dot_dimension_numbers<[1], [0], [0], [1], [0, 0, 1, 1], [], []>} : vector<16x128xbf16>, vector<128x32xbf16>, vector<16x32xf32> -> vector<16x32xf32>
    %c1_53 = arith.constant 1 : index
    %c0_54 = arith.constant 0 : index
    %c0_55 = arith.constant 0 : index
    %75 = vector.load %arg11[%c1_53, %c0_54, %c0_55] : memref<4x1x32xf32, #tpu.memory_space<vmem>>, vector<1x1x32xf32>
    %76 = vector.shape_cast %75 : vector<1x1x32xf32> to vector<1x32xf32>
    %77 = vector.broadcast %76 : vector<1x32xf32> to vector<16x32xf32>
    %78 = arith.addf %74, %77 : vector<16x32xf32>
    %cst_56 = arith.constant 0.176776692 : f32
    %79 = vector.broadcast %cst_56 : f32 to vector<16x32xf32>
    %80 = arith.mulf %64, %79 : vector<16x32xf32>
    %81 = arith.truncf %80 : vector<16x32xf32> to vector<16x32xbf16>
    %82 = arith.truncf %71 : vector<16x32xf32> to vector<16x32xbf16>
    %cst_57 = arith.constant dense<0.000000e+00> : vector<16x16xf32>
    %83 = tpu.matmul %81, %82, %cst_57 {dimension_numbers = #tpu.dot_dimension_numbers<[1], [1], [0], [0], [0, 0, 1, 0], [], []>} : vector<16x32xbf16>, vector<16x32xbf16>, vector<16x16xf32> -> vector<16x16xf32>
    %84 = arith.addf %83, %11 : vector<16x16xf32>
    %cst_58 = arith.constant dense<0xFF800000> : vector<16xf32>
    %85 = vector.multi_reduction <maximumf>, %84, %cst_58 [1] : vector<16x16xf32> to vector<16xf32>
    %86 = vector.shape_cast %85 : vector<16xf32> to vector<16x1xf32>
    %87 = vector.broadcast %86 : vector<16x1xf32> to vector<16x16xf32>
    %88 = arith.subf %84, %87 : vector<16x16xf32>
    %89 = math.exp %88 : vector<16x16xf32>
    %cst_59 = arith.constant dense<0.000000e+00> : vector<16xf32>
    %90 = vector.multi_reduction <add>, %89, %cst_59 [1] : vector<16x16xf32> to vector<16xf32>
    %91 = vector.shape_cast %90 : vector<16xf32> to vector<16x1xf32>
    %92 = tpu.reciprocal %91 {approx = true} : vector<16x1xf32> -> vector<16x1xf32>
    %93 = vector.broadcast %92 : vector<16x1xf32> to vector<16x16xf32>
    %94 = arith.mulf %89, %93 : vector<16x16xf32>
    %95 = arith.truncf %94 : vector<16x16xf32> to vector<16x16xbf16>
    %96 = arith.truncf %78 : vector<16x32xf32> to vector<16x32xbf16>
    %cst_60 = arith.constant dense<0.000000e+00> : vector<16x32xf32>
    %97 = tpu.matmul %95, %96, %cst_60 {dimension_numbers = #tpu.dot_dimension_numbers<[1], [0], [0], [1], [0, 0, 1, 1], [], []>} : vector<16x16xbf16>, vector<16x32xbf16>, vector<16x32xf32> -> vector<16x32xf32>
    %98 = arith.truncf %97 : vector<16x32xf32> to vector<16x32xbf16>
    %c1_61 = arith.constant 1 : index
    %c0_62 = arith.constant 0 : index
    %c0_63 = arith.constant 0 : index
    %99 = vector.load %arg8[%c1_61, %c0_62, %c0_63] : memref<4x32x128xbf16, #tpu.memory_space<vmem>>, vector<1x32x128xbf16>
    %100 = vector.shape_cast %99 : vector<1x32x128xbf16> to vector<32x128xbf16>
    %cst_64 = arith.constant dense<0.000000e+00> : vector<16x128xf32>
    %101 = tpu.matmul %98, %100, %cst_64 {dimension_numbers = #tpu.dot_dimension_numbers<[1], [0], [0], [1], [0, 0, 1, 1], [], []>} : vector<16x32xbf16>, vector<32x128xbf16>, vector<16x128xf32> -> vector<16x128xf32>
    %102 = arith.addf %57, %101 : vector<16x128xf32>
    %c2 = arith.constant 2 : index
    %c0_65 = arith.constant 0 : index
    %c0_66 = arith.constant 0 : index
    %103 = vector.load %arg5[%c2, %c0_65, %c0_66] : memref<4x128x32xbf16, #tpu.memory_space<vmem>>, vector<1x128x32xbf16>
    %104 = vector.shape_cast %103 : vector<1x128x32xbf16> to vector<128x32xbf16>
    %cst_67 = arith.constant dense<0.000000e+00> : vector<16x32xf32>
    %105 = tpu.matmul %12, %104, %cst_67 {dimension_numbers = #tpu.dot_dimension_numbers<[1], [0], [0], [1], [0, 0, 1, 1], [], []>} : vector<16x128xbf16>, vector<128x32xbf16>, vector<16x32xf32> -> vector<16x32xf32>
    %c2_68 = arith.constant 2 : index
    %c0_69 = arith.constant 0 : index
    %c0_70 = arith.constant 0 : index
    %106 = vector.load %arg9[%c2_68, %c0_69, %c0_70] : memref<4x1x32xf32, #tpu.memory_space<vmem>>, vector<1x1x32xf32>
    %107 = vector.shape_cast %106 : vector<1x1x32xf32> to vector<1x32xf32>
    %108 = vector.broadcast %107 : vector<1x32xf32> to vector<16x32xf32>
    %109 = arith.addf %105, %108 : vector<16x32xf32>
    %c2_71 = arith.constant 2 : index
    %c0_72 = arith.constant 0 : index
    %c0_73 = arith.constant 0 : index
    %110 = vector.load %arg6[%c2_71, %c0_72, %c0_73] : memref<4x128x32xbf16, #tpu.memory_space<vmem>>, vector<1x128x32xbf16>
    %111 = vector.shape_cast %110 : vector<1x128x32xbf16> to vector<128x32xbf16>
    %cst_74 = arith.constant dense<0.000000e+00> : vector<16x32xf32>
    %112 = tpu.matmul %13, %111, %cst_74 {dimension_numbers = #tpu.dot_dimension_numbers<[1], [0], [0], [1], [0, 0, 1, 1], [], []>} : vector<16x128xbf16>, vector<128x32xbf16>, vector<16x32xf32> -> vector<16x32xf32>
    %c2_75 = arith.constant 2 : index
    %c0_76 = arith.constant 0 : index
    %c0_77 = arith.constant 0 : index
    %113 = vector.load %arg10[%c2_75, %c0_76, %c0_77] : memref<4x1x32xf32, #tpu.memory_space<vmem>>, vector<1x1x32xf32>
    %114 = vector.shape_cast %113 : vector<1x1x32xf32> to vector<1x32xf32>
    %115 = vector.broadcast %114 : vector<1x32xf32> to vector<16x32xf32>
    %116 = arith.addf %112, %115 : vector<16x32xf32>
    %c2_78 = arith.constant 2 : index
    %c0_79 = arith.constant 0 : index
    %c0_80 = arith.constant 0 : index
    %117 = vector.load %arg7[%c2_78, %c0_79, %c0_80] : memref<4x128x32xbf16, #tpu.memory_space<vmem>>, vector<1x128x32xbf16>
    %118 = vector.shape_cast %117 : vector<1x128x32xbf16> to vector<128x32xbf16>
    %cst_81 = arith.constant dense<0.000000e+00> : vector<16x32xf32>
    %119 = tpu.matmul %13, %118, %cst_81 {dimension_numbers = #tpu.dot_dimension_numbers<[1], [0], [0], [1], [0, 0, 1, 1], [], []>} : vector<16x128xbf16>, vector<128x32xbf16>, vector<16x32xf32> -> vector<16x32xf32>
    %c2_82 = arith.constant 2 : index
    %c0_83 = arith.constant 0 : index
    %c0_84 = arith.constant 0 : index
    %120 = vector.load %arg11[%c2_82, %c0_83, %c0_84] : memref<4x1x32xf32, #tpu.memory_space<vmem>>, vector<1x1x32xf32>
    %121 = vector.shape_cast %120 : vector<1x1x32xf32> to vector<1x32xf32>
    %122 = vector.broadcast %121 : vector<1x32xf32> to vector<16x32xf32>
    %123 = arith.addf %119, %122 : vector<16x32xf32>
    %cst_85 = arith.constant 0.176776692 : f32
    %124 = vector.broadcast %cst_85 : f32 to vector<16x32xf32>
    %125 = arith.mulf %109, %124 : vector<16x32xf32>
    %126 = arith.truncf %125 : vector<16x32xf32> to vector<16x32xbf16>
    %127 = arith.truncf %116 : vector<16x32xf32> to vector<16x32xbf16>
    %cst_86 = arith.constant dense<0.000000e+00> : vector<16x16xf32>
    %128 = tpu.matmul %126, %127, %cst_86 {dimension_numbers = #tpu.dot_dimension_numbers<[1], [1], [0], [0], [0, 0, 1, 0], [], []>} : vector<16x32xbf16>, vector<16x32xbf16>, vector<16x16xf32> -> vector<16x16xf32>
    %129 = arith.addf %128, %11 : vector<16x16xf32>
    %cst_87 = arith.constant dense<0xFF800000> : vector<16xf32>
    %130 = vector.multi_reduction <maximumf>, %129, %cst_87 [1] : vector<16x16xf32> to vector<16xf32>
    %131 = vector.shape_cast %130 : vector<16xf32> to vector<16x1xf32>
    %132 = vector.broadcast %131 : vector<16x1xf32> to vector<16x16xf32>
    %133 = arith.subf %129, %132 : vector<16x16xf32>
    %134 = math.exp %133 : vector<16x16xf32>
    %cst_88 = arith.constant dense<0.000000e+00> : vector<16xf32>
    %135 = vector.multi_reduction <add>, %134, %cst_88 [1] : vector<16x16xf32> to vector<16xf32>
    %136 = vector.shape_cast %135 : vector<16xf32> to vector<16x1xf32>
    %137 = tpu.reciprocal %136 {approx = true} : vector<16x1xf32> -> vector<16x1xf32>
    %138 = vector.broadcast %137 : vector<16x1xf32> to vector<16x16xf32>
    %139 = arith.mulf %134, %138 : vector<16x16xf32>
    %140 = arith.truncf %139 : vector<16x16xf32> to vector<16x16xbf16>
    %141 = arith.truncf %123 : vector<16x32xf32> to vector<16x32xbf16>
    %cst_89 = arith.constant dense<0.000000e+00> : vector<16x32xf32>
    %142 = tpu.matmul %140, %141, %cst_89 {dimension_numbers = #tpu.dot_dimension_numbers<[1], [0], [0], [1], [0, 0, 1, 1], [], []>} : vector<16x16xbf16>, vector<16x32xbf16>, vector<16x32xf32> -> vector<16x32xf32>
    %143 = arith.truncf %142 : vector<16x32xf32> to vector<16x32xbf16>
    %c2_90 = arith.constant 2 : index
    %c0_91 = arith.constant 0 : index
    %c0_92 = arith.constant 0 : index
    %144 = vector.load %arg8[%c2_90, %c0_91, %c0_92] : memref<4x32x128xbf16, #tpu.memory_space<vmem>>, vector<1x32x128xbf16>
    %145 = vector.shape_cast %144 : vector<1x32x128xbf16> to vector<32x128xbf16>
    %cst_93 = arith.constant dense<0.000000e+00> : vector<16x128xf32>
    %146 = tpu.matmul %143, %145, %cst_93 {dimension_numbers = #tpu.dot_dimension_numbers<[1], [0], [0], [1], [0, 0, 1, 1], [], []>} : vector<16x32xbf16>, vector<32x128xbf16>, vector<16x128xf32> -> vector<16x128xf32>
    %147 = arith.addf %102, %146 : vector<16x128xf32>
    %c3 = arith.constant 3 : index
    %c0_94 = arith.constant 0 : index
    %c0_95 = arith.constant 0 : index
    %148 = vector.load %arg5[%c3, %c0_94, %c0_95] : memref<4x128x32xbf16, #tpu.memory_space<vmem>>, vector<1x128x32xbf16>
    %149 = vector.shape_cast %148 : vector<1x128x32xbf16> to vector<128x32xbf16>
    %cst_96 = arith.constant dense<0.000000e+00> : vector<16x32xf32>
    %150 = tpu.matmul %12, %149, %cst_96 {dimension_numbers = #tpu.dot_dimension_numbers<[1], [0], [0], [1], [0, 0, 1, 1], [], []>} : vector<16x128xbf16>, vector<128x32xbf16>, vector<16x32xf32> -> vector<16x32xf32>
    %c3_97 = arith.constant 3 : index
    %c0_98 = arith.constant 0 : index
    %c0_99 = arith.constant 0 : index
    %151 = vector.load %arg9[%c3_97, %c0_98, %c0_99] : memref<4x1x32xf32, #tpu.memory_space<vmem>>, vector<1x1x32xf32>
    %152 = vector.shape_cast %151 : vector<1x1x32xf32> to vector<1x32xf32>
    %153 = vector.broadcast %152 : vector<1x32xf32> to vector<16x32xf32>
    %154 = arith.addf %150, %153 : vector<16x32xf32>
    %c3_100 = arith.constant 3 : index
    %c0_101 = arith.constant 0 : index
    %c0_102 = arith.constant 0 : index
    %155 = vector.load %arg6[%c3_100, %c0_101, %c0_102] : memref<4x128x32xbf16, #tpu.memory_space<vmem>>, vector<1x128x32xbf16>
    %156 = vector.shape_cast %155 : vector<1x128x32xbf16> to vector<128x32xbf16>
    %cst_103 = arith.constant dense<0.000000e+00> : vector<16x32xf32>
    %157 = tpu.matmul %13, %156, %cst_103 {dimension_numbers = #tpu.dot_dimension_numbers<[1], [0], [0], [1], [0, 0, 1, 1], [], []>} : vector<16x128xbf16>, vector<128x32xbf16>, vector<16x32xf32> -> vector<16x32xf32>
    %c3_104 = arith.constant 3 : index
    %c0_105 = arith.constant 0 : index
    %c0_106 = arith.constant 0 : index
    %158 = vector.load %arg10[%c3_104, %c0_105, %c0_106] : memref<4x1x32xf32, #tpu.memory_space<vmem>>, vector<1x1x32xf32>
    %159 = vector.shape_cast %158 : vector<1x1x32xf32> to vector<1x32xf32>
    %160 = vector.broadcast %159 : vector<1x32xf32> to vector<16x32xf32>
    %161 = arith.addf %157, %160 : vector<16x32xf32>
    %c3_107 = arith.constant 3 : index
    %c0_108 = arith.constant 0 : index
    %c0_109 = arith.constant 0 : index
    %162 = vector.load %arg7[%c3_107, %c0_108, %c0_109] : memref<4x128x32xbf16, #tpu.memory_space<vmem>>, vector<1x128x32xbf16>
    %163 = vector.shape_cast %162 : vector<1x128x32xbf16> to vector<128x32xbf16>
    %cst_110 = arith.constant dense<0.000000e+00> : vector<16x32xf32>
    %164 = tpu.matmul %13, %163, %cst_110 {dimension_numbers = #tpu.dot_dimension_numbers<[1], [0], [0], [1], [0, 0, 1, 1], [], []>} : vector<16x128xbf16>, vector<128x32xbf16>, vector<16x32xf32> -> vector<16x32xf32>
    %c3_111 = arith.constant 3 : index
    %c0_112 = arith.constant 0 : index
    %c0_113 = arith.constant 0 : index
    %165 = vector.load %arg11[%c3_111, %c0_112, %c0_113] : memref<4x1x32xf32, #tpu.memory_space<vmem>>, vector<1x1x32xf32>
    %166 = vector.shape_cast %165 : vector<1x1x32xf32> to vector<1x32xf32>
    %167 = vector.broadcast %166 : vector<1x32xf32> to vector<16x32xf32>
    %168 = arith.addf %164, %167 : vector<16x32xf32>
    %cst_114 = arith.constant 0.176776692 : f32
    %169 = vector.broadcast %cst_114 : f32 to vector<16x32xf32>
    %170 = arith.mulf %154, %169 : vector<16x32xf32>
    %171 = arith.truncf %170 : vector<16x32xf32> to vector<16x32xbf16>
    %172 = arith.truncf %161 : vector<16x32xf32> to vector<16x32xbf16>
    %cst_115 = arith.constant dense<0.000000e+00> : vector<16x16xf32>
    %173 = tpu.matmul %171, %172, %cst_115 {dimension_numbers = #tpu.dot_dimension_numbers<[1], [1], [0], [0], [0, 0, 1, 0], [], []>} : vector<16x32xbf16>, vector<16x32xbf16>, vector<16x16xf32> -> vector<16x16xf32>
    %174 = arith.addf %173, %11 : vector<16x16xf32>
    %cst_116 = arith.constant dense<0xFF800000> : vector<16xf32>
    %175 = vector.multi_reduction <maximumf>, %174, %cst_116 [1] : vector<16x16xf32> to vector<16xf32>
    %176 = vector.shape_cast %175 : vector<16xf32> to vector<16x1xf32>
    %177 = vector.broadcast %176 : vector<16x1xf32> to vector<16x16xf32>
    %178 = arith.subf %174, %177 : vector<16x16xf32>
    %179 = math.exp %178 : vector<16x16xf32>
    %cst_117 = arith.constant dense<0.000000e+00> : vector<16xf32>
    %180 = vector.multi_reduction <add>, %179, %cst_117 [1] : vector<16x16xf32> to vector<16xf32>
    %181 = vector.shape_cast %180 : vector<16xf32> to vector<16x1xf32>
    %182 = tpu.reciprocal %181 {approx = true} : vector<16x1xf32> -> vector<16x1xf32>
    %183 = vector.broadcast %182 : vector<16x1xf32> to vector<16x16xf32>
    %184 = arith.mulf %179, %183 : vector<16x16xf32>
    %185 = arith.truncf %184 : vector<16x16xf32> to vector<16x16xbf16>
    %186 = arith.truncf %168 : vector<16x32xf32> to vector<16x32xbf16>
    %cst_118 = arith.constant dense<0.000000e+00> : vector<16x32xf32>
    %187 = tpu.matmul %185, %186, %cst_118 {dimension_numbers = #tpu.dot_dimension_numbers<[1], [0], [0], [1], [0, 0, 1, 1], [], []>} : vector<16x16xbf16>, vector<16x32xbf16>, vector<16x32xf32> -> vector<16x32xf32>
    %188 = arith.truncf %187 : vector<16x32xf32> to vector<16x32xbf16>
    %c3_119 = arith.constant 3 : index
    %c0_120 = arith.constant 0 : index
    %c0_121 = arith.constant 0 : index
    %189 = vector.load %arg8[%c3_119, %c0_120, %c0_121] : memref<4x32x128xbf16, #tpu.memory_space<vmem>>, vector<1x32x128xbf16>
    %190 = vector.shape_cast %189 : vector<1x32x128xbf16> to vector<32x128xbf16>
    %cst_122 = arith.constant dense<0.000000e+00> : vector<16x128xf32>
    %191 = tpu.matmul %188, %190, %cst_122 {dimension_numbers = #tpu.dot_dimension_numbers<[1], [0], [0], [1], [0, 0, 1, 1], [], []>} : vector<16x32xbf16>, vector<32x128xbf16>, vector<16x128xf32> -> vector<16x128xf32>
    %192 = arith.addf %147, %191 : vector<16x128xf32>
    %c0_123 = arith.constant 0 : index
    %c0_124 = arith.constant 0 : index
    %193 = vector.load %arg12[%c0_123, %c0_124] : memref<1x128xf32, #tpu.memory_space<vmem>>, vector<1x128xf32>
    %194 = vector.broadcast %193 : vector<1x128xf32> to vector<16x128xf32>
    %195 = arith.addf %192, %194 : vector<16x128xf32>
    %196 = arith.addf %1, %195 : vector<16x128xf32>
    %cst_125 = arith.constant dense<0.000000e+00> : vector<16xf32>
    %197 = vector.multi_reduction <add>, %196, %cst_125 [1] : vector<16x128xf32> to vector<16xf32>
    %198 = vector.shape_cast %197 : vector<16xf32> to vector<16x1xf32>
    %cst_126 = arith.constant 1.280000e+02 : f32
    %199 = vector.broadcast %cst_126 : f32 to vector<16x1xf32>
    %200 = arith.divf %198, %199 : vector<16x1xf32>
    %201 = vector.broadcast %200 : vector<16x1xf32> to vector<16x128xf32>
    %202 = arith.subf %196, %201 : vector<16x128xf32>
    %203 = vector.broadcast %200 : vector<16x1xf32> to vector<16x128xf32>
    %204 = arith.subf %196, %203 : vector<16x128xf32>
    %205 = arith.mulf %202, %204 : vector<16x128xf32>
    %cst_127 = arith.constant dense<0.000000e+00> : vector<16xf32>
    %206 = vector.multi_reduction <add>, %205, %cst_127 [1] : vector<16x128xf32> to vector<16xf32>
    %207 = vector.shape_cast %206 : vector<16xf32> to vector<16x1xf32>
    %cst_128 = arith.constant 1.280000e+02 : f32
    %208 = vector.broadcast %cst_128 : f32 to vector<16x1xf32>
    %209 = arith.divf %207, %208 : vector<16x1xf32>
    %210 = vector.broadcast %200 : vector<16x1xf32> to vector<16x128xf32>
    %211 = arith.subf %196, %210 : vector<16x128xf32>
    %cst_129 = arith.constant 9.99999974E-6 : f32
    %212 = vector.broadcast %cst_129 : f32 to vector<16x1xf32>
    %213 = arith.addf %209, %212 : vector<16x1xf32>
    %214 = math.rsqrt %213 : vector<16x1xf32>
    %215 = vector.broadcast %214 : vector<16x1xf32> to vector<16x128xf32>
    %216 = arith.mulf %211, %215 : vector<16x128xf32>
    %c0_130 = arith.constant 0 : index
    %c0_131 = arith.constant 0 : index
    %217 = vector.load %arg13[%c0_130, %c0_131] : memref<1x128xf32, #tpu.memory_space<vmem>>, vector<1x128xf32>
    %218 = vector.broadcast %217 : vector<1x128xf32> to vector<16x128xf32>
    %219 = arith.mulf %216, %218 : vector<16x128xf32>
    %c0_132 = arith.constant 0 : index
    %c0_133 = arith.constant 0 : index
    %220 = vector.load %arg14[%c0_132, %c0_133] : memref<1x128xf32, #tpu.memory_space<vmem>>, vector<1x128xf32>
    %221 = vector.broadcast %220 : vector<1x128xf32> to vector<16x128xf32>
    %222 = arith.addf %219, %221 : vector<16x128xf32>
    %c0_134 = arith.constant 0 : index
    %c0_135 = arith.constant 0 : index
    %c0_136 = arith.constant 0 : index
    %223 = vector.load %arg15[%c0_134, %c0_135, %c0_136] : memref<1x16x128xf32, #tpu.memory_space<vmem>>, vector<1x16x128xf32>
    %224 = vector.shape_cast %223 : vector<1x16x128xf32> to vector<16x128xf32>
    %225 = vector.shape_cast %222 : vector<16x128xf32> to vector<1x16x128xf32>
    tpu.vector_store %arg15[%c0_134, %c0_135, %c0_136], %225 {strides = array<i32>} : memref<1x16x128xf32, #tpu.memory_space<vmem>>, vector<1x16x128xf32>,
    return
  }
  func.func @transform_0(%arg0: i32, %arg1: i32, %arg2: memref<2xi32, #tpu.memory_space<smem>>) -> (i32, i32, i32) {
    %c0_i32 = arith.constant 0 : i32
    %c0_i32_0 = arith.constant 0 : i32
    return %arg0, %arg1, %c0_i32 : i32, i32, i32
  }
  func.func @transform_1(%arg0: i32, %arg1: i32, %arg2: memref<2xi32, #tpu.memory_space<smem>>) -> (i32, i32, i32) {
    %c0_i32 = arith.constant 0 : i32
    %c0_i32_0 = arith.constant 0 : i32
    %c0_i32_1 = arith.constant 0 : i32
    return %arg0, %c0_i32, %c0_i32_0 : i32, i32, i32
  }
  func.func @transform_2(%arg0: i32, %arg1: i32, %arg2: memref<2xi32, #tpu.memory_space<smem>>) -> (i32, i32, i32) {
    %c0_i32 = arith.constant 0 : i32
    %c0_i32_0 = arith.constant 0 : i32
    %c0_i32_1 = arith.constant 0 : i32
    %c0_i32_2 = arith.constant 0 : i32
    return %c0_i32, %c0_i32_0, %c0_i32_1 : i32, i32, i32
  }
  func.func @transform_3(%arg0: i32, %arg1: i32, %arg2: memref<2xi32, #tpu.memory_space<smem>>) -> (i32, i32, i32) {
    %c0_i32 = arith.constant 0 : i32
    %c0_i32_0 = arith.constant 0 : i32
    %c0_i32_1 = arith.constant 0 : i32
    %c0_i32_2 = arith.constant 0 : i32
    return %c0_i32, %c0_i32_0, %c0_i32_1 : i32, i32, i32
  }
  func.func @transform_4(%arg0: i32, %arg1: i32, %arg2: memref<2xi32, #tpu.memory_space<smem>>) -> (i32, i32, i32) {
    %c0_i32 = arith.constant 0 : i32
    %c0_i32_0 = arith.constant 0 : i32
    %c0_i32_1 = arith.constant 0 : i32
    %c0_i32_2 = arith.constant 0 : i32
    return %c0_i32, %c0_i32_0, %c0_i32_1 : i32, i32, i32
  }
  func.func @transform_5(%arg0: i32, %arg1: i32, %arg2: memref<2xi32, #tpu.memory_space<smem>>) -> (i32, i32, i32) {
    %c0_i32 = arith.constant 0 : i32
    %c0_i32_0 = arith.constant 0 : i32
    %c0_i32_1 = arith.constant 0 : i32
    %c0_i32_2 = arith.constant 0 : i32
    return %c0_i32, %c0_i32_0, %c0_i32_1 : i32, i32, i32
  }
  func.func @transform_6(%arg0: i32, %arg1: i32, %arg2: memref<2xi32, #tpu.memory_space<smem>>) -> (i32, i32, i32) {
    %c0_i32 = arith.constant 0 : i32
    %c0_i32_0 = arith.constant 0 : i32
    %c0_i32_1 = arith.constant 0 : i32
    %c0_i32_2 = arith.constant 0 : i32
    return %c0_i32, %c0_i32_0, %c0_i32_1 : i32, i32, i32
  }
  func.func @transform_7(%arg0: i32, %arg1: i32, %arg2: memref<2xi32, #tpu.memory_space<smem>>) -> (i32, i32, i32) {
    %c0_i32 = arith.constant 0 : i32
    %c0_i32_0 = arith.constant 0 : i32
    %c0_i32_1 = arith.constant 0 : i32
    %c0_i32_2 = arith.constant 0 : i32
    return %c0_i32, %c0_i32_0, %c0_i32_1 : i32, i32, i32
  }
  func.func @transform_8(%arg0: i32, %arg1: i32, %arg2: memref<2xi32, #tpu.memory_space<smem>>) -> (i32, i32, i32) {
    %c0_i32 = arith.constant 0 : i32
    %c0_i32_0 = arith.constant 0 : i32
    %c0_i32_1 = arith.constant 0 : i32
    %c0_i32_2 = arith.constant 0 : i32
    return %c0_i32, %c0_i32_0, %c0_i32_1 : i32, i32, i32
  }
  func.func @transform_9(%arg0: i32, %arg1: i32, %arg2: memref<2xi32, #tpu.memory_space<smem>>) -> (i32, i32) {
    %c0_i32 = arith.constant 0 : i32
    %c0_i32_0 = arith.constant 0 : i32
    %c0_i32_1 = arith.constant 0 : i32
    return %c0_i32, %c0_i32_0 : i32, i32
  }
  func.func @transform_10(%arg0: i32, %arg1: i32, %arg2: memref<2xi32, #tpu.memory_space<smem>>) -> (i32, i32) {
    %c0_i32 = arith.constant 0 : i32
    %c0_i32_0 = arith.constant 0 : i32
    %c0_i32_1 = arith.constant 0 : i32
    return %c0_i32, %c0_i32_0 : i32, i32
  }
  func.func @transform_11(%arg0: i32, %arg1: i32, %arg2: memref<2xi32, #tpu.memory_space<smem>>) -> (i32, i32) {
    %c0_i32 = arith.constant 0 : i32
    %c0_i32_0 = arith.constant 0 : i32
    %c0_i32_1 = arith.constant 0 : i32
    return %c0_i32, %c0_i32_0 : i32, i32
  }
  func.func @transform_12(%arg0: i32, %arg1: i32, %arg2: memref<2xi32, #tpu.memory_space<smem>>) -> (i32, i32, i32) {
    %c0_i32 = arith.constant 0 : i32
    %c0_i32_0 = arith.constant 0 : i32
    return %arg0, %arg1, %c0_i32 : i32, i32, i32
  }
}

module attributes {stable_mosaic.version = 11 : i64} {
  func.func @_output_head_kernel(%arg0: i32, %arg1: i32, %arg2: memref<16x128xf32, #tpu.memory_space<vmem>>, %arg3: memref<128x128xbf16, #tpu.memory_space<vmem>>, %arg4: memref<16x128xf32, #tpu.memory_space<vmem>>) attributes {dimension_semantics = [#tpu.dimension_semantics<parallel>, #tpu.dimension_semantics<arbitrary>], iteration_bounds = array<i64: 2, 1>, scalar_prefetch = 0 : i64, scratch_operands = 0 : i64, tpu.core_type = #tpu.core_type<tc>, window_params = [{transform_indices = @transform_0, window_bounds = array<i64: 16, 128>}, {transform_indices = @transform_1, window_bounds = array<i64: 128, 128>}, {transform_indices = @transform_2, window_bounds = array<i64: 16, 128>}]} {
    %c0 = arith.constant 0 : index
    %c0_0 = arith.constant 0 : index
    %0 = vector.load %arg2[%c0, %c0_0] : memref<16x128xf32, #tpu.memory_space<vmem>>, vector<16x128xf32>
    %1 = arith.truncf %0 : vector<16x128xf32> to vector<16x128xbf16>
    %c0_1 = arith.constant 0 : index
    %c0_2 = arith.constant 0 : index
    %2 = vector.load %arg3[%c0_1, %c0_2] : memref<128x128xbf16, #tpu.memory_space<vmem>>, vector<128x128xbf16>
    %cst = arith.constant dense<0.000000e+00> : vector<16x128xf32>
    %3 = tpu.matmul %1, %2, %cst {dimension_numbers = #tpu.dot_dimension_numbers<[1], [1], [0], [0], [0, 0, 1, 0], [], []>} : vector<16x128xbf16>, vector<128x128xbf16>, vector<16x128xf32> -> vector<16x128xf32>
    %cst_3 = arith.constant dense<0xFF800000> : vector<16xf32>
    %4 = vector.multi_reduction <maximumf>, %3, %cst_3 [1] : vector<16x128xf32> to vector<16xf32>
    %5 = vector.shape_cast %4 : vector<16xf32> to vector<16x1xf32>
    %6 = vector.broadcast %5 : vector<16x1xf32> to vector<16x128xf32>
    %7 = arith.subf %3, %6 : vector<16x128xf32>
    %8 = math.exp %7 : vector<16x128xf32>
    %cst_4 = arith.constant dense<0.000000e+00> : vector<16xf32>
    %9 = vector.multi_reduction <add>, %8, %cst_4 [1] : vector<16x128xf32> to vector<16xf32>
    %10 = vector.shape_cast %9 : vector<16xf32> to vector<16x1xf32>
    %11 = math.log %10 : vector<16x1xf32>
    %12 = vector.broadcast %11 : vector<16x1xf32> to vector<16x128xf32>
    %13 = arith.subf %7, %12 : vector<16x128xf32>
    %c0_5 = arith.constant 0 : index
    %c0_6 = arith.constant 0 : index
    %14 = vector.load %arg4[%c0_5, %c0_6] : memref<16x128xf32, #tpu.memory_space<vmem>>, vector<16x128xf32>
    tpu.vector_store %arg4[%c0_5, %c0_6], %13 {strides = array<i32>} : memref<16x128xf32, #tpu.memory_space<vmem>>, vector<16x128xf32>,
    return
  }
  func.func @transform_0(%arg0: i32, %arg1: i32) -> (i32, i32) {
    %c0_i32 = arith.constant 0 : i32
    %c0_i32_0 = arith.constant 0 : i32
    return %arg0, %c0_i32 : i32, i32
  }
  func.func @transform_1(%arg0: i32, %arg1: i32) -> (i32, i32) {
    %c0_i32 = arith.constant 0 : i32
    %c0_i32_0 = arith.constant 0 : i32
    return %arg1, %c0_i32 : i32, i32
  }
  func.func @transform_2(%arg0: i32, %arg1: i32) -> (i32, i32) {
    %c0_i32 = arith.constant 0 : i32
    %c0_i32_0 = arith.constant 0 : i32
    return %arg0, %c0_i32 : i32, i32
  }
}

</mosaic_0001>

<bundles_post_ra>
// kernel: tpu_custom_call.1
= control target key start
LH: loop header
LB: loop body
LE: loop exit
PB: predicated region body
PF: predicated region fallthrough
CT: control target
= control target key end

     0   :  { %7 = vsyncpa [#allocation3], 0  ;;  %s649_s0 = inlined_call_operand.hbm [shape: f32[16,128], index: 0, kind: input, shape index: {}]   ;;  %s650_s1 = inlined_call_operand.hbm [shape: f32[8,128], index: 1, kind: input, shape index: {}]   ;;  %s651_s2 = inlined_call_operand.hbm [shape: f32[16,128], index: 2, kind: output, shape index: {}]  }
   0x1   :  { %9 = vsyncpa [#allocation3 + $0x1], 0 }
   0x2   :  { %10 = vsyncpa [#allocation6], 0 }
   0x3   :  { %11 = vsyncpa [#allocation4], 0 }
   0x4   :  { %13 = vsyncpa [#allocation4 + $0x1], 0  ;;  %s483_s9 = smov 0   ;;  %s485_s10 = smov 0  }
   0x5   :  { %s487_s11 = smov 0   ;;  %s489_s12 = smov 0  }
   0x6 LB: > { %s504_s13 = sadd.s32 4294967295, %s463_s12   ;;  %s270_s14 = sadd.s32 4294967294, %s463_s12   ;;  %s463_s12 = sphi %s489_s12, %s674_s12   ;;  %s459_s11 = sphi %s487_s11, %s673_s11   ;;  %s455_s10 = sphi %s485_s10, %s672_s10   ;;  %s451_s9 = sphi %s483_s9, %s671_s9  }
   0x7   : > { %p39_p0 = scmp.ne.s32.totalorder %s455_s10, %s451_s9  ;;  %p652_p1 = scmp.eq.s32.totalorder %s504_s13, 0 }
   0x8   : > { %p90_p3 = scmp.eq.s32.totalorder %s270_s14, 1  ;;  %p271_p5 = scmp.ge.s32.totalorder %s463_s12, 1 }
   0x9   : > { %p513_p4 = por %p652_p1, %p39_p0  ;;  %p97_p7 = scmp.lt.s32.totalorder %s463_s12, 3 }
   0xa   : > { %p518_p6 = por %p90_p3, %p39_p0  ;;  %s465_s18 = smov [#allocation5]  }
   0xb   : > { %s656_s15 = scalar_select %p513_p4, 1, 0 }
   0xc   : > { %s657_s16 = scalar_select %p518_p6, 1, 0 }
   0xd   : > { %p523_p8 = pnand %p271_p5, %p97_p7  ;;  %s110_s19 = sshll.u32 %s465_s18, 4  ;;  %s111_s19 = int_to_ptr.vmem [resolvable:$true] %s110_s19 }
   0xe   : > { %s531_s20 = sadd.s32 1, %s463_s12   ;;  %s26_s24 = sadd.s32 1, %s459_s11 }
   0xf   : > { %s658_s17 = scalar_select %p523_p8, 1, 0 }
  0x10   : > { %p292_p10 = pneg %p523_p8  ;;  %s23_s22 = ssub.s32 %s463_s12, %s531_s20 }
  0x11   : > { %p541_p12 = scmp.eq.s32.totalorder %s23_s22, 0  ;;  %p33_p13 = scmp.ne.s32.totalorder %s459_s11, %s455_s10 }
  0x12   : > { %p535_p11 = pnand %p292_p10, %p652_p1  ;;  %s352_s25 = scalar_lea.vmem %s111_s19, 128 }
  0x13   : > { %p353_p3 = scmp.ne.s32.totalorder %s111_s19, %s352_s25  ;;  %p360_p9 = scmp.lt.s32.totalorder %s111_s19, %s111_s19 }
  0x14   : > { %p343_p0 = pneg %p535_p11  ;;  %p361_p2 = scmp.lt.s32.totalorder %s352_s25, %s352_s25 }
  0x16   : > { %p355_p5 = pnand %p353_p3, %p343_p0  ;;  %p362_p10 = por %p361_p2, %p360_p9 }
  0x18   : > { %p356_p7 = pneg %p355_p5 }
  0x1a   : > { %p363_p1 = pnand %p362_p10, %p356_p7 }
  0x1c   : > { %366 = shalt.err (!%p363_p1)
}
  0x1d   : > { %295 = dma.hbm_to_vmem [thread:$0]  (!%p535_p11), %s650_s1, 128, %s111_s19, [#allocation6]  }
  0x1e   : > { %s558_s28 = scalar_select %p541_p12, %s459_s11, %s26_s24  }
  0x1f   : > { %p34_p1 = scmp.eq.s32.totalorder %s463_s12, 0  ;;  %p661_p2 = scmp.eq.s32.totalorder %s504_s13, 1 }
  0x20   : > { %p305_p0 = scmp.lt.s32.totalorder %s463_s12, 2  ;;  %s121_s30 = sand.u32 1, %s459_s11  }
  0x21   : > { %p566_p9 = por %p661_p2, %p33_p13  ;;  %p35_p3 = por %p34_p1, %p33_p13 }
  0x22   : > { %s274_s3 = sshll.u32 %s121_s30, 3  ;;  %s275_s4 = sshll.u32 %s463_s12, 7 }
  0x23   : > { %s662_s29 = scalar_select %p566_p9, 1, 0 }
  0x24   : > { %s579_s7 = scalar_lea.hbm %s649_s0, %s275_s4  ;;  %s125_s8 = scalar_lea.vmem [#allocation2], %s274_s3 }
  0x25   : > { %s132_s14 = sshll.u32 %s125_s8, 4  ;;  %p581_p11 = pnand %p305_p0, %p35_p3  ;;  %s133_s14 = int_to_ptr.vmem [resolvable:$true] %s132_s14 }
  0x26   : > { %s122_s19 = scalar_lea.sflag [#allocation3], %s121_s30  ;;  %s367_s21 = scalar_lea.hbm %s579_s7, 128 }
  0x27   : > { %p368_p12 = scmp.ne.s32.totalorder %s579_s7, %s367_s21  ;;  %p369_p13 = pneg %p581_p11 }
  0x28   : > { %s372_s24 = scalar_lea.hbm %s649_s0, 256  ;;  %p373_p10 = scmp.lt.s32.totalorder %s579_s7, %s649_s0 }
  0x29   : > { %p370_p5 = pnand %p369_p13, %p368_p12  ;;  %p374_p1 = scmp.lt.s32.totalorder %s372_s24, %s367_s21 }
  0x2b   : > { %p371_p7 = pneg %p370_p5  ;;  %p375_p2 = por %p374_p1, %p373_p10 }
  0x2d   : > { %p376_p0 = pnand %p375_p2, %p371_p7 }
  0x2f   : > { %379 = shalt.err (!%p376_p0)
}
  0x30   : > { %s380_s27 = scalar_lea.vmem %s133_s14, 128  ;;  %s466_s30 = smov [#allocation2]  }
  0x31   : > { %p381_p3 = scmp.ne.s32.totalorder %s133_s14, %s380_s27  ;;  %s385_s3 = sshll.u32 %s466_s30, 4  ;;  %s386_s3 = int_to_ptr.vmem [resolvable:$false] %s385_s3 }
  0x32   : > { %s387_s4 = scalar_lea.vmem %s386_s3, 256  ;;  %p388_p12 = scmp.lt.s32.totalorder %s133_s14, %s386_s3 }
  0x33   : > { %p383_p6 = pnand %p381_p3, %p369_p13  ;;  %p389_p5 = scmp.lt.s32.totalorder %s387_s4, %s380_s27 }
  0x35   : > { %p384_p9 = pneg %p383_p6  ;;  %p390_p4 = por %p389_p5, %p388_p12 }
  0x37   : > { %p391_p8 = pnand %p390_p4, %p384_p9 }
  0x39   : > { %394 = shalt.err (!%p391_p8)
}
  0x3a   : > { %299 = dma.hbm_to_vmem [thread:$0]  (!%p581_p11), %s579_s7, 128, %s133_s14, %s122_s19  }
  0x3b   : > { %p664_p7 = scmp.ne.s32.totalorder %s658_s17, 0 }
  0x3c   : > { %s602_s5 = sand.u32 (!%p664_p7), 1, %s455_s10   ;;  %p665_p6 = scmp.ne.s32.totalorder (!%p664_p7), %s656_s15, 0 }
  0x3d   : > { %141 = sbr.rel (%p664_p7) target bundleno = 95 (0x5f), region = 28  ;;  %s277_s6 = sshll.u32 (!%p664_p7), %s602_s5, 3 }
  0x3e   : > { %s144_s8 = scalar_lea.sflag (!%p664_p7), [#allocation3], %s602_s5  ;;  %s147_s21 = scalar_lea.vmem (!%p664_p7), [#allocation2], %s277_s6 }
  0x42   : > { %438 = dma.done.wait (%p665_p6), %s144_s8, 128  }
  0x43   : > { %440 = vsyncadd (%p665_p6), %s144_s8, 4294967168  ;;  %p666_p4 = scmp.eq.s32.totalorder %s504_s13, 0 }
  0x45   : > { %442 = dma.done.wait (%p666_p4), [#allocation6], 128   ;;  %p667_p8 = pmov %p666_p4 }
  0x46   : > { %s171_s17 = scalar_lea.vmem [#allocation7], %s277_s6  ;;  %s281_s14 = sshll.u32 %s504_s13, 7  ;;  %v172_v0 = vld [vmem:[%s147_s21] sm:$0xff]  ;;  %v173_v1 = vld [vmem:[#allocation5] sm:$0xff] }
  0x47   : > { %444 = vsyncadd (%p667_p8), [#allocation6], 4294967168  ;;  %s190_s7 = sshll.u32 %s171_s17, 4  ;;  %v174_v2 = vadd.f32 %v173_v1, %v172_v0  ;;  %s188_s15 = scalar_lea.hbm %s651_s2, %s281_s14  ;;  %s191_s7 = int_to_ptr.vmem [resolvable:$true] %s190_s7 }
  0x48   : > { %s177_s22 = scalar_lea.sflag [#allocation4], %s602_s5  ;;  %s395_s23 = scalar_lea.vmem %s191_s7, 128 }
  0x49   : > { %175 = vst [vmem:[%s171_s17] sm:$0xff] %v174_v2  ;;  %p396_p9 = scmp.ne.s32.totalorder %s191_s7, %s395_s23  ;;  %p668_p11 = scmp.ne.s32.totalorder %s662_s29, 0 }
  0x4a   : > { %s467_s24 = smov [#allocation7]  }
  0x4b   : > { %p397_p13 = pnand %p396_p9, %p668_p11  ;;  %s399_s25 = sshll.u32 %s467_s24, 4  ;;  %s400_s25 = int_to_ptr.vmem [resolvable:$false] %s399_s25 }
  0x4c   : > { %s401_s26 = scalar_lea.vmem %s400_s25, 256  ;;  %p402_p1 = scmp.lt.s32.totalorder %s191_s7, %s400_s25 }
  0x4d   : > { %p398_p10 = pneg %p397_p13  ;;  %p403_p2 = scmp.lt.s32.totalorder %s401_s26, %s395_s23 }
  0x4f   : > { %p404_p0 = por %p403_p2, %p402_p1 }
  0x51   : > { %p405_p3 = pnand %p404_p0, %p398_p10 }
  0x53   : > { %408 = shalt.err (!%p405_p3)
}
  0x54   : > { %s409_s13 = scalar_lea.hbm %s188_s15, 128  ;;  %s413_s3 = scalar_lea.hbm %s651_s2, 256 }
  0x55   : > { %p410_p12 = scmp.ne.s32.totalorder %s188_s15, %s409_s13  ;;  %p414_p6 = scmp.lt.s32.totalorder %s188_s15, %s651_s2 }
  0x56   : > { %p415_p4 = scmp.lt.s32.totalorder %s413_s3, %s409_s13 }
  0x57   : > { %p411_p5 = pnand %p410_p12, %p668_p11 }
  0x58   : > { %p416_p8 = por %p415_p4, %p414_p6 }
  0x59   : > { %p412_p7 = pneg %p411_p5 }
  0x5b   : > { %p417_p9 = pnand %p416_p8, %p412_p7 }
  0x5d   : > { %420 = shalt.err (!%p417_p9)
}
  0x5e   : > { %290 = dma.vmem_to_hbm [thread:$0]  (%p668_p11), %s191_s7, 128, %s188_s15, %s177_s22  }
  0x5f PF: > { %s202_s6 = sand.u32 1, %s451_s9   ;;  %p669_p13 = scmp.ne.s32.totalorder %s657_s16, 0 }
  0x60   : > { %p670_p10 = scmp.ge.s32.totalorder %s463_s12, 2  ;;  %s203_s8 = scalar_lea.sflag [#allocation4], %s202_s6 }
  0x62   : > { %p301_p1 = pnand %p670_p10, %p669_p13 }
  0x64   : > { %p302_p2 = pneg %p301_p1 }
  0x66   : > { %446 = dma.done.wait (%p302_p2), %s203_s8, 128  }
  0x67   : > { %448 = vsyncadd (%p302_p2), %s203_s8, 4294967168  ;;  %p16_p0 = scmp.ge.s32.totalorder %s531_s20, 4   ;;  %s671_s9 = smov %s455_s10 }
  0x68   : > { %s672_s10 = smov %s459_s11  ;;  %s673_s11 = smov %s558_s28 }
  0x69   : > { %s674_s12 = smov %s531_s20  ;;  %18 = sbr.rel (!%p16_p0) target bundleno = 6 (0x6), region = 77 }
  0x6e   :  { %208 = vsyncpa [#allocation3], 1 }
  0x6f   :  { %210 = vsyncpa [#allocation3 + $0x1], 1 }
  0x70   :  { %211 = vsyncpa [#allocation6], 1 }
  0x71   :  { %212 = vsyncpa [#allocation4], 1 }
  0x72   :  { %214 = vsyncpa [#allocation4 + $0x1], 1 }

// kernel: supertagger_forward.12
= control target key start
LH: loop header
LB: loop body
LE: loop exit
PB: predicated region body
PF: predicated region fallthrough
CT: control target
= control target key end

     0   :  { %s1070_s24 = smov 0   ;;  %s1072_s25 = smov 0   ;;  %s1221_s0 = inlined_call_operand.vmem [shape: f32[32,128], index: 0, kind: input, shape index: {}]   ;;  %s1222_s1 = inlined_call_operand.vmem [shape: bf16[128,256], index: 1, kind: input, shape index: {}]   ;;  %s1223_s2 = inlined_call_operand.vmem [shape: f32[1,256], index: 2, kind: input, shape index: {}]   ;;  %s1224_s3 = inlined_call_operand.vmem [shape: bf16[256,128], index: 3, kind: input, shape index: {}]   ;;  %s1225_s4 = inlined_call_operand.vmem [shape: f32[1,128], index: 4, kind: input, shape index: {}]   ;;  %s1226_s5 = inlined_call_operand.vmem [shape: f32[1,128], index: 5, kind: input, shape index: {}]   ;;  %s1227_s6 = inlined_call_operand.vmem [shape: f32[1,128], index: 6, kind: input, shape index: {}]   ;;  %s1228_s7 = inlined_call_operand.vmem [shape: f32[32,128], index: 7, kind: output, shape index: {}]  }
   0x1   :  { %s1074_s26 = smov 0  }
   0x2 LB: > { %s29_s27 = sadd.s32 1, %s1023_s25  ;;  %p872_p0 = scmp.ge.s32.totalorder %s1027_s26, 1  ;;  %s1027_s26 = sphi %s1074_s26, %s17_s26   ;;  %s1023_s25 = sphi %s1072_s25, %s1230_s25   ;;  %s1019_s24 = sphi %s1070_s24, %s1229_s24  }
   0x3   : > { %p31_p1 = scmp.ge.s32.totalorder %s29_s27, 2  ;;  %p282_p2 = scmp.lt.s32.totalorder %s1027_s26, 3 }
   0x5   : > { %s1232_s27 = smov (%p31_p1, %s29_s27), 0  ;;  %p283_p3 = pnand %p872_p0, %p282_p2 }
   0x6   : > { %s873_s19 = sshll.u32 (!%p283_p3), %s1019_s24, 1 }
   0x7   : > { %286 = sbr.rel (%p283_p3) target bundleno = 763 (0x2fb), region = 48  ;;  %p329_p4 = scmp.lt.s32.totalorder (!%p283_p3), %s873_s19, 3 }
   0xc   : > { %v961_v0 = vld [vmem:[%s1222_s1 + $0x74] ss:$8 sps:$4 sm:$0xff]   ;;  %v963_v1 = vld [vmem:[%s1222_s1 + $0x70] ss:$8 sps:$4 sm:$0xff]   ;;  %v1029_v2 = vmov 0   ;;  %s1234_s19 = smov (!%p329_p4, %s873_s19), 3  ;;  %v385_v36 = vlaneseq }
   0xd   : > { %507 = vmatprep.mubr.bf16.mxu0 %v1029_v2  ;;  %475 = vmatprep.subr.bf16.mxu0 %v961_v0  ;;  %v964_v3 = vld [vmem:[%s1222_s1 + $0x64] ss:$8 sps:$4 sm:$0xff]   ;;  %v966_v4 = vld [vmem:[%s1222_s1 + $0x60] ss:$8 sps:$4 sm:$0xff]   ;;  %v967_v5 = vld [vmem:[%s1222_s1 + $0x54] ss:$8 sps:$4 sm:$0xff]  }
   0xe   : > { %476 = vmatpush1.bf16.msra.mxu0 %v963_v1  ;;  %v969_v6 = vld [vmem:[%s1222_s1 + $0x50] ss:$8 sps:$4 sm:$0xff]   ;;  %v970_v7 = vld [vmem:[%s1222_s1 + $0x44] ss:$8 sps:$4 sm:$0xff]   ;;  %v972_v8 = vld [vmem:[%s1222_s1 + $0x40] ss:$8 sps:$4 sm:$0xff]  }
   0xf   : > { %477 = vmatprep.subr.bf16.mxu0 %v964_v3  ;;  %v973_v9 = vld [vmem:[%s1222_s1 + $0x34] ss:$8 sps:$4 sm:$0xff]   ;;  %v975_v11 = vld [vmem:[%s1222_s1 + $0x30] ss:$8 sps:$4 sm:$0xff]   ;;  %v976_v13 = vld [vmem:[%s1222_s1 + $0x24] ss:$8 sps:$4 sm:$0xff]  }
  0x10   : > { %v985_v10 = vld [vmem:[%s1224_s3 + $0x78] sm:$0xff]   ;;  %v987_v14 = vld [vmem:[%s1224_s3 + $0x70] sm:$0xff]   ;;  %v989_v16 = vld [vmem:[%s1224_s3 + $0x68] sm:$0xff]   ;;  %s874_s9 = sshll.u32 %s1234_s19, 3  ;;  %v386_v37 = vshrl.u32 %v385_v36, 7 }
  0x11   : > { %v986_v12 = vld [vmem:[%s1224_s3 + $0x38] sm:$0xff]   ;;  %914 = vmatprep.subr.bf16.mxu1 %v985_v10  ;;  %v988_v15 = vld [vmem:[%s1224_s3 + $0x30] sm:$0xff]   ;;  %v978_v17 = vld [vmem:[%s1222_s1 + $0x20] ss:$8 sps:$4 sm:$0xff]   ;;  %s332_s18 = scalar_lea.vmem %s1221_s0, %s874_s9  ;;  %s355_s24 = scalar_lea.vmem %s1228_s7, %s874_s9 }
  0x12   : > { %478 = vmatpush1.bf16.msra.mxu0 %v966_v4  ;;  %915 = vmatpush3.bf16.msra.mxu1 %v986_v12  ;;  %v979_v18 = vld [vmem:[%s1222_s1 + $0x14] ss:$8 sps:$4 sm:$0xff]   ;;  %v990_v19 = vld [vmem:[%s1224_s3 + $0x28] sm:$0xff]   ;;  %v991_v20 = vld [vmem:[%s1224_s3 + $0x60] sm:$0xff]   ;;  %v391_v38 = vsub.s32 1, %v386_v37  ;;  %v387_v39 = vsub.s32 0, %v386_v37 }
  0x13   : > { %479 = vmatprep.subr.bf16.mxu0 %v967_v5  ;;  %916 = vmatprep.subr.bf16.mxu1 %v987_v14  ;;  %v981_v21 = vld [vmem:[%s1222_s1 + $0x10] ss:$8 sps:$4 sm:$0xff]   ;;  %v992_v22 = vld [vmem:[%s1224_s3 + $0x20] sm:$0xff]   ;;  %v365_v27 = vld [vmem:[%s332_s18 + $0x8] sm:$0xff] }
  0x14   : > { %v982_v23 = vld [vmem:[%s1222_s1 + $0x4] ss:$8 sps:$4 sm:$0xff]   ;;  %v993_v24 = vld [vmem:[%s1224_s3 + $0x58] sm:$0xff]   ;;  %v984_v25 = vld [vmem:[%s1222_s1] ss:$8 sps:$4 sm:$0xff]  }
  0x15   : > { %v364_v26 = vld [vmem:[%s332_s18] sm:$0xff]  ;;  %v994_v28 = vld [vmem:[%s1224_s3 + $0x18] sm:$0xff]   ;;  %v995_v30 = vld [vmem:[%s1224_s3 + $0x50] sm:$0xff]  }
  0x16   : > { %480 = vmatpush1.bf16.msra.mxu0 %v969_v6  ;;  %917 = vmatpush3.bf16.msra.mxu1 %v988_v15  ;;  %v366_v29 = vpack.c.bf16 %v365_v27, %v364_v26  ;;  %v996_v31 = vld [vmem:[%s1224_s3 + $0x10] sm:$0xff]   ;;  %v997_v32 = vld [vmem:[%s1224_s3 + $0x48] sm:$0xff]   ;;  %v999_v34 = vld [vmem:[%s1224_s3 + $0x40] sm:$0xff]  }
  0x17   : > { %481 = vmatprep.subr.bf16.mxu0 %v970_v7  ;;  %918 = vmatprep.subr.bf16.mxu1 %v989_v16  ;;  %v998_v33 = vld [vmem:[%s1224_s3 + $0x8] sm:$0xff]   ;;  %v1000_v35 = vld [vmem:[%s1224_s3] sm:$0xff]  }
  0x18   : > { %v383_v40 = vld [vmem:[%s1223_s2] sm:$0x3] }
  0x19   : > { %v392_v42 = vrot.slane %v383_v40, %v391_v38  ;;  %v388_v43 = vrot.slane %v383_v40, %v387_v39  ;;  %v909_v61 = vld [vmem:[%s1225_s4] ss:$0 sm:$0xff] }
  0x1a   : > { %482 = vmatpush1.bf16.msra.mxu0 %v972_v8  ;;  %919 = vmatpush3.bf16.msra.mxu1 %v990_v19  ;;  %v910_v19 = vld [vmem:[%s1226_s5] ss:$0 sm:$0xff] }
  0x1b   : > { %483 = vmatprep.subr.bf16.mxu0 %v973_v9  ;;  %920 = vmatprep.subr.bf16.mxu1 %v991_v20 }
  0x1e   : > { %484 = vmatpush1.bf16.msra.mxu0 %v975_v11  ;;  %921 = vmatpush3.bf16.msra.mxu1 %v992_v22 }
  0x1f   : > { %485 = vmatprep.subr.bf16.mxu0 %v976_v13  ;;  %922 = vmatprep.subr.bf16.mxu1 %v993_v24 }
  0x22   : > { %486 = vmatpush1.bf16.msra.mxu0 %v978_v17  ;;  %923 = vmatpush3.bf16.msra.mxu1 %v994_v28 }
  0x23   : > { %487 = vmatprep.subr.bf16.mxu0 %v979_v18  ;;  %924 = vmatprep.subr.bf16.mxu1 %v995_v30 }
  0x26   : > { %488 = vmatpush1.bf16.msra.mxu0 %v981_v21  ;;  %925 = vmatpush3.bf16.msra.mxu1 %v996_v31  ;;  %v911_v21 = vld [vmem:[%s1227_s6] ss:$0 sm:$0xff] }
  0x27   : > { %489 = vmatprep.subr.bf16.mxu0 %v982_v23  ;;  %926 = vmatprep.subr.bf16.mxu1 %v997_v32 }
  0x2a   : > { %490 = vmatpush1.bf16.msra.mxu0 %v984_v25  ;;  %927 = vmatpush3.bf16.msra.mxu1 %v998_v33 }
  0x2b   : > { %928 = vmatprep.subr.bf16.mxu1 %v999_v34 }
  0x2d   : > { %508 = vmatmul.mubr.bf16.vlgmr.msra.gmra.mxu0 %v366_v29 }
  0x2e   : > { %929 = vmatpush3.bf16.msra.mxu1 %v1000_v35 }
  0xed   : > { %v509_v41 = vpop.f32.mrf.mxu0 }
  0xee   : > { %v510_v48 = vadd.f32 %v509_v41, %v388_v43 }
  0xef   : > { %v511_v44 = vpop.f32.mrf.mxu0 }
  0xf0   : > { %v512_v46 = vadd.f32 %v511_v44, %v392_v42  ;;  %v518_v54 = vmax.f32 %v510_v48, 0.0 }
  0xf1   : > { %v513_v45 = vpop.f32.mrf.mxu0 }
  0xf2   : > { %v514_v47 = vadd.f32 %v513_v45, %v388_v43  ;;  %v519_v52 = vmax.f32 %v512_v46, 0.0 }
  0xf3   : > { %v515_v49 = vpop.f32.mrf.mxu0 }
  0xf4   : > { %v516_v50 = vadd.f32 %v515_v49, %v392_v42  ;;  %v520_v51 = vmax.f32 %v514_v47, 0.0 }
  0xf6   : > { %v521_v53 = vmax.f32 %v516_v50, 0.0  ;;  %v524_v56 = vpack.c.bf16 %v520_v51, %v518_v54 }
  0xf8   : > { %v525_v55 = vpack.c.bf16 %v521_v53, %v519_v52 }
  0xfa   : > { %686 = vmatprep.mubr.bf16.mxu1 %v525_v55 }
  0xfb   : > { %687 = vmatmul.mubr.bf16.vlgmr.msra.gmra.mxu1 %v524_v56 }
 0x1bb   : > { %v930_v57 = vpop.f32.mrf.mxu1 }
 0x1bd   : > { %v931_v58 = vpop.f32.mrf.mxu1 }
 0x1be   : > { %v932_v59 = vadd.f32 %v931_v58, %v930_v57 }
 0x1bf   : > { %v933_v60 = vpop.f32.mrf.mxu1 }
 0x1c0   : > { %v704_v62 = vadd.f32 %v932_v59, %v364_v26 }
 0x1c1   : > { %v934_v63 = vpop.f32.mrf.mxu1 }
 0x1c2   : > { %v935_v0 = vadd.f32 %v934_v63, %v933_v60  ;;  %v713_v1 = vadd.f32 %v909_v61, %v704_v62 }
 0x1c4   : > { %v705_v2 = vadd.f32 %v935_v0, %v365_v27  ;;  %715 = vadd.xlane.f32.xlu0 %v713_v1 }
 0x1c6   : > { %v714_v3 = vadd.f32 %v909_v61, %v705_v2 }
 0x1c8   : > { %717 = vadd.xlane.f32.xlu0 %v714_v3 }
 0x24d   : > { %v716_v4 = vpop.xlane.xlu0 %715 }
 0x24e   : > { %v720_v5 = vmul.f32 0.0078125, %v716_v4 }
 0x250   : > { %v722_v6 = vsub.f32 %v713_v1, %v720_v5 }
 0x251   : > { %v718_v7 = vpop.xlane.xlu0 %717 }
 0x252   : > { %v721_v8 = vmul.f32 0.0078125, %v718_v7  ;;  %v724_v9 = vmul.f32 %v722_v6, %v722_v6 }
 0x254   : > { %v723_v10 = vsub.f32 %v714_v3, %v721_v8  ;;  %726 = vadd.xlane.f32.xlu1 %v724_v9 }
 0x256   : > { %v725_v11 = vmul.f32 %v723_v10, %v723_v10 }
 0x258   : > { %728 = vadd.xlane.f32.xlu1 %v725_v11 }
 0x2dd   : > { %v727_v12 = vpop.xlane.xlu1 %726 }
 0x2de   : > { %v730_v13 = vmul.f32 0.0078125, %v727_v12 }
 0x2e0   : > { %v732_v14 = vadd.f32 1e-05, %v730_v13 }
 0x2e1   : > { %v729_v15 = vpop.xlane.xlu1 %728 }
 0x2e2   : > { %1001 = vrsqrt.f32 %v732_v14  ;;  %v731_v16 = vmul.f32 0.0078125, %v729_v15 }
 0x2e4   : > { %v733_v17 = vadd.f32 1e-05, %v731_v16 }
 0x2e6   : > { %1003 = vrsqrt.f32 %v733_v17 }
 0x2ef   : > { %v1002_v18 = vpop.eup %1001 }
 0x2f0   : > { %v736_v20 = vmul.f32 %v1002_v18, %v722_v6 }
 0x2f2   : > { %v745_v22 = vmul.f32 %v910_v19, %v736_v20 }
 0x2f3   : > { %v1004_v23 = vpop.eup %1003 }
 0x2f4   : > { %v754_v24 = vadd.f32 %v911_v21, %v745_v22  ;;  %v737_v25 = vmul.f32 %v1004_v23, %v723_v10 }
 0x2f6   : > { %756 = vst [vmem:[%s355_s24] sm:$0xff] %v754_v24  ;;  %v746_v26 = vmul.f32 %v910_v19, %v737_v25 }
 0x2f8   : > { %v755_v27 = vadd.f32 %v911_v21, %v746_v26 }
 0x2fa   : > { %757 = vst [vmem:[%s355_s24 + $0x8] sm:$0xff] %v755_v27 }
 0x2fb PF: > { %s17_s26 = sadd.s32 1, %s1027_s26   ;;  %s1229_s24 = smov %s1023_s25 }
 0x2fc   : > { %p14_p5 = scmp.ge.s32.totalorder %s17_s26, 4   ;;  %s1230_s25 = smov %s1232_s27 }
 0x2fe   :  { %16 = sbr.rel (!%p14_p5) target bundleno = 2 (0x2), region = 95 }

// kernel: supertagger_forward.11
= control target key start
LH: loop header
LB: loop body
LE: loop exit
PB: predicated region body
PF: predicated region fallthrough
CT: control target
= control target key end

     0   :  { %s4340_s0 = inlined_call_operand.vmem [shape: s32[2], index: 0, kind: input, shape index: {}]   ;;  %s4341_s1 = inlined_call_operand.vmem [shape: f32[2,16,128], index: 1, kind: input, shape index: {}]   ;;  %s4342_s2 = inlined_call_operand.vmem [shape: bf16[4,128,32], index: 2, kind: input, shape index: {}]   ;;  %s4343_s3 = inlined_call_operand.vmem [shape: bf16[4,128,32], index: 3, kind: input, shape index: {}]   ;;  %s4344_s4 = inlined_call_operand.vmem [shape: bf16[4,128,32], index: 4, kind: input, shape index: {}]   ;;  %s4345_s5 = inlined_call_operand.vmem [shape: bf16[4,32,128], index: 5, kind: input, shape index: {}]   ;;  %s4346_s6 = inlined_call_operand.vmem [shape: f32[4,1,32], index: 6, kind: input, shape index: {}]   ;;  %s4347_s7 = inlined_call_operand.vmem [shape: f32[4,1,32], index: 7, kind: input, shape index: {}]   ;;  %s4348_s8 = inlined_call_operand.vmem [shape: f32[4,1,32], index: 8, kind: input, shape index: {}]   ;;  %s4349_s9 = inlined_call_operand.vmem [shape: f32[1,128], index: 9, kind: input, shape index: {}]   ;;  %s4350_s10 = inlined_call_operand.vmem [shape: f32[1,128], index: 10, kind: input, shape index: {}]   ;;  %s4351_s11 = inlined_call_operand.vmem [shape: f32[1,128], index: 11, kind: input, shape index: {}]   ;;  %s4352_s12 = inlined_call_operand.vmem [shape: f32[2,16,128], index: 12, kind: output, shape index: {}]  }
   0x1   :  { %s17_s23 = sshll.u32 %s4340_s0, 4  ;;  %s18_s23 = int_to_ptr.vmem [resolvable:$true] %s17_s23 }
   0x2   :  { %s3588_s24 = scalar_lea.vmem %s18_s23, 16  ;;  %p3593_p1 = scmp.lt.s32.totalorder %s18_s23, %s18_s23 }
   0x3   :  { %p3589_p0 = scmp.ne.s32.totalorder %s18_s23, %s3588_s24  ;;  %p3594_p2 = scmp.lt.s32.totalorder %s3588_s24, %s3588_s24 }
   0x5   :  { %p3595_p3 = por %p3594_p2, %p3593_p1 }
   0x7   :  { %p3596_p4 = pnand %p3595_p3, %p3589_p0 }
   0x9   :  { %3599 = shalt.err (!%p3596_p4)  }
   0xa   :  { %s3626_s25 = smov [#allocation3]  }
   0xb   :  { %20 = dma.vmem_to_smem %s18_s23, 16, %s3626_s25, [#allocation2] }
   0xc   :  { %3612 = dma.done.wait [#allocation2], 16 }
   0xd   :  { %3613 = vsyncadd [#allocation2], 4294967280 }
   0xe   :  { %22 = sfence }
   0xf   :  { %s3698_s26 = smov 0   ;;  %s3700_s27 = smov 0  }
  0x10   :  { %s3702_s28 = smov 0  }
  0x11 LB: > { %s40_s0 = sadd.s32 1, %s3620_s27  ;;  %p2657_p5 = scmp.ge.s32.totalorder %s3624_s28, 1  ;;  %s3624_s28 = sphi %s3702_s28, %s28_s28   ;;  %s3620_s27 = sphi %s3700_s27, %s4354_s27   ;;  %s3616_s26 = sphi %s3698_s26, %s4353_s26  }
  0x12   : > { %p42_p6 = scmp.ge.s32.totalorder %s40_s0, 2  ;;  %p358_p7 = scmp.lt.s32.totalorder %s3624_s28, 3 }
  0x14   : > { %s4356_s0 = smov (%p42_p6, %s40_s0), 0  ;;  %p359_p8 = pnand %p2657_p5, %p358_p7 }
  0x15   : > { %p402_p9 = scmp.lt.s32.totalorder (!%p359_p8), %s3616_s26, 1  ;;  %s422_s15 = sld [smem:[#allocation3 + %s3616_s26]] (!%p359_p8) }
  0x16   : > { %362 = sbr.rel (%p359_p8) target bundleno = 4133 (0x1025), region = 64 }
  0x1b   : > { %v3446_v0 = vld [vmem:[%s4343_s3 + $0x38] sm:$0xff]   ;;  %v3627_v1 = vmov 0.0   ;;  %v3448_v3 = vld [vmem:[%s4343_s3 + $0x30] sm:$0xff]   ;;  %vm3628_vm0 = vmmov 0   ;;  %v3450_v5 = vld [vmem:[%s4343_s3 + $0x28] sm:$0xff]   ;;  %s3756_s30 = scalar_select %p402_p9, %s3616_s26, 1  ;;  %v420_v47 = vlaneseq  ;;  %v423_v49 = vstv %s422_s15 }
  0x1c   : > { %3118 = vmatprep.subr.bf16.mxu1 %v3627_v1  ;;  %3098 = vmatprep.subr.bf16.mxu0 %v3627_v1  ;;  %v3447_v2 = vld [vmem:[%s4342_s2 + $0x38] sm:$0xff]   ;;  %v3449_v4 = vld [vmem:[%s4342_s2 + $0x30] sm:$0xff]   ;;  %v3451_v6 = vld [vmem:[%s4342_s2 + $0x28] sm:$0xff]   ;;  %vm767_vm1 = vcmask 261120   ;;  %v3629_v50 = vmov -1e+09  }
  0x1d   : > { %3119 = vmatpush3.bf16.msra.mxu1 %v3446_v0  ;;  %3134 = vmatprep.mubr.msk.bf16.mxu1 %vm3628_vm0, %v3627_v1  ;;  %v3452_v7 = vld [vmem:[%s4343_s3 + $0x20] sm:$0xff]   ;;  %v3454_v9 = vld [vmem:[%s4343_s3 + $0x18] sm:$0xff]   ;;  %v3456_v11 = vld [vmem:[%s4343_s3 + $0x10] sm:$0xff]   ;;  %s2960_s19 = sshll.u32 %s3756_s30, 4  ;;  %v421_v48 = vand.u32 127, %v420_v47  ;;  %vm815_vm3 = vcmask 130048  }
  0x1e   : > { %3099 = vmatpush3.bf16.msra.mxu0 %v3447_v2  ;;  %3120 = vmatprep.subr.bf16.mxu1 %v3627_v1  ;;  %v3453_v8 = vld [vmem:[%s4342_s2 + $0x20] sm:$0xff]   ;;  %v3455_v10 = vld [vmem:[%s4342_s2 + $0x18] sm:$0xff]   ;;  %v3457_v12 = vld [vmem:[%s4342_s2 + $0x10] sm:$0xff]   ;;  %s3786_s14 = scalar_lea.vmem %s4341_s1, %s2960_s19  ;;  %s415_s21 = scalar_lea.vmem %s4352_s12, %s2960_s19 }
  0x1f   : > { %3100 = vmatprep.subr.bf16.mxu0 %v3627_v1  ;;  %3114 = vmatprep.mubr.msk.bf16.mxu0 %vm3628_vm0, %v3627_v1  ;;  %v3458_v13 = vld [vmem:[%s4343_s3 + $0x8] sm:$0xff]   ;;  %v3460_v15 = vld [vmem:[%s4343_s3] sm:$0xff]   ;;  %v3462_v39 = vld [vmem:[%s4344_s4 + $0x38] sm:$0xff]   ;;  %vm424_vm2 = vcmp.lt.s32.totalorder %v421_v48, %v423_v49 }
  0x20   : > { %v3459_v14 = vld [vmem:[%s4342_s2 + $0x8] sm:$0xff]   ;;  %v418_v16 = vld [vmem:[%s3786_s14] sm:$0xff]  ;;  %v3463_v40 = vld [vmem:[%s4344_s4 + $0x30] sm:$0xff]   ;;  %v3857_v51 = vsel %vm424_vm2, 0.0, %v3629_v50 }
  0x21   : > { %3121 = vmatpush3.bf16.msra.mxu1 %v3448_v3  ;;  %v419_v17 = vld [vmem:[%s3786_s14 + $0x8] sm:$0xff]  ;;  %v3461_v18 = vld [vmem:[%s4342_s2] sm:$0xff]   ;;  %v3466_v43 = vld [vmem:[%s4344_s4 + $0x18] sm:$0xff]  }
  0x22   : > { %3101 = vmatpush3.bf16.msra.mxu0 %v3449_v4  ;;  %3122 = vmatprep.subr.bf16.mxu1 %v3627_v1  ;;  %v3800_v19 = vpack.c.bf16 %v419_v17, %v418_v16  ;;  %v2671_v22 = vld [vmem:[%s4347_s7] ss:$0 sm:$0xff]  ;;  %v3464_v41 = vld [vmem:[%s4344_s4 + $0x28] sm:$0xff]   ;;  %v3467_v44 = vld [vmem:[%s4344_s4 + $0x10] sm:$0xff]  }
  0x23   : > { %3102 = vmatprep.subr.bf16.mxu0 %v3627_v1  ;;  %v2662_v25 = vld [vmem:[%s4346_s6] ss:$0 sm:$0xff]  ;;  %v3468_v45 = vld [vmem:[%s4344_s4 + $0x8] sm:$0xff]   ;;  %v2734_v49 = vld [vmem:[%s4347_s7 + $0x1] ss:$0 sm:$0xff] }
  0x24   : > { %v3465_v42 = vld [vmem:[%s4344_s4 + $0x20] sm:$0xff]   ;;  %v3472_v17 = vld [vmem:[%s4343_s3 + $0x68] sm:$0xff]  }
  0x25   : > { %3123 = vmatpush3.bf16.msra.mxu1 %v3450_v5  ;;  %v3469_v46 = vld [vmem:[%s4344_s4] sm:$0xff]   ;;  %v3494_v47 = vld [vmem:[%s4345_s5 + $0x8] sm:$0xff]  }
  0x26   : > { %3103 = vmatpush3.bf16.msra.mxu0 %v3451_v6  ;;  %3124 = vmatprep.subr.bf16.mxu1 %v3627_v1  ;;  %v3495_v48 = vld [vmem:[%s4345_s5] sm:$0xff]  }
  0x27   : > { %3104 = vmatprep.subr.bf16.mxu0 %v3627_v1 }
  0x29   : > { %3125 = vmatpush3.bf16.msra.mxu1 %v3452_v7  ;;  %v2680_v7 = vld [vmem:[%s4348_s8] ss:$0 sm:$0xff] }
  0x2a   : > { %3105 = vmatpush3.bf16.msra.mxu0 %v3453_v8  ;;  %3126 = vmatprep.subr.bf16.mxu1 %v3627_v1 }
  0x2b   : > { %3106 = vmatprep.subr.bf16.mxu0 %v3627_v1 }
  0x2d   : > { %3127 = vmatpush3.bf16.msra.mxu1 %v3454_v9 }
  0x2e   : > { %3107 = vmatpush3.bf16.msra.mxu0 %v3455_v10  ;;  %3128 = vmatprep.subr.bf16.mxu1 %v3627_v1 }
  0x2f   : > { %3108 = vmatprep.subr.bf16.mxu0 %v3627_v1 }
  0x31   : > { %3129 = vmatpush3.bf16.msra.mxu1 %v3456_v11 }
  0x32   : > { %3109 = vmatpush3.bf16.msra.mxu0 %v3457_v12  ;;  %3130 = vmatprep.subr.bf16.mxu1 %v3627_v1  ;;  %v3470_v12 = vld [vmem:[%s4343_s3 + $0x78] sm:$0xff]  }
  0x33   : > { %3110 = vmatprep.subr.bf16.mxu0 %v3627_v1 }
  0x35   : > { %3131 = vmatpush3.bf16.msra.mxu1 %v3458_v13 }
  0x36   : > { %3111 = vmatpush3.bf16.msra.mxu0 %v3459_v14  ;;  %3132 = vmatprep.subr.bf16.mxu1 %v3627_v1 }
  0x37   : > { %3112 = vmatprep.subr.bf16.mxu0 %v3627_v1 }
  0x39   : > { %3133 = vmatpush3.bf16.msra.mxu1 %v3460_v15  ;;  %v3471_v15 = vld [vmem:[%s4343_s3 + $0x70] sm:$0xff]  }
  0x3a   : > { %3113 = vmatpush3.bf16.msra.mxu0 %v3461_v18  ;;  %3158 = vmatprep.subr.bf16.mxu1 %v3627_v1  ;;  %v3474_v18 = vld [vmem:[%s4343_s3 + $0x60] sm:$0xff]  }
  0x3b   : > { %3138 = vmatprep.subr.bf16.mxu0 %v3627_v1 }
  0x3c   : > { %3135 = vmatmul.mubr.bf16.vlgmr.msra.gmra.mxu1 %v3800_v19 }
  0x3d   : > { %3115 = vmatmul.mubr.bf16.vlgmr.msra.gmra.mxu0 %v3800_v19  ;;  %3160 = vmatprep.mubr.msk.bf16.mxu1 %vm3628_vm0, %v3627_v1 }
  0x3e   : > { %3154 = vmatprep.mubr.msk.bf16.mxu0 %vm3628_vm0, %v3627_v1  ;;  %3139 = vmatpush3.bf16.msra.mxu0 %v3462_v39  ;;  %v3486_v39 = vld [vmem:[%s4344_s4 + $0x78] sm:$0xff]  }
  0x3f   : > { %3140 = vmatprep.subr.bf16.mxu0 %v3627_v1 }
  0x42   : > { %3141 = vmatpush3.bf16.msra.mxu0 %v3463_v40  ;;  %v3487_v40 = vld [vmem:[%s4344_s4 + $0x70] sm:$0xff]  }
  0x43   : > { %3142 = vmatprep.subr.bf16.mxu0 %v3627_v1 }
  0x46   : > { %3143 = vmatpush3.bf16.msra.mxu0 %v3464_v41  ;;  %v3488_v41 = vld [vmem:[%s4344_s4 + $0x68] sm:$0xff]  }
  0x47   : > { %3144 = vmatprep.subr.bf16.mxu0 %v3627_v1 }
  0x4a   : > { %3145 = vmatpush3.bf16.msra.mxu0 %v3465_v42  ;;  %v3489_v42 = vld [vmem:[%s4344_s4 + $0x60] sm:$0xff]  }
  0x4b   : > { %3146 = vmatprep.subr.bf16.mxu0 %v3627_v1 }
  0x4e   : > { %3147 = vmatpush3.bf16.msra.mxu0 %v3466_v43  ;;  %v3490_v43 = vld [vmem:[%s4344_s4 + $0x58] sm:$0xff]  }
  0x4f   : > { %3148 = vmatprep.subr.bf16.mxu0 %v3627_v1 }
  0x52   : > { %3149 = vmatpush3.bf16.msra.mxu0 %v3467_v44  ;;  %v3491_v44 = vld [vmem:[%s4344_s4 + $0x50] sm:$0xff]  }
  0x53   : > { %3150 = vmatprep.subr.bf16.mxu0 %v3627_v1 }
  0x56   : > { %3151 = vmatpush3.bf16.msra.mxu0 %v3468_v45  ;;  %v3492_v45 = vld [vmem:[%s4344_s4 + $0x48] sm:$0xff]  }
  0x57   : > { %3152 = vmatprep.subr.bf16.mxu0 %v3627_v1 }
  0x5a   : > { %3153 = vmatpush3.bf16.msra.mxu0 %v3469_v46  ;;  %v3493_v46 = vld [vmem:[%s4344_s4 + $0x40] sm:$0xff]  }
  0x5b   : > { %3190 = vmatprep.subr.bf16.mxu0 %v3627_v1 }
  0x5d   : > { %3155 = vmatmul.mubr.bf16.vlgmr.msra.gmra.mxu0 %v3800_v19 }
  0x5e   : > { %3206 = vmatprep.mubr.msk.bf16.mxu0 %vm3628_vm0, %v3627_v1  ;;  %3191 = vmatpush3.bf16.msra.mxu0 %v3470_v12 }
  0x5f   : > { %3192 = vmatprep.subr.bf16.mxu0 %v3627_v1 }
  0x62   : > { %3193 = vmatpush3.bf16.msra.mxu0 %v3471_v15 }
  0x63   : > { %3194 = vmatprep.subr.bf16.mxu0 %v3627_v1 }
  0x66   : > { %3195 = vmatpush3.bf16.msra.mxu0 %v3472_v17 }
  0x67   : > { %3196 = vmatprep.subr.bf16.mxu0 %v3627_v1 }
  0x6a   : > { %3197 = vmatpush3.bf16.msra.mxu0 %v3474_v18 }
  0x6b   : > { %3198 = vmatprep.subr.bf16.mxu0 %v3627_v1 }
  0xfc   : > { %v644_v20 = vpop.f32.mrf.mxu1 }
  0xfd   : > { %v532_v21 = vpop.f32.mrf.mxu0  ;;  %v645_v27 = vadd.f32 %v2671_v22, %v644_v20  ;;  %v3476_v20 = vld [vmem:[%s4343_s3 + $0x58] sm:$0xff]  }
  0xfe   : > { %v3136_v23 = vpop.f32.mrf.mxu1  ;;  %v533_v31 = vadd.f32 %v2662_v25, %v532_v21  ;;  %3199 = vmatpush3.bf16.msra.mxu0 %v3476_v20  ;;  %v3478_v21 = vld [vmem:[%s4343_s3 + $0x50] sm:$0xff]  }
  0xff   : > { %v3116_v24 = vpop.f32.mrf.mxu0  ;;  %3200 = vmatprep.subr.bf16.mxu0 %v3627_v1  ;;  %v3482_v23 = vld [vmem:[%s4343_s3 + $0x40] sm:$0xff]  }
 0x100   : > { %v647_v26 = vpop.f32.mrf.mxu1  ;;  %v763_v36 = vmul.f32 0.17677669, %v533_v31 }
 0x101   : > { %v648_v28 = vadd.f32 %v2671_v22, %v647_v26  ;;  %v535_v29 = vpop.f32.mrf.mxu0  ;;  %v3480_v22 = vld [vmem:[%s4343_s3 + $0x48] sm:$0xff]  }
 0x102   : > { %v3137_v30 = vpop.f32.mrf.mxu1  ;;  %v536_v33 = vadd.f32 %v2662_v25, %v535_v29  ;;  %3201 = vmatpush3.bf16.msra.mxu0 %v3478_v21 }
 0x103   : > { %v766_v32 = vpack.c.bf16 %v648_v28, %v645_v27  ;;  %v3117_v34 = vpop.f32.mrf.mxu0  ;;  %3202 = vmatprep.subr.bf16.mxu0 %v3627_v1  ;;  %v3473_v30 = vld [vmem:[%s4342_s2 + $0x78] sm:$0xff]  }
 0x104   : > { %v764_v37 = vmul.f32 0.17677669, %v536_v33  ;;  %v3477_v33 = vld [vmem:[%s4342_s2 + $0x68] sm:$0xff]   ;;  %v3479_v34 = vld [vmem:[%s4342_s2 + $0x60] sm:$0xff]  }
 0x105   : > { %v772_v35 = vsel %vm767_vm1, %v766_v32, 0  ;;  %v3475_v32 = vld [vmem:[%s4342_s2 + $0x70] sm:$0xff]  }
 0x106   : > { %3159 = vmatpush3.bf16.xpose.msra.mxu1 %v772_v35  ;;  %v765_v38 = vpack.c.bf16 %v764_v37, %v763_v36  ;;  %3203 = vmatpush3.bf16.msra.mxu0 %v3480_v22  ;;  %v3481_v35 = vld [vmem:[%s4342_s2 + $0x58] sm:$0xff]   ;;  %v3483_v36 = vld [vmem:[%s4342_s2 + $0x50] sm:$0xff]   ;;  %v3484_v37 = vld [vmem:[%s4342_s2 + $0x48] sm:$0xff]  }
 0x107   : > { %3164 = vmatprep.subr.bf16.mxu1 %v3627_v1  ;;  %3204 = vmatprep.subr.bf16.mxu0 %v3627_v1 }
 0x10a   : > { %3205 = vmatpush3.bf16.msra.mxu0 %v3482_v23 }
 0x10b   : > { %3230 = vmatprep.subr.bf16.mxu0 %v3627_v1 }
 0x10d   : > { %3161 = vmatmul.mubr.msk.bf16.vlgmr.msra.gmra.mxu1 %vm767_vm1, %v765_v38  ;;  %3207 = vmatmul.mubr.bf16.vlgmr.msra.gmra.mxu0 %v3800_v19  ;;  %v3485_v38 = vld [vmem:[%s4342_s2 + $0x40] sm:$0xff]  }
 0x10e   : > { %3166 = vmatprep.mubr.msk.bf16.mxu1 %vm3628_vm0, %v3627_v1  ;;  %3232 = vmatprep.mubr.msk.bf16.mxu0 %vm3628_vm0, %v3627_v1 }
 0x11d   : > { %v756_v8 = vpop.f32.mrf.mxu0 }
 0x11e   : > { %v757_v10 = vadd.f32 %v2680_v7, %v756_v8 }
 0x11f   : > { %v3156_v9 = vpop.f32.mrf.mxu0 }
 0x121   : > { %v759_v11 = vpop.f32.mrf.mxu0 }
 0x122   : > { %v760_v13 = vadd.f32 %v2680_v7, %v759_v11  ;;  %v2760_v11 = vld [vmem:[%s4348_s8 + $0x1] ss:$0 sm:$0xff] }
 0x123   : > { %v3157_v14 = vpop.f32.mrf.mxu0 }
 0x124   : > { %v839_v16 = vpack.c.bf16 %v760_v13, %v757_v10 }
 0x126   : > { %3165 = vmatpush3.bf16.msra.mxu1 %v839_v16 }
 0x127   : > { %3170 = vmatprep.subr.bf16.mxu1 %v3627_v1 }
 0x1cd   : > { %v808_v52 = vpop.f32.mrf.mxu1  ;;  %v1110_v50 = vpop.f32.mrf.mxu0 }
 0x1ce   : > { %v809_v53 = vadd.f32 %v808_v52, %v3857_v51 }
 0x1cf   : > { %v3162_v54 = vpop.f32.mrf.mxu1  ;;  %v3208_v52 = vpop.f32.mrf.mxu0 }
 0x1d0   : > { %v816_v55 = vsel %vm815_vm3, %v809_v53, -inf }
 0x1d1   : > { %817 = vmax.xlane.f32.xlu0 %v816_v55  ;;  %v811_v56 = vpop.f32.mrf.mxu1  ;;  %v1113_v54 = vpop.f32.mrf.mxu0 }
 0x1d2   : > { %v812_v57 = vadd.f32 %v811_v56, %v3857_v51  ;;  %v1114_v55 = vadd.f32 %v2734_v49, %v1113_v54  ;;  %v3500_v54 = vld [vmem:[%s4343_s3 + $0xa8] sm:$0xff]  }
 0x1d3   : > { %v3163_v58 = vpop.f32.mrf.mxu1  ;;  %v3209_v56 = vpop.f32.mrf.mxu0 }
 0x1d4   : > { %v819_v59 = vsel %vm815_vm3, %v812_v57, -inf  ;;  %v3504_v56 = vld [vmem:[%s4343_s3 + $0x98] sm:$0xff]  }
 0x1d5   : > { %820 = vmax.xlane.f32.xlu0 %v819_v59 }
 0x25a   : > { %v818_v60 = vpop.xlane.xlu0 %817 }
 0x25b   : > { %v822_v61 = vsub.f32 %v809_v53, %v818_v60  ;;  %v1111_v53 = vadd.f32 %v2734_v49, %v1110_v50  ;;  %v3497_v50 = vld [vmem:[%s4345_s5 + $0x18] sm:$0xff]  }
 0x25d   : > { %v824_v62 = vmul.f32 1.442695, %v822_v61 }
 0x25e   : > { %v821_v63 = vpop.xlane.xlu0 %820 }
 0x25f   : > { %3550 = vpow2.f32 %v824_v62  ;;  %v823_v0 = vsub.f32 %v812_v57, %v821_v63  ;;  %v1234_v57 = vpack.c.bf16 %v1114_v55, %v1111_v53  ;;  %v3499_v53 = vld [vmem:[%s4345_s5 + $0x10] sm:$0xff]   ;;  %v3502_v55 = vld [vmem:[%s4343_s3 + $0xa0] sm:$0xff]  }
 0x261   : > { %v826_v2 = vmul.f32 1.442695, %v823_v0  ;;  %v1239_v58 = vsel %vm767_vm1, %v1234_v57, 0  ;;  %v2708_v0 = vld [vmem:[%s4346_s6 + $0x1] ss:$0 sm:$0xff]  ;;  %v3506_v57 = vld [vmem:[%s4343_s3 + $0x90] sm:$0xff]  }
 0x262   : > { %3231 = vmatpush3.bf16.xpose.msra.mxu0 %v1239_v58  ;;  %v3508_v58 = vld [vmem:[%s4343_s3 + $0x88] sm:$0xff]  }
 0x263   : > { %3552 = vpow2.f32 %v826_v2  ;;  %3236 = vmatprep.subr.bf16.mxu0 %v3627_v1 }
 0x26c   : > { %v3551_v3 = vpop.eup %3550 }
 0x26d   : > { %v828_v4 = vsel %vm815_vm3, %v3551_v3, 0.0 }
 0x26e   : > { %829 = vadd.xlane.f32.xlu1 %v828_v4 }
 0x270   : > { %v3553_v5 = vpop.eup %3552 }
 0x271   : > { %v831_v6 = vsel %vm815_vm3, %v3553_v5, 0.0 }
 0x272   : > { %832 = vadd.xlane.f32.xlu1 %v831_v6 }
 0x2f7   : > { %v830_v24 = vpop.xlane.xlu1 %829 }
 0x2f8   : > { %3554 = vrcp.f32 %v830_v24 }
 0x2fb   : > { %v833_v25 = vpop.xlane.xlu1 %832 }
 0x2fc   : > { %3556 = vrcp.f32 %v833_v25 }
 0x305   : > { %v3555_v26 = vpop.eup %3554 }
 0x306   : > { %v836_v28 = vmul.f32 %v3555_v26, %v3551_v3 }
 0x309   : > { %v3557_v27 = vpop.eup %3556 }
 0x30a   : > { %v837_v29 = vmul.f32 %v3557_v27, %v3553_v5 }
 0x30c   : > { %v838_v31 = vpack.c.bf16 %v837_v29, %v836_v28 }
 0x30e   : > { %3167 = vmatmul.mubr.msk.bf16.vlgmr.msra.gmra.mxu1 %vm815_vm3, %v838_v31 }
 0x30f   : > { %3171 = vmatpush3.bf16.msra.mxu1 %v3473_v30  ;;  %3186 = vmatprep.mubr.msk.bf16.mxu1 %vm3628_vm0, %v3627_v1 }
 0x310   : > { %3172 = vmatprep.subr.bf16.mxu1 %v3627_v1 }
 0x313   : > { %3173 = vmatpush3.bf16.msra.mxu1 %v3475_v32 }
 0x314   : > { %3174 = vmatprep.subr.bf16.mxu1 %v3627_v1 }
 0x317   : > { %3175 = vmatpush3.bf16.msra.mxu1 %v3477_v33 }
 0x318   : > { %3176 = vmatprep.subr.bf16.mxu1 %v3627_v1 }
 0x31b   : > { %3177 = vmatpush3.bf16.msra.mxu1 %v3479_v34 }
 0x31c   : > { %3178 = vmatprep.subr.bf16.mxu1 %v3627_v1 }
 0x31f   : > { %3179 = vmatpush3.bf16.msra.mxu1 %v3481_v35 }
 0x320   : > { %3180 = vmatprep.subr.bf16.mxu1 %v3627_v1 }
 0x323   : > { %3181 = vmatpush3.bf16.msra.mxu1 %v3483_v36 }
 0x324   : > { %3182 = vmatprep.subr.bf16.mxu1 %v3627_v1 }
 0x327   : > { %3183 = vmatpush3.bf16.msra.mxu1 %v3484_v37 }
 0x328   : > { %3184 = vmatprep.subr.bf16.mxu1 %v3627_v1 }
 0x32b   : > { %3185 = vmatpush3.bf16.msra.mxu1 %v3485_v38 }
 0x32c   : > { %3210 = vmatprep.subr.bf16.mxu1 %v3627_v1 }
 0x32e   : > { %3187 = vmatmul.mubr.bf16.vlgmr.msra.gmra.mxu1 %v3800_v19 }
 0x32f   : > { %3211 = vmatpush3.bf16.msra.mxu1 %v3486_v39  ;;  %3226 = vmatprep.mubr.msk.bf16.mxu1 %vm3628_vm0, %v3627_v1 }
 0x330   : > { %3212 = vmatprep.subr.bf16.mxu1 %v3627_v1 }
 0x333   : > { %3213 = vmatpush3.bf16.msra.mxu1 %v3487_v40 }
 0x334   : > { %3214 = vmatprep.subr.bf16.mxu1 %v3627_v1 }
 0x337   : > { %3215 = vmatpush3.bf16.msra.mxu1 %v3488_v41 }
 0x338   : > { %3216 = vmatprep.subr.bf16.mxu1 %v3627_v1 }
 0x33b   : > { %3217 = vmatpush3.bf16.msra.mxu1 %v3489_v42  ;;  %v3496_v42 = vld [vmem:[%s4343_s3 + $0xb8] sm:$0xff]  }
 0x33c   : > { %3218 = vmatprep.subr.bf16.mxu1 %v3627_v1 }
 0x33f   : > { %3219 = vmatpush3.bf16.msra.mxu1 %v3490_v43  ;;  %v3498_v43 = vld [vmem:[%s4343_s3 + $0xb0] sm:$0xff]  }
 0x340   : > { %3220 = vmatprep.subr.bf16.mxu1 %v3627_v1 }
 0x343   : > { %3221 = vmatpush3.bf16.msra.mxu1 %v3491_v44 }
 0x344   : > { %3222 = vmatprep.subr.bf16.mxu1 %v3627_v1 }
 0x347   : > { %3223 = vmatpush3.bf16.msra.mxu1 %v3492_v45 }
 0x348   : > { %3224 = vmatprep.subr.bf16.mxu1 %v3627_v1 }
 0x34b   : > { %3225 = vmatpush3.bf16.msra.mxu1 %v3493_v46 }
 0x34c   : > { %3250 = vmatprep.subr.bf16.mxu1 %v3627_v1 }
 0x34e   : > { %3227 = vmatmul.mubr.bf16.vlgmr.msra.gmra.mxu1 %v3800_v19 }
 0x34f   : > { %3251 = vmatpush3.bf16.msra.mxu1 %v3494_v47  ;;  %3254 = vmatprep.mubr.msk.bf16.mxu1 %vm3628_vm0, %v3627_v1 }
 0x350   : > { %3252 = vmatprep.subr.bf16.mxu1 %v3627_v1 }
 0x353   : > { %3253 = vmatpush3.bf16.msra.mxu1 %v3495_v48 }
 0x354   : > { %3278 = vmatprep.subr.bf16.mxu1 %v3627_v1 }
 0x3ce   : > { %v877_v59 = vpop.f32.mrf.mxu1 }
 0x3d0   : > { %v3168_v60 = vpop.f32.mrf.mxu1 }
 0x3d2   : > { %v880_v61 = vpop.f32.mrf.mxu1 }
 0x3d3   : > { %v884_v62 = vpack.c.bf16 %v880_v61, %v877_v59  ;;  %v3510_v59 = vld [vmem:[%s4343_s3 + $0x80] sm:$0xff]  }
 0x3d4   : > { %v3169_v63 = vpop.f32.mrf.mxu1 }
 0x3d5   : > { %3255 = vmatmul.mubr.msk.bf16.vlgmr.msra.gmra.mxu1 %vm767_vm1, %v884_v62  ;;  %v3501_v63 = vld [vmem:[%s4342_s2 + $0xb8] sm:$0xff]  }
 0x3d6   : > { %3294 = vmatprep.mubr.msk.bf16.mxu1 %vm3628_vm0, %v3627_v1  ;;  %3279 = vmatpush3.bf16.msra.mxu1 %v3496_v42  ;;  %v3520_v42 = vld [vmem:[%s4344_s4 + $0x88] sm:$0xff]  }
 0x3d7   : > { %3280 = vmatprep.subr.bf16.mxu1 %v3627_v1 }
 0x3da   : > { %3281 = vmatpush3.bf16.msra.mxu1 %v3498_v43  ;;  %v3521_v43 = vld [vmem:[%s4344_s4 + $0x80] sm:$0xff]  }
 0x3db   : > { %3282 = vmatprep.subr.bf16.mxu1 %v3627_v1 }
 0x3de   : > { %3283 = vmatpush3.bf16.msra.mxu1 %v3500_v54 }
 0x3df   : > { %3284 = vmatprep.subr.bf16.mxu1 %v3627_v1 }
 0x3e2   : > { %3285 = vmatpush3.bf16.msra.mxu1 %v3502_v55 }
 0x3e3   : > { %3286 = vmatprep.subr.bf16.mxu1 %v3627_v1 }
 0x3e6   : > { %3287 = vmatpush3.bf16.msra.mxu1 %v3504_v56 }
 0x3e7   : > { %3288 = vmatprep.subr.bf16.mxu1 %v3627_v1 }
 0x3ea   : > { %3289 = vmatpush3.bf16.msra.mxu1 %v3506_v57 }
 0x3eb   : > { %3290 = vmatprep.subr.bf16.mxu1 %v3627_v1 }
 0x3ee   : > { %v996_v2 = vpop.f32.mrf.mxu1  ;;  %3291 = vmatpush3.bf16.msra.mxu1 %v3508_v58 }
 0x3ef   : > { %v997_v4 = vadd.f32 %v2708_v0, %v996_v2  ;;  %3292 = vmatprep.subr.bf16.mxu1 %v3627_v1 }
 0x3f0   : > { %v3188_v3 = vpop.f32.mrf.mxu1 }
 0x3f1   : > { %v1231_v8 = vmul.f32 0.17677669, %v997_v4  ;;  %v3503_v3 = vld [vmem:[%s4342_s2 + $0xb0] sm:$0xff]   ;;  %v3505_v4 = vld [vmem:[%s4342_s2 + $0xa8] sm:$0xff]  }
 0x3f2   : > { %v999_v5 = vpop.f32.mrf.mxu1  ;;  %3293 = vmatpush3.bf16.msra.mxu1 %v3510_v59 }
 0x3f3   : > { %v1000_v6 = vadd.f32 %v2708_v0, %v999_v5  ;;  %3318 = vmatprep.subr.bf16.mxu1 %v3627_v1  ;;  %v3507_v5 = vld [vmem:[%s4342_s2 + $0xa0] sm:$0xff]  }
 0x3f4   : > { %v3189_v7 = vpop.f32.mrf.mxu1 }
 0x3f5   : > { %v1232_v9 = vmul.f32 0.17677669, %v1000_v6  ;;  %3295 = vmatmul.mubr.bf16.vlgmr.msra.gmra.mxu1 %v3800_v19  ;;  %v3509_v6 = vld [vmem:[%s4342_s2 + $0x98] sm:$0xff]   ;;  %v3511_v7 = vld [vmem:[%s4342_s2 + $0x90] sm:$0xff]  }
 0x3f6   : > { %3320 = vmatprep.mubr.msk.bf16.mxu1 %vm3628_vm0, %v3627_v1 }
 0x3f7   : > { %v1233_v10 = vpack.c.bf16 %v1232_v9, %v1231_v8  ;;  %v3512_v8 = vld [vmem:[%s4342_s2 + $0x88] sm:$0xff]   ;;  %v3513_v9 = vld [vmem:[%s4342_s2 + $0x80] sm:$0xff]  }
 0x3f9   : > { %3233 = vmatmul.mubr.msk.bf16.vlgmr.msra.gmra.mxu0 %vm767_vm1, %v1233_v10  ;;  %v2824_v10 = vld [vmem:[%s4347_s7 + $0x2] ss:$0 sm:$0xff] }
 0x3fa   : > { %3238 = vmatprep.mubr.msk.bf16.mxu0 %vm3628_vm0, %v3627_v1 }
 0x40e   : > { %v1224_v12 = vpop.f32.mrf.mxu1 }
 0x40f   : > { %v1225_v14 = vadd.f32 %v2760_v11, %v1224_v12 }
 0x410   : > { %v3228_v13 = vpop.f32.mrf.mxu1 }
 0x412   : > { %v1227_v15 = vpop.f32.mrf.mxu1 }
 0x413   : > { %v1228_v16 = vadd.f32 %v2760_v11, %v1227_v15 }
 0x414   : > { %v3229_v17 = vpop.f32.mrf.mxu1 }
 0x415   : > { %v1305_v18 = vpack.c.bf16 %v1228_v16, %v1225_v14 }
 0x417   : > { %3237 = vmatpush3.bf16.msra.mxu0 %v1305_v18 }
 0x418   : > { %3242 = vmatprep.subr.bf16.mxu0 %v3627_v1 }
 0x495   : > { %v4003_v20 = vpop.f32.mrf.mxu1 }
 0x497   : > { %v3256_v21 = vpop.f32.mrf.mxu1 }
 0x499   : > { %v4005_v22 = vpop.f32.mrf.mxu1 }
 0x49b   : > { %v3257_v23 = vpop.f32.mrf.mxu1 }
 0x4b5   : > { %v1689_v11 = vpop.f32.mrf.mxu1 }
 0x4b6   : > { %v1690_v13 = vadd.f32 %v2824_v10, %v1689_v11 }
 0x4b7   : > { %v3296_v12 = vpop.f32.mrf.mxu1 }
 0x4b9   : > { %v1275_v24 = vpop.f32.mrf.mxu0  ;;  %v1692_v14 = vpop.f32.mrf.mxu1 }
 0x4ba   : > { %v1276_v25 = vadd.f32 %v1275_v24, %v3857_v51  ;;  %v1693_v15 = vadd.f32 %v2824_v10, %v1692_v14 }
 0x4bb   : > { %v3234_v26 = vpop.f32.mrf.mxu0  ;;  %v3297_v16 = vpop.f32.mrf.mxu1 }
 0x4bc   : > { %v1282_v27 = vsel %vm815_vm3, %v1276_v25, -inf  ;;  %v1813_v17 = vpack.c.bf16 %v1693_v15, %v1690_v13  ;;  %v2798_v26 = vld [vmem:[%s4346_s6 + $0x2] ss:$0 sm:$0xff]  ;;  %v3523_v16 = vld [vmem:[%s4345_s5 + $0x28] sm:$0xff]  }
 0x4bd   : > { %1283 = vmax.xlane.f32.xlu0 %v1282_v27  ;;  %v1278_v28 = vpop.f32.mrf.mxu0 }
 0x4be   : > { %v1279_v29 = vadd.f32 %v1278_v28, %v3857_v51  ;;  %v1818_v18 = vsel %vm767_vm1, %v1813_v17, 0 }
 0x4bf   : > { %v3235_v30 = vpop.f32.mrf.mxu0  ;;  %3319 = vmatpush3.bf16.xpose.msra.mxu1 %v1818_v18  ;;  %v3525_v18 = vld [vmem:[%s4345_s5 + $0x20] sm:$0xff]  }
 0x4c0   : > { %v1285_v31 = vsel %vm815_vm3, %v1279_v29, -inf  ;;  %3324 = vmatprep.subr.bf16.mxu1 %v3627_v1 }
 0x4c1   : > { %1286 = vmax.xlane.f32.xlu1 %v1285_v31 }
 0x546   : > { %v1284_v32 = vpop.xlane.xlu0 %1283 }
 0x547   : > { %v1288_v33 = vsub.f32 %v1276_v25, %v1284_v32 }
 0x549   : > { %v1290_v34 = vmul.f32 1.442695, %v1288_v33 }
 0x54a   : > { %v1287_v35 = vpop.xlane.xlu1 %1286 }
 0x54b   : > { %3558 = vpow2.f32 %v1290_v34  ;;  %v1289_v36 = vsub.f32 %v1279_v29, %v1287_v35 }
 0x54d   : > { %v1292_v37 = vmul.f32 1.442695, %v1289_v36  ;;  %v3514_v36 = vld [vmem:[%s4344_s4 + $0xb8] sm:$0xff]  }
 0x54f   : > { %3560 = vpow2.f32 %v1292_v37  ;;  %v3515_v37 = vld [vmem:[%s4344_s4 + $0xb0] sm:$0xff]  }
 0x558   : > { %v3559_v38 = vpop.eup %3558 }
 0x559   : > { %v1294_v39 = vsel %vm815_vm3, %v3559_v38, 0.0 }
 0x55a   : > { %1295 = vadd.xlane.f32.xlu0 %v1294_v39  ;;  %v3517_v39 = vld [vmem:[%s4344_s4 + $0xa0] sm:$0xff]  }
 0x55c   : > { %v3561_v40 = vpop.eup %3560 }
 0x55d   : > { %v1297_v41 = vsel %vm815_vm3, %v3561_v40, 0.0 }
 0x55e   : > { %1298 = vadd.xlane.f32.xlu1 %v1297_v41  ;;  %v3519_v41 = vld [vmem:[%s4344_s4 + $0x90] sm:$0xff]  }
 0x5e3   : > { %v1296_v44 = vpop.xlane.xlu0 %1295 }
 0x5e4   : > { %3562 = vrcp.f32 %v1296_v44 }
 0x5e7   : > { %v1299_v45 = vpop.xlane.xlu1 %1298 }
 0x5e8   : > { %3564 = vrcp.f32 %v1299_v45 }
 0x5f1   : > { %v3563_v46 = vpop.eup %3562 }
 0x5f2   : > { %v1302_v48 = vmul.f32 %v3563_v46, %v3559_v38  ;;  %v3516_v38 = vld [vmem:[%s4344_s4 + $0xa8] sm:$0xff]  }
 0x5f5   : > { %v3565_v47 = vpop.eup %3564 }
 0x5f6   : > { %v1303_v49 = vmul.f32 %v3565_v47, %v3561_v40  ;;  %v3518_v40 = vld [vmem:[%s4344_s4 + $0x98] sm:$0xff]  }
 0x5f8   : > { %v1304_v52 = vpack.c.bf16 %v1303_v49, %v1302_v48 }
 0x5fa   : > { %3239 = vmatmul.mubr.msk.bf16.vlgmr.msra.gmra.mxu0 %vm815_vm3, %v1304_v52 }
 0x5fb   : > { %3243 = vmatpush3.bf16.msra.mxu0 %v3497_v50  ;;  %3246 = vmatprep.mubr.msk.bf16.mxu0 %vm3628_vm0, %v3627_v1 }
 0x5fc   : > { %3244 = vmatprep.subr.bf16.mxu0 %v3627_v1 }
 0x5ff   : > { %3245 = vmatpush3.bf16.msra.mxu0 %v3499_v53 }
 0x600   : > { %3258 = vmatprep.subr.bf16.mxu0 %v3627_v1 }
 0x6ba   : > { %v1343_v60 = vpop.f32.mrf.mxu0 }
 0x6bc   : > { %v3240_v61 = vpop.f32.mrf.mxu0 }
 0x6be   : > { %v1346_v62 = vpop.f32.mrf.mxu0 }
 0x6bf   : > { %v1350_v0 = vpack.c.bf16 %v1346_v62, %v1343_v60 }
 0x6c0   : > { %v3241_v2 = vpop.f32.mrf.mxu0 }
 0x6c1   : > { %3247 = vmatmul.mubr.msk.bf16.vlgmr.msra.gmra.mxu0 %vm767_vm1, %v1350_v0 }
 0x6c2   : > { %3259 = vmatpush3.bf16.msra.mxu0 %v3501_v63  ;;  %3274 = vmatprep.mubr.msk.bf16.mxu0 %vm3628_vm0, %v3627_v1  ;;  %v2850_v63 = vld [vmem:[%s4348_s8 + $0x2] ss:$0 sm:$0xff] }
 0x6c3   : > { %3260 = vmatprep.subr.bf16.mxu0 %v3627_v1 }
 0x6c6   : > { %3261 = vmatpush3.bf16.msra.mxu0 %v3503_v3 }
 0x6c7   : > { %3262 = vmatprep.subr.bf16.mxu0 %v3627_v1 }
 0x6ca   : > { %3263 = vmatpush3.bf16.msra.mxu0 %v3505_v4 }
 0x6cb   : > { %3264 = vmatprep.subr.bf16.mxu0 %v3627_v1 }
 0x6ce   : > { %3265 = vmatpush3.bf16.msra.mxu0 %v3507_v5 }
 0x6cf   : > { %3266 = vmatprep.subr.bf16.mxu0 %v3627_v1 }
 0x6d2   : > { %3267 = vmatpush3.bf16.msra.mxu0 %v3509_v6 }
 0x6d3   : > { %3268 = vmatprep.subr.bf16.mxu0 %v3627_v1 }
 0x6d6   : > { %3269 = vmatpush3.bf16.msra.mxu0 %v3511_v7 }
 0x6d7   : > { %3270 = vmatprep.subr.bf16.mxu0 %v3627_v1 }
 0x6da   : > { %3271 = vmatpush3.bf16.msra.mxu0 %v3512_v8  ;;  %v3522_v8 = vld [vmem:[%s4343_s3 + $0xf8] sm:$0xff]  }
 0x6db   : > { %3272 = vmatprep.subr.bf16.mxu0 %v3627_v1 }
 0x6de   : > { %3273 = vmatpush3.bf16.msra.mxu0 %v3513_v9  ;;  %v3524_v9 = vld [vmem:[%s4343_s3 + $0xf0] sm:$0xff]  }
 0x6df   : > { %3298 = vmatprep.subr.bf16.mxu0 %v3627_v1 }
 0x6e1   : > { %3275 = vmatmul.mubr.bf16.vlgmr.msra.gmra.mxu0 %v3800_v19 }
 0x6e2   : > { %3314 = vmatprep.mubr.msk.bf16.mxu0 %vm3628_vm0, %v3627_v1  ;;  %3299 = vmatpush3.bf16.msra.mxu0 %v3514_v36  ;;  %v3529_v36 = vld [vmem:[%s4342_s2 + $0xf0] sm:$0xff]  }
 0x6e3   : > { %3300 = vmatprep.subr.bf16.mxu0 %v3627_v1 }
 0x6e6   : > { %3301 = vmatpush3.bf16.msra.mxu0 %v3515_v37  ;;  %v3531_v37 = vld [vmem:[%s4342_s2 + $0xe8] sm:$0xff]  }
 0x6e7   : > { %3302 = vmatprep.subr.bf16.mxu0 %v3627_v1 }
 0x6ea   : > { %3303 = vmatpush3.bf16.msra.mxu0 %v3516_v38  ;;  %v3533_v38 = vld [vmem:[%s4342_s2 + $0xe0] sm:$0xff]  }
 0x6eb   : > { %3304 = vmatprep.subr.bf16.mxu0 %v3627_v1 }
 0x6ee   : > { %3305 = vmatpush3.bf16.msra.mxu0 %v3517_v39  ;;  %v3535_v39 = vld [vmem:[%s4342_s2 + $0xd8] sm:$0xff]  }
 0x6ef   : > { %3306 = vmatprep.subr.bf16.mxu0 %v3627_v1 }
 0x6f2   : > { %3307 = vmatpush3.bf16.msra.mxu0 %v3518_v40  ;;  %v3537_v40 = vld [vmem:[%s4342_s2 + $0xd0] sm:$0xff]  }
 0x6f3   : > { %3308 = vmatprep.subr.bf16.mxu0 %v3627_v1 }
 0x6f6   : > { %3309 = vmatpush3.bf16.msra.mxu0 %v3519_v41  ;;  %v3538_v41 = vld [vmem:[%s4342_s2 + $0xc8] sm:$0xff]  }
 0x6f7   : > { %3310 = vmatprep.subr.bf16.mxu0 %v3627_v1 }
 0x6fa   : > { %3311 = vmatpush3.bf16.msra.mxu0 %v3520_v42  ;;  %v3539_v42 = vld [vmem:[%s4342_s2 + $0xc0] sm:$0xff]  }
 0x6fb   : > { %3312 = vmatprep.subr.bf16.mxu0 %v3627_v1 }
 0x6fe   : > { %3313 = vmatpush3.bf16.msra.mxu0 %v3521_v43  ;;  %v2911_v43 = vld [vmem:[%s4347_s7 + $0x3] ss:$0 sm:$0xff] }
 0x6ff   : > { %3358 = vmatprep.subr.bf16.mxu0 %v3627_v1 }
 0x701   : > { %3315 = vmatmul.mubr.bf16.vlgmr.msra.gmra.mxu0 %v3800_v19 }
 0x702   : > { %3374 = vmatprep.mubr.msk.bf16.mxu0 %vm3628_vm0, %v3627_v1  ;;  %3359 = vmatpush3.bf16.msra.mxu0 %v3522_v8  ;;  %v3544_v8 = vld [vmem:[%s4344_s4 + $0xd8] sm:$0xff]  }
 0x703   : > { %3360 = vmatprep.subr.bf16.mxu0 %v3627_v1 }
 0x706   : > { %3361 = vmatpush3.bf16.msra.mxu0 %v3524_v9  ;;  %v3545_v9 = vld [vmem:[%s4344_s4 + $0xd0] sm:$0xff]  }
 0x707   : > { %3362 = vmatprep.subr.bf16.mxu0 %v3627_v1 }
 0x781   : > { %v4102_v21 = vpop.f32.mrf.mxu0 }
 0x783   : > { %v3248_v23 = vpop.f32.mrf.mxu0 }
 0x784   : > { %v3526_v23 = vld [vmem:[%s4343_s3 + $0xe8] sm:$0xff]  }
 0x785   : > { %v4104_v24 = vpop.f32.mrf.mxu0  ;;  %3363 = vmatpush3.bf16.msra.mxu0 %v3526_v23 }
 0x786   : > { %3364 = vmatprep.subr.bf16.mxu0 %v3627_v1 }
 0x787   : > { %v3249_v25 = vpop.f32.mrf.mxu0 }
 0x788   : > { %v3528_v25 = vld [vmem:[%s4343_s3 + $0xe0] sm:$0xff]  }
 0x789   : > { %3365 = vmatpush3.bf16.msra.mxu0 %v3528_v25 }
 0x78a   : > { %3366 = vmatprep.subr.bf16.mxu0 %v3627_v1 }
 0x7a1   : > { %v1575_v27 = vpop.f32.mrf.mxu0 }
 0x7a2   : > { %v1576_v29 = vadd.f32 %v2798_v26, %v1575_v27  ;;  %v3532_v27 = vld [vmem:[%s4343_s3 + $0xd0] sm:$0xff]  }
 0x7a3   : > { %v3276_v28 = vpop.f32.mrf.mxu0 }
 0x7a4   : > { %v1810_v33 = vmul.f32 0.17677669, %v1576_v29  ;;  %v3534_v28 = vld [vmem:[%s4343_s3 + $0xc8] sm:$0xff]   ;;  %v3536_v29 = vld [vmem:[%s4343_s3 + $0xc0] sm:$0xff]  }
 0x7a5   : > { %v1578_v30 = vpop.f32.mrf.mxu0 }
 0x7a6   : > { %v1579_v31 = vadd.f32 %v2798_v26, %v1578_v30  ;;  %v3530_v26 = vld [vmem:[%s4343_s3 + $0xd8] sm:$0xff]  }
 0x7a7   : > { %v3277_v32 = vpop.f32.mrf.mxu0  ;;  %3367 = vmatpush3.bf16.msra.mxu0 %v3530_v26 }
 0x7a8   : > { %v1811_v34 = vmul.f32 0.17677669, %v1579_v31  ;;  %3368 = vmatprep.subr.bf16.mxu0 %v3627_v1 }
 0x7aa   : > { %v1812_v35 = vpack.c.bf16 %v1811_v34, %v1810_v33  ;;  %v3527_v33 = vld [vmem:[%s4342_s2 + $0xf8] sm:$0xff]  }
 0x7ab   : > { %3369 = vmatpush3.bf16.msra.mxu0 %v3532_v27 }
 0x7ac   : > { %3321 = vmatmul.mubr.msk.bf16.vlgmr.msra.gmra.mxu1 %vm767_vm1, %v1812_v35  ;;  %3370 = vmatprep.subr.bf16.mxu0 %v3627_v1 }
 0x7ad   : > { %3326 = vmatprep.mubr.msk.bf16.mxu1 %vm3628_vm0, %v3627_v1 }
 0x7af   : > { %3371 = vmatpush3.bf16.msra.mxu0 %v3534_v28 }
 0x7b0   : > { %3372 = vmatprep.subr.bf16.mxu0 %v3627_v1 }
 0x7b3   : > { %3373 = vmatpush3.bf16.msra.mxu0 %v3536_v29 }
 0x7b4   : > { %3398 = vmatprep.subr.bf16.mxu0 %v3627_v1 }
 0x7b6   : > { %3375 = vmatmul.mubr.bf16.vlgmr.msra.gmra.mxu0 %v3800_v19 }
 0x7b7   : > { %3400 = vmatprep.mubr.msk.bf16.mxu0 %vm3628_vm0, %v3627_v1 }
 0x7c1   : > { %v1803_v0 = vpop.f32.mrf.mxu0 }
 0x7c2   : > { %v1804_v3 = vadd.f32 %v2850_v63, %v1803_v0 }
 0x7c3   : > { %v3316_v2 = vpop.f32.mrf.mxu0 }
 0x7c5   : > { %v1806_v4 = vpop.f32.mrf.mxu0 }
 0x7c6   : > { %v1807_v5 = vadd.f32 %v2850_v63, %v1806_v4 }
 0x7c7   : > { %v3317_v6 = vpop.f32.mrf.mxu0 }
 0x7c8   : > { %v1884_v7 = vpack.c.bf16 %v1807_v5, %v1804_v3  ;;  %v3542_v6 = vld [vmem:[%s4344_s4 + $0xe8] sm:$0xff]  }
 0x7ca   : > { %3325 = vmatpush3.bf16.msra.mxu1 %v1884_v7  ;;  %v3543_v7 = vld [vmem:[%s4344_s4 + $0xe0] sm:$0xff]  }
 0x7cb   : > { %3330 = vmatprep.subr.bf16.mxu1 %v3627_v1 }
 0x86c   : > { %v1854_v44 = vpop.f32.mrf.mxu1 }
 0x86d   : > { %v1855_v45 = vadd.f32 %v1854_v44, %v3857_v51 }
 0x86e   : > { %v3322_v46 = vpop.f32.mrf.mxu1 }
 0x86f   : > { %v1861_v47 = vsel %vm815_vm3, %v1855_v45, -inf }
 0x870   : > { %1862 = vmax.xlane.f32.xlu0 %v1861_v47  ;;  %v1857_v48 = vpop.f32.mrf.mxu1 }
 0x871   : > { %v1858_v49 = vadd.f32 %v1857_v48, %v3857_v51 }
 0x872   : > { %v3323_v50 = vpop.f32.mrf.mxu1 }
 0x873   : > { %v1864_v52 = vsel %vm815_vm3, %v1858_v49, -inf }
 0x874   : > { %1865 = vmax.xlane.f32.xlu1 %v1864_v52 }
 0x876   : > { %v2214_v44 = vpop.f32.mrf.mxu0 }
 0x877   : > { %v2215_v46 = vadd.f32 %v2911_v43, %v2214_v44 }
 0x8f9   : > { %v1863_v53 = vpop.xlane.xlu0 %1862 }
 0x8fa   : > { %v1867_v54 = vsub.f32 %v1855_v45, %v1863_v53  ;;  %v3376_v45 = vpop.f32.mrf.mxu0  ;;  %v1462_v53 = vadd.f32 %v4003_v20, %v4102_v21 }
 0x8fc   : > { %v1869_v55 = vmul.f32 1.442695, %v1867_v54  ;;  %v2217_v47 = vpop.f32.mrf.mxu0 }
 0x8fd   : > { %v1866_v56 = vpop.xlane.xlu1 %1865  ;;  %v2218_v48 = vadd.f32 %v2911_v43, %v2217_v47 }
 0x8fe   : > { %3566 = vpow2.f32 %v1869_v55  ;;  %v1868_v57 = vsub.f32 %v1858_v49, %v1866_v56  ;;  %v3377_v49 = vpop.f32.mrf.mxu0 }
 0x8ff   : > { %v2338_v50 = vpack.c.bf16 %v2218_v48, %v2215_v46  ;;  %v3548_v48 = vld [vmem:[%s4345_s5 + $0x38] sm:$0xff]   ;;  %v3549_v49 = vld [vmem:[%s4345_s5 + $0x30] sm:$0xff]  }
 0x900   : > { %v1871_v58 = vmul.f32 1.442695, %v1868_v57  ;;  %v1465_v57 = vadd.f32 %v4005_v22, %v4104_v24  ;;  %v3540_v22 = vld [vmem:[%s4344_s4 + $0xf8] sm:$0xff]   ;;  %v3541_v24 = vld [vmem:[%s4344_s4 + $0xf0] sm:$0xff]  }
 0x901   : > { %v2343_v52 = vsel %vm767_vm1, %v2338_v50, 0 }
 0x902   : > { %3568 = vpow2.f32 %v1871_v58  ;;  %3399 = vmatpush3.bf16.xpose.msra.mxu0 %v2343_v52 }
 0x903   : > { %3404 = vmatprep.subr.bf16.mxu0 %v3627_v1 }
 0x90b   : > { %v3567_v59 = vpop.eup %3566 }
 0x90c   : > { %v1873_v60 = vsel %vm815_vm3, %v3567_v59, 0.0 }
 0x90d   : > { %1874 = vadd.xlane.f32.xlu0 %v1873_v60 }
 0x90f   : > { %v3569_v61 = vpop.eup %3568 }
 0x910   : > { %v1876_v62 = vsel %vm815_vm3, %v3569_v61, 0.0 }
 0x911   : > { %1877 = vadd.xlane.f32.xlu1 %v1876_v62 }
 0x996   : > { %v1875_v10 = vpop.xlane.xlu0 %1874 }
 0x997   : > { %3570 = vrcp.f32 %v1875_v10  ;;  %v3546_v10 = vld [vmem:[%s4344_s4 + $0xc8] sm:$0xff]  }
 0x99a   : > { %v1878_v11 = vpop.xlane.xlu1 %1877 }
 0x99b   : > { %3572 = vrcp.f32 %v1878_v11  ;;  %v3547_v11 = vld [vmem:[%s4344_s4 + $0xc0] sm:$0xff]  }
 0x9a4   : > { %v3571_v12 = vpop.eup %3570 }
 0x9a5   : > { %v1881_v14 = vmul.f32 %v3571_v12, %v3567_v59 }
 0x9a8   : > { %v3573_v13 = vpop.eup %3572 }
 0x9a9   : > { %v1882_v15 = vmul.f32 %v3573_v13, %v3569_v61  ;;  %v2885_v61 = vld [vmem:[%s4346_s6 + $0x3] ss:$0 sm:$0xff] }
 0x9ab   : > { %v1883_v17 = vpack.c.bf16 %v1882_v15, %v1881_v14 }
 0x9ad   : > { %3327 = vmatmul.mubr.msk.bf16.vlgmr.msra.gmra.mxu1 %vm815_vm3, %v1883_v17 }
 0x9ae   : > { %3331 = vmatpush3.bf16.msra.mxu1 %v3523_v16  ;;  %3334 = vmatprep.mubr.msk.bf16.mxu1 %vm3628_vm0, %v3627_v1 }
 0x9af   : > { %3332 = vmatprep.subr.bf16.mxu1 %v3627_v1 }
 0x9b2   : > { %3333 = vmatpush3.bf16.msra.mxu1 %v3525_v18 }
 0x9b3   : > { %3338 = vmatprep.subr.bf16.mxu1 %v3627_v1 }
 0xa6d   : > { %v1922_v30 = vpop.f32.mrf.mxu1 }
 0xa6f   : > { %v3328_v31 = vpop.f32.mrf.mxu1 }
 0xa71   : > { %v1925_v32 = vpop.f32.mrf.mxu1 }
 0xa72   : > { %v1929_v34 = vpack.c.bf16 %v1925_v32, %v1922_v30 }
 0xa73   : > { %v3329_v35 = vpop.f32.mrf.mxu1 }
 0xa74   : > { %3335 = vmatmul.mubr.msk.bf16.vlgmr.msra.gmra.mxu1 %vm767_vm1, %v1929_v34 }
 0xa75   : > { %3339 = vmatpush3.bf16.msra.mxu1 %v3527_v33  ;;  %3354 = vmatprep.mubr.msk.bf16.mxu1 %vm3628_vm0, %v3627_v1 }
 0xa76   : > { %3340 = vmatprep.subr.bf16.mxu1 %v3627_v1 }
 0xa79   : > { %3341 = vmatpush3.bf16.msra.mxu1 %v3529_v36 }
 0xa7a   : > { %3342 = vmatprep.subr.bf16.mxu1 %v3627_v1 }
 0xa7d   : > { %3343 = vmatpush3.bf16.msra.mxu1 %v3531_v37 }
 0xa7e   : > { %3344 = vmatprep.subr.bf16.mxu1 %v3627_v1 }
 0xa81   : > { %3345 = vmatpush3.bf16.msra.mxu1 %v3533_v38 }
 0xa82   : > { %3346 = vmatprep.subr.bf16.mxu1 %v3627_v1 }
 0xa85   : > { %3347 = vmatpush3.bf16.msra.mxu1 %v3535_v39 }
 0xa86   : > { %3348 = vmatprep.subr.bf16.mxu1 %v3627_v1 }
 0xa89   : > { %3349 = vmatpush3.bf16.msra.mxu1 %v3537_v40 }
 0xa8a   : > { %3350 = vmatprep.subr.bf16.mxu1 %v3627_v1 }
 0xa8d   : > { %3351 = vmatpush3.bf16.msra.mxu1 %v3538_v41 }
 0xa8e   : > { %3352 = vmatprep.subr.bf16.mxu1 %v3627_v1 }
 0xa91   : > { %3353 = vmatpush3.bf16.msra.mxu1 %v3539_v42 }
 0xa92   : > { %3378 = vmatprep.subr.bf16.mxu1 %v3627_v1 }
 0xa94   : > { %3355 = vmatmul.mubr.bf16.vlgmr.msra.gmra.mxu1 %v3800_v19 }
 0xa95   : > { %3394 = vmatprep.mubr.msk.bf16.mxu1 %vm3628_vm0, %v3627_v1  ;;  %3379 = vmatpush3.bf16.msra.mxu1 %v3540_v22 }
 0xa96   : > { %3380 = vmatprep.subr.bf16.mxu1 %v3627_v1 }
 0xa99   : > { %3381 = vmatpush3.bf16.msra.mxu1 %v3541_v24 }
 0xa9a   : > { %3382 = vmatprep.subr.bf16.mxu1 %v3627_v1 }
 0xa9d   : > { %3383 = vmatpush3.bf16.msra.mxu1 %v3542_v6 }
 0xa9e   : > { %3384 = vmatprep.subr.bf16.mxu1 %v3627_v1 }
 0xaa1   : > { %3385 = vmatpush3.bf16.msra.mxu1 %v3543_v7 }
 0xaa2   : > { %3386 = vmatprep.subr.bf16.mxu1 %v3627_v1 }
 0xaa5   : > { %3387 = vmatpush3.bf16.msra.mxu1 %v3544_v8 }
 0xaa6   : > { %3388 = vmatprep.subr.bf16.mxu1 %v3627_v1 }
 0xaa9   : > { %3389 = vmatpush3.bf16.msra.mxu1 %v3545_v9 }
 0xaaa   : > { %3390 = vmatprep.subr.bf16.mxu1 %v3627_v1 }
 0xaad   : > { %3391 = vmatpush3.bf16.msra.mxu1 %v3546_v10 }
 0xaae   : > { %3392 = vmatprep.subr.bf16.mxu1 %v3627_v1 }
 0xab1   : > { %3393 = vmatpush3.bf16.msra.mxu1 %v3547_v11 }
 0xab4   : > { %3395 = vmatmul.mubr.bf16.vlgmr.msra.gmra.mxu1 %v3800_v19 }
 0xb34   : > { %v1984_v54 = vpop.f32.mrf.mxu1 }
 0xb35   : > { %v4248_v55 = vadd.f32 %v1984_v54, %v1462_v53 }
 0xb36   : > { %v3336_v56 = vpop.f32.mrf.mxu1 }
 0xb38   : > { %v1987_v58 = vpop.f32.mrf.mxu1 }
 0xb39   : > { %v4252_v59 = vadd.f32 %v1987_v58, %v1465_v57  ;;  %v2955_v58 = vld [vmem:[%s4349_s9] ss:$0 sm:$0xff] }
 0xb3a   : > { %v3337_v60 = vpop.f32.mrf.mxu1 }
 0xb54   : > { %v2100_v62 = vpop.f32.mrf.mxu1 }
 0xb55   : > { %v2101_v0 = vadd.f32 %v2885_v61, %v2100_v62 }
 0xb56   : > { %v3356_v63 = vpop.f32.mrf.mxu1 }
 0xb57   : > { %v2335_v3 = vmul.f32 0.17677669, %v2101_v0  ;;  %v3586_v0 = vld [vmem:[%s3786_s14] sm:$0xff] }
 0xb58   : > { %v2103_v2 = vpop.f32.mrf.mxu1 }
 0xb59   : > { %v2104_v20 = vadd.f32 %v2885_v61, %v2103_v2 }
 0xb5a   : > { %v3357_v21 = vpop.f32.mrf.mxu1 }
 0xb5b   : > { %v2336_v4 = vmul.f32 0.17677669, %v2104_v20 }
 0xb5d   : > { %v2337_v5 = vpack.c.bf16 %v2336_v4, %v2335_v3  ;;  %v3587_v3 = vld [vmem:[%s3786_s14 + $0x8] sm:$0xff] }
 0xb5f   : > { %3401 = vmatmul.mubr.msk.bf16.vlgmr.msra.gmra.mxu0 %vm767_vm1, %v2337_v5 }
 0xb60   : > { %3406 = vmatprep.mubr.msk.bf16.mxu0 %vm3628_vm0, %v3627_v1 }
 0xb74   : > { %v2328_v34 = vpop.f32.mrf.mxu1 }
 0xb76   : > { %v3396_v35 = vpop.f32.mrf.mxu1 }
 0xb78   : > { %v2331_v37 = vpop.f32.mrf.mxu1 }
 0xb7a   : > { %v3397_v39 = vpop.f32.mrf.mxu1 }
 0xc1f   : > { %v2379_v12 = vpop.f32.mrf.mxu0 }
 0xc20   : > { %v2380_v13 = vadd.f32 %v2379_v12, %v3857_v51 }
 0xc21   : > { %v3402_v14 = vpop.f32.mrf.mxu0 }
 0xc22   : > { %v2386_v15 = vsel %vm815_vm3, %v2380_v13, -inf }
 0xc23   : > { %2387 = vmax.xlane.f32.xlu0 %v2386_v15  ;;  %v2382_v16 = vpop.f32.mrf.mxu0 }
 0xc24   : > { %v2383_v17 = vadd.f32 %v2382_v16, %v3857_v51  ;;  %v2937_v51 = vld [vmem:[%s4348_s8 + $0x3] ss:$0 sm:$0xff]  ;;  %v2956_v16 = vld [vmem:[%s4350_s10] ss:$0 sm:$0xff] }
 0xc25   : > { %v3403_v18 = vpop.f32.mrf.mxu0  ;;  %v2329_v36 = vadd.f32 %v2937_v51, %v2328_v34  ;;  %v2332_v38 = vadd.f32 %v2937_v51, %v2331_v37 }
 0xc26   : > { %v2389_v23 = vsel %vm815_vm3, %v2383_v17, -inf  ;;  %v2957_v18 = vld [vmem:[%s4351_s11] ss:$0 sm:$0xff] }
 0xc27   : > { %2390 = vmax.xlane.f32.xlu1 %v2389_v23  ;;  %v2409_v40 = vpack.c.bf16 %v2332_v38, %v2329_v36 }
 0xc29   : > { %3405 = vmatpush3.bf16.msra.mxu0 %v2409_v40 }
 0xc2a   : > { %3410 = vmatprep.subr.bf16.mxu0 %v3627_v1 }
 0xcac   : > { %v2388_v25 = vpop.xlane.xlu0 %2387 }
 0xcad   : > { %v2392_v26 = vsub.f32 %v2380_v13, %v2388_v25 }
 0xcaf   : > { %v2394_v27 = vmul.f32 1.442695, %v2392_v26 }
 0xcb0   : > { %v2391_v28 = vpop.xlane.xlu1 %2390 }
 0xcb1   : > { %3574 = vpow2.f32 %v2394_v27  ;;  %v2393_v19 = vsub.f32 %v2383_v17, %v2391_v28 }
 0xcb3   : > { %v2396_v29 = vmul.f32 1.442695, %v2393_v19 }
 0xcb5   : > { %3576 = vpow2.f32 %v2396_v29 }
 0xcbe   : > { %v3575_v30 = vpop.eup %3574 }
 0xcbf   : > { %v2398_v31 = vsel %vm815_vm3, %v3575_v30, 0.0 }
 0xcc0   : > { %2399 = vadd.xlane.f32.xlu0 %v2398_v31 }
 0xcc2   : > { %v3577_v32 = vpop.eup %3576 }
 0xcc3   : > { %v2401_v33 = vsel %vm815_vm3, %v3577_v32, 0.0 }
 0xcc4   : > { %2402 = vadd.xlane.f32.xlu1 %v2401_v33 }
 0xd49   : > { %v2400_v41 = vpop.xlane.xlu0 %2399 }
 0xd4a   : > { %3578 = vrcp.f32 %v2400_v41 }
 0xd4d   : > { %v2403_v42 = vpop.xlane.xlu1 %2402 }
 0xd4e   : > { %3580 = vrcp.f32 %v2403_v42 }
 0xd57   : > { %v3579_v43 = vpop.eup %3578 }
 0xd58   : > { %v2406_v45 = vmul.f32 %v3579_v43, %v3575_v30 }
 0xd5b   : > { %v3581_v44 = vpop.eup %3580 }
 0xd5c   : > { %v2407_v46 = vmul.f32 %v3581_v44, %v3577_v32 }
 0xd5e   : > { %v2408_v47 = vpack.c.bf16 %v2407_v46, %v2406_v45 }
 0xd60   : > { %3407 = vmatmul.mubr.msk.bf16.vlgmr.msra.gmra.mxu0 %vm815_vm3, %v2408_v47 }
 0xd61   : > { %3414 = vmatprep.mubr.msk.bf16.mxu0 %vm3628_vm0, %v3627_v1  ;;  %3411 = vmatpush3.bf16.msra.mxu0 %v3548_v48 }
 0xd62   : > { %3412 = vmatprep.subr.bf16.mxu0 %v3627_v1 }
 0xd65   : > { %3413 = vmatpush3.bf16.msra.mxu0 %v3549_v49 }
 0xe20   : > { %v2447_v50 = vpop.f32.mrf.mxu0 }
 0xe22   : > { %v3408_v52 = vpop.f32.mrf.mxu0 }
 0xe24   : > { %v2450_v53 = vpop.f32.mrf.mxu0 }
 0xe25   : > { %v2454_v54 = vpack.c.bf16 %v2450_v53, %v2447_v50 }
 0xe26   : > { %v3409_v56 = vpop.f32.mrf.mxu0 }
 0xe27   : > { %3415 = vmatmul.mubr.msk.bf16.vlgmr.msra.gmra.mxu0 %vm767_vm1, %v2454_v54 }
 0xee7   : > { %v2509_v57 = vpop.f32.mrf.mxu0 }
 0xee8   : > { %v2516_v1 = vadd.f32 %v2509_v57, %v4248_v55 }
 0xee9   : > { %v3416_v60 = vpop.f32.mrf.mxu0 }
 0xeea   : > { %v2525_v61 = vadd.f32 %v2955_v58, %v2516_v1 }
 0xeeb   : > { %v2512_v62 = vpop.f32.mrf.mxu0 }
 0xeec   : > { %v2517_v63 = vadd.f32 %v2512_v62, %v4252_v59  ;;  %v2527_v2 = vadd.f32 %v3586_v0, %v2525_v61 }
 0xeed   : > { %v3417_v20 = vpop.f32.mrf.mxu0 }
 0xeee   : > { %v2526_v21 = vadd.f32 %v2955_v58, %v2517_v63  ;;  %2529 = vadd.xlane.f32.xlu0 %v2527_v2 }
 0xef0   : > { %v2528_v4 = vadd.f32 %v3587_v3, %v2526_v21 }
 0xef2   : > { %2531 = vadd.xlane.f32.xlu1 %v2528_v4 }
 0xf77   : > { %v2530_v5 = vpop.xlane.xlu0 %2529 }
 0xf78   : > { %v2534_v22 = vmul.f32 0.0078125, %v2530_v5 }
 0xf7a   : > { %v2536_v24 = vsub.f32 %v2527_v2, %v2534_v22 }
 0xf7b   : > { %v2532_v6 = vpop.xlane.xlu1 %2531 }
 0xf7c   : > { %v2535_v7 = vmul.f32 0.0078125, %v2532_v6  ;;  %v2538_v8 = vmul.f32 %v2536_v24, %v2536_v24 }
 0xf7e   : > { %v2537_v55 = vsub.f32 %v2528_v4, %v2535_v7  ;;  %2540 = vadd.xlane.f32.xlu0 %v2538_v8 }
 0xf80   : > { %v2539_v9 = vmul.f32 %v2537_v55, %v2537_v55 }
 0xf82   : > { %2542 = vadd.xlane.f32.xlu1 %v2539_v9 }
0x1007   : > { %v2541_v59 = vpop.xlane.xlu0 %2540 }
0x1008   : > { %v2544_v10 = vmul.f32 0.0078125, %v2541_v59 }
0x100a   : > { %v2546_v11 = vadd.f32 1e-05, %v2544_v10 }
0x100b   : > { %v2543_v12 = vpop.xlane.xlu1 %2542 }
0x100c   : > { %3582 = vrsqrt.f32 %v2546_v11  ;;  %v2545_v13 = vmul.f32 0.0078125, %v2543_v12 }
0x100e   : > { %v2547_v14 = vadd.f32 1e-05, %v2545_v13 }
0x1010   : > { %3584 = vrsqrt.f32 %v2547_v14 }
0x1019   : > { %v3583_v15 = vpop.eup %3582 }
0x101a   : > { %v2550_v17 = vmul.f32 %v3583_v15, %v2536_v24 }
0x101c   : > { %v2559_v23 = vmul.f32 %v2956_v16, %v2550_v17 }
0x101d   : > { %v3585_v25 = vpop.eup %3584 }
0x101e   : > { %v2568_v26 = vadd.f32 %v2957_v18, %v2559_v23  ;;  %v2551_v27 = vmul.f32 %v3585_v25, %v2537_v55 }
0x1020   : > { %2570 = vst [vmem:[%s415_s21] sm:$0xff] %v2568_v26  ;;  %v2560_v28 = vmul.f32 %v2956_v16, %v2551_v27 }
0x1022   : > { %v2569_v19 = vadd.f32 %v2957_v18, %v2560_v28 }
0x1024   : > { %2571 = vst [vmem:[%s415_s21 + $0x8] sm:$0xff] %v2569_v19 }
0x1025 PF: > { %s28_s28 = sadd.s32 1, %s3624_s28   ;;  %s4353_s26 = smov %s3620_s27 }
0x1026   : > { %p25_p10 = scmp.ge.s32.totalorder %s28_s28, 4   ;;  %s4354_s27 = smov %s4356_s0 }
0x1028   :  { %27 = sbr.rel (!%p25_p10) target bundleno = 17 (0x11), region = 115 }

// kernel: supertagger_forward.21
= control target key start
LH: loop header
LB: loop body
LE: loop exit
PB: predicated region body
PF: predicated region fallthrough
CT: control target
= control target key end

     0   :  { %7 = vsyncpa [#allocation3], 0  ;;  %s771_s0 = inlined_call_operand.vmem [shape: f32[32,128], index: 0, kind: input, shape index: {}]   ;;  %s772_s1 = inlined_call_operand.vmem [shape: bf16[128,128], index: 1, kind: input, shape index: {}]   ;;  %s773_s2 = inlined_call_operand.hbm [shape: f32[32,128], index: 2, kind: output, shape index: {}]  }
   0x1   :  { %9 = vsyncpa [#allocation3 + $0x1], 0  ;;  %s634_s9 = smov 0   ;;  %s636_s10 = smov 0  }
   0x2   :  { %s638_s11 = smov 0   ;;  %s640_s12 = smov 0  }
   0x3   :  { %s642_s13 = smov 0   ;;  %s644_s14 = smov 0  }
   0x4 LB: > { %s409_s15 = sadd.s32 4294967295, %s612_s14   ;;  %s410_s16 = sadd.s32 4294967294, %s612_s14   ;;  %s612_s14 = sphi %s644_s14, %s15_s14   ;;  %s608_s13 = sphi %s642_s13, %s780_s13   ;;  %s604_s12 = sphi %s640_s12, %s779_s12   ;;  %s600_s11 = sphi %s638_s11, %s778_s11   ;;  %s596_s10 = sphi %s636_s10, %s777_s10   ;;  %s592_s9 = sphi %s634_s9, %s776_s9  }
   0x5   : > { %s27_s17 = sadd.s32 1, %s608_s13  ;;  %s86_s18 = sadd.s32 1, %s600_s11 }
   0x6   : > { %p29_p0 = scmp.ge.s32.totalorder %s27_s17, 2  ;;  %p96_p1 = scmp.ne.s32.totalorder %s600_s11, %s596_s10 }
   0x7   : > { %p97_p2 = scmp.eq.s32.totalorder %s409_s15, 1  ;;  %p102_p3 = scmp.ne.s32.totalorder %s596_s10, %s592_s9 }
   0x8   : > { %s782_s17 = smov (%p29_p0, %s27_s17), 0  ;;  %p103_p5 = scmp.eq.s32.totalorder %s410_s16, 1 }
   0x9   : > { %p674_p4 = por %p97_p2, %p96_p1  ;;  %s83_s20 = ssub.s32 %s608_s13, %s782_s17 }
   0xa   : > { %p414_p6 = scmp.ge.s32.totalorder %s612_s14, 1  ;;  %p84_p7 = scmp.eq.s32.totalorder %s83_s20, 0 }
   0xb   : > { %p681_p8 = por %p103_p5, %p102_p3  ;;  %p139_p9 = scmp.lt.s32.totalorder %s612_s14, 3 }
   0xc   : > { %s687_s22 = scalar_select %p84_p7, %s600_s11, %s86_s18  }
   0xd   : > { %p140_p10 = pnand %p414_p6, %p139_p9 }
   0xe   : > { %s416_s7 = sshll.u32 (!%p140_p10), %s604_s12, 1  ;;  %s163_s26 = sand.u32 (!%p140_p10), 1, %s596_s10  }
   0xf   : > { %143 = sbr.rel (%p140_p10) target bundleno = 608 (0x260), region = 28  ;;  %p167_p11 = scmp.lt.s32.totalorder (!%p140_p10), %s416_s7, 3 }
  0x10   : > { %s415_s27 = sshll.u32 (!%p140_p10), %s163_s26, 4  ;;  %s431_s28 = sshll.u32 (!%p140_p10), %s604_s12, 8 }
  0x11   : > { %s165_s29 = scalar_lea.vmem (!%p140_p10), [#allocation2], %s415_s27  ;;  %s722_s5 = scalar_lea.hbm (!%p140_p10), %s773_s2, %s431_s28 }
  0x12   : > { %s324_s30 = sshll.u32 (!%p140_p10), %s165_s29, 4  ;;  %s726_s6 = scalar_lea.sflag (!%p140_p10), [#allocation3], %s163_s26  ;;  %s724_s30 = int_to_ptr.vmem [resolvable:$true] %s324_s30 }
  0x13   : > { %s536_s12 = scalar_lea.vmem (!%p140_p10), %s724_s30, 256 }
  0x14   : > { %v520_v0 = vld [vmem:[%s772_s1 + $0x38] sm:$0xff]   ;;  %v614_v1 = vmov 0.0   ;;  %vm615_vm0 = vmmov 0   ;;  %v521_v2 = vld [vmem:[%s772_s1 + $0x30] sm:$0xff]   ;;  %v522_v3 = vld [vmem:[%s772_s1 + $0x28] sm:$0xff]   ;;  %s784_s7 = smov (!%p167_p11, %s416_s7), 3  ;;  %p537_p12 = scmp.ne.s32.totalorder %s724_s30, %s536_s12 }
  0x15   : > { %441 = vmatprep.subr.bf16.mxu0 %v614_v1  ;;  %457 = vmatprep.mubr.msk.bf16.mxu0 %vm615_vm0, %v614_v1  ;;  %v523_v4 = vld [vmem:[%s772_s1 + $0x20] sm:$0xff]   ;;  %v524_v5 = vld [vmem:[%s772_s1 + $0x18] sm:$0xff]   ;;  %v525_v6 = vld [vmem:[%s772_s1 + $0x10] sm:$0xff]   ;;  %s417_s16 = sshll.u32 %s784_s7, 3  ;;  %s616_s7 = smov [#allocation2]  }
  0x16   : > { %442 = vmatpush3.bf16.xpose.msra.mxu0 %v520_v0  ;;  %v526_v7 = vld [vmem:[%s772_s1 + $0x8] sm:$0xff]   ;;  %v527_v8 = vld [vmem:[%s772_s1] sm:$0xff]   ;;  %s170_s25 = scalar_lea.vmem %s771_s0, %s417_s16  ;;  %p538_p13 = pnand %p537_p12, %p674_p4 }
  0x17   : > { %443 = vmatprep.subr.bf16.mxu0 %v614_v1  ;;  %v180_v9 = vld [vmem:[%s170_s25] sm:$0xff]  ;;  %v181_v10 = vld [vmem:[%s170_s25 + $0x8] sm:$0xff]  ;;  %s540_s8 = sshll.u32 %s616_s7, 4  ;;  %s541_s8 = int_to_ptr.vmem [resolvable:$false] %s540_s8 }
  0x18   : > { %v182_v11 = vpack.c.bf16 %v181_v10, %v180_v9  ;;  %p539_p0 = pneg %p538_p13  ;;  %s542_s15 = scalar_lea.vmem %s541_s8, 512 }
  0x19   : > { %p543_p1 = scmp.lt.s32.totalorder %s724_s30, %s541_s8  ;;  %p544_p2 = scmp.lt.s32.totalorder %s542_s15, %s536_s12 }
  0x1b   : > { %p545_p3 = por %p544_p2, %p543_p1 }
  0x1d   : > { %p546_p5 = pnand %p545_p3, %p539_p0 }
  0x1e   : > { %444 = vmatpush3.bf16.xpose.msra.mxu0 %v521_v2 }
  0x1f   : > { %445 = vmatprep.subr.bf16.mxu0 %v614_v1 }
  0x26   : > { %446 = vmatpush3.bf16.xpose.msra.mxu0 %v522_v3 }
  0x27   : > { %447 = vmatprep.subr.bf16.mxu0 %v614_v1 }
  0x2e   : > { %448 = vmatpush3.bf16.xpose.msra.mxu0 %v523_v4 }
  0x2f   : > { %449 = vmatprep.subr.bf16.mxu0 %v614_v1 }
  0x36   : > { %450 = vmatpush3.bf16.xpose.msra.mxu0 %v524_v5 }
  0x37   : > { %451 = vmatprep.subr.bf16.mxu0 %v614_v1 }
  0x3e   : > { %452 = vmatpush3.bf16.xpose.msra.mxu0 %v525_v6 }
  0x3f   : > { %453 = vmatprep.subr.bf16.mxu0 %v614_v1 }
  0x46   : > { %454 = vmatpush3.bf16.xpose.msra.mxu0 %v526_v7 }
  0x47   : > { %455 = vmatprep.subr.bf16.mxu0 %v614_v1 }
  0x4e   : > { %456 = vmatpush3.bf16.xpose.msra.mxu0 %v527_v8 }
  0x55   : > { %458 = vmatmul.mubr.bf16.vlgmr.msra.gmra.mxu0 %v182_v11 }
 0x115   : > { %v281_v12 = vpop.f32.mrf.mxu0 }
 0x116   : > { %288 = vmax.xlane.f32.xlu0 %v281_v12 }
 0x117   : > { %v459_v13 = vpop.f32.mrf.mxu0 }
 0x119   : > { %v284_v14 = vpop.f32.mrf.mxu0 }
 0x11a   : > { %290 = vmax.xlane.f32.xlu0 %v284_v14 }
 0x11b   : > { %v460_v15 = vpop.f32.mrf.mxu0 }
 0x19f   : > { %v289_v16 = vpop.xlane.xlu0 %288 }
 0x1a0   : > { %v292_v17 = vsub.f32 %v281_v12, %v289_v16 }
 0x1a2   : > { %v294_v18 = vmul.f32 1.442695, %v292_v17 }
 0x1a3   : > { %v291_v19 = vpop.xlane.xlu0 %290 }
 0x1a4   : > { %v293_v20 = vsub.f32 %v284_v14, %v291_v19  ;;  %528 = vpow2.f32 %v294_v18 }
 0x1a6   : > { %v296_v21 = vmul.f32 1.442695, %v293_v20 }
 0x1a8   : > { %530 = vpow2.f32 %v296_v21 }
 0x1b1   : > { %v529_v22 = vpop.eup %528 }
 0x1b2   : > { %298 = vadd.xlane.f32.xlu1 %v529_v22 }
 0x1b5   : > { %v531_v23 = vpop.eup %530 }
 0x1b6   : > { %300 = vadd.xlane.f32.xlu1 %v531_v23 }
 0x23b   : > { %v299_v24 = vpop.xlane.xlu1 %298 }
 0x23c   : > { %532 = vlog2.f32 %v299_v24 }
 0x23f   : > { %v301_v25 = vpop.xlane.xlu1 %300 }
 0x240   : > { %534 = vlog2.f32 %v301_v25 }
 0x249   : > { %v533_v26 = vpop.eup %532 }
 0x24a   : > { %v303_v27 = vmul.f32 0.6931472, %v533_v26 }
 0x24c   : > { %v306_v28 = vsub.f32 %v292_v17, %v303_v27 }
 0x24d   : > { %v535_v29 = vpop.eup %534 }
 0x24e   : > { %308 = vst [vmem:[%s165_s29] sm:$0xff] %v306_v28  ;;  %v305_v30 = vmul.f32 0.6931472, %v535_v29 }
 0x250   : > { %v307_v31 = vsub.f32 %v293_v20, %v305_v30 }
 0x252   : > { %309 = vst [vmem:[%s165_s29 + $0x8] sm:$0xff] %v307_v31 }
 0x253   : > { %549 = shalt.err (!%p546_p5)
}
 0x254   : > { %s550_s16 = scalar_lea.hbm %s722_s5, 256  ;;  %s554_s23 = scalar_lea.hbm %s773_s2, 512 }
 0x255   : > { %p551_p6 = scmp.ne.s32.totalorder %s722_s5, %s550_s16  ;;  %p555_p10 = scmp.lt.s32.totalorder %s722_s5, %s773_s2 }
 0x256   : > { %p556_p11 = scmp.lt.s32.totalorder %s554_s23, %s550_s16 }
 0x257   : > { %p552_p7 = pnand %p551_p6, %p674_p4 }
 0x258   : > { %p557_p12 = por %p556_p11, %p555_p10 }
 0x259   : > { %p553_p9 = pneg %p552_p7 }
 0x25b   : > { %p558_p13 = pnand %p557_p12, %p553_p9 }
 0x25d   : > { %561 = shalt.err (!%p558_p13)
}
 0x25e   : > { %s617_s26 = smov 128   ;;  %s618_s27 = smov 8  }
 0x25f   : > { %461 = dma.vmem_to_hbm [thread:$0]  (%p674_p4), %s724_s30, 256, %s722_s5, %s726_s6, %s617_s26, %s617_s26, %s618_s27  }
 0x260 PF: > { %p467_p0 = scmp.ge.s32.totalorder %s612_s14, 2  ;;  %s339_s28 = sand.u32 1, %s592_s9  }
 0x261   : > { %s340_s29 = scalar_lea.sflag [#allocation3], %s339_s28 }
 0x262   : > { %p464_p1 = pnand %p467_p0, %p681_p8 }
 0x264   : > { %p465_p2 = pneg %p464_p1 }
 0x266   : > { %587 = dma.done.wait (%p465_p2), %s340_s29, 256  }
 0x267   : > { %589 = vsyncadd (%p465_p2), %s340_s29, 4294967040  ;;  %s15_s14 = sadd.s32 1, %s612_s14   ;;  %s776_s9 = smov %s596_s10 }
 0x268   : > { %p12_p3 = scmp.ge.s32.totalorder %s15_s14, 4   ;;  %s777_s10 = smov %s600_s11 }
 0x269   : > { %s778_s11 = smov %s687_s22  ;;  %s779_s12 = smov %s608_s13 }
 0x26a   : > { %s780_s13 = smov %s782_s17  ;;  %14 = sbr.rel (!%p12_p3) target bundleno = 4 (0x4), region = 66 }
 0x26f   :  { %345 = vsyncpa [#allocation3], 1 }
 0x270   :  { %347 = vsyncpa [#allocation3 + $0x1], 1 }

// kernel: supertagger_forward.16
= control target key start
LH: loop header
LB: loop body
LE: loop exit
PB: predicated region body
PF: predicated region fallthrough
CT: control target
= control target key end

     0   :  { %s4435_s0 = inlined_call_operand.vmem [shape: s32[2], index: 0, kind: input, shape index: {}]   ;;  %s4436_s1 = inlined_call_operand.vmem [shape: f32[2,16,128], index: 1, kind: input, shape index: {}]   ;;  %s4437_s2 = inlined_call_operand.vmem [shape: f32[2,16,128], index: 2, kind: input, shape index: {}]   ;;  %s4438_s3 = inlined_call_operand.vmem [shape: bf16[4,128,32], index: 3, kind: input, shape index: {}]   ;;  %s4439_s4 = inlined_call_operand.vmem [shape: bf16[4,128,32], index: 4, kind: input, shape index: {}]   ;;  %s4440_s5 = inlined_call_operand.vmem [shape: bf16[4,128,32], index: 5, kind: input, shape index: {}]   ;;  %s4441_s6 = inlined_call_operand.vmem [shape: bf16[4,32,128], index: 6, kind: input, shape index: {}]   ;;  %s4442_s7 = inlined_call_operand.vmem [shape: f32[4,1,32], index: 7, kind: input, shape index: {}]   ;;  %s4443_s8 = inlined_call_operand.vmem [shape: f32[4,1,32], index: 8, kind: input, shape index: {}]   ;;  %s4444_s9 = inlined_call_operand.vmem [shape: f32[4,1,32], index: 9, kind: input, shape index: {}]   ;;  %s4445_s10 = inlined_call_operand.vmem [shape: f32[1,128], index: 10, kind: input, shape index: {}]   ;;  %s4446_s11 = inlined_call_operand.vmem [shape: f32[1,128], index: 11, kind: input, shape index: {}]   ;;  %s4447_s12 = inlined_call_operand.vmem [shape: f32[1,128], index: 12, kind: input, shape index: {}]   ;;  %s4448_s13 = inlined_call_operand.vmem [shape: f32[2,16,128], index: 13, kind: output, shape index: {}]  }
   0x1   :  { %s18_s27 = sshll.u32 %s4435_s0, 4  ;;  %s19_s27 = int_to_ptr.vmem [resolvable:$true] %s18_s27 }
   0x2   :  { %s3675_s28 = scalar_lea.vmem %s19_s27, 16  ;;  %p3680_p1 = scmp.lt.s32.totalorder %s19_s27, %s19_s27 }
   0x3   :  { %p3676_p0 = scmp.ne.s32.totalorder %s19_s27, %s3675_s28  ;;  %p3681_p2 = scmp.lt.s32.totalorder %s3675_s28, %s3675_s28 }
   0x5   :  { %p3682_p3 = por %p3681_p2, %p3680_p1 }
   0x7   :  { %p3683_p4 = pnand %p3682_p3, %p3676_p0 }
   0x9   :  { %3686 = shalt.err (!%p3683_p4)  }
   0xa   :  { %s3713_s29 = smov [#allocation3]  }
   0xb   :  { %21 = dma.vmem_to_smem %s19_s27, 16, %s3713_s29, [#allocation2] }
   0xc   :  { %3699 = dma.done.wait [#allocation2], 16 }
   0xd   :  { %3700 = vsyncadd [#allocation2], 4294967280 }
   0xe   :  { %23 = sfence }
   0xf   :  { %s3790_s30 = smov 0   ;;  %s3792_s14 = smov 0  }
  0x10   :  { %s3794_s15 = smov 0  }
  0x11 LB: > { %s41_s0 = sadd.s32 1, %s3707_s14  ;;  %p2741_p5 = scmp.ge.s32.totalorder %s3711_s15, 1  ;;  %s3711_s15 = sphi %s3794_s15, %s29_s15   ;;  %s3707_s14 = sphi %s3792_s14, %s4450_s14   ;;  %s3703_s30 = sphi %s3790_s30, %s4449_s30  }
  0x12   : > { %p43_p6 = scmp.ge.s32.totalorder %s41_s0, 2  ;;  %p400_p7 = scmp.lt.s32.totalorder %s3711_s15, 3 }
  0x14   : > { %s4452_s0 = smov (%p43_p6, %s41_s0), 0  ;;  %p401_p8 = pnand %p2741_p5, %p400_p7 }
  0x15   : > { %p456_p9 = scmp.lt.s32.totalorder (!%p401_p8), %s3703_s30, 1  ;;  %s487_s24 = sld [smem:[#allocation3 + %s3703_s30]] (!%p401_p8) }
  0x16   : > { %404 = sbr.rel (%p401_p8) target bundleno = 4133 (0x1025), region = 68 }
  0x1b   : > { %v3533_v0 = vld [vmem:[%s4439_s4 + $0x38] sm:$0xff]   ;;  %v3714_v1 = vmov 0.0   ;;  %v3535_v3 = vld [vmem:[%s4439_s4 + $0x30] sm:$0xff]   ;;  %vm3715_vm0 = vmmov 0   ;;  %v3537_v5 = vld [vmem:[%s4439_s4 + $0x28] sm:$0xff]   ;;  %s457_s18 = scalar_select %p456_p9, %s3703_s30, 1  ;;  %v485_v50 = vlaneseq  ;;  %v488_v52 = vstv %s487_s24 }
  0x1c   : > { %3205 = vmatprep.subr.bf16.mxu1 %v3714_v1  ;;  %3185 = vmatprep.subr.bf16.mxu0 %v3714_v1  ;;  %v3534_v2 = vld [vmem:[%s4438_s3 + $0x38] sm:$0xff]   ;;  %v3536_v4 = vld [vmem:[%s4438_s3 + $0x30] sm:$0xff]   ;;  %v3538_v6 = vld [vmem:[%s4438_s3 + $0x28] sm:$0xff]   ;;  %vm833_vm1 = vcmask 261120   ;;  %v3716_v53 = vmov -1e+09  }
  0x1d   : > { %3206 = vmatpush3.bf16.msra.mxu1 %v3533_v0  ;;  %3221 = vmatprep.mubr.msk.bf16.mxu1 %vm3715_vm0, %v3714_v1  ;;  %v3539_v7 = vld [vmem:[%s4439_s4 + $0x20] sm:$0xff]   ;;  %v3541_v9 = vld [vmem:[%s4439_s4 + $0x18] sm:$0xff]   ;;  %v3543_v11 = vld [vmem:[%s4439_s4 + $0x10] sm:$0xff]   ;;  %s3862_s27 = sshll.u32 %s457_s18, 4  ;;  %v486_v51 = vand.u32 127, %v485_v50  ;;  %vm881_vm3 = vcmask 130048  }
  0x1e   : > { %3186 = vmatpush3.bf16.msra.mxu0 %v3534_v2  ;;  %3207 = vmatprep.subr.bf16.mxu1 %v3714_v1  ;;  %v3540_v8 = vld [vmem:[%s4438_s3 + $0x20] sm:$0xff]   ;;  %v3542_v10 = vld [vmem:[%s4438_s3 + $0x18] sm:$0xff]   ;;  %v3544_v12 = vld [vmem:[%s4438_s3 + $0x10] sm:$0xff]   ;;  %s469_s18 = scalar_lea.vmem %s4437_s2, %s3862_s27  ;;  %s3880_s23 = scalar_lea.vmem %s4436_s1, %s3862_s27 }
  0x1f   : > { %3187 = vmatprep.subr.bf16.mxu0 %v3714_v1  ;;  %3201 = vmatprep.mubr.msk.bf16.mxu0 %vm3715_vm0, %v3714_v1  ;;  %v3545_v13 = vld [vmem:[%s4439_s4 + $0x8] sm:$0xff]   ;;  %v3547_v15 = vld [vmem:[%s4439_s4] sm:$0xff]   ;;  %v3549_v42 = vld [vmem:[%s4440_s5 + $0x38] sm:$0xff]   ;;  %vm489_vm2 = vcmp.lt.s32.totalorder %v486_v51, %v488_v52  ;;  %s478_s16 = scalar_lea.vmem %s4448_s13, %s3862_s27 }
  0x20   : > { %v3546_v14 = vld [vmem:[%s4438_s3 + $0x8] sm:$0xff]   ;;  %v483_v16 = vld [vmem:[%s469_s18] sm:$0xff]  ;;  %v3550_v43 = vld [vmem:[%s4440_s5 + $0x30] sm:$0xff]   ;;  %v3953_v54 = vsel %vm489_vm2, 0.0, %v3716_v53 }
  0x21   : > { %3208 = vmatpush3.bf16.msra.mxu1 %v3535_v3  ;;  %v484_v17 = vld [vmem:[%s469_s18 + $0x8] sm:$0xff]  ;;  %v3548_v18 = vld [vmem:[%s4438_s3] sm:$0xff]   ;;  %v3553_v46 = vld [vmem:[%s4440_s5 + $0x18] sm:$0xff]  }
  0x22   : > { %3188 = vmatpush3.bf16.msra.mxu0 %v3536_v4  ;;  %3209 = vmatprep.subr.bf16.mxu1 %v3714_v1  ;;  %v481_v19 = vld [vmem:[%s3880_s23] sm:$0xff]  ;;  %v482_v20 = vld [vmem:[%s3880_s23 + $0x8] sm:$0xff]  ;;  %v3894_v21 = vpack.c.bf16 %v484_v17, %v483_v16  ;;  %v3554_v47 = vld [vmem:[%s4440_s5 + $0x10] sm:$0xff]  }
  0x23   : > { %3189 = vmatprep.subr.bf16.mxu0 %v3714_v1  ;;  %v3896_v22 = vpack.c.bf16 %v482_v20, %v481_v19  ;;  %v2757_v25 = vld [vmem:[%s4443_s8] ss:$0 sm:$0xff]  ;;  %v3551_v44 = vld [vmem:[%s4440_s5 + $0x28] sm:$0xff]   ;;  %v2820_v53 = vld [vmem:[%s4443_s8 + $0x1] ss:$0 sm:$0xff] }
  0x24   : > { %v2748_v28 = vld [vmem:[%s4442_s7] ss:$0 sm:$0xff]  ;;  %v3555_v48 = vld [vmem:[%s4440_s5 + $0x8] sm:$0xff]  }
  0x25   : > { %3210 = vmatpush3.bf16.msra.mxu1 %v3537_v5  ;;  %v3552_v45 = vld [vmem:[%s4440_s5 + $0x20] sm:$0xff]   ;;  %v3559_v20 = vld [vmem:[%s4439_s4 + $0x68] sm:$0xff]  }
  0x26   : > { %3190 = vmatpush3.bf16.msra.mxu0 %v3538_v6  ;;  %3211 = vmatprep.subr.bf16.mxu1 %v3714_v1  ;;  %v3556_v49 = vld [vmem:[%s4440_s5] sm:$0xff]   ;;  %v3581_v51 = vld [vmem:[%s4441_s6 + $0x8] sm:$0xff]  }
  0x27   : > { %3191 = vmatprep.subr.bf16.mxu0 %v3714_v1  ;;  %v3580_v50 = vld [vmem:[%s4440_s5 + $0x40] sm:$0xff]  }
  0x28   : > { %v3582_v52 = vld [vmem:[%s4441_s6] sm:$0xff]  }
  0x29   : > { %3212 = vmatpush3.bf16.msra.mxu1 %v3539_v7 }
  0x2a   : > { %3192 = vmatpush3.bf16.msra.mxu0 %v3540_v8  ;;  %3213 = vmatprep.subr.bf16.mxu1 %v3714_v1 }
  0x2b   : > { %3193 = vmatprep.subr.bf16.mxu0 %v3714_v1 }
  0x2d   : > { %3214 = vmatpush3.bf16.msra.mxu1 %v3541_v9 }
  0x2e   : > { %3194 = vmatpush3.bf16.msra.mxu0 %v3542_v10  ;;  %3215 = vmatprep.subr.bf16.mxu1 %v3714_v1  ;;  %v2766_v10 = vld [vmem:[%s4444_s9] ss:$0 sm:$0xff] }
  0x2f   : > { %3195 = vmatprep.subr.bf16.mxu0 %v3714_v1 }
  0x31   : > { %3216 = vmatpush3.bf16.msra.mxu1 %v3543_v11 }
  0x32   : > { %3196 = vmatpush3.bf16.msra.mxu0 %v3544_v12  ;;  %3217 = vmatprep.subr.bf16.mxu1 %v3714_v1 }
  0x33   : > { %3197 = vmatprep.subr.bf16.mxu0 %v3714_v1 }
  0x35   : > { %3218 = vmatpush3.bf16.msra.mxu1 %v3545_v13 }
  0x36   : > { %3198 = vmatpush3.bf16.msra.mxu0 %v3546_v14  ;;  %3219 = vmatprep.subr.bf16.mxu1 %v3714_v1 }
  0x37   : > { %3199 = vmatprep.subr.bf16.mxu0 %v3714_v1 }
  0x39   : > { %3220 = vmatpush3.bf16.msra.mxu1 %v3547_v15  ;;  %v3557_v15 = vld [vmem:[%s4439_s4 + $0x78] sm:$0xff]  }
  0x3a   : > { %3200 = vmatpush3.bf16.msra.mxu0 %v3548_v18  ;;  %3245 = vmatprep.subr.bf16.mxu1 %v3714_v1  ;;  %v3558_v18 = vld [vmem:[%s4439_s4 + $0x70] sm:$0xff]  }
  0x3b   : > { %3225 = vmatprep.subr.bf16.mxu0 %v3714_v1 }
  0x3c   : > { %3222 = vmatmul.mubr.bf16.vlgmr.msra.gmra.mxu1 %v3894_v21 }
  0x3d   : > { %3202 = vmatmul.mubr.bf16.vlgmr.msra.gmra.mxu0 %v3896_v22  ;;  %3247 = vmatprep.mubr.msk.bf16.mxu1 %vm3715_vm0, %v3714_v1 }
  0x3e   : > { %3241 = vmatprep.mubr.msk.bf16.mxu0 %vm3715_vm0, %v3714_v1  ;;  %3226 = vmatpush3.bf16.msra.mxu0 %v3549_v42  ;;  %v3572_v42 = vld [vmem:[%s4438_s3 + $0x40] sm:$0xff]  }
  0x3f   : > { %3227 = vmatprep.subr.bf16.mxu0 %v3714_v1 }
  0x42   : > { %3228 = vmatpush3.bf16.msra.mxu0 %v3550_v43  ;;  %v3573_v43 = vld [vmem:[%s4440_s5 + $0x78] sm:$0xff]  }
  0x43   : > { %3229 = vmatprep.subr.bf16.mxu0 %v3714_v1 }
  0x46   : > { %3230 = vmatpush3.bf16.msra.mxu0 %v3551_v44  ;;  %v3574_v44 = vld [vmem:[%s4440_s5 + $0x70] sm:$0xff]  }
  0x47   : > { %3231 = vmatprep.subr.bf16.mxu0 %v3714_v1 }
  0x4a   : > { %3232 = vmatpush3.bf16.msra.mxu0 %v3552_v45  ;;  %v3575_v45 = vld [vmem:[%s4440_s5 + $0x68] sm:$0xff]  }
  0x4b   : > { %3233 = vmatprep.subr.bf16.mxu0 %v3714_v1 }
  0x4e   : > { %3234 = vmatpush3.bf16.msra.mxu0 %v3553_v46  ;;  %v3576_v46 = vld [vmem:[%s4440_s5 + $0x60] sm:$0xff]  }
  0x4f   : > { %3235 = vmatprep.subr.bf16.mxu0 %v3714_v1 }
  0x52   : > { %3236 = vmatpush3.bf16.msra.mxu0 %v3554_v47  ;;  %v3577_v47 = vld [vmem:[%s4440_s5 + $0x58] sm:$0xff]  }
  0x53   : > { %3237 = vmatprep.subr.bf16.mxu0 %v3714_v1 }
  0x56   : > { %3238 = vmatpush3.bf16.msra.mxu0 %v3555_v48  ;;  %v3578_v48 = vld [vmem:[%s4440_s5 + $0x50] sm:$0xff]  }
  0x57   : > { %3239 = vmatprep.subr.bf16.mxu0 %v3714_v1 }
  0x5a   : > { %3240 = vmatpush3.bf16.msra.mxu0 %v3556_v49  ;;  %v3579_v49 = vld [vmem:[%s4440_s5 + $0x48] sm:$0xff]  }
  0x5b   : > { %3277 = vmatprep.subr.bf16.mxu0 %v3714_v1 }
  0x5d   : > { %3242 = vmatmul.mubr.bf16.vlgmr.msra.gmra.mxu0 %v3894_v21 }
  0x5e   : > { %3293 = vmatprep.mubr.msk.bf16.mxu0 %vm3715_vm0, %v3714_v1  ;;  %3278 = vmatpush3.bf16.msra.mxu0 %v3557_v15  ;;  %v2846_v15 = vld [vmem:[%s4444_s9 + $0x1] ss:$0 sm:$0xff] }
  0x5f   : > { %3279 = vmatprep.subr.bf16.mxu0 %v3714_v1 }
  0x62   : > { %3280 = vmatpush3.bf16.msra.mxu0 %v3558_v18 }
  0x63   : > { %3281 = vmatprep.subr.bf16.mxu0 %v3714_v1 }
  0x66   : > { %3282 = vmatpush3.bf16.msra.mxu0 %v3559_v20 }
  0x67   : > { %3283 = vmatprep.subr.bf16.mxu0 %v3714_v1 }
  0xfc   : > { %v710_v23 = vpop.f32.mrf.mxu1 }
  0xfd   : > { %v598_v24 = vpop.f32.mrf.mxu0  ;;  %v711_v30 = vadd.f32 %v2757_v25, %v710_v23  ;;  %v3561_v23 = vld [vmem:[%s4439_s4 + $0x60] sm:$0xff]  }
  0xfe   : > { %v3223_v26 = vpop.f32.mrf.mxu1  ;;  %v599_v34 = vadd.f32 %v2748_v28, %v598_v24  ;;  %3284 = vmatpush3.bf16.msra.mxu0 %v3561_v23  ;;  %v3563_v24 = vld [vmem:[%s4439_s4 + $0x58] sm:$0xff]  }
  0xff   : > { %v3203_v27 = vpop.f32.mrf.mxu0  ;;  %3285 = vmatprep.subr.bf16.mxu0 %v3714_v1  ;;  %v3567_v26 = vld [vmem:[%s4439_s4 + $0x48] sm:$0xff]  }
 0x100   : > { %v713_v29 = vpop.f32.mrf.mxu1  ;;  %v829_v39 = vmul.f32 0.17677669, %v599_v34  ;;  %v3569_v27 = vld [vmem:[%s4439_s4 + $0x40] sm:$0xff]   ;;  %v3560_v34 = vld [vmem:[%s4438_s3 + $0x78] sm:$0xff]  }
 0x101   : > { %v714_v31 = vadd.f32 %v2757_v25, %v713_v29  ;;  %v601_v32 = vpop.f32.mrf.mxu0  ;;  %v3565_v25 = vld [vmem:[%s4439_s4 + $0x50] sm:$0xff]  }
 0x102   : > { %v3224_v33 = vpop.f32.mrf.mxu1  ;;  %v602_v36 = vadd.f32 %v2748_v28, %v601_v32  ;;  %3286 = vmatpush3.bf16.msra.mxu0 %v3563_v24 }
 0x103   : > { %v832_v35 = vpack.c.bf16 %v714_v31, %v711_v30  ;;  %v3204_v37 = vpop.f32.mrf.mxu0  ;;  %3287 = vmatprep.subr.bf16.mxu0 %v3714_v1 }
 0x104   : > { %v830_v40 = vmul.f32 0.17677669, %v602_v36  ;;  %v3562_v36 = vld [vmem:[%s4438_s3 + $0x70] sm:$0xff]   ;;  %v3564_v37 = vld [vmem:[%s4438_s3 + $0x68] sm:$0xff]  }
 0x105   : > { %v838_v38 = vsel %vm833_vm1, %v832_v35, 0 }
 0x106   : > { %3246 = vmatpush3.bf16.xpose.msra.mxu1 %v838_v38  ;;  %v831_v41 = vpack.c.bf16 %v830_v40, %v829_v39  ;;  %3288 = vmatpush3.bf16.msra.mxu0 %v3565_v25  ;;  %v3566_v38 = vld [vmem:[%s4438_s3 + $0x60] sm:$0xff]   ;;  %v3568_v39 = vld [vmem:[%s4438_s3 + $0x58] sm:$0xff]   ;;  %v3570_v40 = vld [vmem:[%s4438_s3 + $0x50] sm:$0xff]  }
 0x107   : > { %3251 = vmatprep.subr.bf16.mxu1 %v3714_v1  ;;  %3289 = vmatprep.subr.bf16.mxu0 %v3714_v1 }
 0x10a   : > { %3290 = vmatpush3.bf16.msra.mxu0 %v3567_v26 }
 0x10b   : > { %3291 = vmatprep.subr.bf16.mxu0 %v3714_v1 }
 0x10d   : > { %3248 = vmatmul.mubr.msk.bf16.vlgmr.msra.gmra.mxu1 %vm833_vm1, %v831_v41  ;;  %v3571_v41 = vld [vmem:[%s4438_s3 + $0x48] sm:$0xff]  }
 0x10e   : > { %3253 = vmatprep.mubr.msk.bf16.mxu1 %vm3715_vm0, %v3714_v1  ;;  %3292 = vmatpush3.bf16.msra.mxu0 %v3569_v27 }
 0x10f   : > { %3317 = vmatprep.subr.bf16.mxu0 %v3714_v1 }
 0x111   : > { %3294 = vmatmul.mubr.bf16.vlgmr.msra.gmra.mxu0 %v3894_v21 }
 0x112   : > { %3319 = vmatprep.mubr.msk.bf16.mxu0 %vm3715_vm0, %v3714_v1 }
 0x11d   : > { %v822_v11 = vpop.f32.mrf.mxu0 }
 0x11e   : > { %v823_v13 = vadd.f32 %v2766_v10, %v822_v11 }
 0x11f   : > { %v3243_v12 = vpop.f32.mrf.mxu0 }
 0x121   : > { %v825_v14 = vpop.f32.mrf.mxu0 }
 0x122   : > { %v826_v16 = vadd.f32 %v2766_v10, %v825_v14 }
 0x123   : > { %v3244_v17 = vpop.f32.mrf.mxu0 }
 0x124   : > { %v905_v19 = vpack.c.bf16 %v826_v16, %v823_v13 }
 0x126   : > { %3252 = vmatpush3.bf16.msra.mxu1 %v905_v19 }
 0x127   : > { %3257 = vmatprep.subr.bf16.mxu1 %v3714_v1 }
 0x1cd   : > { %v874_v55 = vpop.f32.mrf.mxu1 }
 0x1ce   : > { %v875_v56 = vadd.f32 %v874_v55, %v3953_v54 }
 0x1cf   : > { %v3249_v57 = vpop.f32.mrf.mxu1 }
 0x1d0   : > { %v882_v58 = vsel %vm881_vm3, %v875_v56, -inf }
 0x1d1   : > { %883 = vmax.xlane.f32.xlu0 %v882_v58  ;;  %v877_v59 = vpop.f32.mrf.mxu1  ;;  %v1176_v55 = vpop.f32.mrf.mxu0 }
 0x1d2   : > { %v878_v60 = vadd.f32 %v877_v59, %v3953_v54  ;;  %v1177_v57 = vadd.f32 %v2820_v53, %v1176_v55 }
 0x1d3   : > { %v3250_v61 = vpop.f32.mrf.mxu1 }
 0x1d4   : > { %v885_v62 = vsel %vm881_vm3, %v878_v60, -inf }
 0x1d5   : > { %886 = vmax.xlane.f32.xlu0 %v885_v62 }
 0x25a   : > { %v884_v63 = vpop.xlane.xlu0 %883 }
 0x25b   : > { %v888_v0 = vsub.f32 %v875_v56, %v884_v63  ;;  %v3295_v56 = vpop.f32.mrf.mxu0 }
 0x25c   : > { %v3584_v56 = vld [vmem:[%s4441_s6 + $0x18] sm:$0xff]  }
 0x25d   : > { %v890_v2 = vmul.f32 1.442695, %v888_v0  ;;  %v1179_v58 = vpop.f32.mrf.mxu0 }
 0x25e   : > { %v887_v3 = vpop.xlane.xlu0 %886  ;;  %v1180_v59 = vadd.f32 %v2820_v53, %v1179_v58  ;;  %v3586_v58 = vld [vmem:[%s4441_s6 + $0x10] sm:$0xff]  }
 0x25f   : > { %3637 = vpow2.f32 %v890_v2  ;;  %v889_v4 = vsub.f32 %v878_v60, %v887_v3  ;;  %v3296_v60 = vpop.f32.mrf.mxu0 }
 0x260   : > { %v1300_v61 = vpack.c.bf16 %v1180_v59, %v1177_v57  ;;  %v3587_v59 = vld [vmem:[%s4439_s4 + $0xa8] sm:$0xff]   ;;  %v3589_v60 = vld [vmem:[%s4439_s4 + $0xa0] sm:$0xff]  }
 0x261   : > { %v892_v5 = vmul.f32 1.442695, %v889_v4 }
 0x262   : > { %v1305_v62 = vsel %vm833_vm1, %v1300_v61, 0  ;;  %v3591_v61 = vld [vmem:[%s4439_s4 + $0x98] sm:$0xff]  }
 0x263   : > { %3639 = vpow2.f32 %v892_v5  ;;  %3318 = vmatpush3.bf16.xpose.msra.mxu0 %v1305_v62  ;;  %v2794_v5 = vld [vmem:[%s4442_s7 + $0x1] ss:$0 sm:$0xff]  ;;  %v3593_v62 = vld [vmem:[%s4439_s4 + $0x90] sm:$0xff]  }
 0x264   : > { %3323 = vmatprep.subr.bf16.mxu0 %v3714_v1 }
 0x26c   : > { %v3638_v6 = vpop.eup %3637 }
 0x26d   : > { %v894_v7 = vsel %vm881_vm3, %v3638_v6, 0.0 }
 0x26e   : > { %895 = vadd.xlane.f32.xlu1 %v894_v7 }
 0x270   : > { %v3640_v8 = vpop.eup %3639 }
 0x271   : > { %v897_v9 = vsel %vm881_vm3, %v3640_v8, 0.0 }
 0x272   : > { %898 = vadd.xlane.f32.xlu1 %v897_v9 }
 0x2f7   : > { %v896_v28 = vpop.xlane.xlu1 %895 }
 0x2f8   : > { %3641 = vrcp.f32 %v896_v28 }
 0x2fb   : > { %v899_v29 = vpop.xlane.xlu1 %898 }
 0x2fc   : > { %3643 = vrcp.f32 %v899_v29 }
 0x305   : > { %v3642_v30 = vpop.eup %3641 }
 0x306   : > { %v902_v32 = vmul.f32 %v3642_v30, %v3638_v6 }
 0x309   : > { %v3644_v31 = vpop.eup %3643 }
 0x30a   : > { %v903_v33 = vmul.f32 %v3644_v31, %v3640_v8 }
 0x30c   : > { %v904_v35 = vpack.c.bf16 %v903_v33, %v902_v32 }
 0x30e   : > { %3254 = vmatmul.mubr.msk.bf16.vlgmr.msra.gmra.mxu1 %vm881_vm3, %v904_v35 }
 0x30f   : > { %3258 = vmatpush3.bf16.msra.mxu1 %v3560_v34  ;;  %3273 = vmatprep.mubr.msk.bf16.mxu1 %vm3715_vm0, %v3714_v1 }
 0x310   : > { %3259 = vmatprep.subr.bf16.mxu1 %v3714_v1 }
 0x313   : > { %3260 = vmatpush3.bf16.msra.mxu1 %v3562_v36 }
 0x314   : > { %3261 = vmatprep.subr.bf16.mxu1 %v3714_v1 }
 0x317   : > { %3262 = vmatpush3.bf16.msra.mxu1 %v3564_v37 }
 0x318   : > { %3263 = vmatprep.subr.bf16.mxu1 %v3714_v1 }
 0x31b   : > { %3264 = vmatpush3.bf16.msra.mxu1 %v3566_v38 }
 0x31c   : > { %3265 = vmatprep.subr.bf16.mxu1 %v3714_v1 }
 0x31f   : > { %3266 = vmatpush3.bf16.msra.mxu1 %v3568_v39 }
 0x320   : > { %3267 = vmatprep.subr.bf16.mxu1 %v3714_v1 }
 0x323   : > { %3268 = vmatpush3.bf16.msra.mxu1 %v3570_v40 }
 0x324   : > { %3269 = vmatprep.subr.bf16.mxu1 %v3714_v1 }
 0x327   : > { %3270 = vmatpush3.bf16.msra.mxu1 %v3571_v41 }
 0x328   : > { %3271 = vmatprep.subr.bf16.mxu1 %v3714_v1 }
 0x32b   : > { %3272 = vmatpush3.bf16.msra.mxu1 %v3572_v42 }
 0x32c   : > { %3297 = vmatprep.subr.bf16.mxu1 %v3714_v1 }
 0x32e   : > { %3274 = vmatmul.mubr.bf16.vlgmr.msra.gmra.mxu1 %v3896_v22 }
 0x32f   : > { %3298 = vmatpush3.bf16.msra.mxu1 %v3573_v43  ;;  %3313 = vmatprep.mubr.msk.bf16.mxu1 %vm3715_vm0, %v3714_v1 }
 0x330   : > { %3299 = vmatprep.subr.bf16.mxu1 %v3714_v1 }
 0x333   : > { %3300 = vmatpush3.bf16.msra.mxu1 %v3574_v44 }
 0x334   : > { %3301 = vmatprep.subr.bf16.mxu1 %v3714_v1 }
 0x337   : > { %3302 = vmatpush3.bf16.msra.mxu1 %v3575_v45 }
 0x338   : > { %3303 = vmatprep.subr.bf16.mxu1 %v3714_v1 }
 0x33b   : > { %3304 = vmatpush3.bf16.msra.mxu1 %v3576_v46 }
 0x33c   : > { %3305 = vmatprep.subr.bf16.mxu1 %v3714_v1 }
 0x33f   : > { %3306 = vmatpush3.bf16.msra.mxu1 %v3577_v47  ;;  %v3583_v47 = vld [vmem:[%s4439_s4 + $0xb8] sm:$0xff]  }
 0x340   : > { %3307 = vmatprep.subr.bf16.mxu1 %v3714_v1 }
 0x343   : > { %3308 = vmatpush3.bf16.msra.mxu1 %v3578_v48  ;;  %v3585_v48 = vld [vmem:[%s4439_s4 + $0xb0] sm:$0xff]  }
 0x344   : > { %3309 = vmatprep.subr.bf16.mxu1 %v3714_v1 }
 0x347   : > { %3310 = vmatpush3.bf16.msra.mxu1 %v3579_v49 }
 0x348   : > { %3311 = vmatprep.subr.bf16.mxu1 %v3714_v1 }
 0x34b   : > { %3312 = vmatpush3.bf16.msra.mxu1 %v3580_v50 }
 0x34c   : > { %3337 = vmatprep.subr.bf16.mxu1 %v3714_v1 }
 0x34e   : > { %3314 = vmatmul.mubr.bf16.vlgmr.msra.gmra.mxu1 %v3894_v21 }
 0x34f   : > { %3338 = vmatpush3.bf16.msra.mxu1 %v3581_v51  ;;  %3341 = vmatprep.mubr.msk.bf16.mxu1 %vm3715_vm0, %v3714_v1 }
 0x350   : > { %3339 = vmatprep.subr.bf16.mxu1 %v3714_v1 }
 0x353   : > { %3340 = vmatpush3.bf16.msra.mxu1 %v3582_v52 }
 0x354   : > { %3365 = vmatprep.subr.bf16.mxu1 %v3714_v1 }
 0x3ce   : > { %v943_v63 = vpop.f32.mrf.mxu1 }
 0x3d0   : > { %v3255_v0 = vpop.f32.mrf.mxu1 }
 0x3d1   : > { %v3597_v0 = vld [vmem:[%s4439_s4 + $0x80] sm:$0xff]  }
 0x3d2   : > { %v946_v2 = vpop.f32.mrf.mxu1 }
 0x3d3   : > { %v950_v3 = vpack.c.bf16 %v946_v2, %v943_v63  ;;  %v3595_v63 = vld [vmem:[%s4439_s4 + $0x88] sm:$0xff]  }
 0x3d4   : > { %v3256_v4 = vpop.f32.mrf.mxu1 }
 0x3d5   : > { %3342 = vmatmul.mubr.msk.bf16.vlgmr.msra.gmra.mxu1 %vm833_vm1, %v950_v3 }
 0x3d6   : > { %3381 = vmatprep.mubr.msk.bf16.mxu1 %vm3715_vm0, %v3714_v1  ;;  %3366 = vmatpush3.bf16.msra.mxu1 %v3583_v47  ;;  %v3606_v47 = vld [vmem:[%s4440_s5 + $0x90] sm:$0xff]  }
 0x3d7   : > { %3367 = vmatprep.subr.bf16.mxu1 %v3714_v1 }
 0x3da   : > { %3368 = vmatpush3.bf16.msra.mxu1 %v3585_v48  ;;  %v3607_v48 = vld [vmem:[%s4440_s5 + $0x88] sm:$0xff]  }
 0x3db   : > { %3369 = vmatprep.subr.bf16.mxu1 %v3714_v1 }
 0x3de   : > { %3370 = vmatpush3.bf16.msra.mxu1 %v3587_v59 }
 0x3df   : > { %3371 = vmatprep.subr.bf16.mxu1 %v3714_v1 }
 0x3e2   : > { %3372 = vmatpush3.bf16.msra.mxu1 %v3589_v60 }
 0x3e3   : > { %3373 = vmatprep.subr.bf16.mxu1 %v3714_v1 }
 0x3e6   : > { %3374 = vmatpush3.bf16.msra.mxu1 %v3591_v61 }
 0x3e7   : > { %3375 = vmatprep.subr.bf16.mxu1 %v3714_v1 }
 0x3ea   : > { %3376 = vmatpush3.bf16.msra.mxu1 %v3593_v62 }
 0x3eb   : > { %3377 = vmatprep.subr.bf16.mxu1 %v3714_v1 }
 0x3ee   : > { %v1062_v6 = vpop.f32.mrf.mxu1  ;;  %3378 = vmatpush3.bf16.msra.mxu1 %v3595_v63 }
 0x3ef   : > { %v1063_v8 = vadd.f32 %v2794_v5, %v1062_v6  ;;  %3379 = vmatprep.subr.bf16.mxu1 %v3714_v1 }
 0x3f0   : > { %v3275_v7 = vpop.f32.mrf.mxu1 }
 0x3f1   : > { %v1297_v12 = vmul.f32 0.17677669, %v1063_v8  ;;  %v3590_v8 = vld [vmem:[%s4438_s3 + $0xb0] sm:$0xff]  }
 0x3f2   : > { %v1065_v9 = vpop.f32.mrf.mxu1  ;;  %3380 = vmatpush3.bf16.msra.mxu1 %v3597_v0 }
 0x3f3   : > { %v1066_v10 = vadd.f32 %v2794_v5, %v1065_v9  ;;  %3405 = vmatprep.subr.bf16.mxu1 %v3714_v1  ;;  %v3588_v5 = vld [vmem:[%s4438_s3 + $0xb8] sm:$0xff]   ;;  %v3592_v9 = vld [vmem:[%s4438_s3 + $0xa8] sm:$0xff]  }
 0x3f4   : > { %v3276_v11 = vpop.f32.mrf.mxu1 }
 0x3f5   : > { %v1298_v13 = vmul.f32 0.17677669, %v1066_v10  ;;  %3382 = vmatmul.mubr.bf16.vlgmr.msra.gmra.mxu1 %v3894_v21  ;;  %v3594_v10 = vld [vmem:[%s4438_s3 + $0xa0] sm:$0xff]   ;;  %v3596_v11 = vld [vmem:[%s4438_s3 + $0x98] sm:$0xff]  }
 0x3f6   : > { %3407 = vmatprep.mubr.msk.bf16.mxu1 %vm3715_vm0, %v3714_v1 }
 0x3f7   : > { %v1299_v14 = vpack.c.bf16 %v1298_v13, %v1297_v12  ;;  %v3598_v12 = vld [vmem:[%s4438_s3 + $0x90] sm:$0xff]   ;;  %v3599_v13 = vld [vmem:[%s4438_s3 + $0x88] sm:$0xff]  }
 0x3f9   : > { %3320 = vmatmul.mubr.msk.bf16.vlgmr.msra.gmra.mxu0 %vm833_vm1, %v1299_v14  ;;  %v3600_v14 = vld [vmem:[%s4438_s3 + $0x80] sm:$0xff]  }
 0x3fa   : > { %3325 = vmatprep.mubr.msk.bf16.mxu0 %vm3715_vm0, %v3714_v1 }
 0x40e   : > { %v1290_v16 = vpop.f32.mrf.mxu1 }
 0x40f   : > { %v1291_v18 = vadd.f32 %v2846_v15, %v1290_v16 }
 0x410   : > { %v3315_v17 = vpop.f32.mrf.mxu1 }
 0x412   : > { %v1293_v19 = vpop.f32.mrf.mxu1 }
 0x413   : > { %v1294_v20 = vadd.f32 %v2846_v15, %v1293_v19  ;;  %v2910_v15 = vld [vmem:[%s4443_s8 + $0x2] ss:$0 sm:$0xff] }
 0x414   : > { %v3316_v23 = vpop.f32.mrf.mxu1 }
 0x415   : > { %v1371_v24 = vpack.c.bf16 %v1294_v20, %v1291_v18 }
 0x417   : > { %3324 = vmatpush3.bf16.msra.mxu0 %v1371_v24 }
 0x418   : > { %3329 = vmatprep.subr.bf16.mxu0 %v3714_v1 }
 0x495   : > { %v4099_v25 = vpop.f32.mrf.mxu1 }
 0x497   : > { %v3343_v26 = vpop.f32.mrf.mxu1 }
 0x499   : > { %v4101_v27 = vpop.f32.mrf.mxu1 }
 0x49b   : > { %v3344_v28 = vpop.f32.mrf.mxu1 }
 0x4b5   : > { %v1755_v16 = vpop.f32.mrf.mxu1 }
 0x4b6   : > { %v1756_v18 = vadd.f32 %v2910_v15, %v1755_v16 }
 0x4b7   : > { %v3383_v17 = vpop.f32.mrf.mxu1 }
 0x4b9   : > { %v1341_v29 = vpop.f32.mrf.mxu0  ;;  %v1758_v19 = vpop.f32.mrf.mxu1 }
 0x4ba   : > { %v1342_v30 = vadd.f32 %v1341_v29, %v3953_v54  ;;  %v1759_v20 = vadd.f32 %v2910_v15, %v1758_v19  ;;  %v3611_v15 = vld [vmem:[%s4439_s4 + $0xf0] sm:$0xff]  }
 0x4bb   : > { %v3321_v31 = vpop.f32.mrf.mxu0  ;;  %v3384_v23 = vpop.f32.mrf.mxu1 }
 0x4bc   : > { %v1348_v32 = vsel %vm881_vm3, %v1342_v30, -inf  ;;  %v1879_v24 = vpack.c.bf16 %v1759_v20, %v1756_v18 }
 0x4bd   : > { %1349 = vmax.xlane.f32.xlu0 %v1348_v32  ;;  %v1344_v33 = vpop.f32.mrf.mxu0  ;;  %v2884_v32 = vld [vmem:[%s4442_s7 + $0x2] ss:$0 sm:$0xff] }
 0x4be   : > { %v1345_v34 = vadd.f32 %v1344_v33, %v3953_v54  ;;  %v1884_v26 = vsel %vm833_vm1, %v1879_v24, 0  ;;  %v3610_v24 = vld [vmem:[%s4441_s6 + $0x28] sm:$0xff]  }
 0x4bf   : > { %v3322_v35 = vpop.f32.mrf.mxu0  ;;  %3406 = vmatpush3.bf16.xpose.msra.mxu1 %v1884_v26 }
 0x4c0   : > { %v1351_v36 = vsel %vm881_vm3, %v1345_v34, -inf  ;;  %3411 = vmatprep.subr.bf16.mxu1 %v3714_v1 }
 0x4c1   : > { %1352 = vmax.xlane.f32.xlu1 %v1351_v36 }
 0x546   : > { %v1350_v37 = vpop.xlane.xlu0 %1349 }
 0x547   : > { %v1354_v38 = vsub.f32 %v1342_v30, %v1350_v37 }
 0x549   : > { %v1356_v39 = vmul.f32 1.442695, %v1354_v38 }
 0x54a   : > { %v1353_v40 = vpop.xlane.xlu1 %1352 }
 0x54b   : > { %3645 = vpow2.f32 %v1356_v39  ;;  %v1355_v41 = vsub.f32 %v1345_v34, %v1353_v40 }
 0x54d   : > { %v1358_v42 = vmul.f32 1.442695, %v1355_v41 }
 0x54f   : > { %3647 = vpow2.f32 %v1358_v42  ;;  %v3601_v42 = vld [vmem:[%s4440_s5 + $0xb8] sm:$0xff]  }
 0x558   : > { %v3646_v43 = vpop.eup %3645 }
 0x559   : > { %v1360_v44 = vsel %vm881_vm3, %v3646_v43, 0.0 }
 0x55a   : > { %1361 = vadd.xlane.f32.xlu0 %v1360_v44  ;;  %v3603_v44 = vld [vmem:[%s4440_s5 + $0xa8] sm:$0xff]  }
 0x55c   : > { %v3648_v45 = vpop.eup %3647 }
 0x55d   : > { %v1363_v46 = vsel %vm881_vm3, %v3648_v45, 0.0 }
 0x55e   : > { %1364 = vadd.xlane.f32.xlu1 %v1363_v46  ;;  %v3605_v46 = vld [vmem:[%s4440_s5 + $0x98] sm:$0xff]  }
 0x5e3   : > { %v1362_v49 = vpop.xlane.xlu0 %1361 }
 0x5e4   : > { %3649 = vrcp.f32 %v1362_v49  ;;  %v3608_v49 = vld [vmem:[%s4440_s5 + $0x80] sm:$0xff]  }
 0x5e7   : > { %v1365_v50 = vpop.xlane.xlu1 %1364 }
 0x5e8   : > { %3651 = vrcp.f32 %v1365_v50 }
 0x5f1   : > { %v3650_v51 = vpop.eup %3649 }
 0x5f2   : > { %v1368_v53 = vmul.f32 %v3650_v51, %v3646_v43  ;;  %v3602_v43 = vld [vmem:[%s4440_s5 + $0xb0] sm:$0xff]  }
 0x5f5   : > { %v3652_v52 = vpop.eup %3651 }
 0x5f6   : > { %v1369_v55 = vmul.f32 %v3652_v52, %v3648_v45  ;;  %v3604_v45 = vld [vmem:[%s4440_s5 + $0xa0] sm:$0xff]  }
 0x5f8   : > { %v1370_v57 = vpack.c.bf16 %v1369_v55, %v1368_v53 }
 0x5fa   : > { %3326 = vmatmul.mubr.msk.bf16.vlgmr.msra.gmra.mxu0 %vm881_vm3, %v1370_v57 }
 0x5fb   : > { %3330 = vmatpush3.bf16.msra.mxu0 %v3584_v56  ;;  %3333 = vmatprep.mubr.msk.bf16.mxu0 %vm3715_vm0, %v3714_v1 }
 0x5fc   : > { %3331 = vmatprep.subr.bf16.mxu0 %v3714_v1 }
 0x5ff   : > { %3332 = vmatpush3.bf16.msra.mxu0 %v3586_v58 }
 0x600   : > { %3345 = vmatprep.subr.bf16.mxu0 %v3714_v1 }
 0x6ba   : > { %v1409_v2 = vpop.f32.mrf.mxu0 }
 0x6bc   : > { %v3327_v3 = vpop.f32.mrf.mxu0 }
 0x6be   : > { %v1412_v4 = vpop.f32.mrf.mxu0 }
 0x6bf   : > { %v1416_v6 = vpack.c.bf16 %v1412_v4, %v1409_v2 }
 0x6c0   : > { %v3328_v7 = vpop.f32.mrf.mxu0 }
 0x6c1   : > { %3334 = vmatmul.mubr.msk.bf16.vlgmr.msra.gmra.mxu0 %vm833_vm1, %v1416_v6  ;;  %v2936_v6 = vld [vmem:[%s4444_s9 + $0x2] ss:$0 sm:$0xff] }
 0x6c2   : > { %3346 = vmatpush3.bf16.msra.mxu0 %v3588_v5  ;;  %3361 = vmatprep.mubr.msk.bf16.mxu0 %vm3715_vm0, %v3714_v1 }
 0x6c3   : > { %3347 = vmatprep.subr.bf16.mxu0 %v3714_v1 }
 0x6c6   : > { %3348 = vmatpush3.bf16.msra.mxu0 %v3590_v8 }
 0x6c7   : > { %3349 = vmatprep.subr.bf16.mxu0 %v3714_v1 }
 0x6ca   : > { %3350 = vmatpush3.bf16.msra.mxu0 %v3592_v9 }
 0x6cb   : > { %3351 = vmatprep.subr.bf16.mxu0 %v3714_v1 }
 0x6ce   : > { %3352 = vmatpush3.bf16.msra.mxu0 %v3594_v10 }
 0x6cf   : > { %3353 = vmatprep.subr.bf16.mxu0 %v3714_v1 }
 0x6d2   : > { %3354 = vmatpush3.bf16.msra.mxu0 %v3596_v11 }
 0x6d3   : > { %3355 = vmatprep.subr.bf16.mxu0 %v3714_v1 }
 0x6d6   : > { %3356 = vmatpush3.bf16.msra.mxu0 %v3598_v12 }
 0x6d7   : > { %3357 = vmatprep.subr.bf16.mxu0 %v3714_v1 }
 0x6da   : > { %3358 = vmatpush3.bf16.msra.mxu0 %v3599_v13 }
 0x6db   : > { %3359 = vmatprep.subr.bf16.mxu0 %v3714_v1 }
 0x6de   : > { %3360 = vmatpush3.bf16.msra.mxu0 %v3600_v14  ;;  %v3609_v14 = vld [vmem:[%s4439_s4 + $0xf8] sm:$0xff]  }
 0x6df   : > { %3385 = vmatprep.subr.bf16.mxu0 %v3714_v1 }
 0x6e1   : > { %3362 = vmatmul.mubr.bf16.vlgmr.msra.gmra.mxu0 %v3896_v22 }
 0x6e2   : > { %3401 = vmatprep.mubr.msk.bf16.mxu0 %vm3715_vm0, %v3714_v1  ;;  %3386 = vmatpush3.bf16.msra.mxu0 %v3601_v42 }
 0x6e3   : > { %3387 = vmatprep.subr.bf16.mxu0 %v3714_v1 }
 0x6e6   : > { %3388 = vmatpush3.bf16.msra.mxu0 %v3602_v43  ;;  %v3616_v43 = vld [vmem:[%s4438_s3 + $0xf0] sm:$0xff]  }
 0x6e7   : > { %3389 = vmatprep.subr.bf16.mxu0 %v3714_v1 }
 0x6ea   : > { %3390 = vmatpush3.bf16.msra.mxu0 %v3603_v44  ;;  %v3618_v44 = vld [vmem:[%s4438_s3 + $0xe8] sm:$0xff]  }
 0x6eb   : > { %3391 = vmatprep.subr.bf16.mxu0 %v3714_v1 }
 0x6ee   : > { %3392 = vmatpush3.bf16.msra.mxu0 %v3604_v45  ;;  %v3620_v45 = vld [vmem:[%s4438_s3 + $0xe0] sm:$0xff]  }
 0x6ef   : > { %3393 = vmatprep.subr.bf16.mxu0 %v3714_v1 }
 0x6f2   : > { %3394 = vmatpush3.bf16.msra.mxu0 %v3605_v46  ;;  %v3622_v46 = vld [vmem:[%s4438_s3 + $0xd8] sm:$0xff]  }
 0x6f3   : > { %3395 = vmatprep.subr.bf16.mxu0 %v3714_v1 }
 0x6f6   : > { %3396 = vmatpush3.bf16.msra.mxu0 %v3606_v47  ;;  %v3624_v47 = vld [vmem:[%s4438_s3 + $0xd0] sm:$0xff]  }
 0x6f7   : > { %3397 = vmatprep.subr.bf16.mxu0 %v3714_v1 }
 0x6fa   : > { %3398 = vmatpush3.bf16.msra.mxu0 %v3607_v48  ;;  %v3625_v48 = vld [vmem:[%s4438_s3 + $0xc8] sm:$0xff]  }
 0x6fb   : > { %3399 = vmatprep.subr.bf16.mxu0 %v3714_v1 }
 0x6fe   : > { %3400 = vmatpush3.bf16.msra.mxu0 %v3608_v49  ;;  %v3626_v49 = vld [vmem:[%s4438_s3 + $0xc0] sm:$0xff]  }
 0x6ff   : > { %3445 = vmatprep.subr.bf16.mxu0 %v3714_v1 }
 0x701   : > { %3402 = vmatmul.mubr.bf16.vlgmr.msra.gmra.mxu0 %v3894_v21 }
 0x702   : > { %3461 = vmatprep.mubr.msk.bf16.mxu0 %vm3715_vm0, %v3714_v1  ;;  %3446 = vmatpush3.bf16.msra.mxu0 %v3609_v14  ;;  %v3631_v14 = vld [vmem:[%s4440_s5 + $0xd8] sm:$0xff]  }
 0x703   : > { %3447 = vmatprep.subr.bf16.mxu0 %v3714_v1 }
 0x706   : > { %3448 = vmatpush3.bf16.msra.mxu0 %v3611_v15  ;;  %v3632_v15 = vld [vmem:[%s4440_s5 + $0xd0] sm:$0xff]  }
 0x707   : > { %3449 = vmatprep.subr.bf16.mxu0 %v3714_v1 }
 0x781   : > { %v4198_v28 = vpop.f32.mrf.mxu0 }
 0x783   : > { %v3335_v29 = vpop.f32.mrf.mxu0 }
 0x784   : > { %v3612_v29 = vld [vmem:[%s4441_s6 + $0x20] sm:$0xff]  }
 0x785   : > { %v4200_v30 = vpop.f32.mrf.mxu0 }
 0x787   : > { %v3336_v31 = vpop.f32.mrf.mxu0 }
 0x788   : > { %v3613_v31 = vld [vmem:[%s4439_s4 + $0xe8] sm:$0xff]  }
 0x789   : > { %3450 = vmatpush3.bf16.msra.mxu0 %v3613_v31 }
 0x78a   : > { %3451 = vmatprep.subr.bf16.mxu0 %v3714_v1 }
 0x7a1   : > { %v1641_v33 = vpop.f32.mrf.mxu0 }
 0x7a2   : > { %v1642_v35 = vadd.f32 %v2884_v32, %v1641_v33  ;;  %v3617_v33 = vld [vmem:[%s4439_s4 + $0xd8] sm:$0xff]  }
 0x7a3   : > { %v3363_v34 = vpop.f32.mrf.mxu0 }
 0x7a4   : > { %v1876_v39 = vmul.f32 0.17677669, %v1642_v35  ;;  %v3619_v34 = vld [vmem:[%s4439_s4 + $0xd0] sm:$0xff]   ;;  %v3621_v35 = vld [vmem:[%s4439_s4 + $0xc8] sm:$0xff]  }
 0x7a5   : > { %v1644_v36 = vpop.f32.mrf.mxu0 }
 0x7a6   : > { %v1645_v37 = vadd.f32 %v2884_v32, %v1644_v36  ;;  %v3615_v32 = vld [vmem:[%s4439_s4 + $0xe0] sm:$0xff]  }
 0x7a7   : > { %v3364_v38 = vpop.f32.mrf.mxu0  ;;  %3452 = vmatpush3.bf16.msra.mxu0 %v3615_v32  ;;  %v3623_v36 = vld [vmem:[%s4439_s4 + $0xc0] sm:$0xff]  }
 0x7a8   : > { %v1877_v40 = vmul.f32 0.17677669, %v1645_v37  ;;  %3453 = vmatprep.subr.bf16.mxu0 %v3714_v1 }
 0x7aa   : > { %v1878_v41 = vpack.c.bf16 %v1877_v40, %v1876_v39  ;;  %v3614_v40 = vld [vmem:[%s4438_s3 + $0xf8] sm:$0xff]  }
 0x7ab   : > { %3454 = vmatpush3.bf16.msra.mxu0 %v3617_v33 }
 0x7ac   : > { %3408 = vmatmul.mubr.msk.bf16.vlgmr.msra.gmra.mxu1 %vm833_vm1, %v1878_v41  ;;  %3455 = vmatprep.subr.bf16.mxu0 %v3714_v1 }
 0x7ad   : > { %3413 = vmatprep.mubr.msk.bf16.mxu1 %vm3715_vm0, %v3714_v1 }
 0x7af   : > { %3456 = vmatpush3.bf16.msra.mxu0 %v3619_v34 }
 0x7b0   : > { %3457 = vmatprep.subr.bf16.mxu0 %v3714_v1 }
 0x7b3   : > { %3458 = vmatpush3.bf16.msra.mxu0 %v3621_v35 }
 0x7b4   : > { %3459 = vmatprep.subr.bf16.mxu0 %v3714_v1 }
 0x7b7   : > { %3460 = vmatpush3.bf16.msra.mxu0 %v3623_v36 }
 0x7b8   : > { %3485 = vmatprep.subr.bf16.mxu0 %v3714_v1 }
 0x7ba   : > { %3462 = vmatmul.mubr.bf16.vlgmr.msra.gmra.mxu0 %v3894_v21 }
 0x7bb   : > { %3487 = vmatprep.mubr.msk.bf16.mxu0 %vm3715_vm0, %v3714_v1 }
 0x7c1   : > { %v1869_v7 = vpop.f32.mrf.mxu0 }
 0x7c2   : > { %v1870_v9 = vadd.f32 %v2936_v6, %v1869_v7 }
 0x7c3   : > { %v3403_v8 = vpop.f32.mrf.mxu0 }
 0x7c5   : > { %v1872_v10 = vpop.f32.mrf.mxu0 }
 0x7c6   : > { %v1873_v11 = vadd.f32 %v2936_v6, %v1872_v10 }
 0x7c7   : > { %v3404_v12 = vpop.f32.mrf.mxu0 }
 0x7c8   : > { %v1950_v13 = vpack.c.bf16 %v1873_v11, %v1870_v9  ;;  %v3629_v12 = vld [vmem:[%s4440_s5 + $0xe8] sm:$0xff]  }
 0x7ca   : > { %3412 = vmatpush3.bf16.msra.mxu1 %v1950_v13  ;;  %v3630_v13 = vld [vmem:[%s4440_s5 + $0xe0] sm:$0xff]  }
 0x7cb   : > { %3417 = vmatprep.subr.bf16.mxu1 %v3714_v1 }
 0x86c   : > { %v1920_v50 = vpop.f32.mrf.mxu1 }
 0x86d   : > { %v1921_v51 = vadd.f32 %v1920_v50, %v3953_v54  ;;  %v2997_v50 = vld [vmem:[%s4443_s8 + $0x3] ss:$0 sm:$0xff] }
 0x86e   : > { %v3409_v52 = vpop.f32.mrf.mxu1 }
 0x86f   : > { %v1927_v53 = vsel %vm881_vm3, %v1921_v51, -inf }
 0x870   : > { %1928 = vmax.xlane.f32.xlu0 %v1927_v53  ;;  %v1923_v55 = vpop.f32.mrf.mxu1 }
 0x871   : > { %v1924_v56 = vadd.f32 %v1923_v55, %v3953_v54 }
 0x872   : > { %v3410_v57 = vpop.f32.mrf.mxu1 }
 0x873   : > { %v1930_v58 = vsel %vm881_vm3, %v1924_v56, -inf }
 0x874   : > { %1931 = vmax.xlane.f32.xlu1 %v1930_v58 }
 0x8f9   : > { %v1929_v59 = vpop.xlane.xlu0 %1928 }
 0x8fa   : > { %v1933_v60 = vsub.f32 %v1921_v51, %v1929_v59  ;;  %v2280_v51 = vpop.f32.mrf.mxu0 }
 0x8fb   : > { %v2281_v53 = vadd.f32 %v2997_v50, %v2280_v51 }
 0x8fc   : > { %v1935_v61 = vmul.f32 1.442695, %v1933_v60  ;;  %v3463_v52 = vpop.f32.mrf.mxu0 }
 0x8fd   : > { %v1932_v62 = vpop.xlane.xlu1 %1931 }
 0x8fe   : > { %3653 = vpow2.f32 %v1935_v61  ;;  %v1934_v63 = vsub.f32 %v1924_v56, %v1932_v62  ;;  %v2283_v55 = vpop.f32.mrf.mxu0 }
 0x8ff   : > { %v2284_v56 = vadd.f32 %v2997_v50, %v2283_v55 }
 0x900   : > { %v1937_v0 = vmul.f32 1.442695, %v1934_v63  ;;  %v3464_v57 = vpop.f32.mrf.mxu0  ;;  %v1531_v63 = vadd.f32 %v4101_v27, %v4200_v30  ;;  %v3627_v27 = vld [vmem:[%s4440_s5 + $0xf8] sm:$0xff]   ;;  %v3628_v30 = vld [vmem:[%s4440_s5 + $0xf0] sm:$0xff]  }
 0x901   : > { %v2404_v58 = vpack.c.bf16 %v2284_v56, %v2281_v53  ;;  %v3635_v56 = vld [vmem:[%s4441_s6 + $0x38] sm:$0xff]   ;;  %v3636_v57 = vld [vmem:[%s4441_s6 + $0x30] sm:$0xff]  }
 0x902   : > { %3655 = vpow2.f32 %v1937_v0 }
 0x903   : > { %v2409_v59 = vsel %vm833_vm1, %v2404_v58, 0 }
 0x904   : > { %3486 = vmatpush3.bf16.xpose.msra.mxu0 %v2409_v59 }
 0x905   : > { %3491 = vmatprep.subr.bf16.mxu0 %v3714_v1 }
 0x90b   : > { %v3654_v2 = vpop.eup %3653 }
 0x90c   : > { %v1939_v3 = vsel %vm881_vm3, %v3654_v2, 0.0 }
 0x90d   : > { %1940 = vadd.xlane.f32.xlu0 %v1939_v3 }
 0x90f   : > { %v3656_v4 = vpop.eup %3655 }
 0x910   : > { %v1942_v5 = vsel %vm881_vm3, %v3656_v4, 0.0 }
 0x911   : > { %1943 = vadd.xlane.f32.xlu1 %v1942_v5 }
 0x996   : > { %v1941_v16 = vpop.xlane.xlu0 %1940 }
 0x997   : > { %3657 = vrcp.f32 %v1941_v16  ;;  %v3633_v16 = vld [vmem:[%s4440_s5 + $0xc8] sm:$0xff]  }
 0x99a   : > { %v1944_v17 = vpop.xlane.xlu1 %1943 }
 0x99b   : > { %3659 = vrcp.f32 %v1944_v17  ;;  %v3634_v17 = vld [vmem:[%s4440_s5 + $0xc0] sm:$0xff]  }
 0x9a4   : > { %v3658_v18 = vpop.eup %3657 }
 0x9a5   : > { %v1947_v20 = vmul.f32 %v3658_v18, %v3654_v2 }
 0x9a8   : > { %v3660_v19 = vpop.eup %3659 }
 0x9a9   : > { %v1948_v23 = vmul.f32 %v3660_v19, %v3656_v4  ;;  %v2971_v4 = vld [vmem:[%s4442_s7 + $0x3] ss:$0 sm:$0xff] }
 0x9ab   : > { %v1949_v26 = vpack.c.bf16 %v1948_v23, %v1947_v20 }
 0x9ad   : > { %3414 = vmatmul.mubr.msk.bf16.vlgmr.msra.gmra.mxu1 %vm881_vm3, %v1949_v26 }
 0x9ae   : > { %3418 = vmatpush3.bf16.msra.mxu1 %v3610_v24  ;;  %3421 = vmatprep.mubr.msk.bf16.mxu1 %vm3715_vm0, %v3714_v1 }
 0x9af   : > { %3419 = vmatprep.subr.bf16.mxu1 %v3714_v1 }
 0x9b2   : > { %3420 = vmatpush3.bf16.msra.mxu1 %v3612_v29 }
 0x9b3   : > { %3425 = vmatprep.subr.bf16.mxu1 %v3714_v1 }
 0xa6d   : > { %v1988_v37 = vpop.f32.mrf.mxu1 }
 0xa6f   : > { %v3415_v38 = vpop.f32.mrf.mxu1 }
 0xa71   : > { %v1991_v39 = vpop.f32.mrf.mxu1 }
 0xa72   : > { %v1995_v41 = vpack.c.bf16 %v1991_v39, %v1988_v37 }
 0xa73   : > { %v3416_v42 = vpop.f32.mrf.mxu1 }
 0xa74   : > { %3422 = vmatmul.mubr.msk.bf16.vlgmr.msra.gmra.mxu1 %vm833_vm1, %v1995_v41 }
 0xa75   : > { %3426 = vmatpush3.bf16.msra.mxu1 %v3614_v40  ;;  %3441 = vmatprep.mubr.msk.bf16.mxu1 %vm3715_vm0, %v3714_v1 }
 0xa76   : > { %3427 = vmatprep.subr.bf16.mxu1 %v3714_v1 }
 0xa79   : > { %3428 = vmatpush3.bf16.msra.mxu1 %v3616_v43 }
 0xa7a   : > { %3429 = vmatprep.subr.bf16.mxu1 %v3714_v1 }
 0xa7d   : > { %3430 = vmatpush3.bf16.msra.mxu1 %v3618_v44 }
 0xa7e   : > { %3431 = vmatprep.subr.bf16.mxu1 %v3714_v1 }
 0xa81   : > { %3432 = vmatpush3.bf16.msra.mxu1 %v3620_v45 }
 0xa82   : > { %3433 = vmatprep.subr.bf16.mxu1 %v3714_v1 }
 0xa85   : > { %3434 = vmatpush3.bf16.msra.mxu1 %v3622_v46 }
 0xa86   : > { %3435 = vmatprep.subr.bf16.mxu1 %v3714_v1 }
 0xa89   : > { %3436 = vmatpush3.bf16.msra.mxu1 %v3624_v47 }
 0xa8a   : > { %3437 = vmatprep.subr.bf16.mxu1 %v3714_v1 }
 0xa8d   : > { %3438 = vmatpush3.bf16.msra.mxu1 %v3625_v48 }
 0xa8e   : > { %3439 = vmatprep.subr.bf16.mxu1 %v3714_v1 }
 0xa91   : > { %3440 = vmatpush3.bf16.msra.mxu1 %v3626_v49 }
 0xa92   : > { %3465 = vmatprep.subr.bf16.mxu1 %v3714_v1 }
 0xa94   : > { %3442 = vmatmul.mubr.bf16.vlgmr.msra.gmra.mxu1 %v3896_v22  ;;  %v1528_v22 = vadd.f32 %v4099_v25, %v4198_v28 }
 0xa95   : > { %3481 = vmatprep.mubr.msk.bf16.mxu1 %vm3715_vm0, %v3714_v1  ;;  %3466 = vmatpush3.bf16.msra.mxu1 %v3627_v27 }
 0xa96   : > { %3467 = vmatprep.subr.bf16.mxu1 %v3714_v1 }
 0xa99   : > { %3468 = vmatpush3.bf16.msra.mxu1 %v3628_v30 }
 0xa9a   : > { %3469 = vmatprep.subr.bf16.mxu1 %v3714_v1 }
 0xa9d   : > { %3470 = vmatpush3.bf16.msra.mxu1 %v3629_v12 }
 0xa9e   : > { %3471 = vmatprep.subr.bf16.mxu1 %v3714_v1 }
 0xaa1   : > { %3472 = vmatpush3.bf16.msra.mxu1 %v3630_v13 }
 0xaa2   : > { %3473 = vmatprep.subr.bf16.mxu1 %v3714_v1 }
 0xaa5   : > { %3474 = vmatpush3.bf16.msra.mxu1 %v3631_v14 }
 0xaa6   : > { %3475 = vmatprep.subr.bf16.mxu1 %v3714_v1 }
 0xaa9   : > { %3476 = vmatpush3.bf16.msra.mxu1 %v3632_v15 }
 0xaaa   : > { %3477 = vmatprep.subr.bf16.mxu1 %v3714_v1 }
 0xaad   : > { %3478 = vmatpush3.bf16.msra.mxu1 %v3633_v16 }
 0xaae   : > { %3479 = vmatprep.subr.bf16.mxu1 %v3714_v1 }
 0xab1   : > { %3480 = vmatpush3.bf16.msra.mxu1 %v3634_v17 }
 0xab4   : > { %3482 = vmatmul.mubr.bf16.vlgmr.msra.gmra.mxu1 %v3894_v21 }
 0xb34   : > { %v2050_v60 = vpop.f32.mrf.mxu1 }
 0xb35   : > { %v4344_v61 = vadd.f32 %v2050_v60, %v1528_v22 }
 0xb36   : > { %v3423_v62 = vpop.f32.mrf.mxu1 }
 0xb38   : > { %v2053_v0 = vpop.f32.mrf.mxu1 }
 0xb39   : > { %v4348_v2 = vadd.f32 %v2053_v0, %v1531_v63  ;;  %v3041_v0 = vld [vmem:[%s4445_s10] ss:$0 sm:$0xff] }
 0xb3a   : > { %v3424_v3 = vpop.f32.mrf.mxu1 }
 0xb54   : > { %v2166_v5 = vpop.f32.mrf.mxu1 }
 0xb55   : > { %v2167_v7 = vadd.f32 %v2971_v4, %v2166_v5 }
 0xb56   : > { %v3443_v6 = vpop.f32.mrf.mxu1 }
 0xb57   : > { %v2401_v9 = vmul.f32 0.17677669, %v2167_v7  ;;  %v3673_v7 = vld [vmem:[%s3880_s23] sm:$0xff] }
 0xb58   : > { %v2169_v8 = vpop.f32.mrf.mxu1 }
 0xb59   : > { %v2170_v25 = vadd.f32 %v2971_v4, %v2169_v8 }
 0xb5a   : > { %v3444_v28 = vpop.f32.mrf.mxu1 }
 0xb5b   : > { %v2402_v10 = vmul.f32 0.17677669, %v2170_v25 }
 0xb5d   : > { %v2403_v11 = vpack.c.bf16 %v2402_v10, %v2401_v9  ;;  %v3674_v9 = vld [vmem:[%s3880_s23 + $0x8] sm:$0xff] }
 0xb5f   : > { %3488 = vmatmul.mubr.msk.bf16.vlgmr.msra.gmra.mxu0 %vm833_vm1, %v2403_v11 }
 0xb60   : > { %3493 = vmatprep.mubr.msk.bf16.mxu0 %vm3715_vm0, %v3714_v1 }
 0xb74   : > { %v2394_v41 = vpop.f32.mrf.mxu1 }
 0xb76   : > { %v3483_v42 = vpop.f32.mrf.mxu1 }
 0xb78   : > { %v2397_v44 = vpop.f32.mrf.mxu1 }
 0xb7a   : > { %v3484_v46 = vpop.f32.mrf.mxu1 }
 0xc1f   : > { %v2445_v18 = vpop.f32.mrf.mxu0 }
 0xc20   : > { %v2446_v19 = vadd.f32 %v2445_v18, %v3953_v54 }
 0xc21   : > { %v3489_v20 = vpop.f32.mrf.mxu0 }
 0xc22   : > { %v2452_v23 = vsel %vm881_vm3, %v2446_v19, -inf }
 0xc23   : > { %2453 = vmax.xlane.f32.xlu0 %v2452_v23  ;;  %v2448_v24 = vpop.f32.mrf.mxu0 }
 0xc24   : > { %v2449_v26 = vadd.f32 %v2448_v24, %v3953_v54  ;;  %v3023_v54 = vld [vmem:[%s4444_s9 + $0x3] ss:$0 sm:$0xff]  ;;  %v3042_v24 = vld [vmem:[%s4446_s11] ss:$0 sm:$0xff] }
 0xc25   : > { %v3490_v29 = vpop.f32.mrf.mxu0  ;;  %v2395_v43 = vadd.f32 %v3023_v54, %v2394_v41  ;;  %v2398_v45 = vadd.f32 %v3023_v54, %v2397_v44 }
 0xc26   : > { %v2455_v31 = vsel %vm881_vm3, %v2449_v26, -inf  ;;  %v3043_v29 = vld [vmem:[%s4447_s12] ss:$0 sm:$0xff] }
 0xc27   : > { %2456 = vmax.xlane.f32.xlu1 %v2455_v31  ;;  %v2475_v47 = vpack.c.bf16 %v2398_v45, %v2395_v43 }
 0xc29   : > { %3492 = vmatpush3.bf16.msra.mxu0 %v2475_v47 }
 0xc2a   : > { %3497 = vmatprep.subr.bf16.mxu0 %v3714_v1 }
 0xcac   : > { %v2454_v32 = vpop.xlane.xlu0 %2453 }
 0xcad   : > { %v2458_v33 = vsub.f32 %v2446_v19, %v2454_v32 }
 0xcaf   : > { %v2460_v34 = vmul.f32 1.442695, %v2458_v33 }
 0xcb0   : > { %v2457_v35 = vpop.xlane.xlu1 %2456 }
 0xcb1   : > { %3661 = vpow2.f32 %v2460_v34  ;;  %v2459_v21 = vsub.f32 %v2449_v26, %v2457_v35 }
 0xcb3   : > { %v2462_v36 = vmul.f32 1.442695, %v2459_v21 }
 0xcb5   : > { %3663 = vpow2.f32 %v2462_v36 }
 0xcbe   : > { %v3662_v37 = vpop.eup %3661 }
 0xcbf   : > { %v2464_v38 = vsel %vm881_vm3, %v3662_v37, 0.0 }
 0xcc0   : > { %2465 = vadd.xlane.f32.xlu0 %v2464_v38 }
 0xcc2   : > { %v3664_v39 = vpop.eup %3663 }
 0xcc3   : > { %v2467_v40 = vsel %vm881_vm3, %v3664_v39, 0.0 }
 0xcc4   : > { %2468 = vadd.xlane.f32.xlu1 %v2467_v40 }
 0xd49   : > { %v2466_v48 = vpop.xlane.xlu0 %2465 }
 0xd4a   : > { %3665 = vrcp.f32 %v2466_v48 }
 0xd4d   : > { %v2469_v49 = vpop.xlane.xlu1 %2468 }
 0xd4e   : > { %3667 = vrcp.f32 %v2469_v49 }
 0xd57   : > { %v3666_v50 = vpop.eup %3665 }
 0xd58   : > { %v2472_v52 = vmul.f32 %v3666_v50, %v3662_v37 }
 0xd5b   : > { %v3668_v51 = vpop.eup %3667 }
 0xd5c   : > { %v2473_v53 = vmul.f32 %v3668_v51, %v3664_v39 }
 0xd5e   : > { %v2474_v55 = vpack.c.bf16 %v2473_v53, %v2472_v52 }
 0xd60   : > { %3494 = vmatmul.mubr.msk.bf16.vlgmr.msra.gmra.mxu0 %vm881_vm3, %v2474_v55 }
 0xd61   : > { %3501 = vmatprep.mubr.msk.bf16.mxu0 %vm3715_vm0, %v3714_v1  ;;  %3498 = vmatpush3.bf16.msra.mxu0 %v3635_v56 }
 0xd62   : > { %3499 = vmatprep.subr.bf16.mxu0 %v3714_v1 }
 0xd65   : > { %3500 = vmatpush3.bf16.msra.mxu0 %v3636_v57 }
 0xe20   : > { %v2513_v58 = vpop.f32.mrf.mxu0 }
 0xe22   : > { %v3495_v59 = vpop.f32.mrf.mxu0 }
 0xe24   : > { %v2516_v22 = vpop.f32.mrf.mxu0 }
 0xe25   : > { %v2520_v60 = vpack.c.bf16 %v2516_v22, %v2513_v58 }
 0xe26   : > { %v3496_v62 = vpop.f32.mrf.mxu0 }
 0xe27   : > { %3502 = vmatmul.mubr.msk.bf16.vlgmr.msra.gmra.mxu0 %vm833_vm1, %v2520_v60 }
 0xee7   : > { %v2575_v63 = vpop.f32.mrf.mxu0 }
 0xee8   : > { %v2582_v1 = vadd.f32 %v2575_v63, %v4344_v61 }
 0xee9   : > { %v3503_v3 = vpop.f32.mrf.mxu0 }
 0xeea   : > { %v2591_v4 = vadd.f32 %v3041_v0, %v2582_v1 }
 0xeeb   : > { %v2578_v5 = vpop.f32.mrf.mxu0 }
 0xeec   : > { %v2583_v6 = vadd.f32 %v2578_v5, %v4348_v2  ;;  %v2593_v8 = vadd.f32 %v3673_v7, %v2591_v4 }
 0xeed   : > { %v3504_v25 = vpop.f32.mrf.mxu0 }
 0xeee   : > { %v2592_v28 = vadd.f32 %v3041_v0, %v2583_v6  ;;  %2595 = vadd.xlane.f32.xlu0 %v2593_v8 }
 0xef0   : > { %v2594_v10 = vadd.f32 %v3674_v9, %v2592_v28 }
 0xef2   : > { %2597 = vadd.xlane.f32.xlu1 %v2594_v10 }
 0xf77   : > { %v2596_v11 = vpop.xlane.xlu0 %2595 }
 0xf78   : > { %v2600_v27 = vmul.f32 0.0078125, %v2596_v11 }
 0xf7a   : > { %v2602_v30 = vsub.f32 %v2593_v8, %v2600_v27 }
 0xf7b   : > { %v2598_v12 = vpop.xlane.xlu1 %2597 }
 0xf7c   : > { %v2601_v13 = vmul.f32 0.0078125, %v2598_v12  ;;  %v2604_v14 = vmul.f32 %v2602_v30, %v2602_v30 }
 0xf7e   : > { %v2603_v61 = vsub.f32 %v2594_v10, %v2601_v13  ;;  %2606 = vadd.xlane.f32.xlu0 %v2604_v14 }
 0xf80   : > { %v2605_v15 = vmul.f32 %v2603_v61, %v2603_v61 }
 0xf82   : > { %2608 = vadd.xlane.f32.xlu1 %v2605_v15 }
0x1007   : > { %v2607_v2 = vpop.xlane.xlu0 %2606 }
0x1008   : > { %v2610_v16 = vmul.f32 0.0078125, %v2607_v2 }
0x100a   : > { %v2612_v17 = vadd.f32 1e-05, %v2610_v16 }
0x100b   : > { %v2609_v18 = vpop.xlane.xlu1 %2608 }
0x100c   : > { %3669 = vrsqrt.f32 %v2612_v17  ;;  %v2611_v19 = vmul.f32 0.0078125, %v2609_v18 }
0x100e   : > { %v2613_v20 = vadd.f32 1e-05, %v2611_v19 }
0x1010   : > { %3671 = vrsqrt.f32 %v2613_v20 }
0x1019   : > { %v3670_v23 = vpop.eup %3669 }
0x101a   : > { %v2616_v26 = vmul.f32 %v3670_v23, %v2602_v30 }
0x101c   : > { %v2625_v31 = vmul.f32 %v3042_v24, %v2616_v26 }
0x101d   : > { %v3672_v32 = vpop.eup %3671 }
0x101e   : > { %v2634_v33 = vadd.f32 %v3043_v29, %v2625_v31  ;;  %v2617_v34 = vmul.f32 %v3672_v32, %v2603_v61 }
0x1020   : > { %2636 = vst [vmem:[%s478_s16] sm:$0xff] %v2634_v33  ;;  %v2626_v35 = vmul.f32 %v3042_v24, %v2617_v34 }
0x1022   : > { %v2635_v21 = vadd.f32 %v3043_v29, %v2626_v35 }
0x1024   : > { %2637 = vst [vmem:[%s478_s16 + $0x8] sm:$0xff] %v2635_v21 }
0x1025 PF: > { %s29_s15 = sadd.s32 1, %s3711_s15   ;;  %s4449_s30 = smov %s3707_s14 }
0x1026   : > { %p26_p10 = scmp.ge.s32.totalorder %s29_s15, 4   ;;  %s4450_s14 = smov %s4452_s0 }
0x1028   :  { %28 = sbr.rel (!%p26_p10) target bundleno = 17 (0x11), region = 122 }

// kernel: supertagger_forward.15
= control target key start
LH: loop header
LB: loop body
LE: loop exit
PB: predicated region body
PF: predicated region fallthrough
CT: control target
= control target key end

     0   :  { %s4350_s0 = inlined_call_operand.vmem [shape: s32[2], index: 0, kind: input, shape index: {}]   ;;  %s4351_s1 = inlined_call_operand.vmem [shape: f32[2,16,128], index: 1, kind: input, shape index: {}]   ;;  %s4352_s2 = inlined_call_operand.vmem [shape: bf16[4,128,32], index: 2, kind: input, shape index: {}]   ;;  %s4353_s3 = inlined_call_operand.vmem [shape: bf16[4,128,32], index: 3, kind: input, shape index: {}]   ;;  %s4354_s4 = inlined_call_operand.vmem [shape: bf16[4,128,32], index: 4, kind: input, shape index: {}]   ;;  %s4355_s5 = inlined_call_operand.vmem [shape: bf16[4,32,128], index: 5, kind: input, shape index: {}]   ;;  %s4356_s6 = inlined_call_operand.vmem [shape: f32[4,1,32], index: 6, kind: input, shape index: {}]   ;;  %s4357_s7 = inlined_call_operand.vmem [shape: f32[4,1,32], index: 7, kind: input, shape index: {}]   ;;  %s4358_s8 = inlined_call_operand.vmem [shape: f32[4,1,32], index: 8, kind: input, shape index: {}]   ;;  %s4359_s9 = inlined_call_operand.vmem [shape: f32[1,128], index: 9, kind: input, shape index: {}]   ;;  %s4360_s10 = inlined_call_operand.vmem [shape: f32[1,128], index: 10, kind: input, shape index: {}]   ;;  %s4361_s11 = inlined_call_operand.vmem [shape: f32[1,128], index: 11, kind: input, shape index: {}]   ;;  %s4362_s12 = inlined_call_operand.vmem [shape: f32[2,16,128], index: 12, kind: output, shape index: {}]  }
   0x1   :  { %s17_s23 = sshll.u32 %s4350_s0, 4  ;;  %s18_s23 = int_to_ptr.vmem [resolvable:$true] %s17_s23 }
   0x2   :  { %s3596_s24 = scalar_lea.vmem %s18_s23, 16  ;;  %p3601_p1 = scmp.lt.s32.totalorder %s18_s23, %s18_s23 }
   0x3   :  { %p3597_p0 = scmp.ne.s32.totalorder %s18_s23, %s3596_s24  ;;  %p3602_p2 = scmp.lt.s32.totalorder %s3596_s24, %s3596_s24 }
   0x5   :  { %p3603_p3 = por %p3602_p2, %p3601_p1 }
   0x7   :  { %p3604_p4 = pnand %p3603_p3, %p3597_p0 }
   0x9   :  { %3607 = shalt.err (!%p3604_p4)  }
   0xa   :  { %s3634_s25 = smov [#allocation3]  }
   0xb   :  { %20 = dma.vmem_to_smem %s18_s23, 16, %s3634_s25, [#allocation2] }
   0xc   :  { %3620 = dma.done.wait [#allocation2], 16 }
   0xd   :  { %3621 = vsyncadd [#allocation2], 4294967280 }
   0xe   :  { %22 = sfence }
   0xf   :  { %s3706_s26 = smov 0   ;;  %s3708_s27 = smov 0  }
  0x10   :  { %s3710_s28 = smov 0  }
  0x11 LB: > { %s40_s0 = sadd.s32 1, %s3628_s27  ;;  %p2665_p5 = scmp.ge.s32.totalorder %s3632_s28, 1  ;;  %s3632_s28 = sphi %s3710_s28, %s28_s28   ;;  %s3628_s27 = sphi %s3708_s27, %s4364_s27   ;;  %s3624_s26 = sphi %s3706_s26, %s4363_s26  }
  0x12   : > { %p42_p6 = scmp.ge.s32.totalorder %s40_s0, 2  ;;  %p358_p7 = scmp.lt.s32.totalorder %s3632_s28, 3 }
  0x14   : > { %s4366_s0 = smov (%p42_p6, %s40_s0), 0  ;;  %p359_p8 = pnand %p2665_p5, %p358_p7 }
  0x15   : > { %p402_p9 = scmp.lt.s32.totalorder (!%p359_p8), %s3624_s26, 1  ;;  %s422_s15 = sld [smem:[#allocation3 + %s3624_s26]] (!%p359_p8) }
  0x16   : > { %362 = sbr.rel (%p359_p8) target bundleno = 4133 (0x1025), region = 64 }
  0x1b   : > { %v3454_v0 = vld [vmem:[%s4353_s3 + $0x38] sm:$0xff]   ;;  %v3635_v1 = vmov 0.0   ;;  %v3456_v3 = vld [vmem:[%s4353_s3 + $0x30] sm:$0xff]   ;;  %vm3636_vm0 = vmmov 0   ;;  %v3458_v5 = vld [vmem:[%s4353_s3 + $0x28] sm:$0xff]   ;;  %s3764_s30 = scalar_select %p402_p9, %s3624_s26, 1  ;;  %v420_v47 = vlaneseq  ;;  %v423_v50 = vstv %s422_s15 }
  0x1c   : > { %3126 = vmatprep.subr.bf16.mxu1 %v3635_v1  ;;  %3106 = vmatprep.subr.bf16.mxu0 %v3635_v1  ;;  %v3455_v2 = vld [vmem:[%s4352_s2 + $0x38] sm:$0xff]   ;;  %v3457_v4 = vld [vmem:[%s4352_s2 + $0x30] sm:$0xff]   ;;  %v3459_v6 = vld [vmem:[%s4352_s2 + $0x28] sm:$0xff]   ;;  %vm775_vm1 = vcmask 261120   ;;  %v3637_v52 = vmov -1e+09  }
  0x1d   : > { %3127 = vmatpush3.bf16.msra.mxu1 %v3454_v0  ;;  %3142 = vmatprep.mubr.msk.bf16.mxu1 %vm3636_vm0, %v3635_v1  ;;  %v3460_v7 = vld [vmem:[%s4353_s3 + $0x20] sm:$0xff]   ;;  %v3462_v9 = vld [vmem:[%s4353_s3 + $0x18] sm:$0xff]   ;;  %v3464_v11 = vld [vmem:[%s4353_s3 + $0x10] sm:$0xff]   ;;  %s2968_s19 = sshll.u32 %s3764_s30, 4  ;;  %v421_v48 = vand.u32 127, %v420_v47  ;;  %v426_v49 = vshrl.u32 %v420_v47, 7 }
  0x1e   : > { %3107 = vmatpush3.bf16.msra.mxu0 %v3455_v2  ;;  %3128 = vmatprep.subr.bf16.mxu1 %v3635_v1  ;;  %v3461_v8 = vld [vmem:[%s4352_s2 + $0x20] sm:$0xff]   ;;  %v3463_v10 = vld [vmem:[%s4352_s2 + $0x18] sm:$0xff]   ;;  %v3465_v12 = vld [vmem:[%s4352_s2 + $0x10] sm:$0xff]   ;;  %s3794_s14 = scalar_lea.vmem %s4351_s1, %s2968_s19  ;;  %vm823_vm7 = vcmask 130048   ;;  %s415_s21 = scalar_lea.vmem %s4362_s12, %s2968_s19 }
  0x1f   : > { %3108 = vmatprep.subr.bf16.mxu0 %v3635_v1  ;;  %3122 = vmatprep.mubr.msk.bf16.mxu0 %vm3636_vm0, %v3635_v1  ;;  %v3466_v13 = vld [vmem:[%s4353_s3 + $0x8] sm:$0xff]   ;;  %v3468_v15 = vld [vmem:[%s4353_s3] sm:$0xff]   ;;  %v3470_v39 = vld [vmem:[%s4354_s4 + $0x38] sm:$0xff]   ;;  %vm424_vm2 = vcmp.lt.s32.totalorder %v421_v48, %v423_v50  ;;  %vm428_vm3 = vcmp.le.s32.totalorder %v421_v48, %v426_v49  ;;  %v427_v51 = vadd.s32 8, %v426_v49 }
  0x20   : > { %v3467_v14 = vld [vmem:[%s4352_s2 + $0x8] sm:$0xff]   ;;  %v418_v16 = vld [vmem:[%s3794_s14] sm:$0xff]  ;;  %v3471_v40 = vld [vmem:[%s4354_s4 + $0x30] sm:$0xff]  }
  0x21   : > { %3129 = vmatpush3.bf16.msra.mxu1 %v3456_v3  ;;  %v419_v17 = vld [vmem:[%s3794_s14 + $0x8] sm:$0xff]  ;;  %v3469_v18 = vld [vmem:[%s4352_s2] sm:$0xff]   ;;  %v3474_v43 = vld [vmem:[%s4354_s4 + $0x18] sm:$0xff]   ;;  %vm429_vm5 = vcmp.le.s32.totalorder %v421_v48, %v427_v51 }
  0x22   : > { %3109 = vmatpush3.bf16.msra.mxu0 %v3457_v4  ;;  %3130 = vmatprep.subr.bf16.mxu1 %v3635_v1  ;;  %v3808_v19 = vpack.c.bf16 %v419_v17, %v418_v16  ;;  %v2679_v22 = vld [vmem:[%s4357_s7] ss:$0 sm:$0xff]  ;;  %v3472_v41 = vld [vmem:[%s4354_s4 + $0x28] sm:$0xff]   ;;  %v3475_v44 = vld [vmem:[%s4354_s4 + $0x10] sm:$0xff]  }
  0x23   : > { %3110 = vmatprep.subr.bf16.mxu0 %v3635_v1  ;;  %v2670_v25 = vld [vmem:[%s4356_s6] ss:$0 sm:$0xff]  ;;  %v3476_v45 = vld [vmem:[%s4354_s4 + $0x8] sm:$0xff]   ;;  %vm430_vm4 = vmand %vm424_vm2, %vm428_vm3 }
  0x24   : > { %v3473_v42 = vld [vmem:[%s4354_s4 + $0x20] sm:$0xff]   ;;  %v3865_v53 = vsel %vm430_vm4, 0.0, %v3637_v52  ;;  %vm431_vm6 = vmand %vm424_vm2, %vm429_vm5  ;;  %v3499_v47 = vld [vmem:[%s4354_s4 + $0x50] sm:$0xff]  }
  0x25   : > { %3131 = vmatpush3.bf16.msra.mxu1 %v3458_v5  ;;  %v3477_v46 = vld [vmem:[%s4354_s4] sm:$0xff]   ;;  %v3868_v57 = vsel %vm431_vm6, 0.0, %v3637_v52  ;;  %v3500_v48 = vld [vmem:[%s4354_s4 + $0x48] sm:$0xff]  }
  0x26   : > { %3111 = vmatpush3.bf16.msra.mxu0 %v3459_v6  ;;  %3132 = vmatprep.subr.bf16.mxu1 %v3635_v1  ;;  %v3501_v49 = vld [vmem:[%s4354_s4 + $0x40] sm:$0xff]   ;;  %v3502_v50 = vld [vmem:[%s4355_s5 + $0x8] sm:$0xff]  }
  0x27   : > { %3112 = vmatprep.subr.bf16.mxu0 %v3635_v1  ;;  %v3503_v51 = vld [vmem:[%s4355_s5] sm:$0xff]  }
  0x28   : > { %v2742_v52 = vld [vmem:[%s4357_s7 + $0x1] ss:$0 sm:$0xff] }
  0x29   : > { %3133 = vmatpush3.bf16.msra.mxu1 %v3460_v7 }
  0x2a   : > { %3113 = vmatpush3.bf16.msra.mxu0 %v3461_v8  ;;  %3134 = vmatprep.subr.bf16.mxu1 %v3635_v1 }
  0x2b   : > { %3114 = vmatprep.subr.bf16.mxu0 %v3635_v1 }
  0x2d   : > { %3135 = vmatpush3.bf16.msra.mxu1 %v3462_v9 }
  0x2e   : > { %3115 = vmatpush3.bf16.msra.mxu0 %v3463_v10  ;;  %3136 = vmatprep.subr.bf16.mxu1 %v3635_v1  ;;  %v2688_v10 = vld [vmem:[%s4358_s8] ss:$0 sm:$0xff] }
  0x2f   : > { %3116 = vmatprep.subr.bf16.mxu0 %v3635_v1 }
  0x31   : > { %3137 = vmatpush3.bf16.msra.mxu1 %v3464_v11 }
  0x32   : > { %3117 = vmatpush3.bf16.msra.mxu0 %v3465_v12  ;;  %3138 = vmatprep.subr.bf16.mxu1 %v3635_v1 }
  0x33   : > { %3118 = vmatprep.subr.bf16.mxu0 %v3635_v1 }
  0x35   : > { %3139 = vmatpush3.bf16.msra.mxu1 %v3466_v13 }
  0x36   : > { %3119 = vmatpush3.bf16.msra.mxu0 %v3467_v14  ;;  %3140 = vmatprep.subr.bf16.mxu1 %v3635_v1 }
  0x37   : > { %3120 = vmatprep.subr.bf16.mxu0 %v3635_v1 }
  0x39   : > { %3141 = vmatpush3.bf16.msra.mxu1 %v3468_v15  ;;  %v3478_v15 = vld [vmem:[%s4353_s3 + $0x78] sm:$0xff]  }
  0x3a   : > { %3121 = vmatpush3.bf16.msra.mxu0 %v3469_v18  ;;  %3166 = vmatprep.subr.bf16.mxu1 %v3635_v1  ;;  %v3479_v18 = vld [vmem:[%s4353_s3 + $0x70] sm:$0xff]  }
  0x3b   : > { %3146 = vmatprep.subr.bf16.mxu0 %v3635_v1 }
  0x3c   : > { %3143 = vmatmul.mubr.bf16.vlgmr.msra.gmra.mxu1 %v3808_v19 }
  0x3d   : > { %3123 = vmatmul.mubr.bf16.vlgmr.msra.gmra.mxu0 %v3808_v19  ;;  %3168 = vmatprep.mubr.msk.bf16.mxu1 %vm3636_vm0, %v3635_v1 }
  0x3e   : > { %3162 = vmatprep.mubr.msk.bf16.mxu0 %vm3636_vm0, %v3635_v1  ;;  %3147 = vmatpush3.bf16.msra.mxu0 %v3470_v39  ;;  %v3491_v39 = vld [vmem:[%s4352_s2 + $0x50] sm:$0xff]  }
  0x3f   : > { %3148 = vmatprep.subr.bf16.mxu0 %v3635_v1 }
  0x42   : > { %3149 = vmatpush3.bf16.msra.mxu0 %v3471_v40  ;;  %v3492_v40 = vld [vmem:[%s4352_s2 + $0x48] sm:$0xff]  }
  0x43   : > { %3150 = vmatprep.subr.bf16.mxu0 %v3635_v1 }
  0x46   : > { %3151 = vmatpush3.bf16.msra.mxu0 %v3472_v41  ;;  %v3493_v41 = vld [vmem:[%s4352_s2 + $0x40] sm:$0xff]  }
  0x47   : > { %3152 = vmatprep.subr.bf16.mxu0 %v3635_v1 }
  0x4a   : > { %3153 = vmatpush3.bf16.msra.mxu0 %v3473_v42  ;;  %v3494_v42 = vld [vmem:[%s4354_s4 + $0x78] sm:$0xff]  }
  0x4b   : > { %3154 = vmatprep.subr.bf16.mxu0 %v3635_v1 }
  0x4e   : > { %3155 = vmatpush3.bf16.msra.mxu0 %v3474_v43  ;;  %v3495_v43 = vld [vmem:[%s4354_s4 + $0x70] sm:$0xff]  }
  0x4f   : > { %3156 = vmatprep.subr.bf16.mxu0 %v3635_v1 }
  0x52   : > { %3157 = vmatpush3.bf16.msra.mxu0 %v3475_v44  ;;  %v3496_v44 = vld [vmem:[%s4354_s4 + $0x68] sm:$0xff]  }
  0x53   : > { %3158 = vmatprep.subr.bf16.mxu0 %v3635_v1 }
  0x56   : > { %3159 = vmatpush3.bf16.msra.mxu0 %v3476_v45  ;;  %v3497_v45 = vld [vmem:[%s4354_s4 + $0x60] sm:$0xff]  }
  0x57   : > { %3160 = vmatprep.subr.bf16.mxu0 %v3635_v1 }
  0x5a   : > { %3161 = vmatpush3.bf16.msra.mxu0 %v3477_v46  ;;  %v3498_v46 = vld [vmem:[%s4354_s4 + $0x58] sm:$0xff]  }
  0x5b   : > { %3198 = vmatprep.subr.bf16.mxu0 %v3635_v1 }
  0x5d   : > { %3163 = vmatmul.mubr.bf16.vlgmr.msra.gmra.mxu0 %v3808_v19 }
  0x5e   : > { %3214 = vmatprep.mubr.msk.bf16.mxu0 %vm3636_vm0, %v3635_v1  ;;  %3199 = vmatpush3.bf16.msra.mxu0 %v3478_v15  ;;  %v2768_v15 = vld [vmem:[%s4358_s8 + $0x1] ss:$0 sm:$0xff] }
  0x5f   : > { %3200 = vmatprep.subr.bf16.mxu0 %v3635_v1 }
  0x62   : > { %3201 = vmatpush3.bf16.msra.mxu0 %v3479_v18 }
  0x63   : > { %3202 = vmatprep.subr.bf16.mxu0 %v3635_v1 }
  0xfc   : > { %v652_v20 = vpop.f32.mrf.mxu1 }
  0xfd   : > { %v540_v21 = vpop.f32.mrf.mxu0  ;;  %v653_v27 = vadd.f32 %v2679_v22, %v652_v20 }
  0xfe   : > { %v3144_v23 = vpop.f32.mrf.mxu1  ;;  %v541_v31 = vadd.f32 %v2670_v25, %v540_v21  ;;  %v3480_v21 = vld [vmem:[%s4353_s3 + $0x68] sm:$0xff]  }
  0xff   : > { %v3124_v24 = vpop.f32.mrf.mxu0  ;;  %3203 = vmatpush3.bf16.msra.mxu0 %v3480_v21  ;;  %v3484_v23 = vld [vmem:[%s4353_s3 + $0x58] sm:$0xff]  }
 0x100   : > { %v655_v26 = vpop.f32.mrf.mxu1  ;;  %v771_v36 = vmul.f32 0.17677669, %v541_v31  ;;  %3204 = vmatprep.subr.bf16.mxu0 %v3635_v1  ;;  %v3486_v24 = vld [vmem:[%s4353_s3 + $0x50] sm:$0xff]  }
 0x101   : > { %v656_v28 = vadd.f32 %v2679_v22, %v655_v26  ;;  %v543_v29 = vpop.f32.mrf.mxu0  ;;  %v3482_v22 = vld [vmem:[%s4353_s3 + $0x60] sm:$0xff]  }
 0x102   : > { %v3145_v30 = vpop.f32.mrf.mxu1  ;;  %v544_v33 = vadd.f32 %v2670_v25, %v543_v29  ;;  %v3488_v25 = vld [vmem:[%s4353_s3 + $0x48] sm:$0xff]   ;;  %v3490_v26 = vld [vmem:[%s4353_s3 + $0x40] sm:$0xff]  }
 0x103   : > { %v774_v32 = vpack.c.bf16 %v656_v28, %v653_v27  ;;  %v3125_v34 = vpop.f32.mrf.mxu0  ;;  %3205 = vmatpush3.bf16.msra.mxu0 %v3482_v22 }
 0x104   : > { %v772_v37 = vmul.f32 0.17677669, %v544_v33  ;;  %3206 = vmatprep.subr.bf16.mxu0 %v3635_v1  ;;  %v3481_v33 = vld [vmem:[%s4352_s2 + $0x78] sm:$0xff]  }
 0x105   : > { %v780_v35 = vsel %vm775_vm1, %v774_v32, 0 }
 0x106   : > { %3167 = vmatpush3.bf16.xpose.msra.mxu1 %v780_v35  ;;  %v773_v38 = vpack.c.bf16 %v772_v37, %v771_v36  ;;  %v3483_v35 = vld [vmem:[%s4352_s2 + $0x70] sm:$0xff]   ;;  %v3485_v36 = vld [vmem:[%s4352_s2 + $0x68] sm:$0xff]   ;;  %v3487_v37 = vld [vmem:[%s4352_s2 + $0x60] sm:$0xff]  }
 0x107   : > { %3172 = vmatprep.subr.bf16.mxu1 %v3635_v1  ;;  %3207 = vmatpush3.bf16.msra.mxu0 %v3484_v23 }
 0x108   : > { %3208 = vmatprep.subr.bf16.mxu0 %v3635_v1 }
 0x10b   : > { %3209 = vmatpush3.bf16.msra.mxu0 %v3486_v24 }
 0x10c   : > { %3210 = vmatprep.subr.bf16.mxu0 %v3635_v1 }
 0x10d   : > { %3169 = vmatmul.mubr.msk.bf16.vlgmr.msra.gmra.mxu1 %vm775_vm1, %v773_v38  ;;  %v3489_v38 = vld [vmem:[%s4352_s2 + $0x58] sm:$0xff]  }
 0x10e   : > { %3174 = vmatprep.mubr.msk.bf16.mxu1 %vm3636_vm0, %v3635_v1 }
 0x10f   : > { %3211 = vmatpush3.bf16.msra.mxu0 %v3488_v25 }
 0x110   : > { %3212 = vmatprep.subr.bf16.mxu0 %v3635_v1 }
 0x113   : > { %3213 = vmatpush3.bf16.msra.mxu0 %v3490_v26 }
 0x114   : > { %3238 = vmatprep.subr.bf16.mxu0 %v3635_v1 }
 0x116   : > { %3215 = vmatmul.mubr.bf16.vlgmr.msra.gmra.mxu0 %v3808_v19 }
 0x117   : > { %3240 = vmatprep.mubr.msk.bf16.mxu0 %vm3636_vm0, %v3635_v1 }
 0x11d   : > { %v764_v11 = vpop.f32.mrf.mxu0 }
 0x11e   : > { %v765_v13 = vadd.f32 %v2688_v10, %v764_v11 }
 0x11f   : > { %v3164_v12 = vpop.f32.mrf.mxu0 }
 0x121   : > { %v767_v14 = vpop.f32.mrf.mxu0 }
 0x122   : > { %v768_v16 = vadd.f32 %v2688_v10, %v767_v14 }
 0x123   : > { %v3165_v17 = vpop.f32.mrf.mxu0 }
 0x124   : > { %v847_v20 = vpack.c.bf16 %v768_v16, %v765_v13 }
 0x126   : > { %3173 = vmatpush3.bf16.msra.mxu1 %v847_v20 }
 0x127   : > { %3178 = vmatprep.subr.bf16.mxu1 %v3635_v1 }
 0x1cd   : > { %v816_v54 = vpop.f32.mrf.mxu1 }
 0x1ce   : > { %v817_v55 = vadd.f32 %v816_v54, %v3865_v53 }
 0x1cf   : > { %v3170_v56 = vpop.f32.mrf.mxu1 }
 0x1d0   : > { %v824_v58 = vsel %vm823_vm7, %v817_v55, -inf }
 0x1d1   : > { %825 = vmax.xlane.f32.xlu0 %v824_v58  ;;  %v819_v59 = vpop.f32.mrf.mxu1 }
 0x1d2   : > { %v820_v60 = vadd.f32 %v819_v59, %v3868_v57 }
 0x1d3   : > { %v3171_v61 = vpop.f32.mrf.mxu1 }
 0x1d4   : > { %v827_v62 = vsel %vm823_vm7, %v820_v60, -inf }
 0x1d5   : > { %828 = vmax.xlane.f32.xlu0 %v827_v62 }
 0x1d6   : > { %v1118_v54 = vpop.f32.mrf.mxu0 }
 0x1d7   : > { %v1119_v56 = vadd.f32 %v2742_v52, %v1118_v54 }
 0x25a   : > { %v826_v63 = vpop.xlane.xlu0 %825 }
 0x25b   : > { %v830_v0 = vsub.f32 %v817_v55, %v826_v63  ;;  %v3216_v55 = vpop.f32.mrf.mxu0 }
 0x25c   : > { %v3505_v55 = vld [vmem:[%s4355_s5 + $0x18] sm:$0xff]  }
 0x25d   : > { %v832_v2 = vmul.f32 1.442695, %v830_v0  ;;  %v1121_v58 = vpop.f32.mrf.mxu0 }
 0x25e   : > { %v829_v3 = vpop.xlane.xlu0 %828  ;;  %v1122_v59 = vadd.f32 %v2742_v52, %v1121_v58  ;;  %v3507_v58 = vld [vmem:[%s4355_s5 + $0x10] sm:$0xff]  }
 0x25f   : > { %3558 = vpow2.f32 %v832_v2  ;;  %v831_v4 = vsub.f32 %v820_v60, %v829_v3  ;;  %v3217_v60 = vpop.f32.mrf.mxu0 }
 0x260   : > { %v1242_v61 = vpack.c.bf16 %v1122_v59, %v1119_v56  ;;  %v3508_v59 = vld [vmem:[%s4353_s3 + $0xa8] sm:$0xff]   ;;  %v3510_v60 = vld [vmem:[%s4353_s3 + $0xa0] sm:$0xff]  }
 0x261   : > { %v834_v5 = vmul.f32 1.442695, %v831_v4 }
 0x262   : > { %v1247_v62 = vsel %vm775_vm1, %v1242_v61, 0  ;;  %v3512_v61 = vld [vmem:[%s4353_s3 + $0x98] sm:$0xff]  }
 0x263   : > { %3560 = vpow2.f32 %v834_v5  ;;  %3239 = vmatpush3.bf16.xpose.msra.mxu0 %v1247_v62  ;;  %v2716_v5 = vld [vmem:[%s4356_s6 + $0x1] ss:$0 sm:$0xff]  ;;  %v3514_v62 = vld [vmem:[%s4353_s3 + $0x90] sm:$0xff]  }
 0x264   : > { %3244 = vmatprep.subr.bf16.mxu0 %v3635_v1 }
 0x26c   : > { %v3559_v6 = vpop.eup %3558 }
 0x26d   : > { %v836_v7 = vsel %vm823_vm7, %v3559_v6, 0.0 }
 0x26e   : > { %837 = vadd.xlane.f32.xlu1 %v836_v7 }
 0x270   : > { %v3561_v8 = vpop.eup %3560 }
 0x271   : > { %v839_v9 = vsel %vm823_vm7, %v3561_v8, 0.0 }
 0x272   : > { %840 = vadd.xlane.f32.xlu1 %v839_v9 }
 0x2f7   : > { %v838_v27 = vpop.xlane.xlu1 %837 }
 0x2f8   : > { %3562 = vrcp.f32 %v838_v27 }
 0x2fb   : > { %v841_v28 = vpop.xlane.xlu1 %840 }
 0x2fc   : > { %3564 = vrcp.f32 %v841_v28 }
 0x305   : > { %v3563_v29 = vpop.eup %3562 }
 0x306   : > { %v844_v31 = vmul.f32 %v3563_v29, %v3559_v6 }
 0x309   : > { %v3565_v30 = vpop.eup %3564 }
 0x30a   : > { %v845_v32 = vmul.f32 %v3565_v30, %v3561_v8 }
 0x30c   : > { %v846_v34 = vpack.c.bf16 %v845_v32, %v844_v31 }
 0x30e   : > { %3175 = vmatmul.mubr.msk.bf16.vlgmr.msra.gmra.mxu1 %vm823_vm7, %v846_v34 }
 0x30f   : > { %3179 = vmatpush3.bf16.msra.mxu1 %v3481_v33  ;;  %3194 = vmatprep.mubr.msk.bf16.mxu1 %vm3636_vm0, %v3635_v1 }
 0x310   : > { %3180 = vmatprep.subr.bf16.mxu1 %v3635_v1 }
 0x313   : > { %3181 = vmatpush3.bf16.msra.mxu1 %v3483_v35 }
 0x314   : > { %3182 = vmatprep.subr.bf16.mxu1 %v3635_v1 }
 0x317   : > { %3183 = vmatpush3.bf16.msra.mxu1 %v3485_v36 }
 0x318   : > { %3184 = vmatprep.subr.bf16.mxu1 %v3635_v1 }
 0x31b   : > { %3185 = vmatpush3.bf16.msra.mxu1 %v3487_v37 }
 0x31c   : > { %3186 = vmatprep.subr.bf16.mxu1 %v3635_v1 }
 0x31f   : > { %3187 = vmatpush3.bf16.msra.mxu1 %v3489_v38 }
 0x320   : > { %3188 = vmatprep.subr.bf16.mxu1 %v3635_v1 }
 0x323   : > { %3189 = vmatpush3.bf16.msra.mxu1 %v3491_v39 }
 0x324   : > { %3190 = vmatprep.subr.bf16.mxu1 %v3635_v1 }
 0x327   : > { %3191 = vmatpush3.bf16.msra.mxu1 %v3492_v40 }
 0x328   : > { %3192 = vmatprep.subr.bf16.mxu1 %v3635_v1 }
 0x32b   : > { %3193 = vmatpush3.bf16.msra.mxu1 %v3493_v41 }
 0x32c   : > { %3218 = vmatprep.subr.bf16.mxu1 %v3635_v1 }
 0x32e   : > { %3195 = vmatmul.mubr.bf16.vlgmr.msra.gmra.mxu1 %v3808_v19 }
 0x32f   : > { %3219 = vmatpush3.bf16.msra.mxu1 %v3494_v42  ;;  %3234 = vmatprep.mubr.msk.bf16.mxu1 %vm3636_vm0, %v3635_v1 }
 0x330   : > { %3220 = vmatprep.subr.bf16.mxu1 %v3635_v1 }
 0x333   : > { %3221 = vmatpush3.bf16.msra.mxu1 %v3495_v43 }
 0x334   : > { %3222 = vmatprep.subr.bf16.mxu1 %v3635_v1 }
 0x337   : > { %3223 = vmatpush3.bf16.msra.mxu1 %v3496_v44 }
 0x338   : > { %3224 = vmatprep.subr.bf16.mxu1 %v3635_v1 }
 0x33b   : > { %3225 = vmatpush3.bf16.msra.mxu1 %v3497_v45 }
 0x33c   : > { %3226 = vmatprep.subr.bf16.mxu1 %v3635_v1 }
 0x33f   : > { %3227 = vmatpush3.bf16.msra.mxu1 %v3498_v46  ;;  %v3504_v46 = vld [vmem:[%s4353_s3 + $0xb8] sm:$0xff]  }
 0x340   : > { %3228 = vmatprep.subr.bf16.mxu1 %v3635_v1 }
 0x343   : > { %3229 = vmatpush3.bf16.msra.mxu1 %v3499_v47  ;;  %v3506_v47 = vld [vmem:[%s4353_s3 + $0xb0] sm:$0xff]  }
 0x344   : > { %3230 = vmatprep.subr.bf16.mxu1 %v3635_v1 }
 0x347   : > { %3231 = vmatpush3.bf16.msra.mxu1 %v3500_v48 }
 0x348   : > { %3232 = vmatprep.subr.bf16.mxu1 %v3635_v1 }
 0x34b   : > { %3233 = vmatpush3.bf16.msra.mxu1 %v3501_v49 }
 0x34c   : > { %3258 = vmatprep.subr.bf16.mxu1 %v3635_v1 }
 0x34e   : > { %3235 = vmatmul.mubr.bf16.vlgmr.msra.gmra.mxu1 %v3808_v19 }
 0x34f   : > { %3259 = vmatpush3.bf16.msra.mxu1 %v3502_v50  ;;  %3262 = vmatprep.mubr.msk.bf16.mxu1 %vm3636_vm0, %v3635_v1 }
 0x350   : > { %3260 = vmatprep.subr.bf16.mxu1 %v3635_v1 }
 0x353   : > { %3261 = vmatpush3.bf16.msra.mxu1 %v3503_v51 }
 0x354   : > { %3286 = vmatprep.subr.bf16.mxu1 %v3635_v1 }
 0x3ce   : > { %v885_v63 = vpop.f32.mrf.mxu1 }
 0x3d0   : > { %v3176_v0 = vpop.f32.mrf.mxu1 }
 0x3d1   : > { %v3518_v0 = vld [vmem:[%s4353_s3 + $0x80] sm:$0xff]  }
 0x3d2   : > { %v888_v2 = vpop.f32.mrf.mxu1 }
 0x3d3   : > { %v892_v3 = vpack.c.bf16 %v888_v2, %v885_v63  ;;  %v3516_v63 = vld [vmem:[%s4353_s3 + $0x88] sm:$0xff]  }
 0x3d4   : > { %v3177_v4 = vpop.f32.mrf.mxu1 }
 0x3d5   : > { %3263 = vmatmul.mubr.msk.bf16.vlgmr.msra.gmra.mxu1 %vm775_vm1, %v892_v3 }
 0x3d6   : > { %3302 = vmatprep.mubr.msk.bf16.mxu1 %vm3636_vm0, %v3635_v1  ;;  %3287 = vmatpush3.bf16.msra.mxu1 %v3504_v46  ;;  %v3527_v46 = vld [vmem:[%s4354_s4 + $0x90] sm:$0xff]  }
 0x3d7   : > { %3288 = vmatprep.subr.bf16.mxu1 %v3635_v1 }
 0x3da   : > { %3289 = vmatpush3.bf16.msra.mxu1 %v3506_v47  ;;  %v3528_v47 = vld [vmem:[%s4354_s4 + $0x88] sm:$0xff]  }
 0x3db   : > { %3290 = vmatprep.subr.bf16.mxu1 %v3635_v1 }
 0x3de   : > { %3291 = vmatpush3.bf16.msra.mxu1 %v3508_v59 }
 0x3df   : > { %3292 = vmatprep.subr.bf16.mxu1 %v3635_v1 }
 0x3e2   : > { %3293 = vmatpush3.bf16.msra.mxu1 %v3510_v60 }
 0x3e3   : > { %3294 = vmatprep.subr.bf16.mxu1 %v3635_v1 }
 0x3e6   : > { %3295 = vmatpush3.bf16.msra.mxu1 %v3512_v61 }
 0x3e7   : > { %3296 = vmatprep.subr.bf16.mxu1 %v3635_v1 }
 0x3ea   : > { %3297 = vmatpush3.bf16.msra.mxu1 %v3514_v62 }
 0x3eb   : > { %3298 = vmatprep.subr.bf16.mxu1 %v3635_v1 }
 0x3ee   : > { %v1004_v6 = vpop.f32.mrf.mxu1  ;;  %3299 = vmatpush3.bf16.msra.mxu1 %v3516_v63 }
 0x3ef   : > { %v1005_v8 = vadd.f32 %v2716_v5, %v1004_v6  ;;  %3300 = vmatprep.subr.bf16.mxu1 %v3635_v1 }
 0x3f0   : > { %v3196_v7 = vpop.f32.mrf.mxu1 }
 0x3f1   : > { %v1239_v12 = vmul.f32 0.17677669, %v1005_v8  ;;  %v3511_v8 = vld [vmem:[%s4352_s2 + $0xb0] sm:$0xff]  }
 0x3f2   : > { %v1007_v9 = vpop.f32.mrf.mxu1  ;;  %3301 = vmatpush3.bf16.msra.mxu1 %v3518_v0 }
 0x3f3   : > { %v1008_v10 = vadd.f32 %v2716_v5, %v1007_v9  ;;  %3326 = vmatprep.subr.bf16.mxu1 %v3635_v1  ;;  %v3509_v5 = vld [vmem:[%s4352_s2 + $0xb8] sm:$0xff]   ;;  %v3513_v9 = vld [vmem:[%s4352_s2 + $0xa8] sm:$0xff]  }
 0x3f4   : > { %v3197_v11 = vpop.f32.mrf.mxu1 }
 0x3f5   : > { %v1240_v13 = vmul.f32 0.17677669, %v1008_v10  ;;  %3303 = vmatmul.mubr.bf16.vlgmr.msra.gmra.mxu1 %v3808_v19  ;;  %v3515_v10 = vld [vmem:[%s4352_s2 + $0xa0] sm:$0xff]   ;;  %v3517_v11 = vld [vmem:[%s4352_s2 + $0x98] sm:$0xff]  }
 0x3f6   : > { %3328 = vmatprep.mubr.msk.bf16.mxu1 %vm3636_vm0, %v3635_v1 }
 0x3f7   : > { %v1241_v14 = vpack.c.bf16 %v1240_v13, %v1239_v12  ;;  %v3519_v12 = vld [vmem:[%s4352_s2 + $0x90] sm:$0xff]   ;;  %v3520_v13 = vld [vmem:[%s4352_s2 + $0x88] sm:$0xff]  }
 0x3f9   : > { %3241 = vmatmul.mubr.msk.bf16.vlgmr.msra.gmra.mxu0 %vm775_vm1, %v1241_v14  ;;  %v3521_v14 = vld [vmem:[%s4352_s2 + $0x80] sm:$0xff]  }
 0x3fa   : > { %3246 = vmatprep.mubr.msk.bf16.mxu0 %vm3636_vm0, %v3635_v1 }
 0x40e   : > { %v1232_v16 = vpop.f32.mrf.mxu1 }
 0x40f   : > { %v1233_v18 = vadd.f32 %v2768_v15, %v1232_v16 }
 0x410   : > { %v3236_v17 = vpop.f32.mrf.mxu1 }
 0x412   : > { %v1235_v20 = vpop.f32.mrf.mxu1 }
 0x413   : > { %v1236_v21 = vadd.f32 %v2768_v15, %v1235_v20  ;;  %v2832_v15 = vld [vmem:[%s4357_s7 + $0x2] ss:$0 sm:$0xff] }
 0x414   : > { %v3237_v22 = vpop.f32.mrf.mxu1 }
 0x415   : > { %v1313_v23 = vpack.c.bf16 %v1236_v21, %v1233_v18 }
 0x417   : > { %3245 = vmatpush3.bf16.msra.mxu0 %v1313_v23 }
 0x418   : > { %3250 = vmatprep.subr.bf16.mxu0 %v3635_v1 }
 0x495   : > { %v4013_v24 = vpop.f32.mrf.mxu1 }
 0x497   : > { %v3264_v25 = vpop.f32.mrf.mxu1 }
 0x499   : > { %v4015_v26 = vpop.f32.mrf.mxu1 }
 0x49b   : > { %v3265_v27 = vpop.f32.mrf.mxu1 }
 0x4b5   : > { %v1697_v16 = vpop.f32.mrf.mxu1 }
 0x4b6   : > { %v1698_v18 = vadd.f32 %v2832_v15, %v1697_v16 }
 0x4b7   : > { %v3304_v17 = vpop.f32.mrf.mxu1 }
 0x4b9   : > { %v1283_v28 = vpop.f32.mrf.mxu0  ;;  %v1700_v20 = vpop.f32.mrf.mxu1 }
 0x4ba   : > { %v1284_v29 = vadd.f32 %v1283_v28, %v3865_v53  ;;  %v1701_v21 = vadd.f32 %v2832_v15, %v1700_v20  ;;  %v3532_v15 = vld [vmem:[%s4353_s3 + $0xf0] sm:$0xff]  }
 0x4bb   : > { %v3242_v30 = vpop.f32.mrf.mxu0  ;;  %v3305_v22 = vpop.f32.mrf.mxu1 }
 0x4bc   : > { %v1290_v31 = vsel %vm823_vm7, %v1284_v29, -inf  ;;  %v1821_v23 = vpack.c.bf16 %v1701_v21, %v1698_v18 }
 0x4bd   : > { %1291 = vmax.xlane.f32.xlu0 %v1290_v31  ;;  %v1286_v32 = vpop.f32.mrf.mxu0  ;;  %v2806_v31 = vld [vmem:[%s4356_s6 + $0x2] ss:$0 sm:$0xff] }
 0x4be   : > { %v1287_v33 = vadd.f32 %v1286_v32, %v3868_v57  ;;  %v1826_v25 = vsel %vm775_vm1, %v1821_v23, 0  ;;  %v3531_v23 = vld [vmem:[%s4355_s5 + $0x28] sm:$0xff]  }
 0x4bf   : > { %v3243_v34 = vpop.f32.mrf.mxu0  ;;  %3327 = vmatpush3.bf16.xpose.msra.mxu1 %v1826_v25 }
 0x4c0   : > { %v1293_v35 = vsel %vm823_vm7, %v1287_v33, -inf  ;;  %3332 = vmatprep.subr.bf16.mxu1 %v3635_v1 }
 0x4c1   : > { %1294 = vmax.xlane.f32.xlu1 %v1293_v35 }
 0x546   : > { %v1292_v36 = vpop.xlane.xlu0 %1291 }
 0x547   : > { %v1296_v37 = vsub.f32 %v1284_v29, %v1292_v36 }
 0x549   : > { %v1298_v38 = vmul.f32 1.442695, %v1296_v37 }
 0x54a   : > { %v1295_v39 = vpop.xlane.xlu1 %1294 }
 0x54b   : > { %3566 = vpow2.f32 %v1298_v38  ;;  %v1297_v40 = vsub.f32 %v1287_v33, %v1295_v39 }
 0x54d   : > { %v1300_v41 = vmul.f32 1.442695, %v1297_v40 }
 0x54f   : > { %3568 = vpow2.f32 %v1300_v41  ;;  %v3522_v41 = vld [vmem:[%s4354_s4 + $0xb8] sm:$0xff]  }
 0x558   : > { %v3567_v42 = vpop.eup %3566 }
 0x559   : > { %v1302_v43 = vsel %vm823_vm7, %v3567_v42, 0.0 }
 0x55a   : > { %1303 = vadd.xlane.f32.xlu0 %v1302_v43  ;;  %v3524_v43 = vld [vmem:[%s4354_s4 + $0xa8] sm:$0xff]  }
 0x55c   : > { %v3569_v44 = vpop.eup %3568 }
 0x55d   : > { %v1305_v45 = vsel %vm823_vm7, %v3569_v44, 0.0 }
 0x55e   : > { %1306 = vadd.xlane.f32.xlu1 %v1305_v45  ;;  %v3526_v45 = vld [vmem:[%s4354_s4 + $0x98] sm:$0xff]  }
 0x5e3   : > { %v1304_v48 = vpop.xlane.xlu0 %1303 }
 0x5e4   : > { %3570 = vrcp.f32 %v1304_v48  ;;  %v3529_v48 = vld [vmem:[%s4354_s4 + $0x80] sm:$0xff]  }
 0x5e7   : > { %v1307_v49 = vpop.xlane.xlu1 %1306 }
 0x5e8   : > { %3572 = vrcp.f32 %v1307_v49 }
 0x5f1   : > { %v3571_v50 = vpop.eup %3570 }
 0x5f2   : > { %v1310_v52 = vmul.f32 %v3571_v50, %v3567_v42  ;;  %v3523_v42 = vld [vmem:[%s4354_s4 + $0xb0] sm:$0xff]  }
 0x5f5   : > { %v3573_v51 = vpop.eup %3572 }
 0x5f6   : > { %v1311_v54 = vmul.f32 %v3573_v51, %v3569_v44  ;;  %v3525_v44 = vld [vmem:[%s4354_s4 + $0xa0] sm:$0xff]  }
 0x5f8   : > { %v1312_v56 = vpack.c.bf16 %v1311_v54, %v1310_v52 }
 0x5fa   : > { %3247 = vmatmul.mubr.msk.bf16.vlgmr.msra.gmra.mxu0 %vm823_vm7, %v1312_v56 }
 0x5fb   : > { %3251 = vmatpush3.bf16.msra.mxu0 %v3505_v55  ;;  %3254 = vmatprep.mubr.msk.bf16.mxu0 %vm3636_vm0, %v3635_v1 }
 0x5fc   : > { %3252 = vmatprep.subr.bf16.mxu0 %v3635_v1 }
 0x5ff   : > { %3253 = vmatpush3.bf16.msra.mxu0 %v3507_v58 }
 0x600   : > { %3266 = vmatprep.subr.bf16.mxu0 %v3635_v1 }
 0x6ba   : > { %v1351_v2 = vpop.f32.mrf.mxu0 }
 0x6bc   : > { %v3248_v3 = vpop.f32.mrf.mxu0 }
 0x6be   : > { %v1354_v4 = vpop.f32.mrf.mxu0 }
 0x6bf   : > { %v1358_v6 = vpack.c.bf16 %v1354_v4, %v1351_v2 }
 0x6c0   : > { %v3249_v7 = vpop.f32.mrf.mxu0 }
 0x6c1   : > { %3255 = vmatmul.mubr.msk.bf16.vlgmr.msra.gmra.mxu0 %vm775_vm1, %v1358_v6  ;;  %v2858_v6 = vld [vmem:[%s4358_s8 + $0x2] ss:$0 sm:$0xff] }
 0x6c2   : > { %3267 = vmatpush3.bf16.msra.mxu0 %v3509_v5  ;;  %3282 = vmatprep.mubr.msk.bf16.mxu0 %vm3636_vm0, %v3635_v1 }
 0x6c3   : > { %3268 = vmatprep.subr.bf16.mxu0 %v3635_v1 }
 0x6c6   : > { %3269 = vmatpush3.bf16.msra.mxu0 %v3511_v8 }
 0x6c7   : > { %3270 = vmatprep.subr.bf16.mxu0 %v3635_v1 }
 0x6ca   : > { %3271 = vmatpush3.bf16.msra.mxu0 %v3513_v9 }
 0x6cb   : > { %3272 = vmatprep.subr.bf16.mxu0 %v3635_v1 }
 0x6ce   : > { %3273 = vmatpush3.bf16.msra.mxu0 %v3515_v10 }
 0x6cf   : > { %3274 = vmatprep.subr.bf16.mxu0 %v3635_v1 }
 0x6d2   : > { %3275 = vmatpush3.bf16.msra.mxu0 %v3517_v11 }
 0x6d3   : > { %3276 = vmatprep.subr.bf16.mxu0 %v3635_v1 }
 0x6d6   : > { %3277 = vmatpush3.bf16.msra.mxu0 %v3519_v12 }
 0x6d7   : > { %3278 = vmatprep.subr.bf16.mxu0 %v3635_v1 }
 0x6da   : > { %3279 = vmatpush3.bf16.msra.mxu0 %v3520_v13 }
 0x6db   : > { %3280 = vmatprep.subr.bf16.mxu0 %v3635_v1 }
 0x6de   : > { %3281 = vmatpush3.bf16.msra.mxu0 %v3521_v14  ;;  %v3530_v14 = vld [vmem:[%s4353_s3 + $0xf8] sm:$0xff]  }
 0x6df   : > { %3306 = vmatprep.subr.bf16.mxu0 %v3635_v1 }
 0x6e1   : > { %3283 = vmatmul.mubr.bf16.vlgmr.msra.gmra.mxu0 %v3808_v19 }
 0x6e2   : > { %3322 = vmatprep.mubr.msk.bf16.mxu0 %vm3636_vm0, %v3635_v1  ;;  %3307 = vmatpush3.bf16.msra.mxu0 %v3522_v41 }
 0x6e3   : > { %3308 = vmatprep.subr.bf16.mxu0 %v3635_v1 }
 0x6e6   : > { %3309 = vmatpush3.bf16.msra.mxu0 %v3523_v42  ;;  %v3537_v42 = vld [vmem:[%s4352_s2 + $0xf0] sm:$0xff]  }
 0x6e7   : > { %3310 = vmatprep.subr.bf16.mxu0 %v3635_v1 }
 0x6ea   : > { %3311 = vmatpush3.bf16.msra.mxu0 %v3524_v43  ;;  %v3539_v43 = vld [vmem:[%s4352_s2 + $0xe8] sm:$0xff]  }
 0x6eb   : > { %3312 = vmatprep.subr.bf16.mxu0 %v3635_v1 }
 0x6ee   : > { %3313 = vmatpush3.bf16.msra.mxu0 %v3525_v44  ;;  %v3541_v44 = vld [vmem:[%s4352_s2 + $0xe0] sm:$0xff]  }
 0x6ef   : > { %3314 = vmatprep.subr.bf16.mxu0 %v3635_v1 }
 0x6f2   : > { %3315 = vmatpush3.bf16.msra.mxu0 %v3526_v45  ;;  %v3543_v45 = vld [vmem:[%s4352_s2 + $0xd8] sm:$0xff]  }
 0x6f3   : > { %3316 = vmatprep.subr.bf16.mxu0 %v3635_v1 }
 0x6f6   : > { %3317 = vmatpush3.bf16.msra.mxu0 %v3527_v46  ;;  %v3545_v46 = vld [vmem:[%s4352_s2 + $0xd0] sm:$0xff]  }
 0x6f7   : > { %3318 = vmatprep.subr.bf16.mxu0 %v3635_v1 }
 0x6fa   : > { %3319 = vmatpush3.bf16.msra.mxu0 %v3528_v47  ;;  %v3546_v47 = vld [vmem:[%s4352_s2 + $0xc8] sm:$0xff]  }
 0x6fb   : > { %3320 = vmatprep.subr.bf16.mxu0 %v3635_v1 }
 0x6fe   : > { %3321 = vmatpush3.bf16.msra.mxu0 %v3529_v48  ;;  %v3547_v48 = vld [vmem:[%s4352_s2 + $0xc0] sm:$0xff]  }
 0x6ff   : > { %3366 = vmatprep.subr.bf16.mxu0 %v3635_v1 }
 0x701   : > { %3323 = vmatmul.mubr.bf16.vlgmr.msra.gmra.mxu0 %v3808_v19 }
 0x702   : > { %3382 = vmatprep.mubr.msk.bf16.mxu0 %vm3636_vm0, %v3635_v1  ;;  %3367 = vmatpush3.bf16.msra.mxu0 %v3530_v14  ;;  %v3551_v14 = vld [vmem:[%s4354_s4 + $0xe0] sm:$0xff]  }
 0x703   : > { %3368 = vmatprep.subr.bf16.mxu0 %v3635_v1 }
 0x706   : > { %3369 = vmatpush3.bf16.msra.mxu0 %v3532_v15  ;;  %v3552_v15 = vld [vmem:[%s4354_s4 + $0xd8] sm:$0xff]  }
 0x707   : > { %3370 = vmatprep.subr.bf16.mxu0 %v3635_v1 }
 0x781   : > { %v4112_v27 = vpop.f32.mrf.mxu0 }
 0x783   : > { %v3256_v28 = vpop.f32.mrf.mxu0 }
 0x784   : > { %v3533_v28 = vld [vmem:[%s4355_s5 + $0x20] sm:$0xff]  }
 0x785   : > { %v4114_v29 = vpop.f32.mrf.mxu0 }
 0x787   : > { %v3257_v30 = vpop.f32.mrf.mxu0 }
 0x788   : > { %v3534_v30 = vld [vmem:[%s4353_s3 + $0xe8] sm:$0xff]  }
 0x789   : > { %3371 = vmatpush3.bf16.msra.mxu0 %v3534_v30 }
 0x78a   : > { %3372 = vmatprep.subr.bf16.mxu0 %v3635_v1 }
 0x7a1   : > { %v1583_v32 = vpop.f32.mrf.mxu0 }
 0x7a2   : > { %v1584_v34 = vadd.f32 %v2806_v31, %v1583_v32  ;;  %v3538_v32 = vld [vmem:[%s4353_s3 + $0xd8] sm:$0xff]  }
 0x7a3   : > { %v3284_v33 = vpop.f32.mrf.mxu0 }
 0x7a4   : > { %v1818_v38 = vmul.f32 0.17677669, %v1584_v34  ;;  %v3540_v33 = vld [vmem:[%s4353_s3 + $0xd0] sm:$0xff]   ;;  %v3542_v34 = vld [vmem:[%s4353_s3 + $0xc8] sm:$0xff]  }
 0x7a5   : > { %v1586_v35 = vpop.f32.mrf.mxu0 }
 0x7a6   : > { %v1587_v36 = vadd.f32 %v2806_v31, %v1586_v35  ;;  %v3536_v31 = vld [vmem:[%s4353_s3 + $0xe0] sm:$0xff]  }
 0x7a7   : > { %v3285_v37 = vpop.f32.mrf.mxu0  ;;  %3373 = vmatpush3.bf16.msra.mxu0 %v3536_v31  ;;  %v3544_v35 = vld [vmem:[%s4353_s3 + $0xc0] sm:$0xff]  }
 0x7a8   : > { %v1819_v39 = vmul.f32 0.17677669, %v1587_v36  ;;  %3374 = vmatprep.subr.bf16.mxu0 %v3635_v1 }
 0x7aa   : > { %v1820_v40 = vpack.c.bf16 %v1819_v39, %v1818_v38  ;;  %v3535_v39 = vld [vmem:[%s4352_s2 + $0xf8] sm:$0xff]  }
 0x7ab   : > { %3375 = vmatpush3.bf16.msra.mxu0 %v3538_v32 }
 0x7ac   : > { %3329 = vmatmul.mubr.msk.bf16.vlgmr.msra.gmra.mxu1 %vm775_vm1, %v1820_v40  ;;  %3376 = vmatprep.subr.bf16.mxu0 %v3635_v1 }
 0x7ad   : > { %3334 = vmatprep.mubr.msk.bf16.mxu1 %vm3636_vm0, %v3635_v1 }
 0x7af   : > { %3377 = vmatpush3.bf16.msra.mxu0 %v3540_v33 }
 0x7b0   : > { %3378 = vmatprep.subr.bf16.mxu0 %v3635_v1 }
 0x7b3   : > { %3379 = vmatpush3.bf16.msra.mxu0 %v3542_v34 }
 0x7b4   : > { %3380 = vmatprep.subr.bf16.mxu0 %v3635_v1 }
 0x7b7   : > { %3381 = vmatpush3.bf16.msra.mxu0 %v3544_v35 }
 0x7b8   : > { %3406 = vmatprep.subr.bf16.mxu0 %v3635_v1 }
 0x7ba   : > { %3383 = vmatmul.mubr.bf16.vlgmr.msra.gmra.mxu0 %v3808_v19 }
 0x7bb   : > { %3408 = vmatprep.mubr.msk.bf16.mxu0 %vm3636_vm0, %v3635_v1 }
 0x7c1   : > { %v1811_v7 = vpop.f32.mrf.mxu0 }
 0x7c2   : > { %v1812_v9 = vadd.f32 %v2858_v6, %v1811_v7 }
 0x7c3   : > { %v3324_v8 = vpop.f32.mrf.mxu0 }
 0x7c5   : > { %v1814_v10 = vpop.f32.mrf.mxu0 }
 0x7c6   : > { %v1815_v11 = vadd.f32 %v2858_v6, %v1814_v10 }
 0x7c7   : > { %v3325_v12 = vpop.f32.mrf.mxu0 }
 0x7c8   : > { %v1892_v13 = vpack.c.bf16 %v1815_v11, %v1812_v9 }
 0x7ca   : > { %3333 = vmatpush3.bf16.msra.mxu1 %v1892_v13  ;;  %v3550_v13 = vld [vmem:[%s4354_s4 + $0xe8] sm:$0xff]  }
 0x7cb   : > { %3338 = vmatprep.subr.bf16.mxu1 %v3635_v1 }
 0x86c   : > { %v1862_v49 = vpop.f32.mrf.mxu1 }
 0x86d   : > { %v1863_v50 = vadd.f32 %v1862_v49, %v3865_v53  ;;  %v2919_v49 = vld [vmem:[%s4357_s7 + $0x3] ss:$0 sm:$0xff] }
 0x86e   : > { %v3330_v51 = vpop.f32.mrf.mxu1 }
 0x86f   : > { %v1869_v52 = vsel %vm823_vm7, %v1863_v50, -inf }
 0x870   : > { %1870 = vmax.xlane.f32.xlu0 %v1869_v52  ;;  %v1865_v54 = vpop.f32.mrf.mxu1 }
 0x871   : > { %v1866_v55 = vadd.f32 %v1865_v54, %v3868_v57 }
 0x872   : > { %v3331_v56 = vpop.f32.mrf.mxu1 }
 0x873   : > { %v1872_v58 = vsel %vm823_vm7, %v1866_v55, -inf }
 0x874   : > { %1873 = vmax.xlane.f32.xlu1 %v1872_v58 }
 0x8f9   : > { %v1871_v59 = vpop.xlane.xlu0 %1870 }
 0x8fa   : > { %v1875_v60 = vsub.f32 %v1863_v50, %v1871_v59  ;;  %v2222_v50 = vpop.f32.mrf.mxu0 }
 0x8fb   : > { %v2223_v52 = vadd.f32 %v2919_v49, %v2222_v50 }
 0x8fc   : > { %v1877_v61 = vmul.f32 1.442695, %v1875_v60  ;;  %v3384_v51 = vpop.f32.mrf.mxu0  ;;  %v1470_v60 = vadd.f32 %v4013_v24, %v4112_v27 }
 0x8fd   : > { %v1874_v62 = vpop.xlane.xlu1 %1873 }
 0x8fe   : > { %3574 = vpow2.f32 %v1877_v61  ;;  %v1876_v63 = vsub.f32 %v1866_v55, %v1874_v62  ;;  %v2225_v54 = vpop.f32.mrf.mxu0 }
 0x8ff   : > { %v2226_v55 = vadd.f32 %v2919_v49, %v2225_v54 }
 0x900   : > { %v1879_v0 = vmul.f32 1.442695, %v1876_v63  ;;  %v3385_v56 = vpop.f32.mrf.mxu0 }
 0x901   : > { %v2346_v58 = vpack.c.bf16 %v2226_v55, %v2223_v52  ;;  %v3556_v55 = vld [vmem:[%s4355_s5 + $0x38] sm:$0xff]   ;;  %v3557_v56 = vld [vmem:[%s4355_s5 + $0x30] sm:$0xff]  }
 0x902   : > { %3576 = vpow2.f32 %v1879_v0  ;;  %v1473_v0 = vadd.f32 %v4015_v26, %v4114_v29  ;;  %v3548_v26 = vld [vmem:[%s4354_s4 + $0xf8] sm:$0xff]   ;;  %v3549_v29 = vld [vmem:[%s4354_s4 + $0xf0] sm:$0xff]  }
 0x903   : > { %v2351_v59 = vsel %vm775_vm1, %v2346_v58, 0 }
 0x904   : > { %3407 = vmatpush3.bf16.xpose.msra.mxu0 %v2351_v59 }
 0x905   : > { %3412 = vmatprep.subr.bf16.mxu0 %v3635_v1 }
 0x90b   : > { %v3575_v2 = vpop.eup %3574 }
 0x90c   : > { %v1881_v3 = vsel %vm823_vm7, %v3575_v2, 0.0 }
 0x90d   : > { %1882 = vadd.xlane.f32.xlu0 %v1881_v3 }
 0x90f   : > { %v3577_v4 = vpop.eup %3576 }
 0x910   : > { %v1884_v5 = vsel %vm823_vm7, %v3577_v4, 0.0 }
 0x911   : > { %1885 = vadd.xlane.f32.xlu1 %v1884_v5  ;;  %v2893_v5 = vld [vmem:[%s4356_s6 + $0x3] ss:$0 sm:$0xff] }
 0x996   : > { %v1883_v16 = vpop.xlane.xlu0 %1882 }
 0x997   : > { %3578 = vrcp.f32 %v1883_v16  ;;  %v3553_v16 = vld [vmem:[%s4354_s4 + $0xd0] sm:$0xff]  }
 0x99a   : > { %v1886_v17 = vpop.xlane.xlu1 %1885 }
 0x99b   : > { %3580 = vrcp.f32 %v1886_v17  ;;  %v3554_v17 = vld [vmem:[%s4354_s4 + $0xc8] sm:$0xff]  }
 0x9a4   : > { %v3579_v18 = vpop.eup %3578 }
 0x9a5   : > { %v1889_v21 = vmul.f32 %v3579_v18, %v3575_v2  ;;  %v3555_v18 = vld [vmem:[%s4354_s4 + $0xc0] sm:$0xff]  }
 0x9a8   : > { %v3581_v20 = vpop.eup %3580 }
 0x9a9   : > { %v1890_v22 = vmul.f32 %v3581_v20, %v3577_v4 }
 0x9ab   : > { %v1891_v25 = vpack.c.bf16 %v1890_v22, %v1889_v21 }
 0x9ad   : > { %3335 = vmatmul.mubr.msk.bf16.vlgmr.msra.gmra.mxu1 %vm823_vm7, %v1891_v25 }
 0x9ae   : > { %3339 = vmatpush3.bf16.msra.mxu1 %v3531_v23  ;;  %3342 = vmatprep.mubr.msk.bf16.mxu1 %vm3636_vm0, %v3635_v1 }
 0x9af   : > { %3340 = vmatprep.subr.bf16.mxu1 %v3635_v1 }
 0x9b2   : > { %3341 = vmatpush3.bf16.msra.mxu1 %v3533_v28 }
 0x9b3   : > { %3346 = vmatprep.subr.bf16.mxu1 %v3635_v1 }
 0xa6d   : > { %v1930_v36 = vpop.f32.mrf.mxu1 }
 0xa6f   : > { %v3336_v37 = vpop.f32.mrf.mxu1 }
 0xa71   : > { %v1933_v38 = vpop.f32.mrf.mxu1 }
 0xa72   : > { %v1937_v40 = vpack.c.bf16 %v1933_v38, %v1930_v36 }
 0xa73   : > { %v3337_v41 = vpop.f32.mrf.mxu1 }
 0xa74   : > { %3343 = vmatmul.mubr.msk.bf16.vlgmr.msra.gmra.mxu1 %vm775_vm1, %v1937_v40 }
 0xa75   : > { %3347 = vmatpush3.bf16.msra.mxu1 %v3535_v39  ;;  %3362 = vmatprep.mubr.msk.bf16.mxu1 %vm3636_vm0, %v3635_v1 }
 0xa76   : > { %3348 = vmatprep.subr.bf16.mxu1 %v3635_v1 }
 0xa79   : > { %3349 = vmatpush3.bf16.msra.mxu1 %v3537_v42 }
 0xa7a   : > { %3350 = vmatprep.subr.bf16.mxu1 %v3635_v1 }
 0xa7d   : > { %3351 = vmatpush3.bf16.msra.mxu1 %v3539_v43 }
 0xa7e   : > { %3352 = vmatprep.subr.bf16.mxu1 %v3635_v1 }
 0xa81   : > { %3353 = vmatpush3.bf16.msra.mxu1 %v3541_v44 }
 0xa82   : > { %3354 = vmatprep.subr.bf16.mxu1 %v3635_v1 }
 0xa85   : > { %3355 = vmatpush3.bf16.msra.mxu1 %v3543_v45 }
 0xa86   : > { %3356 = vmatprep.subr.bf16.mxu1 %v3635_v1 }
 0xa89   : > { %3357 = vmatpush3.bf16.msra.mxu1 %v3545_v46 }
 0xa8a   : > { %3358 = vmatprep.subr.bf16.mxu1 %v3635_v1 }
 0xa8d   : > { %3359 = vmatpush3.bf16.msra.mxu1 %v3546_v47 }
 0xa8e   : > { %3360 = vmatprep.subr.bf16.mxu1 %v3635_v1 }
 0xa91   : > { %3361 = vmatpush3.bf16.msra.mxu1 %v3547_v48 }
 0xa92   : > { %3386 = vmatprep.subr.bf16.mxu1 %v3635_v1 }
 0xa94   : > { %3363 = vmatmul.mubr.bf16.vlgmr.msra.gmra.mxu1 %v3808_v19 }
 0xa95   : > { %3402 = vmatprep.mubr.msk.bf16.mxu1 %vm3636_vm0, %v3635_v1  ;;  %3387 = vmatpush3.bf16.msra.mxu1 %v3548_v26 }
 0xa96   : > { %3388 = vmatprep.subr.bf16.mxu1 %v3635_v1 }
 0xa99   : > { %3389 = vmatpush3.bf16.msra.mxu1 %v3549_v29 }
 0xa9a   : > { %3390 = vmatprep.subr.bf16.mxu1 %v3635_v1 }
 0xa9d   : > { %3391 = vmatpush3.bf16.msra.mxu1 %v3550_v13 }
 0xa9e   : > { %3392 = vmatprep.subr.bf16.mxu1 %v3635_v1 }
 0xaa1   : > { %3393 = vmatpush3.bf16.msra.mxu1 %v3551_v14 }
 0xaa2   : > { %3394 = vmatprep.subr.bf16.mxu1 %v3635_v1 }
 0xaa5   : > { %3395 = vmatpush3.bf16.msra.mxu1 %v3552_v15 }
 0xaa6   : > { %3396 = vmatprep.subr.bf16.mxu1 %v3635_v1 }
 0xaa9   : > { %3397 = vmatpush3.bf16.msra.mxu1 %v3553_v16 }
 0xaaa   : > { %3398 = vmatprep.subr.bf16.mxu1 %v3635_v1 }
 0xaad   : > { %3399 = vmatpush3.bf16.msra.mxu1 %v3554_v17 }
 0xaae   : > { %3400 = vmatprep.subr.bf16.mxu1 %v3635_v1 }
 0xab1   : > { %3401 = vmatpush3.bf16.msra.mxu1 %v3555_v18 }
 0xab4   : > { %3403 = vmatmul.mubr.bf16.vlgmr.msra.gmra.mxu1 %v3808_v19 }
 0xb34   : > { %v1992_v61 = vpop.f32.mrf.mxu1 }
 0xb35   : > { %v4258_v62 = vadd.f32 %v1992_v61, %v1470_v60 }
 0xb36   : > { %v3344_v63 = vpop.f32.mrf.mxu1 }
 0xb38   : > { %v1995_v2 = vpop.f32.mrf.mxu1 }
 0xb39   : > { %v4262_v3 = vadd.f32 %v1995_v2, %v1473_v0  ;;  %v2963_v2 = vld [vmem:[%s4359_s9] ss:$0 sm:$0xff] }
 0xb3a   : > { %v3345_v4 = vpop.f32.mrf.mxu1 }
 0xb54   : > { %v2108_v6 = vpop.f32.mrf.mxu1 }
 0xb55   : > { %v2109_v8 = vadd.f32 %v2893_v5, %v2108_v6 }
 0xb56   : > { %v3364_v7 = vpop.f32.mrf.mxu1 }
 0xb57   : > { %v2343_v10 = vmul.f32 0.17677669, %v2109_v8  ;;  %v3594_v8 = vld [vmem:[%s3794_s14] sm:$0xff] }
 0xb58   : > { %v2111_v9 = vpop.f32.mrf.mxu1 }
 0xb59   : > { %v2112_v24 = vadd.f32 %v2893_v5, %v2111_v9 }
 0xb5a   : > { %v3365_v27 = vpop.f32.mrf.mxu1 }
 0xb5b   : > { %v2344_v11 = vmul.f32 0.17677669, %v2112_v24 }
 0xb5d   : > { %v2345_v12 = vpack.c.bf16 %v2344_v11, %v2343_v10  ;;  %v3595_v10 = vld [vmem:[%s3794_s14 + $0x8] sm:$0xff] }
 0xb5f   : > { %3409 = vmatmul.mubr.msk.bf16.vlgmr.msra.gmra.mxu0 %vm775_vm1, %v2345_v12 }
 0xb60   : > { %3414 = vmatprep.mubr.msk.bf16.mxu0 %vm3636_vm0, %v3635_v1 }
 0xb74   : > { %v2336_v40 = vpop.f32.mrf.mxu1 }
 0xb76   : > { %v3404_v41 = vpop.f32.mrf.mxu1 }
 0xb78   : > { %v2339_v43 = vpop.f32.mrf.mxu1 }
 0xb7a   : > { %v3405_v45 = vpop.f32.mrf.mxu1 }
 0xc1f   : > { %v2387_v20 = vpop.f32.mrf.mxu0 }
 0xc20   : > { %v2388_v21 = vadd.f32 %v2387_v20, %v3865_v53 }
 0xc21   : > { %v3410_v22 = vpop.f32.mrf.mxu0 }
 0xc22   : > { %v2394_v23 = vsel %vm823_vm7, %v2388_v21, -inf }
 0xc23   : > { %2395 = vmax.xlane.f32.xlu0 %v2394_v23  ;;  %v2390_v25 = vpop.f32.mrf.mxu0 }
 0xc24   : > { %v2391_v28 = vadd.f32 %v2390_v25, %v3868_v57  ;;  %v2945_v57 = vld [vmem:[%s4358_s8 + $0x3] ss:$0 sm:$0xff]  ;;  %v2964_v25 = vld [vmem:[%s4360_s10] ss:$0 sm:$0xff] }
 0xc25   : > { %v3411_v30 = vpop.f32.mrf.mxu0  ;;  %v2337_v42 = vadd.f32 %v2945_v57, %v2336_v40  ;;  %v2340_v44 = vadd.f32 %v2945_v57, %v2339_v43 }
 0xc26   : > { %v2397_v31 = vsel %vm823_vm7, %v2391_v28, -inf  ;;  %v2965_v30 = vld [vmem:[%s4361_s11] ss:$0 sm:$0xff] }
 0xc27   : > { %2398 = vmax.xlane.f32.xlu1 %v2397_v31  ;;  %v2417_v46 = vpack.c.bf16 %v2340_v44, %v2337_v42 }
 0xc29   : > { %3413 = vmatpush3.bf16.msra.mxu0 %v2417_v46 }
 0xc2a   : > { %3418 = vmatprep.subr.bf16.mxu0 %v3635_v1 }
 0xcac   : > { %v2396_v32 = vpop.xlane.xlu0 %2395 }
 0xcad   : > { %v2400_v33 = vsub.f32 %v2388_v21, %v2396_v32 }
 0xcaf   : > { %v2402_v34 = vmul.f32 1.442695, %v2400_v33 }
 0xcb0   : > { %v2399_v35 = vpop.xlane.xlu1 %2398 }
 0xcb1   : > { %3582 = vpow2.f32 %v2402_v34  ;;  %v2401_v19 = vsub.f32 %v2391_v28, %v2399_v35 }
 0xcb3   : > { %v2404_v36 = vmul.f32 1.442695, %v2401_v19 }
 0xcb5   : > { %3584 = vpow2.f32 %v2404_v36 }
 0xcbe   : > { %v3583_v53 = vpop.eup %3582 }
 0xcbf   : > { %v2406_v37 = vsel %vm823_vm7, %v3583_v53, 0.0 }
 0xcc0   : > { %2407 = vadd.xlane.f32.xlu0 %v2406_v37 }
 0xcc2   : > { %v3585_v38 = vpop.eup %3584 }
 0xcc3   : > { %v2409_v39 = vsel %vm823_vm7, %v3585_v38, 0.0 }
 0xcc4   : > { %2410 = vadd.xlane.f32.xlu1 %v2409_v39 }
 0xd49   : > { %v2408_v47 = vpop.xlane.xlu0 %2407 }
 0xd4a   : > { %3586 = vrcp.f32 %v2408_v47 }
 0xd4d   : > { %v2411_v48 = vpop.xlane.xlu1 %2410 }
 0xd4e   : > { %3588 = vrcp.f32 %v2411_v48 }
 0xd57   : > { %v3587_v49 = vpop.eup %3586 }
 0xd58   : > { %v2414_v51 = vmul.f32 %v3587_v49, %v3583_v53 }
 0xd5b   : > { %v3589_v50 = vpop.eup %3588 }
 0xd5c   : > { %v2415_v52 = vmul.f32 %v3589_v50, %v3585_v38 }
 0xd5e   : > { %v2416_v54 = vpack.c.bf16 %v2415_v52, %v2414_v51 }
 0xd60   : > { %3415 = vmatmul.mubr.msk.bf16.vlgmr.msra.gmra.mxu0 %vm823_vm7, %v2416_v54 }
 0xd61   : > { %3422 = vmatprep.mubr.msk.bf16.mxu0 %vm3636_vm0, %v3635_v1  ;;  %3419 = vmatpush3.bf16.msra.mxu0 %v3556_v55 }
 0xd62   : > { %3420 = vmatprep.subr.bf16.mxu0 %v3635_v1 }
 0xd65   : > { %3421 = vmatpush3.bf16.msra.mxu0 %v3557_v56 }
 0xe20   : > { %v2455_v58 = vpop.f32.mrf.mxu0 }
 0xe22   : > { %v3416_v59 = vpop.f32.mrf.mxu0 }
 0xe24   : > { %v2458_v60 = vpop.f32.mrf.mxu0 }
 0xe25   : > { %v2462_v61 = vpack.c.bf16 %v2458_v60, %v2455_v58 }
 0xe26   : > { %v3417_v63 = vpop.f32.mrf.mxu0 }
 0xe27   : > { %3423 = vmatmul.mubr.msk.bf16.vlgmr.msra.gmra.mxu0 %vm775_vm1, %v2462_v61 }
 0xee7   : > { %v2517_v0 = vpop.f32.mrf.mxu0 }
 0xee8   : > { %v2524_v1 = vadd.f32 %v2517_v0, %v4258_v62 }
 0xee9   : > { %v3424_v4 = vpop.f32.mrf.mxu0 }
 0xeea   : > { %v2533_v5 = vadd.f32 %v2963_v2, %v2524_v1 }
 0xeeb   : > { %v2520_v6 = vpop.f32.mrf.mxu0 }
 0xeec   : > { %v2525_v7 = vadd.f32 %v2520_v6, %v4262_v3  ;;  %v2535_v9 = vadd.f32 %v3594_v8, %v2533_v5 }
 0xeed   : > { %v3425_v24 = vpop.f32.mrf.mxu0 }
 0xeee   : > { %v2534_v27 = vadd.f32 %v2963_v2, %v2525_v7  ;;  %2537 = vadd.xlane.f32.xlu0 %v2535_v9 }
 0xef0   : > { %v2536_v11 = vadd.f32 %v3595_v10, %v2534_v27 }
 0xef2   : > { %2539 = vadd.xlane.f32.xlu1 %v2536_v11 }
 0xf77   : > { %v2538_v12 = vpop.xlane.xlu0 %2537 }
 0xf78   : > { %v2542_v26 = vmul.f32 0.0078125, %v2538_v12 }
 0xf7a   : > { %v2544_v29 = vsub.f32 %v2535_v9, %v2542_v26 }
 0xf7b   : > { %v2540_v13 = vpop.xlane.xlu1 %2539 }
 0xf7c   : > { %v2543_v14 = vmul.f32 0.0078125, %v2540_v13  ;;  %v2546_v15 = vmul.f32 %v2544_v29, %v2544_v29 }
 0xf7e   : > { %v2545_v62 = vsub.f32 %v2536_v11, %v2543_v14  ;;  %2548 = vadd.xlane.f32.xlu0 %v2546_v15 }
 0xf80   : > { %v2547_v16 = vmul.f32 %v2545_v62, %v2545_v62 }
 0xf82   : > { %2550 = vadd.xlane.f32.xlu1 %v2547_v16 }
0x1007   : > { %v2549_v3 = vpop.xlane.xlu0 %2548 }
0x1008   : > { %v2552_v17 = vmul.f32 0.0078125, %v2549_v3 }
0x100a   : > { %v2554_v18 = vadd.f32 1e-05, %v2552_v17 }
0x100b   : > { %v2551_v20 = vpop.xlane.xlu1 %2550 }
0x100c   : > { %3590 = vrsqrt.f32 %v2554_v18  ;;  %v2553_v21 = vmul.f32 0.0078125, %v2551_v20 }
0x100e   : > { %v2555_v22 = vadd.f32 1e-05, %v2553_v21 }
0x1010   : > { %3592 = vrsqrt.f32 %v2555_v22 }
0x1019   : > { %v3591_v23 = vpop.eup %3590 }
0x101a   : > { %v2558_v28 = vmul.f32 %v3591_v23, %v2544_v29 }
0x101c   : > { %v2567_v31 = vmul.f32 %v2964_v25, %v2558_v28 }
0x101d   : > { %v3593_v32 = vpop.eup %3592 }
0x101e   : > { %v2576_v33 = vadd.f32 %v2965_v30, %v2567_v31  ;;  %v2559_v34 = vmul.f32 %v3593_v32, %v2545_v62 }
0x1020   : > { %2578 = vst [vmem:[%s415_s21] sm:$0xff] %v2576_v33  ;;  %v2568_v35 = vmul.f32 %v2964_v25, %v2559_v34 }
0x1022   : > { %v2577_v19 = vadd.f32 %v2965_v30, %v2568_v35 }
0x1024   : > { %2579 = vst [vmem:[%s415_s21 + $0x8] sm:$0xff] %v2577_v19 }
0x1025 PF: > { %s28_s28 = sadd.s32 1, %s3632_s28   ;;  %s4363_s26 = smov %s3628_s27 }
0x1026   : > { %p25_p10 = scmp.ge.s32.totalorder %s28_s28, 4   ;;  %s4364_s27 = smov %s4366_s0 }
0x1028   :  { %27 = sbr.rel (!%p25_p10) target bundleno = 17 (0x11), region = 115 }

</bundles_post_ra>
